<compile_context>
chip_gen: v6e
topology: v6e:2x2x1
jax: 0.10.0
libtpu: 0.0.40
codegen_flags: <defaults>
</compile_context>

<pallas_src>
import functools
import math

import jax
import jax.numpy as jnp
from jax.experimental import pallas as pl
from jax.experimental.pallas import tpu as pltpu


# ----------------------------- config ---------------------------------------
class Cfg:
    hidden_ndim = 32
    emb_hidden_ndim = 16
    emb_nheads = 2
    emb_nlayers = 1
    emb_dropout = 0.0      # eval mode -> identity
    nheads = 4
    nlayers = 2
    dropout = 0.0          # eval mode -> identity
    n_clusters = 4
    latent_ndim = 8
    seq_len = 8
    patch_size = 8
    img_size = 16
    img_channels = 3
    tau = 0.5              # unused in forward


_BLOCK_KEYS = ("wqkv", "bqkv", "wo", "bo", "ln1g", "ln1b",
               "wf1", "bf1", "wf2", "bf2", "ln2g", "ln2b")


# ----------------------------- in-kernel math helpers -------------------------
def _silu(x):
    return x * jax.nn.sigmoid(x)


def _ln(x, g, b):
    mu = jnp.mean(x, axis=-1, keepdims=True)
    xc = x - mu
    var = jnp.mean(xc * xc, axis=-1, keepdims=True)
    return xc * jax.lax.rsqrt(var + 1e-5) * g + b


def _ln_joint(x, g, b):
    # LayerNorm over BOTH axes (PyTorch LayerNorm((seq_len, latent_ndim))).
    mu = jnp.mean(jnp.mean(x, axis=-1, keepdims=True), axis=-2, keepdims=True)
    xc = x - mu
    var = jnp.mean(jnp.mean(xc * xc, axis=-1, keepdims=True), axis=-2, keepdims=True)
    return xc * jax.lax.rsqrt(var + 1e-5) * g + b


# ----------------------------- fused kernel ----------------------------------
def _q_fused_kernel(xp_ref, xs_ref, mb_ref, eps_ref, w_ref, zml_ref, y_ref, *,
                    idx, bb, cfg):
    T = cfg.seq_len
    S = T + 1
    E = cfg.emb_hidden_ndim
    D = cfg.hidden_ndim
    L = cfg.latent_ndim

    def W(name):
        # static, sublane-aligned slice of the packed weight slab (load near use)
        r, h, cw = idx[name]
        return w_ref[r:r + h, :cw]

    def block(x, bias2d, pfx, d, nh):
        # TODO(synk): TransformerEncoderBlock source not given; post-norm MHA + FF block.
        dh = d // nh
        scale = 1.0 / math.sqrt(dh)
        qkv = jnp.dot(x, W(pfx + "wqkv"), preferred_element_type=jnp.float32) + W(pfx + "bqkv")
        wo = W(pfx + "wo")
        o = None
        for h in range(nh):          # static unroll; output concat replaced by W_o row-slice accumulation
            qh = qkv[:, h * dh:(h + 1) * dh]
            kh = qkv[:, d + h * dh:d + (h + 1) * dh]
            vh = qkv[:, 2 * d + h * dh:2 * d + (h + 1) * dh]
            s = jax.lax.dot_general(qh, kh, (((1,), (1,)), ((), ())),
                                    preferred_element_type=jnp.float32) * scale + bias2d
            m = jnp.max(s, axis=-1, keepdims=True)
            p = jnp.exp(s - m)
            p = p / jnp.sum(p, axis=-1, keepdims=True)      # exact softmax
            oh = jnp.dot(p, vh, preferred_element_type=jnp.float32)
            ph = jnp.dot(oh, wo[h * dh:(h + 1) * dh, :],
                         preferred_element_type=jnp.float32)
            o = ph if o is None else o + ph
        o = o + W(pfx + "bo")
        h1 = _ln(x + o, W(pfx + "ln1g"), W(pfx + "ln1b"))
        # TODO(synk): MLP source not given; Linear -> SiLU -> Linear.
        f = _silu(jnp.dot(h1, W(pfx + "wf1"), preferred_element_type=jnp.float32) + W(pfx + "bf1"))
        f = jnp.dot(f, W(pfx + "wf2"), preferred_element_type=jnp.float32) + W(pfx + "bf2")
        return _ln(h1 + f, W(pfx + "ln2g"), W(pfx + "ln2b"))

    for i in range(bb):              # static unroll over the batch block
        xp = xp_ref[i]               # (T*npatch, patch_dim)
        xs = xs_ref[i]               # (T, 4)
        mb = mb_ref[i]               # (1, S) additive key-padding bias (tokens..., cls)
        eps = eps_ref[i]             # (T, L)

        # ---- IndividualEmbedding --------------------------------------------
        # TODO(synk): IndividualEmbedding source not given; patch linear ->
        # transformer over patches (within-frame attention) -> mean pool,
        # spatial MLP, fusion MLP.
        h = jnp.dot(xp, W("patch_w"), preferred_element_type=jnp.float32) + W("patch_b")
        for l in range(cfg.emb_nlayers):
            h = block(h, W("patch_bias"), f"emb{l}_", E, cfg.emb_nheads)
        hv = jnp.dot(W("pool"), h, preferred_element_type=jnp.float32)            # (T, E)
        hs = _silu(jnp.dot(xs, W("spc_w1"), preferred_element_type=jnp.float32) + W("spc_b1"))
        hs = jnp.dot(hs, W("spc_w2"), preferred_element_type=jnp.float32) + W("spc_b2")  # (T, E)
        f = _silu(jnp.dot(hv, W("fuse_w1a"), preferred_element_type=jnp.float32)
                  + jnp.dot(hs, W("fuse_w1b"), preferred_element_type=jnp.float32)
                  + W("fuse_b1"))
        emb = jnp.dot(f, W("fuse_w2"), preferred_element_type=jnp.float32) + W("fuse_b2")  # (T, D)

        # ---- cls appended at END + rotary (x*cos + (x@R)*sin, MXU) ----------
        x = jnp.concatenate([emb, W("cls")], axis=0)                               # (S, D)
        x = x * W("rot_cos") + jnp.dot(x, W("rot_R"),
                                       preferred_element_type=jnp.float32) * W("rot_sin")

        # ---- main encoder stack (broadcast of key mask hoisted) -------------
        bias2d = jnp.broadcast_to(mb, (S, S))
        for l in range(cfg.nlayers):
            x = block(x, bias2d, f"enc{l}_", D, cfg.nheads)

        tok = x[0:T, :]              # aligned view (cls sits at the end)
        cl = x[T:T + 1, :]

        # ---- q(y|x): MLP -> LayerNorm -> Linear -> softmax -------------------
        hq = _silu(jnp.dot(cl, W("q_w1"), preferred_element_type=jnp.float32) + W("q_b1"))
        hq = jnp.dot(hq, W("q_w2"), preferred_element_type=jnp.float32) + W("q_b2")
        hq = _ln(hq, W("q_lng"), W("q_lnb"))
        logits = jnp.dot(hq, W("q_ow"), preferred_element_type=jnp.float32) + W("q_ob")
        m = jnp.max(logits, axis=-1, keepdims=True)
        e = jnp.exp(logits - m)
        y_ref[i] = e / jnp.sum(e, axis=-1, keepdims=True)

        # ---- fused mu/logvar MLPs (concat 1st layer, block-diag 2nd) + joint LN
        h1 = _silu(jnp.dot(tok, W("ml_w1"), preferred_element_type=jnp.float32) + W("ml_b1"))
        h2 = jnp.dot(h1, W("ml_w2"), preferred_element_type=jnp.float32) + W("ml_b2")
        mu = _ln_joint(h2[:, :L], W("mu_lng"), W("mu_lnb"))
        lv = _ln_joint(h2[:, L:2 * L], W("lv_lng"), W("lv_lnb"))
        z = mu + jnp.exp(lv * 0.5) * eps
        zml_ref[i] = jnp.concatenate([z, mu, lv], axis=-1)     # lane-dense (T, 3L) store


# ----------------------------- wrapper ----------------------------------------
def q_forward(cfg, idx, bb, wslab, x_vis, x_spc, mask, eps):
    B, T, Cimg, Himg, Wimg = x_vis.shape
    ps = cfg.patch_size
    nph, npw = Himg // ps, Wimg // ps
    npatch = nph * npw
    TP = T * npatch
    pdim = Cimg * ps * ps
    L, C = cfg.latent_ndim, cfg.n_clusters
    S = T + 1
    assert B % bb == 0

    # host-side input prep (pure layout): patchify, flatten spatial, mask -> bias
    xp = x_vis.reshape(B, T, Cimg, nph, ps, npw, ps)
    xp = xp.transpose(0, 1, 3, 5, 2, 4, 6).reshape(B, TP, pdim)
    xs = x_spc.reshape(B, T, -1)
    mb = jnp.concatenate([jnp.where(mask, -1e9, 0.0).astype(jnp.float32),
                          jnp.zeros((B, 1), jnp.float32)], axis=1)[:, None, :]   # (B,1,S)

    kern = functools.partial(_q_fused_kernel, idx=idx, bb=bb, cfg=cfg)
    zml, y = pl.pallas_call(
        kern,
        out_shape=(jax.ShapeDtypeStruct((B, T, 3 * L), jnp.float32),
                   jax.ShapeDtypeStruct((B, 1, C), jnp.float32)),
        grid=(B // bb,),
        in_specs=[pl.BlockSpec((bb, TP, pdim), lambda b: (b, 0, 0)),
                  pl.BlockSpec((bb, T, xs.shape[-1]), lambda b: (b, 0, 0)),
                  pl.BlockSpec((bb, 1, S), lambda b: (b, 0, 0)),
                  pl.BlockSpec((bb, T, L), lambda b: (b, 0, 0)),
                  pl.BlockSpec(wslab.shape, lambda b: (0, 0))],
        out_specs=(pl.BlockSpec((bb, T, 3 * L), lambda b: (b, 0, 0)),
                   pl.BlockSpec((bb, 1, C), lambda b: (b, 0, 0))),
        compiler_params=pltpu.CompilerParams(dimension_semantics=("parallel",)),
    )(xp, xs, mb, eps, wslab)

    return zml[..., :L], zml[..., L:2 * L], zml[..., 2 * L:], y[:, 0, :]


def pick_batch_block(B):
    """Whole batch in one grid step on 1-TC chips (v5e/v6e); 2-way split on v7x."""
    kind = ""
    try:
        kind = jax.devices()[0].device_kind.lower()
    except Exception:
        pass
    bb = max(1, B // 2) if ("v7" in kind or "7x" in kind) else B
    while B % bb:
        bb -= 1
    return max(bb, 1)


# ----------------------------- parameters & packing ---------------------------
def init_params(cfg, key):
    D, E, L = cfg.hidden_ndim, cfg.emb_hidden_ndim, cfg.latent_ndim
    T, C = cfg.seq_len, cfg.n_clusters
    pdim = cfg.img_channels * cfg.patch_size * cfg.patch_size
    keys = jax.random.split(key, 6)

    def dense(k, fi, fo):
        return jax.random.normal(k, (fi, fo), jnp.float32) / math.sqrt(fi)

    def block(k, d):
        ks = jax.random.split(k, 6)
        return {
            "wqkv": jnp.concatenate([dense(ks[0], d, d), dense(ks[1], d, d),
                                     dense(ks[2], d, d)], axis=1),
            "bqkv": jnp.zeros((1, 3 * d), jnp.float32),
            "wo": dense(ks[3], d, d), "bo": jnp.zeros((1, d), jnp.float32),
            "ln1g": jnp.ones((1, d), jnp.float32), "ln1b": jnp.zeros((1, d), jnp.float32),
            "wf1": dense(ks[4], d, d), "bf1": jnp.zeros((1, d), jnp.float32),
            "wf2": dense(ks[5], d, d), "bf2": jnp.zeros((1, d), jnp.float32),
            "ln2g": jnp.ones((1, d), jnp.float32), "ln2b": jnp.zeros((1, d), jnp.float32),
        }

    ke = jax.random.split(keys[1], 6)
    kq = jax.random.split(keys[3], 3)
    km = jax.random.split(keys[4], 2)
    kl = jax.random.split(keys[5], 2)

    w2 = jnp.zeros((2 * L, 2 * L), jnp.float32)
    w2 = w2.at[:L, :L].set(dense(km[1], L, L)).at[L:, L:].set(dense(kl[1], L, L))

    return {
        "cls_token": jax.random.normal(keys[0], (1, 1, D), jnp.float32),
        "emb": {
            "patch_w": dense(ke[0], pdim, E), "patch_b": jnp.zeros((1, E), jnp.float32),
            "blocks": [block(k, E) for k in jax.random.split(ke[1], cfg.emb_nlayers)],
            "spc_w1": dense(ke[2], 4, E), "spc_b1": jnp.zeros((1, E), jnp.float32),
            "spc_w2": dense(ke[3], E, E), "spc_b2": jnp.zeros((1, E), jnp.float32),
            "fuse_w1": dense(ke[4], 2 * E, D), "fuse_b1": jnp.zeros((1, D), jnp.float32),
            "fuse_w2": dense(ke[5], D, D), "fuse_b2": jnp.zeros((1, D), jnp.float32),
        },
        "encoders": [block(k, D) for k in jax.random.split(keys[2], cfg.nlayers)],
        "qy_x": {
            "w1": dense(kq[0], D, D), "b1": jnp.zeros((1, D), jnp.float32),
            "w2": dense(kq[1], D, D), "b2": jnp.zeros((1, D), jnp.float32),
            "lng": jnp.ones((1, D), jnp.float32), "lnb": jnp.zeros((1, D), jnp.float32),
            "ow": dense(kq[2], D, C), "ob": jnp.zeros((1, C), jnp.float32),
        },
        "mu_logvar": {
            "w1": jnp.concatenate([dense(km[0], D, L), dense(kl[0], D, L)], axis=1),
            "b1": jnp.zeros((1, 2 * L), jnp.float32),
            "w2": w2,
            "b2": jnp.zeros((1, 2 * L), jnp.float32),
            "mu_lng": jnp.ones((T, L), jnp.float32), "mu_lnb": jnp.zeros((T, L), jnp.float32),
            "lv_lng": jnp.ones((T, L), jnp.float32), "lv_lnb": jnp.zeros((T, L), jnp.float32),
        },
    }


def pack_params(cfg, params):
    """Pack all weights + grid-invariant constants into one (rows, 128) slab."""
    T, D, E, L = cfg.seq_len, cfg.hidden_ndim, cfg.emb_hidden_ndim, cfg.latent_ndim
    npatch = (cfg.img_size // cfg.patch_size) ** 2
    TP = T * npatch
    S = T + 1

    entries = []

    def add(name, a):
        entries.append((name, jnp.asarray(a, jnp.float32)))

    emb = params["emb"]
    add("patch_w", emb["patch_w"]); add("patch_b", emb["patch_b"])
    for l, blk in enumerate(emb["blocks"]):
        for k in _BLOCK_KEYS:
            add(f"emb{l}_" + k, blk[k])
    add("spc_w1", emb["spc_w1"]); add("spc_b1", emb["spc_b1"])
    add("spc_w2", emb["spc_w2"]); add("spc_b2", emb["spc_b2"])
    add("fuse_w1a", emb["fuse_w1"][:E]); add("fuse_w1b", emb["fuse_w1"][E:])
    add("fuse_b1", emb["fuse_b1"]); add("fuse_w2", emb["fuse_w2"]); add("fuse_b2", emb["fuse_b2"])
    for l, blk in enumerate(params["encoders"]):
        for k in _BLOCK_KEYS:
            add(f"enc{l}_" + k, blk[k])
    qp = params["qy_x"]
    add("q_w1", qp["w1"]); add("q_b1", qp["b1"]); add("q_w2", qp["w2"]); add("q_b2", qp["b2"])
    add("q_lng", qp["lng"]); add("q_lnb", qp["lnb"]); add("q_ow", qp["ow"]); add("q_ob", qp["ob"])
    mp = params["mu_logvar"]
    add("ml_w1", mp["w1"]); add("ml_b1", mp["b1"]); add("ml_w2", mp["w2"]); add("ml_b2", mp["b2"])
    add("mu_lng", mp["mu_lng"]); add("mu_lnb", mp["mu_lnb"])
    add("lv_lng", mp["lv_lng"]); add("lv_lnb", mp["lv_lnb"])
    add("cls", params["cls_token"].reshape(1, D))

    # grid-invariant constants (hoisted out of the kernel)
    rf = jnp.arange(TP)[:, None] // npatch
    cf = jnp.arange(TP)[None, :] // npatch
    add("patch_bias", jnp.where(rf == cf, 0.0, -1e9))          # within-frame patch attention
    pr = jnp.arange(T)[:, None]
    add("pool", jnp.where(pr == cf, 1.0 / npatch, 0.0))        # per-frame mean pool matrix
    # rotary tables, ordered [pos 1..T, pos 0] to match [tokens..., cls] layout
    pos = jnp.concatenate([jnp.arange(1, T + 1, dtype=jnp.float32),
                           jnp.zeros((1,), jnp.float32)])
    inv_freq = 1.0 / (10000.0 ** (jnp.arange(0, D, 2, dtype=jnp.float32) / D))
    ang = jnp.repeat(pos[:, None] * inv_freq[None, :], 2, axis=-1)               # (S, D)
    add("rot_cos", jnp.cos(ang)); add("rot_sin", jnp.sin(ang))
    j = jnp.arange(D)
    R = jnp.zeros((D, D), jnp.float32)
    R = R.at[j[1::2], j[0::2]].set(-1.0).at[j[0::2], j[1::2]].set(1.0)           # rotate_half as matmul
    add("rot_R", R)

    idx, slabs, r = {}, [], 0
    for name, a in entries:
        if a.ndim == 1:
            a = a[None, :]
        h, w = a.shape
        if w > 128:
            raise ValueError(f"{name}: width {w} > 128")
        hp = ((h + 7) // 8) * 8                                  # keep slices sublane-aligned
        slabs.append(jnp.zeros((hp, 128), jnp.float32).at[:h, :w].set(a))
        idx[name] = (r, h, w)
        r += hp
    return jnp.concatenate(slabs, axis=0), idx


# ----------------------------- main -------------------------------------------
if __name__ == "__main__":
    cfg = Cfg()
    key = jax.random.PRNGKey(0)
    kp, kv, ks, ke = jax.random.split(key, 4)
    params = init_params(cfg, kp)
    wslab, idx = pack_params(cfg, params)

    B = 2
    x_vis = jax.random.normal(
        kv, (B, cfg.seq_len, cfg.img_channels, cfg.img_size, cfg.img_size), jnp.float32)
    x_spc = jax.random.normal(ks, (B, cfg.seq_len, 2, 2), jnp.float32)
    mask = jnp.zeros((B, cfg.seq_len), dtype=bool).at[1, -2:].set(True)  # pad last 2 frames of sample 1
    eps = jax.random.normal(ke, (B, cfg.seq_len, cfg.latent_ndim), jnp.float32)

    bb = pick_batch_block(B)
    fwd = jax.jit(functools.partial(q_forward, cfg, idx, bb))
    z, mu, logvar, y = fwd(wslab, x_vis, x_spc, mask, eps)
    jax.block_until_ready((z, mu, logvar, y))

    assert z.shape == (B, cfg.seq_len, cfg.latent_ndim)
    assert mu.shape == (B, cfg.seq_len, cfg.latent_ndim)
    assert logvar.shape == (B, cfg.seq_len, cfg.latent_ndim)
    assert y.shape == (B, cfg.n_clusters)
    assert bool(jnp.all(jnp.isfinite(z)))
    assert bool(jnp.all(jnp.isfinite(mu))) and bool(jnp.all(jnp.isfinite(logvar)))
    assert bool(jnp.allclose(jnp.sum(y, axis=1), 1.0, atol=1e-5))
    print("KERNEL_OK")
</pallas_src>

<mosaic_0001>
module attributes {stable_mosaic.version = 11 : i64} {
  func.func @_q_fused_kernel(%arg0: i32, %arg1: memref<2x32x192xf32, #tpu.memory_space<vmem>>, %arg2: memref<2x8x4xf32, #tpu.memory_space<vmem>>, %arg3: memref<2x1x9xf32, #tpu.memory_space<vmem>>, %arg4: memref<2x8x8xf32, #tpu.memory_space<vmem>>, %arg5: memref<1176x128xf32, #tpu.memory_space<vmem>>, %arg6: memref<2x8x24xf32, #tpu.memory_space<vmem>>, %arg7: memref<2x1x4xf32, #tpu.memory_space<vmem>>) attributes {dimension_semantics = [#tpu.dimension_semantics<parallel>], iteration_bounds = array<i64: 1>, scalar_prefetch = 0 : i64, scratch_operands = 0 : i64, tpu.core_type = #tpu.core_type<tc>, window_params = [{transform_indices = @transform_0, window_bounds = array<i64: 2, 32, 192>}, {transform_indices = @transform_1, window_bounds = array<i64: 2, 8, 4>}, {transform_indices = @transform_2, window_bounds = array<i64: 2, 1, 9>}, {transform_indices = @transform_3, window_bounds = array<i64: 2, 8, 8>}, {pipeline_mode = #tpu.pipeline_mode<synchronous>, transform_indices = @transform_4, window_bounds = array<i64: 1176, 128>}, {transform_indices = @transform_5, window_bounds = array<i64: 2, 8, 24>}, {transform_indices = @transform_6, window_bounds = array<i64: 2, 1, 4>}]} {
    %c0 = arith.constant 0 : index
    %c0_0 = arith.constant 0 : index
    %c0_1 = arith.constant 0 : index
    %0 = vector.load %arg1[%c0, %c0_0, %c0_1] : memref<2x32x192xf32, #tpu.memory_space<vmem>>, vector<1x32x192xf32>
    %1 = vector.shape_cast %0 : vector<1x32x192xf32> to vector<32x192xf32>
    %c0_2 = arith.constant 0 : index
    %c0_3 = arith.constant 0 : index
    %c0_4 = arith.constant 0 : index
    %2 = vector.load %arg2[%c0_2, %c0_3, %c0_4] : memref<2x8x4xf32, #tpu.memory_space<vmem>>, vector<1x8x4xf32>
    %3 = vector.shape_cast %2 : vector<1x8x4xf32> to vector<8x4xf32>
    %c0_5 = arith.constant 0 : index
    %c0_6 = arith.constant 0 : index
    %c0_7 = arith.constant 0 : index
    %4 = vector.load %arg3[%c0_5, %c0_6, %c0_7] : memref<2x1x9xf32, #tpu.memory_space<vmem>>, vector<1x1x9xf32>
    %5 = vector.shape_cast %4 : vector<1x1x9xf32> to vector<1x9xf32>
    %c0_8 = arith.constant 0 : index
    %c0_9 = arith.constant 0 : index
    %c0_10 = arith.constant 0 : index
    %6 = vector.load %arg4[%c0_8, %c0_9, %c0_10] : memref<2x8x8xf32, #tpu.memory_space<vmem>>, vector<1x8x8xf32>
    %7 = vector.shape_cast %6 : vector<1x8x8xf32> to vector<8x8xf32>
    %c0_11 = arith.constant 0 : index
    %c0_12 = arith.constant 0 : index
    %8 = vector.load %arg5[%c0_11, %c0_12] : memref<1176x128xf32, #tpu.memory_space<vmem>>, vector<192x16xf32>
    %cst = arith.constant dense<0.000000e+00> : vector<32x16xf32>
    %9 = tpu.matmul %1, %8, %cst {dimension_numbers = #tpu.dot_dimension_numbers<[1], [0], [0], [1], [0, 0, 1, 1], [], []>} : vector<32x192xf32>, vector<192x16xf32>, vector<32x16xf32> -> vector<32x16xf32>
    %c192 = arith.constant 192 : index
    %c0_13 = arith.constant 0 : index
    %10 = vector.load %arg5[%c192, %c0_13] : memref<1176x128xf32, #tpu.memory_space<vmem>>, vector<1x16xf32>
    %11 = vector.broadcast %10 : vector<1x16xf32> to vector<32x16xf32>
    %12 = arith.addf %9, %11 : vector<32x16xf32>
    %c1072 = arith.constant 1072 : index
    %c0_14 = arith.constant 0 : index
    %13 = vector.load %arg5[%c1072, %c0_14] : memref<1176x128xf32, #tpu.memory_space<vmem>>, vector<32x32xf32>
    %c200 = arith.constant 200 : index
    %c0_15 = arith.constant 0 : index
    %14 = vector.load %arg5[%c200, %c0_15] : memref<1176x128xf32, #tpu.memory_space<vmem>>, vector<16x48xf32>
    %cst_16 = arith.constant dense<0.000000e+00> : vector<32x48xf32>
    %15 = tpu.matmul %12, %14, %cst_16 {dimension_numbers = #tpu.dot_dimension_numbers<[1], [0], [0], [1], [0, 0, 1, 1], [], []>} : vector<32x16xf32>, vector<16x48xf32>, vector<32x48xf32> -> vector<32x48xf32>
    %c216 = arith.constant 216 : index
    %c0_17 = arith.constant 0 : index
    %16 = vector.load %arg5[%c216, %c0_17] : memref<1176x128xf32, #tpu.memory_space<vmem>>, vector<1x48xf32>
    %17 = vector.broadcast %16 : vector<1x48xf32> to vector<32x48xf32>
    %18 = arith.addf %15, %17 : vector<32x48xf32>
    %c224 = arith.constant 224 : index
    %c0_18 = arith.constant 0 : index
    %19 = vector.load %arg5[%c224, %c0_18] : memref<1176x128xf32, #tpu.memory_space<vmem>>, vector<16x16xf32>
    %20 = vector.extract_strided_slice %18 {offsets = [0, 0], sizes = [32, 8], strides = [1, 1]} : vector<32x48xf32> to vector<32x8xf32>
    %21 = vector.extract_strided_slice %18 {offsets = [0, 16], sizes = [32, 8], strides = [1, 1]} : vector<32x48xf32> to vector<32x8xf32>
    %22 = vector.extract_strided_slice %18 {offsets = [0, 32], sizes = [32, 8], strides = [1, 1]} : vector<32x48xf32> to vector<32x8xf32>
    %cst_19 = arith.constant dense<0.000000e+00> : vector<32x32xf32>
    %23 = tpu.matmul %20, %21, %cst_19 {dimension_numbers = #tpu.dot_dimension_numbers<[1], [1], [0], [0], [0, 0, 1, 0], [], []>} : vector<32x8xf32>, vector<32x8xf32>, vector<32x32xf32> -> vector<32x32xf32>
    %cst_20 = arith.constant 0.353553385 : f32
    %24 = vector.broadcast %cst_20 : f32 to vector<32x32xf32>
    %25 = arith.mulf %23, %24 : vector<32x32xf32>
    %26 = arith.addf %25, %13 : vector<32x32xf32>
    %cst_21 = arith.constant dense<0xFF800000> : vector<32xf32>
    %27 = vector.multi_reduction <maximumf>, %26, %cst_21 [1] : vector<32x32xf32> to vector<32xf32>
    %28 = vector.shape_cast %27 : vector<32xf32> to vector<32x1xf32>
    %29 = vector.broadcast %28 : vector<32x1xf32> to vector<32x32xf32>
    %30 = arith.subf %26, %29 : vector<32x32xf32>
    %31 = math.exp %30 : vector<32x32xf32>
    %cst_22 = arith.constant dense<0.000000e+00> : vector<32xf32>
    %32 = vector.multi_reduction <add>, %31, %cst_22 [1] : vector<32x32xf32> to vector<32xf32>
    %33 = vector.shape_cast %32 : vector<32xf32> to vector<32x1xf32>
    %34 = vector.broadcast %33 : vector<32x1xf32> to vector<32x32xf32>
    %35 = arith.divf %31, %34 : vector<32x32xf32>
    %cst_23 = arith.constant dense<0.000000e+00> : vector<32x8xf32>
    %36 = tpu.matmul %35, %22, %cst_23 {dimension_numbers = #tpu.dot_dimension_numbers<[1], [0], [0], [1], [0, 0, 1, 1], [], []>} : vector<32x32xf32>, vector<32x8xf32>, vector<32x8xf32> -> vector<32x8xf32>
    %37 = vector.extract_strided_slice %19 {offsets = [0, 0], sizes = [8, 16], strides = [1, 1]} : vector<16x16xf32> to vector<8x16xf32>
    %cst_24 = arith.constant dense<0.000000e+00> : vector<32x16xf32>
    %38 = tpu.matmul %36, %37, %cst_24 {dimension_numbers = #tpu.dot_dimension_numbers<[1], [0], [0], [1], [0, 0, 1, 1], [], []>} : vector<32x8xf32>, vector<8x16xf32>, vector<32x16xf32> -> vector<32x16xf32>
    %39 = vector.extract_strided_slice %18 {offsets = [0, 8], sizes = [32, 8], strides = [1, 1]} : vector<32x48xf32> to vector<32x8xf32>
    %40 = vector.extract_strided_slice %18 {offsets = [0, 24], sizes = [32, 8], strides = [1, 1]} : vector<32x48xf32> to vector<32x8xf32>
    %41 = vector.extract_strided_slice %18 {offsets = [0, 40], sizes = [32, 8], strides = [1, 1]} : vector<32x48xf32> to vector<32x8xf32>
    %cst_25 = arith.constant dense<0.000000e+00> : vector<32x32xf32>
    %42 = tpu.matmul %39, %40, %cst_25 {dimension_numbers = #tpu.dot_dimension_numbers<[1], [1], [0], [0], [0, 0, 1, 0], [], []>} : vector<32x8xf32>, vector<32x8xf32>, vector<32x32xf32> -> vector<32x32xf32>
    %cst_26 = arith.constant 0.353553385 : f32
    %43 = vector.broadcast %cst_26 : f32 to vector<32x32xf32>
    %44 = arith.mulf %42, %43 : vector<32x32xf32>
    %45 = arith.addf %44, %13 : vector<32x32xf32>
    %cst_27 = arith.constant dense<0xFF800000> : vector<32xf32>
    %46 = vector.multi_reduction <maximumf>, %45, %cst_27 [1] : vector<32x32xf32> to vector<32xf32>
    %47 = vector.shape_cast %46 : vector<32xf32> to vector<32x1xf32>
    %48 = vector.broadcast %47 : vector<32x1xf32> to vector<32x32xf32>
    %49 = arith.subf %45, %48 : vector<32x32xf32>
    %50 = math.exp %49 : vector<32x32xf32>
    %cst_28 = arith.constant dense<0.000000e+00> : vector<32xf32>
    %51 = vector.multi_reduction <add>, %50, %cst_28 [1] : vector<32x32xf32> to vector<32xf32>
    %52 = vector.shape_cast %51 : vector<32xf32> to vector<32x1xf32>
    %53 = vector.broadcast %52 : vector<32x1xf32> to vector<32x32xf32>
    %54 = arith.divf %50, %53 : vector<32x32xf32>
    %cst_29 = arith.constant dense<0.000000e+00> : vector<32x8xf32>
    %55 = tpu.matmul %54, %41, %cst_29 {dimension_numbers = #tpu.dot_dimension_numbers<[1], [0], [0], [1], [0, 0, 1, 1], [], []>} : vector<32x32xf32>, vector<32x8xf32>, vector<32x8xf32> -> vector<32x8xf32>
    %56 = vector.extract_strided_slice %19 {offsets = [8, 0], sizes = [8, 16], strides = [1, 1]} : vector<16x16xf32> to vector<8x16xf32>
    %cst_30 = arith.constant dense<0.000000e+00> : vector<32x16xf32>
    %57 = tpu.matmul %55, %56, %cst_30 {dimension_numbers = #tpu.dot_dimension_numbers<[1], [0], [0], [1], [0, 0, 1, 1], [], []>} : vector<32x8xf32>, vector<8x16xf32>, vector<32x16xf32> -> vector<32x16xf32>
    %58 = arith.addf %38, %57 : vector<32x16xf32>
    %c240 = arith.constant 240 : index
    %c0_31 = arith.constant 0 : index
    %59 = vector.load %arg5[%c240, %c0_31] : memref<1176x128xf32, #tpu.memory_space<vmem>>, vector<1x16xf32>
    %60 = vector.broadcast %59 : vector<1x16xf32> to vector<32x16xf32>
    %61 = arith.addf %58, %60 : vector<32x16xf32>
    %62 = arith.addf %12, %61 : vector<32x16xf32>
    %c248 = arith.constant 248 : index
    %c0_32 = arith.constant 0 : index
    %63 = vector.load %arg5[%c248, %c0_32] : memref<1176x128xf32, #tpu.memory_space<vmem>>, vector<1x16xf32>
    %c256 = arith.constant 256 : index
    %c0_33 = arith.constant 0 : index
    %64 = vector.load %arg5[%c256, %c0_33] : memref<1176x128xf32, #tpu.memory_space<vmem>>, vector<1x16xf32>
    %cst_34 = arith.constant dense<0.000000e+00> : vector<32xf32>
    %65 = vector.multi_reduction <add>, %62, %cst_34 [1] : vector<32x16xf32> to vector<32xf32>
    %66 = vector.shape_cast %65 : vector<32xf32> to vector<32x1xf32>
    %cst_35 = arith.constant 1.600000e+01 : f32
    %67 = vector.broadcast %cst_35 : f32 to vector<32x1xf32>
    %68 = arith.divf %66, %67 : vector<32x1xf32>
    %69 = vector.broadcast %68 : vector<32x1xf32> to vector<32x16xf32>
    %70 = arith.subf %62, %69 : vector<32x16xf32>
    %71 = arith.mulf %70, %70 : vector<32x16xf32>
    %cst_36 = arith.constant dense<0.000000e+00> : vector<32xf32>
    %72 = vector.multi_reduction <add>, %71, %cst_36 [1] : vector<32x16xf32> to vector<32xf32>
    %73 = vector.shape_cast %72 : vector<32xf32> to vector<32x1xf32>
    %cst_37 = arith.constant 1.600000e+01 : f32
    %74 = vector.broadcast %cst_37 : f32 to vector<32x1xf32>
    %75 = arith.divf %73, %74 : vector<32x1xf32>
    %cst_38 = arith.constant 9.99999974E-6 : f32
    %76 = vector.broadcast %cst_38 : f32 to vector<32x1xf32>
    %77 = arith.addf %75, %76 : vector<32x1xf32>
    %78 = math.rsqrt %77 : vector<32x1xf32>
    %79 = vector.broadcast %78 : vector<32x1xf32> to vector<32x16xf32>
    %80 = arith.mulf %70, %79 : vector<32x16xf32>
    %81 = vector.broadcast %63 : vector<1x16xf32> to vector<32x16xf32>
    %82 = arith.mulf %80, %81 : vector<32x16xf32>
    %83 = vector.broadcast %64 : vector<1x16xf32> to vector<32x16xf32>
    %84 = arith.addf %82, %83 : vector<32x16xf32>
    %c264 = arith.constant 264 : index
    %c0_39 = arith.constant 0 : index
    %85 = vector.load %arg5[%c264, %c0_39] : memref<1176x128xf32, #tpu.memory_space<vmem>>, vector<16x16xf32>
    %cst_40 = arith.constant dense<0.000000e+00> : vector<32x16xf32>
    %86 = tpu.matmul %84, %85, %cst_40 {dimension_numbers = #tpu.dot_dimension_numbers<[1], [0], [0], [1], [0, 0, 1, 1], [], []>} : vector<32x16xf32>, vector<16x16xf32>, vector<32x16xf32> -> vector<32x16xf32>
    %c280 = arith.constant 280 : index
    %c0_41 = arith.constant 0 : index
    %87 = vector.load %arg5[%c280, %c0_41] : memref<1176x128xf32, #tpu.memory_space<vmem>>, vector<1x16xf32>
    %88 = vector.broadcast %87 : vector<1x16xf32> to vector<32x16xf32>
    %89 = arith.addf %86, %88 : vector<32x16xf32>
    %90 = arith.negf %89 : vector<32x16xf32>
    %91 = math.exp %90 : vector<32x16xf32>
    %cst_42 = arith.constant 1.000000e+00 : f32
    %92 = vector.broadcast %cst_42 : f32 to vector<32x16xf32>
    %93 = arith.addf %92, %91 : vector<32x16xf32>
    %94 = arith.divf %92, %93 : vector<32x16xf32>
    %95 = arith.mulf %89, %94 : vector<32x16xf32>
    %c288 = arith.constant 288 : index
    %c0_43 = arith.constant 0 : index
    %96 = vector.load %arg5[%c288, %c0_43] : memref<1176x128xf32, #tpu.memory_space<vmem>>, vector<16x16xf32>
    %cst_44 = arith.constant dense<0.000000e+00> : vector<32x16xf32>
    %97 = tpu.matmul %95, %96, %cst_44 {dimension_numbers = #tpu.dot_dimension_numbers<[1], [0], [0], [1], [0, 0, 1, 1], [], []>} : vector<32x16xf32>, vector<16x16xf32>, vector<32x16xf32> -> vector<32x16xf32>
    %c304 = arith.constant 304 : index
    %c0_45 = arith.constant 0 : index
    %98 = vector.load %arg5[%c304, %c0_45] : memref<1176x128xf32, #tpu.memory_space<vmem>>, vector<1x16xf32>
    %99 = vector.broadcast %98 : vector<1x16xf32> to vector<32x16xf32>
    %100 = arith.addf %97, %99 : vector<32x16xf32>
    %101 = arith.addf %84, %100 : vector<32x16xf32>
    %c312 = arith.constant 312 : index
    %c0_46 = arith.constant 0 : index
    %102 = vector.load %arg5[%c312, %c0_46] : memref<1176x128xf32, #tpu.memory_space<vmem>>, vector<1x16xf32>
    %c320 = arith.constant 320 : index
    %c0_47 = arith.constant 0 : index
    %103 = vector.load %arg5[%c320, %c0_47] : memref<1176x128xf32, #tpu.memory_space<vmem>>, vector<1x16xf32>
    %cst_48 = arith.constant dense<0.000000e+00> : vector<32xf32>
    %104 = vector.multi_reduction <add>, %101, %cst_48 [1] : vector<32x16xf32> to vector<32xf32>
    %105 = vector.shape_cast %104 : vector<32xf32> to vector<32x1xf32>
    %cst_49 = arith.constant 1.600000e+01 : f32
    %106 = vector.broadcast %cst_49 : f32 to vector<32x1xf32>
    %107 = arith.divf %105, %106 : vector<32x1xf32>
    %108 = vector.broadcast %107 : vector<32x1xf32> to vector<32x16xf32>
    %109 = arith.subf %101, %108 : vector<32x16xf32>
    %110 = arith.mulf %109, %109 : vector<32x16xf32>
    %cst_50 = arith.constant dense<0.000000e+00> : vector<32xf32>
    %111 = vector.multi_reduction <add>, %110, %cst_50 [1] : vector<32x16xf32> to vector<32xf32>
    %112 = vector.shape_cast %111 : vector<32xf32> to vector<32x1xf32>
    %cst_51 = arith.constant 1.600000e+01 : f32
    %113 = vector.broadcast %cst_51 : f32 to vector<32x1xf32>
    %114 = arith.divf %112, %113 : vector<32x1xf32>
    %cst_52 = arith.constant 9.99999974E-6 : f32
    %115 = vector.broadcast %cst_52 : f32 to vector<32x1xf32>
    %116 = arith.addf %114, %115 : vector<32x1xf32>
    %117 = math.rsqrt %116 : vector<32x1xf32>
    %118 = vector.broadcast %117 : vector<32x1xf32> to vector<32x16xf32>
    %119 = arith.mulf %109, %118 : vector<32x16xf32>
    %120 = vector.broadcast %102 : vector<1x16xf32> to vector<32x16xf32>
    %121 = arith.mulf %119, %120 : vector<32x16xf32>
    %122 = vector.broadcast %103 : vector<1x16xf32> to vector<32x16xf32>
    %123 = arith.addf %121, %122 : vector<32x16xf32>
    %c1104 = arith.constant 1104 : index
    %c0_53 = arith.constant 0 : index
    %124 = vector.load %arg5[%c1104, %c0_53] : memref<1176x128xf32, #tpu.memory_space<vmem>>, vector<8x32xf32>
    %cst_54 = arith.constant dense<0.000000e+00> : vector<8x16xf32>
    %125 = tpu.matmul %124, %123, %cst_54 {dimension_numbers = #tpu.dot_dimension_numbers<[1], [0], [0], [1], [0, 0, 1, 1], [], []>} : vector<8x32xf32>, vector<32x16xf32>, vector<8x16xf32> -> vector<8x16xf32>
    %c328 = arith.constant 328 : index
    %c0_55 = arith.constant 0 : index
    %126 = vector.load %arg5[%c328, %c0_55] : memref<1176x128xf32, #tpu.memory_space<vmem>>, vector<4x16xf32>
    %cst_56 = arith.constant dense<0.000000e+00> : vector<8x16xf32>
    %127 = tpu.matmul %3, %126, %cst_56 {dimension_numbers = #tpu.dot_dimension_numbers<[1], [0], [0], [1], [0, 0, 1, 1], [], []>} : vector<8x4xf32>, vector<4x16xf32>, vector<8x16xf32> -> vector<8x16xf32>
    %c336 = arith.constant 336 : index
    %c0_57 = arith.constant 0 : index
    %128 = vector.load %arg5[%c336, %c0_57] : memref<1176x128xf32, #tpu.memory_space<vmem>>, vector<1x16xf32>
    %129 = vector.broadcast %128 : vector<1x16xf32> to vector<8x16xf32>
    %130 = arith.addf %127, %129 : vector<8x16xf32>
    %131 = arith.negf %130 : vector<8x16xf32>
    %132 = math.exp %131 : vector<8x16xf32>
    %cst_58 = arith.constant 1.000000e+00 : f32
    %133 = vector.broadcast %cst_58 : f32 to vector<8x16xf32>
    %134 = arith.addf %133, %132 : vector<8x16xf32>
    %135 = arith.divf %133, %134 : vector<8x16xf32>
    %136 = arith.mulf %130, %135 : vector<8x16xf32>
    %c344 = arith.constant 344 : index
    %c0_59 = arith.constant 0 : index
    %137 = vector.load %arg5[%c344, %c0_59] : memref<1176x128xf32, #tpu.memory_space<vmem>>, vector<16x16xf32>
    %cst_60 = arith.constant dense<0.000000e+00> : vector<8x16xf32>
    %138 = tpu.matmul %136, %137, %cst_60 {dimension_numbers = #tpu.dot_dimension_numbers<[1], [0], [0], [1], [0, 0, 1, 1], [], []>} : vector<8x16xf32>, vector<16x16xf32>, vector<8x16xf32> -> vector<8x16xf32>
    %c360 = arith.constant 360 : index
    %c0_61 = arith.constant 0 : index
    %139 = vector.load %arg5[%c360, %c0_61] : memref<1176x128xf32, #tpu.memory_space<vmem>>, vector<1x16xf32>
    %140 = vector.broadcast %139 : vector<1x16xf32> to vector<8x16xf32>
    %141 = arith.addf %138, %140 : vector<8x16xf32>
    %c368 = arith.constant 368 : index
    %c0_62 = arith.constant 0 : index
    %142 = vector.load %arg5[%c368, %c0_62] : memref<1176x128xf32, #tpu.memory_space<vmem>>, vector<16x32xf32>
    %cst_63 = arith.constant dense<0.000000e+00> : vector<8x32xf32>
    %143 = tpu.matmul %125, %142, %cst_63 {dimension_numbers = #tpu.dot_dimension_numbers<[1], [0], [0], [1], [0, 0, 1, 1], [], []>} : vector<8x16xf32>, vector<16x32xf32>, vector<8x32xf32> -> vector<8x32xf32>
    %c384 = arith.constant 384 : index
    %c0_64 = arith.constant 0 : index
    %144 = vector.load %arg5[%c384, %c0_64] : memref<1176x128xf32, #tpu.memory_space<vmem>>, vector<16x32xf32>
    %cst_65 = arith.constant dense<0.000000e+00> : vector<8x32xf32>
    %145 = tpu.matmul %141, %144, %cst_65 {dimension_numbers = #tpu.dot_dimension_numbers<[1], [0], [0], [1], [0, 0, 1, 1], [], []>} : vector<8x16xf32>, vector<16x32xf32>, vector<8x32xf32> -> vector<8x32xf32>
    %146 = arith.addf %143, %145 : vector<8x32xf32>
    %c400 = arith.constant 400 : index
    %c0_66 = arith.constant 0 : index
    %147 = vector.load %arg5[%c400, %c0_66] : memref<1176x128xf32, #tpu.memory_space<vmem>>, vector<1x32xf32>
    %148 = vector.broadcast %147 : vector<1x32xf32> to vector<8x32xf32>
    %149 = arith.addf %146, %148 : vector<8x32xf32>
    %150 = arith.negf %149 : vector<8x32xf32>
    %151 = math.exp %150 : vector<8x32xf32>
    %cst_67 = arith.constant 1.000000e+00 : f32
    %152 = vector.broadcast %cst_67 : f32 to vector<8x32xf32>
    %153 = arith.addf %152, %151 : vector<8x32xf32>
    %154 = arith.divf %152, %153 : vector<8x32xf32>
    %155 = arith.mulf %149, %154 : vector<8x32xf32>
    %c408 = arith.constant 408 : index
    %c0_68 = arith.constant 0 : index
    %156 = vector.load %arg5[%c408, %c0_68] : memref<1176x128xf32, #tpu.memory_space<vmem>>, vector<32x32xf32>
    %cst_69 = arith.constant dense<0.000000e+00> : vector<8x32xf32>
    %157 = tpu.matmul %155, %156, %cst_69 {dimension_numbers = #tpu.dot_dimension_numbers<[1], [0], [0], [1], [0, 0, 1, 1], [], []>} : vector<8x32xf32>, vector<32x32xf32>, vector<8x32xf32> -> vector<8x32xf32>
    %c440 = arith.constant 440 : index
    %c0_70 = arith.constant 0 : index
    %158 = vector.load %arg5[%c440, %c0_70] : memref<1176x128xf32, #tpu.memory_space<vmem>>, vector<1x32xf32>
    %159 = vector.broadcast %158 : vector<1x32xf32> to vector<8x32xf32>
    %160 = arith.addf %157, %159 : vector<8x32xf32>
    %c1064 = arith.constant 1064 : index
    %c0_71 = arith.constant 0 : index
    %161 = vector.load %arg5[%c1064, %c0_71] : memref<1176x128xf32, #tpu.memory_space<vmem>>, vector<1x32xf32>
    %162 = tpu.concatenate %160, %161 in 0 : vector<8x32xf32>, vector<1x32xf32> -> vector<9x32xf32>
    %c1112 = arith.constant 1112 : index
    %c0_72 = arith.constant 0 : index
    %163 = vector.load %arg5[%c1112, %c0_72] : memref<1176x128xf32, #tpu.memory_space<vmem>>, vector<9x32xf32>
    %164 = arith.mulf %162, %163 : vector<9x32xf32>
    %c1144 = arith.constant 1144 : index
    %c0_73 = arith.constant 0 : index
    %165 = vector.load %arg5[%c1144, %c0_73] : memref<1176x128xf32, #tpu.memory_space<vmem>>, vector<32x32xf32>
    %cst_74 = arith.constant dense<0.000000e+00> : vector<9x32xf32>
    %166 = tpu.matmul %162, %165, %cst_74 {dimension_numbers = #tpu.dot_dimension_numbers<[1], [0], [0], [1], [0, 0, 1, 1], [], []>} : vector<9x32xf32>, vector<32x32xf32>, vector<9x32xf32> -> vector<9x32xf32>
    %c1128 = arith.constant 1128 : index
    %c0_75 = arith.constant 0 : index
    %167 = vector.load %arg5[%c1128, %c0_75] : memref<1176x128xf32, #tpu.memory_space<vmem>>, vector<9x32xf32>
    %168 = arith.mulf %166, %167 : vector<9x32xf32>
    %169 = arith.addf %164, %168 : vector<9x32xf32>
    %170 = vector.shape_cast %5 : vector<1x9xf32> to vector<1x9xf32>
    %171 = vector.broadcast %170 : vector<1x9xf32> to vector<9x9xf32>
    %c448 = arith.constant 448 : index
    %c0_76 = arith.constant 0 : index
    %172 = vector.load %arg5[%c448, %c0_76] : memref<1176x128xf32, #tpu.memory_space<vmem>>, vector<32x96xf32>
    %cst_77 = arith.constant dense<0.000000e+00> : vector<9x96xf32>
    %173 = tpu.matmul %169, %172, %cst_77 {dimension_numbers = #tpu.dot_dimension_numbers<[1], [0], [0], [1], [0, 0, 1, 1], [], []>} : vector<9x32xf32>, vector<32x96xf32>, vector<9x96xf32> -> vector<9x96xf32>
    %c480 = arith.constant 480 : index
    %c0_78 = arith.constant 0 : index
    %174 = vector.load %arg5[%c480, %c0_78] : memref<1176x128xf32, #tpu.memory_space<vmem>>, vector<1x96xf32>
    %175 = vector.broadcast %174 : vector<1x96xf32> to vector<9x96xf32>
    %176 = arith.addf %173, %175 : vector<9x96xf32>
    %c488 = arith.constant 488 : index
    %c0_79 = arith.constant 0 : index
    %177 = vector.load %arg5[%c488, %c0_79] : memref<1176x128xf32, #tpu.memory_space<vmem>>, vector<32x32xf32>
    %178 = vector.extract_strided_slice %176 {offsets = [0, 0], sizes = [9, 8], strides = [1, 1]} : vector<9x96xf32> to vector<9x8xf32>
    %179 = vector.extract_strided_slice %176 {offsets = [0, 32], sizes = [9, 8], strides = [1, 1]} : vector<9x96xf32> to vector<9x8xf32>
    %180 = vector.extract_strided_slice %176 {offsets = [0, 64], sizes = [9, 8], strides = [1, 1]} : vector<9x96xf32> to vector<9x8xf32>
    %cst_80 = arith.constant dense<0.000000e+00> : vector<9x9xf32>
    %181 = tpu.matmul %178, %179, %cst_80 {dimension_numbers = #tpu.dot_dimension_numbers<[1], [1], [0], [0], [0, 0, 1, 0], [], []>} : vector<9x8xf32>, vector<9x8xf32>, vector<9x9xf32> -> vector<9x9xf32>
    %cst_81 = arith.constant 0.353553385 : f32
    %182 = vector.broadcast %cst_81 : f32 to vector<9x9xf32>
    %183 = arith.mulf %181, %182 : vector<9x9xf32>
    %184 = arith.addf %183, %171 : vector<9x9xf32>
    %cst_82 = arith.constant dense<0xFF800000> : vector<9xf32>
    %185 = vector.multi_reduction <maximumf>, %184, %cst_82 [1] : vector<9x9xf32> to vector<9xf32>
    %186 = vector.shape_cast %185 : vector<9xf32> to vector<9x1xf32>
    %187 = vector.broadcast %186 : vector<9x1xf32> to vector<9x9xf32>
    %188 = arith.subf %184, %187 : vector<9x9xf32>
    %189 = math.exp %188 : vector<9x9xf32>
    %cst_83 = arith.constant dense<0.000000e+00> : vector<9xf32>
    %190 = vector.multi_reduction <add>, %189, %cst_83 [1] : vector<9x9xf32> to vector<9xf32>
    %191 = vector.shape_cast %190 : vector<9xf32> to vector<9x1xf32>
    %192 = vector.broadcast %191 : vector<9x1xf32> to vector<9x9xf32>
    %193 = arith.divf %189, %192 : vector<9x9xf32>
    %cst_84 = arith.constant dense<0.000000e+00> : vector<9x8xf32>
    %194 = tpu.matmul %193, %180, %cst_84 {dimension_numbers = #tpu.dot_dimension_numbers<[1], [0], [0], [1], [0, 0, 1, 1], [], []>} : vector<9x9xf32>, vector<9x8xf32>, vector<9x8xf32> -> vector<9x8xf32>
    %195 = vector.extract_strided_slice %177 {offsets = [0, 0], sizes = [8, 32], strides = [1, 1]} : vector<32x32xf32> to vector<8x32xf32>
    %cst_85 = arith.constant dense<0.000000e+00> : vector<9x32xf32>
    %196 = tpu.matmul %194, %195, %cst_85 {dimension_numbers = #tpu.dot_dimension_numbers<[1], [0], [0], [1], [0, 0, 1, 1], [], []>} : vector<9x8xf32>, vector<8x32xf32>, vector<9x32xf32> -> vector<9x32xf32>
    %197 = vector.extract_strided_slice %176 {offsets = [0, 8], sizes = [9, 8], strides = [1, 1]} : vector<9x96xf32> to vector<9x8xf32>
    %198 = vector.extract_strided_slice %176 {offsets = [0, 40], sizes = [9, 8], strides = [1, 1]} : vector<9x96xf32> to vector<9x8xf32>
    %199 = vector.extract_strided_slice %176 {offsets = [0, 72], sizes = [9, 8], strides = [1, 1]} : vector<9x96xf32> to vector<9x8xf32>
    %cst_86 = arith.constant dense<0.000000e+00> : vector<9x9xf32>
    %200 = tpu.matmul %197, %198, %cst_86 {dimension_numbers = #tpu.dot_dimension_numbers<[1], [1], [0], [0], [0, 0, 1, 0], [], []>} : vector<9x8xf32>, vector<9x8xf32>, vector<9x9xf32> -> vector<9x9xf32>
    %cst_87 = arith.constant 0.353553385 : f32
    %201 = vector.broadcast %cst_87 : f32 to vector<9x9xf32>
    %202 = arith.mulf %200, %201 : vector<9x9xf32>
    %203 = arith.addf %202, %171 : vector<9x9xf32>
    %cst_88 = arith.constant dense<0xFF800000> : vector<9xf32>
    %204 = vector.multi_reduction <maximumf>, %203, %cst_88 [1] : vector<9x9xf32> to vector<9xf32>
    %205 = vector.shape_cast %204 : vector<9xf32> to vector<9x1xf32>
    %206 = vector.broadcast %205 : vector<9x1xf32> to vector<9x9xf32>
    %207 = arith.subf %203, %206 : vector<9x9xf32>
    %208 = math.exp %207 : vector<9x9xf32>
    %cst_89 = arith.constant dense<0.000000e+00> : vector<9xf32>
    %209 = vector.multi_reduction <add>, %208, %cst_89 [1] : vector<9x9xf32> to vector<9xf32>
    %210 = vector.shape_cast %209 : vector<9xf32> to vector<9x1xf32>
    %211 = vector.broadcast %210 : vector<9x1xf32> to vector<9x9xf32>
    %212 = arith.divf %208, %211 : vector<9x9xf32>
    %cst_90 = arith.constant dense<0.000000e+00> : vector<9x8xf32>
    %213 = tpu.matmul %212, %199, %cst_90 {dimension_numbers = #tpu.dot_dimension_numbers<[1], [0], [0], [1], [0, 0, 1, 1], [], []>} : vector<9x9xf32>, vector<9x8xf32>, vector<9x8xf32> -> vector<9x8xf32>
    %214 = vector.extract_strided_slice %177 {offsets = [8, 0], sizes = [8, 32], strides = [1, 1]} : vector<32x32xf32> to vector<8x32xf32>
    %cst_91 = arith.constant dense<0.000000e+00> : vector<9x32xf32>
    %215 = tpu.matmul %213, %214, %cst_91 {dimension_numbers = #tpu.dot_dimension_numbers<[1], [0], [0], [1], [0, 0, 1, 1], [], []>} : vector<9x8xf32>, vector<8x32xf32>, vector<9x32xf32> -> vector<9x32xf32>
    %216 = arith.addf %196, %215 : vector<9x32xf32>
    %217 = vector.extract_strided_slice %176 {offsets = [0, 16], sizes = [9, 8], strides = [1, 1]} : vector<9x96xf32> to vector<9x8xf32>
    %218 = vector.extract_strided_slice %176 {offsets = [0, 48], sizes = [9, 8], strides = [1, 1]} : vector<9x96xf32> to vector<9x8xf32>
    %219 = vector.extract_strided_slice %176 {offsets = [0, 80], sizes = [9, 8], strides = [1, 1]} : vector<9x96xf32> to vector<9x8xf32>
    %cst_92 = arith.constant dense<0.000000e+00> : vector<9x9xf32>
    %220 = tpu.matmul %217, %218, %cst_92 {dimension_numbers = #tpu.dot_dimension_numbers<[1], [1], [0], [0], [0, 0, 1, 0], [], []>} : vector<9x8xf32>, vector<9x8xf32>, vector<9x9xf32> -> vector<9x9xf32>
    %cst_93 = arith.constant 0.353553385 : f32
    %221 = vector.broadcast %cst_93 : f32 to vector<9x9xf32>
    %222 = arith.mulf %220, %221 : vector<9x9xf32>
    %223 = arith.addf %222, %171 : vector<9x9xf32>
    %cst_94 = arith.constant dense<0xFF800000> : vector<9xf32>
    %224 = vector.multi_reduction <maximumf>, %223, %cst_94 [1] : vector<9x9xf32> to vector<9xf32>
    %225 = vector.shape_cast %224 : vector<9xf32> to vector<9x1xf32>
    %226 = vector.broadcast %225 : vector<9x1xf32> to vector<9x9xf32>
    %227 = arith.subf %223, %226 : vector<9x9xf32>
    %228 = math.exp %227 : vector<9x9xf32>
    %cst_95 = arith.constant dense<0.000000e+00> : vector<9xf32>
    %229 = vector.multi_reduction <add>, %228, %cst_95 [1] : vector<9x9xf32> to vector<9xf32>
    %230 = vector.shape_cast %229 : vector<9xf32> to vector<9x1xf32>
    %231 = vector.broadcast %230 : vector<9x1xf32> to vector<9x9xf32>
    %232 = arith.divf %228, %231 : vector<9x9xf32>
    %cst_96 = arith.constant dense<0.000000e+00> : vector<9x8xf32>
    %233 = tpu.matmul %232, %219, %cst_96 {dimension_numbers = #tpu.dot_dimension_numbers<[1], [0], [0], [1], [0, 0, 1, 1], [], []>} : vector<9x9xf32>, vector<9x8xf32>, vector<9x8xf32> -> vector<9x8xf32>
    %234 = vector.extract_strided_slice %177 {offsets = [16, 0], sizes = [8, 32], strides = [1, 1]} : vector<32x32xf32> to vector<8x32xf32>
    %cst_97 = arith.constant dense<0.000000e+00> : vector<9x32xf32>
    %235 = tpu.matmul %233, %234, %cst_97 {dimension_numbers = #tpu.dot_dimension_numbers<[1], [0], [0], [1], [0, 0, 1, 1], [], []>} : vector<9x8xf32>, vector<8x32xf32>, vector<9x32xf32> -> vector<9x32xf32>
    %236 = arith.addf %216, %235 : vector<9x32xf32>
    %237 = vector.extract_strided_slice %176 {offsets = [0, 24], sizes = [9, 8], strides = [1, 1]} : vector<9x96xf32> to vector<9x8xf32>
    %238 = vector.extract_strided_slice %176 {offsets = [0, 56], sizes = [9, 8], strides = [1, 1]} : vector<9x96xf32> to vector<9x8xf32>
    %239 = vector.extract_strided_slice %176 {offsets = [0, 88], sizes = [9, 8], strides = [1, 1]} : vector<9x96xf32> to vector<9x8xf32>
    %cst_98 = arith.constant dense<0.000000e+00> : vector<9x9xf32>
    %240 = tpu.matmul %237, %238, %cst_98 {dimension_numbers = #tpu.dot_dimension_numbers<[1], [1], [0], [0], [0, 0, 1, 0], [], []>} : vector<9x8xf32>, vector<9x8xf32>, vector<9x9xf32> -> vector<9x9xf32>
    %cst_99 = arith.constant 0.353553385 : f32
    %241 = vector.broadcast %cst_99 : f32 to vector<9x9xf32>
    %242 = arith.mulf %240, %241 : vector<9x9xf32>
    %243 = arith.addf %242, %171 : vector<9x9xf32>
    %cst_100 = arith.constant dense<0xFF800000> : vector<9xf32>
    %244 = vector.multi_reduction <maximumf>, %243, %cst_100 [1] : vector<9x9xf32> to vector<9xf32>
    %245 = vector.shape_cast %244 : vector<9xf32> to vector<9x1xf32>
    %246 = vector.broadcast %245 : vector<9x1xf32> to vector<9x9xf32>
    %247 = arith.subf %243, %246 : vector<9x9xf32>
    %248 = math.exp %247 : vector<9x9xf32>
    %cst_101 = arith.constant dense<0.000000e+00> : vector<9xf32>
    %249 = vector.multi_reduction <add>, %248, %cst_101 [1] : vector<9x9xf32> to vector<9xf32>
    %250 = vector.shape_cast %249 : vector<9xf32> to vector<9x1xf32>
    %251 = vector.broadcast %250 : vector<9x1xf32> to vector<9x9xf32>
    %252 = arith.divf %248, %251 : vector<9x9xf32>
    %cst_102 = arith.constant dense<0.000000e+00> : vector<9x8xf32>
    %253 = tpu.matmul %252, %239, %cst_102 {dimension_numbers = #tpu.dot_dimension_numbers<[1], [0], [0], [1], [0, 0, 1, 1], [], []>} : vector<9x9xf32>, vector<9x8xf32>, vector<9x8xf32> -> vector<9x8xf32>
    %254 = vector.extract_strided_slice %177 {offsets = [24, 0], sizes = [8, 32], strides = [1, 1]} : vector<32x32xf32> to vector<8x32xf32>
    %cst_103 = arith.constant dense<0.000000e+00> : vector<9x32xf32>
    %255 = tpu.matmul %253, %254, %cst_103 {dimension_numbers = #tpu.dot_dimension_numbers<[1], [0], [0], [1], [0, 0, 1, 1], [], []>} : vector<9x8xf32>, vector<8x32xf32>, vector<9x32xf32> -> vector<9x32xf32>
    %256 = arith.addf %236, %255 : vector<9x32xf32>
    %c520 = arith.constant 520 : index
    %c0_104 = arith.constant 0 : index
    %257 = vector.load %arg5[%c520, %c0_104] : memref<1176x128xf32, #tpu.memory_space<vmem>>, vector<1x32xf32>
    %258 = vector.broadcast %257 : vector<1x32xf32> to vector<9x32xf32>
    %259 = arith.addf %256, %258 : vector<9x32xf32>
    %260 = arith.addf %169, %259 : vector<9x32xf32>
    %c528 = arith.constant 528 : index
    %c0_105 = arith.constant 0 : index
    %261 = vector.load %arg5[%c528, %c0_105] : memref<1176x128xf32, #tpu.memory_space<vmem>>, vector<1x32xf32>
    %c536 = arith.constant 536 : index
    %c0_106 = arith.constant 0 : index
    %262 = vector.load %arg5[%c536, %c0_106] : memref<1176x128xf32, #tpu.memory_space<vmem>>, vector<1x32xf32>
    %cst_107 = arith.constant dense<0.000000e+00> : vector<9xf32>
    %263 = vector.multi_reduction <add>, %260, %cst_107 [1] : vector<9x32xf32> to vector<9xf32>
    %264 = vector.shape_cast %263 : vector<9xf32> to vector<9x1xf32>
    %cst_108 = arith.constant 3.200000e+01 : f32
    %265 = vector.broadcast %cst_108 : f32 to vector<9x1xf32>
    %266 = arith.divf %264, %265 : vector<9x1xf32>
    %267 = vector.broadcast %266 : vector<9x1xf32> to vector<9x32xf32>
    %268 = arith.subf %260, %267 : vector<9x32xf32>
    %269 = arith.mulf %268, %268 : vector<9x32xf32>
    %cst_109 = arith.constant dense<0.000000e+00> : vector<9xf32>
    %270 = vector.multi_reduction <add>, %269, %cst_109 [1] : vector<9x32xf32> to vector<9xf32>
    %271 = vector.shape_cast %270 : vector<9xf32> to vector<9x1xf32>
    %cst_110 = arith.constant 3.200000e+01 : f32
    %272 = vector.broadcast %cst_110 : f32 to vector<9x1xf32>
    %273 = arith.divf %271, %272 : vector<9x1xf32>
    %cst_111 = arith.constant 9.99999974E-6 : f32
    %274 = vector.broadcast %cst_111 : f32 to vector<9x1xf32>
    %275 = arith.addf %273, %274 : vector<9x1xf32>
    %276 = math.rsqrt %275 : vector<9x1xf32>
    %277 = vector.broadcast %276 : vector<9x1xf32> to vector<9x32xf32>
    %278 = arith.mulf %268, %277 : vector<9x32xf32>
    %279 = vector.broadcast %261 : vector<1x32xf32> to vector<9x32xf32>
    %280 = arith.mulf %278, %279 : vector<9x32xf32>
    %281 = vector.broadcast %262 : vector<1x32xf32> to vector<9x32xf32>
    %282 = arith.addf %280, %281 : vector<9x32xf32>
    %c544 = arith.constant 544 : index
    %c0_112 = arith.constant 0 : index
    %283 = vector.load %arg5[%c544, %c0_112] : memref<1176x128xf32, #tpu.memory_space<vmem>>, vector<32x32xf32>
    %cst_113 = arith.constant dense<0.000000e+00> : vector<9x32xf32>
    %284 = tpu.matmul %282, %283, %cst_113 {dimension_numbers = #tpu.dot_dimension_numbers<[1], [0], [0], [1], [0, 0, 1, 1], [], []>} : vector<9x32xf32>, vector<32x32xf32>, vector<9x32xf32> -> vector<9x32xf32>
    %c576 = arith.constant 576 : index
    %c0_114 = arith.constant 0 : index
    %285 = vector.load %arg5[%c576, %c0_114] : memref<1176x128xf32, #tpu.memory_space<vmem>>, vector<1x32xf32>
    %286 = vector.broadcast %285 : vector<1x32xf32> to vector<9x32xf32>
    %287 = arith.addf %284, %286 : vector<9x32xf32>
    %288 = arith.negf %287 : vector<9x32xf32>
    %289 = math.exp %288 : vector<9x32xf32>
    %cst_115 = arith.constant 1.000000e+00 : f32
    %290 = vector.broadcast %cst_115 : f32 to vector<9x32xf32>
    %291 = arith.addf %290, %289 : vector<9x32xf32>
    %292 = arith.divf %290, %291 : vector<9x32xf32>
    %293 = arith.mulf %287, %292 : vector<9x32xf32>
    %c584 = arith.constant 584 : index
    %c0_116 = arith.constant 0 : index
    %294 = vector.load %arg5[%c584, %c0_116] : memref<1176x128xf32, #tpu.memory_space<vmem>>, vector<32x32xf32>
    %cst_117 = arith.constant dense<0.000000e+00> : vector<9x32xf32>
    %295 = tpu.matmul %293, %294, %cst_117 {dimension_numbers = #tpu.dot_dimension_numbers<[1], [0], [0], [1], [0, 0, 1, 1], [], []>} : vector<9x32xf32>, vector<32x32xf32>, vector<9x32xf32> -> vector<9x32xf32>
    %c616 = arith.constant 616 : index
    %c0_118 = arith.constant 0 : index
    %296 = vector.load %arg5[%c616, %c0_118] : memref<1176x128xf32, #tpu.memory_space<vmem>>, vector<1x32xf32>
    %297 = vector.broadcast %296 : vector<1x32xf32> to vector<9x32xf32>
    %298 = arith.addf %295, %297 : vector<9x32xf32>
    %299 = arith.addf %282, %298 : vector<9x32xf32>
    %c624 = arith.constant 624 : index
    %c0_119 = arith.constant 0 : index
    %300 = vector.load %arg5[%c624, %c0_119] : memref<1176x128xf32, #tpu.memory_space<vmem>>, vector<1x32xf32>
    %c632 = arith.constant 632 : index
    %c0_120 = arith.constant 0 : index
    %301 = vector.load %arg5[%c632, %c0_120] : memref<1176x128xf32, #tpu.memory_space<vmem>>, vector<1x32xf32>
    %cst_121 = arith.constant dense<0.000000e+00> : vector<9xf32>
    %302 = vector.multi_reduction <add>, %299, %cst_121 [1] : vector<9x32xf32> to vector<9xf32>
    %303 = vector.shape_cast %302 : vector<9xf32> to vector<9x1xf32>
    %cst_122 = arith.constant 3.200000e+01 : f32
    %304 = vector.broadcast %cst_122 : f32 to vector<9x1xf32>
    %305 = arith.divf %303, %304 : vector<9x1xf32>
    %306 = vector.broadcast %305 : vector<9x1xf32> to vector<9x32xf32>
    %307 = arith.subf %299, %306 : vector<9x32xf32>
    %308 = arith.mulf %307, %307 : vector<9x32xf32>
    %cst_123 = arith.constant dense<0.000000e+00> : vector<9xf32>
    %309 = vector.multi_reduction <add>, %308, %cst_123 [1] : vector<9x32xf32> to vector<9xf32>
    %310 = vector.shape_cast %309 : vector<9xf32> to vector<9x1xf32>
    %cst_124 = arith.constant 3.200000e+01 : f32
    %311 = vector.broadcast %cst_124 : f32 to vector<9x1xf32>
    %312 = arith.divf %310, %311 : vector<9x1xf32>
    %cst_125 = arith.constant 9.99999974E-6 : f32
    %313 = vector.broadcast %cst_125 : f32 to vector<9x1xf32>
    %314 = arith.addf %312, %313 : vector<9x1xf32>
    %315 = math.rsqrt %314 : vector<9x1xf32>
    %316 = vector.broadcast %315 : vector<9x1xf32> to vector<9x32xf32>
    %317 = arith.mulf %307, %316 : vector<9x32xf32>
    %318 = vector.broadcast %300 : vector<1x32xf32> to vector<9x32xf32>
    %319 = arith.mulf %317, %318 : vector<9x32xf32>
    %320 = vector.broadcast %301 : vector<1x32xf32> to vector<9x32xf32>
    %321 = arith.addf %319, %320 : vector<9x32xf32>
    %c640 = arith.constant 640 : index
    %c0_126 = arith.constant 0 : index
    %322 = vector.load %arg5[%c640, %c0_126] : memref<1176x128xf32, #tpu.memory_space<vmem>>, vector<32x96xf32>
    %cst_127 = arith.constant dense<0.000000e+00> : vector<9x96xf32>
    %323 = tpu.matmul %321, %322, %cst_127 {dimension_numbers = #tpu.dot_dimension_numbers<[1], [0], [0], [1], [0, 0, 1, 1], [], []>} : vector<9x32xf32>, vector<32x96xf32>, vector<9x96xf32> -> vector<9x96xf32>
    %c672 = arith.constant 672 : index
    %c0_128 = arith.constant 0 : index
    %324 = vector.load %arg5[%c672, %c0_128] : memref<1176x128xf32, #tpu.memory_space<vmem>>, vector<1x96xf32>
    %325 = vector.broadcast %324 : vector<1x96xf32> to vector<9x96xf32>
    %326 = arith.addf %323, %325 : vector<9x96xf32>
    %c680 = arith.constant 680 : index
    %c0_129 = arith.constant 0 : index
    %327 = vector.load %arg5[%c680, %c0_129] : memref<1176x128xf32, #tpu.memory_space<vmem>>, vector<32x32xf32>
    %328 = vector.extract_strided_slice %326 {offsets = [0, 0], sizes = [9, 8], strides = [1, 1]} : vector<9x96xf32> to vector<9x8xf32>
    %329 = vector.extract_strided_slice %326 {offsets = [0, 32], sizes = [9, 8], strides = [1, 1]} : vector<9x96xf32> to vector<9x8xf32>
    %330 = vector.extract_strided_slice %326 {offsets = [0, 64], sizes = [9, 8], strides = [1, 1]} : vector<9x96xf32> to vector<9x8xf32>
    %cst_130 = arith.constant dense<0.000000e+00> : vector<9x9xf32>
    %331 = tpu.matmul %328, %329, %cst_130 {dimension_numbers = #tpu.dot_dimension_numbers<[1], [1], [0], [0], [0, 0, 1, 0], [], []>} : vector<9x8xf32>, vector<9x8xf32>, vector<9x9xf32> -> vector<9x9xf32>
    %cst_131 = arith.constant 0.353553385 : f32
    %332 = vector.broadcast %cst_131 : f32 to vector<9x9xf32>
    %333 = arith.mulf %331, %332 : vector<9x9xf32>
    %334 = arith.addf %333, %171 : vector<9x9xf32>
    %cst_132 = arith.constant dense<0xFF800000> : vector<9xf32>
    %335 = vector.multi_reduction <maximumf>, %334, %cst_132 [1] : vector<9x9xf32> to vector<9xf32>
    %336 = vector.shape_cast %335 : vector<9xf32> to vector<9x1xf32>
    %337 = vector.broadcast %336 : vector<9x1xf32> to vector<9x9xf32>
    %338 = arith.subf %334, %337 : vector<9x9xf32>
    %339 = math.exp %338 : vector<9x9xf32>
    %cst_133 = arith.constant dense<0.000000e+00> : vector<9xf32>
    %340 = vector.multi_reduction <add>, %339, %cst_133 [1] : vector<9x9xf32> to vector<9xf32>
    %341 = vector.shape_cast %340 : vector<9xf32> to vector<9x1xf32>
    %342 = vector.broadcast %341 : vector<9x1xf32> to vector<9x9xf32>
    %343 = arith.divf %339, %342 : vector<9x9xf32>
    %cst_134 = arith.constant dense<0.000000e+00> : vector<9x8xf32>
    %344 = tpu.matmul %343, %330, %cst_134 {dimension_numbers = #tpu.dot_dimension_numbers<[1], [0], [0], [1], [0, 0, 1, 1], [], []>} : vector<9x9xf32>, vector<9x8xf32>, vector<9x8xf32> -> vector<9x8xf32>
    %345 = vector.extract_strided_slice %327 {offsets = [0, 0], sizes = [8, 32], strides = [1, 1]} : vector<32x32xf32> to vector<8x32xf32>
    %cst_135 = arith.constant dense<0.000000e+00> : vector<9x32xf32>
    %346 = tpu.matmul %344, %345, %cst_135 {dimension_numbers = #tpu.dot_dimension_numbers<[1], [0], [0], [1], [0, 0, 1, 1], [], []>} : vector<9x8xf32>, vector<8x32xf32>, vector<9x32xf32> -> vector<9x32xf32>
    %347 = vector.extract_strided_slice %326 {offsets = [0, 8], sizes = [9, 8], strides = [1, 1]} : vector<9x96xf32> to vector<9x8xf32>
    %348 = vector.extract_strided_slice %326 {offsets = [0, 40], sizes = [9, 8], strides = [1, 1]} : vector<9x96xf32> to vector<9x8xf32>
    %349 = vector.extract_strided_slice %326 {offsets = [0, 72], sizes = [9, 8], strides = [1, 1]} : vector<9x96xf32> to vector<9x8xf32>
    %cst_136 = arith.constant dense<0.000000e+00> : vector<9x9xf32>
    %350 = tpu.matmul %347, %348, %cst_136 {dimension_numbers = #tpu.dot_dimension_numbers<[1], [1], [0], [0], [0, 0, 1, 0], [], []>} : vector<9x8xf32>, vector<9x8xf32>, vector<9x9xf32> -> vector<9x9xf32>
    %cst_137 = arith.constant 0.353553385 : f32
    %351 = vector.broadcast %cst_137 : f32 to vector<9x9xf32>
    %352 = arith.mulf %350, %351 : vector<9x9xf32>
    %353 = arith.addf %352, %171 : vector<9x9xf32>
    %cst_138 = arith.constant dense<0xFF800000> : vector<9xf32>
    %354 = vector.multi_reduction <maximumf>, %353, %cst_138 [1] : vector<9x9xf32> to vector<9xf32>
    %355 = vector.shape_cast %354 : vector<9xf32> to vector<9x1xf32>
    %356 = vector.broadcast %355 : vector<9x1xf32> to vector<9x9xf32>
    %357 = arith.subf %353, %356 : vector<9x9xf32>
    %358 = math.exp %357 : vector<9x9xf32>
    %cst_139 = arith.constant dense<0.000000e+00> : vector<9xf32>
    %359 = vector.multi_reduction <add>, %358, %cst_139 [1] : vector<9x9xf32> to vector<9xf32>
    %360 = vector.shape_cast %359 : vector<9xf32> to vector<9x1xf32>
    %361 = vector.broadcast %360 : vector<9x1xf32> to vector<9x9xf32>
    %362 = arith.divf %358, %361 : vector<9x9xf32>
    %cst_140 = arith.constant dense<0.000000e+00> : vector<9x8xf32>
    %363 = tpu.matmul %362, %349, %cst_140 {dimension_numbers = #tpu.dot_dimension_numbers<[1], [0], [0], [1], [0, 0, 1, 1], [], []>} : vector<9x9xf32>, vector<9x8xf32>, vector<9x8xf32> -> vector<9x8xf32>
    %364 = vector.extract_strided_slice %327 {offsets = [8, 0], sizes = [8, 32], strides = [1, 1]} : vector<32x32xf32> to vector<8x32xf32>
    %cst_141 = arith.constant dense<0.000000e+00> : vector<9x32xf32>
    %365 = tpu.matmul %363, %364, %cst_141 {dimension_numbers = #tpu.dot_dimension_numbers<[1], [0], [0], [1], [0, 0, 1, 1], [], []>} : vector<9x8xf32>, vector<8x32xf32>, vector<9x32xf32> -> vector<9x32xf32>
    %366 = arith.addf %346, %365 : vector<9x32xf32>
    %367 = vector.extract_strided_slice %326 {offsets = [0, 16], sizes = [9, 8], strides = [1, 1]} : vector<9x96xf32> to vector<9x8xf32>
    %368 = vector.extract_strided_slice %326 {offsets = [0, 48], sizes = [9, 8], strides = [1, 1]} : vector<9x96xf32> to vector<9x8xf32>
    %369 = vector.extract_strided_slice %326 {offsets = [0, 80], sizes = [9, 8], strides = [1, 1]} : vector<9x96xf32> to vector<9x8xf32>
    %cst_142 = arith.constant dense<0.000000e+00> : vector<9x9xf32>
    %370 = tpu.matmul %367, %368, %cst_142 {dimension_numbers = #tpu.dot_dimension_numbers<[1], [1], [0], [0], [0, 0, 1, 0], [], []>} : vector<9x8xf32>, vector<9x8xf32>, vector<9x9xf32> -> vector<9x9xf32>
    %cst_143 = arith.constant 0.353553385 : f32
    %371 = vector.broadcast %cst_143 : f32 to vector<9x9xf32>
    %372 = arith.mulf %370, %371 : vector<9x9xf32>
    %373 = arith.addf %372, %171 : vector<9x9xf32>
    %cst_144 = arith.constant dense<0xFF800000> : vector<9xf32>
    %374 = vector.multi_reduction <maximumf>, %373, %cst_144 [1] : vector<9x9xf32> to vector<9xf32>
    %375 = vector.shape_cast %374 : vector<9xf32> to vector<9x1xf32>
    %376 = vector.broadcast %375 : vector<9x1xf32> to vector<9x9xf32>
    %377 = arith.subf %373, %376 : vector<9x9xf32>
    %378 = math.exp %377 : vector<9x9xf32>
    %cst_145 = arith.constant dense<0.000000e+00> : vector<9xf32>
    %379 = vector.multi_reduction <add>, %378, %cst_145 [1] : vector<9x9xf32> to vector<9xf32>
    %380 = vector.shape_cast %379 : vector<9xf32> to vector<9x1xf32>
    %381 = vector.broadcast %380 : vector<9x1xf32> to vector<9x9xf32>
    %382 = arith.divf %378, %381 : vector<9x9xf32>
    %cst_146 = arith.constant dense<0.000000e+00> : vector<9x8xf32>
    %383 = tpu.matmul %382, %369, %cst_146 {dimension_numbers = #tpu.dot_dimension_numbers<[1], [0], [0], [1], [0, 0, 1, 1], [], []>} : vector<9x9xf32>, vector<9x8xf32>, vector<9x8xf32> -> vector<9x8xf32>
    %384 = vector.extract_strided_slice %327 {offsets = [16, 0], sizes = [8, 32], strides = [1, 1]} : vector<32x32xf32> to vector<8x32xf32>
    %cst_147 = arith.constant dense<0.000000e+00> : vector<9x32xf32>
    %385 = tpu.matmul %383, %384, %cst_147 {dimension_numbers = #tpu.dot_dimension_numbers<[1], [0], [0], [1], [0, 0, 1, 1], [], []>} : vector<9x8xf32>, vector<8x32xf32>, vector<9x32xf32> -> vector<9x32xf32>
    %386 = arith.addf %366, %385 : vector<9x32xf32>
    %387 = vector.extract_strided_slice %326 {offsets = [0, 24], sizes = [9, 8], strides = [1, 1]} : vector<9x96xf32> to vector<9x8xf32>
    %388 = vector.extract_strided_slice %326 {offsets = [0, 56], sizes = [9, 8], strides = [1, 1]} : vector<9x96xf32> to vector<9x8xf32>
    %389 = vector.extract_strided_slice %326 {offsets = [0, 88], sizes = [9, 8], strides = [1, 1]} : vector<9x96xf32> to vector<9x8xf32>
    %cst_148 = arith.constant dense<0.000000e+00> : vector<9x9xf32>
    %390 = tpu.matmul %387, %388, %cst_148 {dimension_numbers = #tpu.dot_dimension_numbers<[1], [1], [0], [0], [0, 0, 1, 0], [], []>} : vector<9x8xf32>, vector<9x8xf32>, vector<9x9xf32> -> vector<9x9xf32>
    %cst_149 = arith.constant 0.353553385 : f32
    %391 = vector.broadcast %cst_149 : f32 to vector<9x9xf32>
    %392 = arith.mulf %390, %391 : vector<9x9xf32>
    %393 = arith.addf %392, %171 : vector<9x9xf32>
    %cst_150 = arith.constant dense<0xFF800000> : vector<9xf32>
    %394 = vector.multi_reduction <maximumf>, %393, %cst_150 [1] : vector<9x9xf32> to vector<9xf32>
    %395 = vector.shape_cast %394 : vector<9xf32> to vector<9x1xf32>
    %396 = vector.broadcast %395 : vector<9x1xf32> to vector<9x9xf32>
    %397 = arith.subf %393, %396 : vector<9x9xf32>
    %398 = math.exp %397 : vector<9x9xf32>
    %cst_151 = arith.constant dense<0.000000e+00> : vector<9xf32>
    %399 = vector.multi_reduction <add>, %398, %cst_151 [1] : vector<9x9xf32> to vector<9xf32>
    %400 = vector.shape_cast %399 : vector<9xf32> to vector<9x1xf32>
    %401 = vector.broadcast %400 : vector<9x1xf32> to vector<9x9xf32>
    %402 = arith.divf %398, %401 : vector<9x9xf32>
    %cst_152 = arith.constant dense<0.000000e+00> : vector<9x8xf32>
    %403 = tpu.matmul %402, %389, %cst_152 {dimension_numbers = #tpu.dot_dimension_numbers<[1], [0], [0], [1], [0, 0, 1, 1], [], []>} : vector<9x9xf32>, vector<9x8xf32>, vector<9x8xf32> -> vector<9x8xf32>
    %404 = vector.extract_strided_slice %327 {offsets = [24, 0], sizes = [8, 32], strides = [1, 1]} : vector<32x32xf32> to vector<8x32xf32>
    %cst_153 = arith.constant dense<0.000000e+00> : vector<9x32xf32>
    %405 = tpu.matmul %403, %404, %cst_153 {dimension_numbers = #tpu.dot_dimension_numbers<[1], [0], [0], [1], [0, 0, 1, 1], [], []>} : vector<9x8xf32>, vector<8x32xf32>, vector<9x32xf32> -> vector<9x32xf32>
    %406 = arith.addf %386, %405 : vector<9x32xf32>
    %c712 = arith.constant 712 : index
    %c0_154 = arith.constant 0 : index
    %407 = vector.load %arg5[%c712, %c0_154] : memref<1176x128xf32, #tpu.memory_space<vmem>>, vector<1x32xf32>
    %408 = vector.broadcast %407 : vector<1x32xf32> to vector<9x32xf32>
    %409 = arith.addf %406, %408 : vector<9x32xf32>
    %410 = arith.addf %321, %409 : vector<9x32xf32>
    %c720 = arith.constant 720 : index
    %c0_155 = arith.constant 0 : index
    %411 = vector.load %arg5[%c720, %c0_155] : memref<1176x128xf32, #tpu.memory_space<vmem>>, vector<1x32xf32>
    %c728 = arith.constant 728 : index
    %c0_156 = arith.constant 0 : index
    %412 = vector.load %arg5[%c728, %c0_156] : memref<1176x128xf32, #tpu.memory_space<vmem>>, vector<1x32xf32>
    %cst_157 = arith.constant dense<0.000000e+00> : vector<9xf32>
    %413 = vector.multi_reduction <add>, %410, %cst_157 [1] : vector<9x32xf32> to vector<9xf32>
    %414 = vector.shape_cast %413 : vector<9xf32> to vector<9x1xf32>
    %cst_158 = arith.constant 3.200000e+01 : f32
    %415 = vector.broadcast %cst_158 : f32 to vector<9x1xf32>
    %416 = arith.divf %414, %415 : vector<9x1xf32>
    %417 = vector.broadcast %416 : vector<9x1xf32> to vector<9x32xf32>
    %418 = arith.subf %410, %417 : vector<9x32xf32>
    %419 = arith.mulf %418, %418 : vector<9x32xf32>
    %cst_159 = arith.constant dense<0.000000e+00> : vector<9xf32>
    %420 = vector.multi_reduction <add>, %419, %cst_159 [1] : vector<9x32xf32> to vector<9xf32>
    %421 = vector.shape_cast %420 : vector<9xf32> to vector<9x1xf32>
    %cst_160 = arith.constant 3.200000e+01 : f32
    %422 = vector.broadcast %cst_160 : f32 to vector<9x1xf32>
    %423 = arith.divf %421, %422 : vector<9x1xf32>
    %cst_161 = arith.constant 9.99999974E-6 : f32
    %424 = vector.broadcast %cst_161 : f32 to vector<9x1xf32>
    %425 = arith.addf %423, %424 : vector<9x1xf32>
    %426 = math.rsqrt %425 : vector<9x1xf32>
    %427 = vector.broadcast %426 : vector<9x1xf32> to vector<9x32xf32>
    %428 = arith.mulf %418, %427 : vector<9x32xf32>
    %429 = vector.broadcast %411 : vector<1x32xf32> to vector<9x32xf32>
    %430 = arith.mulf %428, %429 : vector<9x32xf32>
    %431 = vector.broadcast %412 : vector<1x32xf32> to vector<9x32xf32>
    %432 = arith.addf %430, %431 : vector<9x32xf32>
    %c736 = arith.constant 736 : index
    %c0_162 = arith.constant 0 : index
    %433 = vector.load %arg5[%c736, %c0_162] : memref<1176x128xf32, #tpu.memory_space<vmem>>, vector<32x32xf32>
    %cst_163 = arith.constant dense<0.000000e+00> : vector<9x32xf32>
    %434 = tpu.matmul %432, %433, %cst_163 {dimension_numbers = #tpu.dot_dimension_numbers<[1], [0], [0], [1], [0, 0, 1, 1], [], []>} : vector<9x32xf32>, vector<32x32xf32>, vector<9x32xf32> -> vector<9x32xf32>
    %c768 = arith.constant 768 : index
    %c0_164 = arith.constant 0 : index
    %435 = vector.load %arg5[%c768, %c0_164] : memref<1176x128xf32, #tpu.memory_space<vmem>>, vector<1x32xf32>
    %436 = vector.broadcast %435 : vector<1x32xf32> to vector<9x32xf32>
    %437 = arith.addf %434, %436 : vector<9x32xf32>
    %438 = arith.negf %437 : vector<9x32xf32>
    %439 = math.exp %438 : vector<9x32xf32>
    %cst_165 = arith.constant 1.000000e+00 : f32
    %440 = vector.broadcast %cst_165 : f32 to vector<9x32xf32>
    %441 = arith.addf %440, %439 : vector<9x32xf32>
    %442 = arith.divf %440, %441 : vector<9x32xf32>
    %443 = arith.mulf %437, %442 : vector<9x32xf32>
    %c776 = arith.constant 776 : index
    %c0_166 = arith.constant 0 : index
    %444 = vector.load %arg5[%c776, %c0_166] : memref<1176x128xf32, #tpu.memory_space<vmem>>, vector<32x32xf32>
    %cst_167 = arith.constant dense<0.000000e+00> : vector<9x32xf32>
    %445 = tpu.matmul %443, %444, %cst_167 {dimension_numbers = #tpu.dot_dimension_numbers<[1], [0], [0], [1], [0, 0, 1, 1], [], []>} : vector<9x32xf32>, vector<32x32xf32>, vector<9x32xf32> -> vector<9x32xf32>
    %c808 = arith.constant 808 : index
    %c0_168 = arith.constant 0 : index
    %446 = vector.load %arg5[%c808, %c0_168] : memref<1176x128xf32, #tpu.memory_space<vmem>>, vector<1x32xf32>
    %447 = vector.broadcast %446 : vector<1x32xf32> to vector<9x32xf32>
    %448 = arith.addf %445, %447 : vector<9x32xf32>
    %449 = arith.addf %432, %448 : vector<9x32xf32>
    %c816 = arith.constant 816 : index
    %c0_169 = arith.constant 0 : index
    %450 = vector.load %arg5[%c816, %c0_169] : memref<1176x128xf32, #tpu.memory_space<vmem>>, vector<1x32xf32>
    %c824 = arith.constant 824 : index
    %c0_170 = arith.constant 0 : index
    %451 = vector.load %arg5[%c824, %c0_170] : memref<1176x128xf32, #tpu.memory_space<vmem>>, vector<1x32xf32>
    %cst_171 = arith.constant dense<0.000000e+00> : vector<9xf32>
    %452 = vector.multi_reduction <add>, %449, %cst_171 [1] : vector<9x32xf32> to vector<9xf32>
    %453 = vector.shape_cast %452 : vector<9xf32> to vector<9x1xf32>
    %cst_172 = arith.constant 3.200000e+01 : f32
    %454 = vector.broadcast %cst_172 : f32 to vector<9x1xf32>
    %455 = arith.divf %453, %454 : vector<9x1xf32>
    %456 = vector.broadcast %455 : vector<9x1xf32> to vector<9x32xf32>
    %457 = arith.subf %449, %456 : vector<9x32xf32>
    %458 = arith.mulf %457, %457 : vector<9x32xf32>
    %cst_173 = arith.constant dense<0.000000e+00> : vector<9xf32>
    %459 = vector.multi_reduction <add>, %458, %cst_173 [1] : vector<9x32xf32> to vector<9xf32>
    %460 = vector.shape_cast %459 : vector<9xf32> to vector<9x1xf32>
    %cst_174 = arith.constant 3.200000e+01 : f32
    %461 = vector.broadcast %cst_174 : f32 to vector<9x1xf32>
    %462 = arith.divf %460, %461 : vector<9x1xf32>
    %cst_175 = arith.constant 9.99999974E-6 : f32
    %463 = vector.broadcast %cst_175 : f32 to vector<9x1xf32>
    %464 = arith.addf %462, %463 : vector<9x1xf32>
    %465 = math.rsqrt %464 : vector<9x1xf32>
    %466 = vector.broadcast %465 : vector<9x1xf32> to vector<9x32xf32>
    %467 = arith.mulf %457, %466 : vector<9x32xf32>
    %468 = vector.broadcast %450 : vector<1x32xf32> to vector<9x32xf32>
    %469 = arith.mulf %467, %468 : vector<9x32xf32>
    %470 = vector.broadcast %451 : vector<1x32xf32> to vector<9x32xf32>
    %471 = arith.addf %469, %470 : vector<9x32xf32>
    %472 = vector.extract_strided_slice %471 {offsets = [0, 0], sizes = [8, 32], strides = [1, 1]} : vector<9x32xf32> to vector<8x32xf32>
    %473 = vector.extract_strided_slice %471 {offsets = [8, 0], sizes = [1, 32], strides = [1, 1]} : vector<9x32xf32> to vector<1x32xf32>
    %c832 = arith.constant 832 : index
    %c0_176 = arith.constant 0 : index
    %474 = vector.load %arg5[%c832, %c0_176] : memref<1176x128xf32, #tpu.memory_space<vmem>>, vector<32x32xf32>
    %cst_177 = arith.constant dense<0.000000e+00> : vector<1x32xf32>
    %475 = tpu.matmul %473, %474, %cst_177 {dimension_numbers = #tpu.dot_dimension_numbers<[1], [0], [0], [1], [0, 0, 1, 1], [], []>} : vector<1x32xf32>, vector<32x32xf32>, vector<1x32xf32> -> vector<1x32xf32>
    %c864 = arith.constant 864 : index
    %c0_178 = arith.constant 0 : index
    %476 = vector.load %arg5[%c864, %c0_178] : memref<1176x128xf32, #tpu.memory_space<vmem>>, vector<1x32xf32>
    %477 = arith.addf %475, %476 : vector<1x32xf32>
    %478 = arith.negf %477 : vector<1x32xf32>
    %479 = math.exp %478 : vector<1x32xf32>
    %cst_179 = arith.constant 1.000000e+00 : f32
    %480 = vector.broadcast %cst_179 : f32 to vector<1x32xf32>
    %481 = arith.addf %480, %479 : vector<1x32xf32>
    %482 = arith.divf %480, %481 : vector<1x32xf32>
    %483 = arith.mulf %477, %482 : vector<1x32xf32>
    %c872 = arith.constant 872 : index
    %c0_180 = arith.constant 0 : index
    %484 = vector.load %arg5[%c872, %c0_180] : memref<1176x128xf32, #tpu.memory_space<vmem>>, vector<32x32xf32>
    %cst_181 = arith.constant dense<0.000000e+00> : vector<1x32xf32>
    %485 = tpu.matmul %483, %484, %cst_181 {dimension_numbers = #tpu.dot_dimension_numbers<[1], [0], [0], [1], [0, 0, 1, 1], [], []>} : vector<1x32xf32>, vector<32x32xf32>, vector<1x32xf32> -> vector<1x32xf32>
    %c904 = arith.constant 904 : index
    %c0_182 = arith.constant 0 : index
    %486 = vector.load %arg5[%c904, %c0_182] : memref<1176x128xf32, #tpu.memory_space<vmem>>, vector<1x32xf32>
    %487 = arith.addf %485, %486 : vector<1x32xf32>
    %c912 = arith.constant 912 : index
    %c0_183 = arith.constant 0 : index
    %488 = vector.load %arg5[%c912, %c0_183] : memref<1176x128xf32, #tpu.memory_space<vmem>>, vector<1x32xf32>
    %c920 = arith.constant 920 : index
    %c0_184 = arith.constant 0 : index
    %489 = vector.load %arg5[%c920, %c0_184] : memref<1176x128xf32, #tpu.memory_space<vmem>>, vector<1x32xf32>
    %cst_185 = arith.constant dense<0.000000e+00> : vector<1xf32>
    %490 = vector.multi_reduction <add>, %487, %cst_185 [1] : vector<1x32xf32> to vector<1xf32>
    %491 = vector.shape_cast %490 : vector<1xf32> to vector<1x1xf32>
    %cst_186 = arith.constant 3.200000e+01 : f32
    %492 = vector.broadcast %cst_186 : f32 to vector<1x1xf32>
    %493 = arith.divf %491, %492 : vector<1x1xf32>
    %494 = vector.broadcast %493 : vector<1x1xf32> to vector<1x32xf32>
    %495 = arith.subf %487, %494 : vector<1x32xf32>
    %496 = arith.mulf %495, %495 : vector<1x32xf32>
    %cst_187 = arith.constant dense<0.000000e+00> : vector<1xf32>
    %497 = vector.multi_reduction <add>, %496, %cst_187 [1] : vector<1x32xf32> to vector<1xf32>
    %498 = vector.shape_cast %497 : vector<1xf32> to vector<1x1xf32>
    %cst_188 = arith.constant 3.200000e+01 : f32
    %499 = vector.broadcast %cst_188 : f32 to vector<1x1xf32>
    %500 = arith.divf %498, %499 : vector<1x1xf32>
    %cst_189 = arith.constant 9.99999974E-6 : f32
    %501 = vector.broadcast %cst_189 : f32 to vector<1x1xf32>
    %502 = arith.addf %500, %501 : vector<1x1xf32>
    %503 = math.rsqrt %502 : vector<1x1xf32>
    %504 = vector.broadcast %503 : vector<1x1xf32> to vector<1x32xf32>
    %505 = arith.mulf %495, %504 : vector<1x32xf32>
    %506 = arith.mulf %505, %488 : vector<1x32xf32>
    %507 = arith.addf %506, %489 : vector<1x32xf32>
    %c928 = arith.constant 928 : index
    %c0_190 = arith.constant 0 : index
    %508 = vector.load %arg5[%c928, %c0_190] : memref<1176x128xf32, #tpu.memory_space<vmem>>, vector<32x4xf32>
    %cst_191 = arith.constant dense<0.000000e+00> : vector<1x4xf32>
    %509 = tpu.matmul %507, %508, %cst_191 {dimension_numbers = #tpu.dot_dimension_numbers<[1], [0], [0], [1], [0, 0, 1, 1], [], []>} : vector<1x32xf32>, vector<32x4xf32>, vector<1x4xf32> -> vector<1x4xf32>
    %c960 = arith.constant 960 : index
    %c0_192 = arith.constant 0 : index
    %510 = vector.load %arg5[%c960, %c0_192] : memref<1176x128xf32, #tpu.memory_space<vmem>>, vector<1x4xf32>
    %511 = arith.addf %509, %510 : vector<1x4xf32>
    %cst_193 = arith.constant dense<0xFF800000> : vector<1xf32>
    %512 = vector.multi_reduction <maximumf>, %511, %cst_193 [1] : vector<1x4xf32> to vector<1xf32>
    %513 = vector.shape_cast %512 : vector<1xf32> to vector<1x1xf32>
    %514 = vector.broadcast %513 : vector<1x1xf32> to vector<1x4xf32>
    %515 = arith.subf %511, %514 : vector<1x4xf32>
    %516 = math.exp %515 : vector<1x4xf32>
    %cst_194 = arith.constant dense<0.000000e+00> : vector<1xf32>
    %517 = vector.multi_reduction <add>, %516, %cst_194 [1] : vector<1x4xf32> to vector<1xf32>
    %518 = vector.shape_cast %517 : vector<1xf32> to vector<1x1xf32>
    %519 = vector.broadcast %518 : vector<1x1xf32> to vector<1x4xf32>
    %520 = arith.divf %516, %519 : vector<1x4xf32>
    %c0_195 = arith.constant 0 : index
    %c0_196 = arith.constant 0 : index
    %c0_197 = arith.constant 0 : index
    %521 = vector.load %arg7[%c0_195, %c0_196, %c0_197] : memref<2x1x4xf32, #tpu.memory_space<vmem>>, vector<1x1x4xf32>
    %522 = vector.shape_cast %521 : vector<1x1x4xf32> to vector<1x4xf32>
    %523 = vector.shape_cast %520 : vector<1x4xf32> to vector<1x1x4xf32>
    tpu.vector_store %arg7[%c0_195, %c0_196, %c0_197], %523 {strides = array<i32>} : memref<2x1x4xf32, #tpu.memory_space<vmem>>, vector<1x1x4xf32>,
    %c968 = arith.constant 968 : index
    %c0_198 = arith.constant 0 : index
    %524 = vector.load %arg5[%c968, %c0_198] : memref<1176x128xf32, #tpu.memory_space<vmem>>, vector<32x16xf32>
    %cst_199 = arith.constant dense<0.000000e+00> : vector<8x16xf32>
    %525 = tpu.matmul %472, %524, %cst_199 {dimension_numbers = #tpu.dot_dimension_numbers<[1], [0], [0], [1], [0, 0, 1, 1], [], []>} : vector<8x32xf32>, vector<32x16xf32>, vector<8x16xf32> -> vector<8x16xf32>
    %c1000 = arith.constant 1000 : index
    %c0_200 = arith.constant 0 : index
    %526 = vector.load %arg5[%c1000, %c0_200] : memref<1176x128xf32, #tpu.memory_space<vmem>>, vector<1x16xf32>
    %527 = vector.broadcast %526 : vector<1x16xf32> to vector<8x16xf32>
    %528 = arith.addf %525, %527 : vector<8x16xf32>
    %529 = arith.negf %528 : vector<8x16xf32>
    %530 = math.exp %529 : vector<8x16xf32>
    %cst_201 = arith.constant 1.000000e+00 : f32
    %531 = vector.broadcast %cst_201 : f32 to vector<8x16xf32>
    %532 = arith.addf %531, %530 : vector<8x16xf32>
    %533 = arith.divf %531, %532 : vector<8x16xf32>
    %534 = arith.mulf %528, %533 : vector<8x16xf32>
    %c1008 = arith.constant 1008 : index
    %c0_202 = arith.constant 0 : index
    %535 = vector.load %arg5[%c1008, %c0_202] : memref<1176x128xf32, #tpu.memory_space<vmem>>, vector<16x16xf32>
    %cst_203 = arith.constant dense<0.000000e+00> : vector<8x16xf32>
    %536 = tpu.matmul %534, %535, %cst_203 {dimension_numbers = #tpu.dot_dimension_numbers<[1], [0], [0], [1], [0, 0, 1, 1], [], []>} : vector<8x16xf32>, vector<16x16xf32>, vector<8x16xf32> -> vector<8x16xf32>
    %c1024 = arith.constant 1024 : index
    %c0_204 = arith.constant 0 : index
    %537 = vector.load %arg5[%c1024, %c0_204] : memref<1176x128xf32, #tpu.memory_space<vmem>>, vector<1x16xf32>
    %538 = vector.broadcast %537 : vector<1x16xf32> to vector<8x16xf32>
    %539 = arith.addf %536, %538 : vector<8x16xf32>
    %540 = vector.extract_strided_slice %539 {offsets = [0, 0], sizes = [8, 8], strides = [1, 1]} : vector<8x16xf32> to vector<8x8xf32>
    %c1032 = arith.constant 1032 : index
    %c0_205 = arith.constant 0 : index
    %541 = vector.load %arg5[%c1032, %c0_205] : memref<1176x128xf32, #tpu.memory_space<vmem>>, vector<8x8xf32>
    %c1040 = arith.constant 1040 : index
    %c0_206 = arith.constant 0 : index
    %542 = vector.load %arg5[%c1040, %c0_206] : memref<1176x128xf32, #tpu.memory_space<vmem>>, vector<8x8xf32>
    %cst_207 = arith.constant dense<0.000000e+00> : vector<8xf32>
    %543 = vector.multi_reduction <add>, %540, %cst_207 [1] : vector<8x8xf32> to vector<8xf32>
    %544 = vector.shape_cast %543 : vector<8xf32> to vector<8x1xf32>
    %cst_208 = arith.constant 8.000000e+00 : f32
    %545 = vector.broadcast %cst_208 : f32 to vector<8x1xf32>
    %546 = arith.divf %544, %545 : vector<8x1xf32>
    %cst_209 = arith.constant dense<0.000000e+00> : vector<1xf32>
    %547 = vector.multi_reduction <add>, %546, %cst_209 [0] : vector<8x1xf32> to vector<1xf32>
    %548 = vector.shape_cast %547 : vector<1xf32> to vector<1x1xf32>
    %cst_210 = arith.constant 8.000000e+00 : f32
    %549 = vector.broadcast %cst_210 : f32 to vector<1x1xf32>
    %550 = arith.divf %548, %549 : vector<1x1xf32>
    %551 = vector.broadcast %550 : vector<1x1xf32> to vector<8x8xf32>
    %552 = arith.subf %540, %551 : vector<8x8xf32>
    %553 = arith.mulf %552, %552 : vector<8x8xf32>
    %cst_211 = arith.constant dense<0.000000e+00> : vector<8xf32>
    %554 = vector.multi_reduction <add>, %553, %cst_211 [1] : vector<8x8xf32> to vector<8xf32>
    %555 = vector.shape_cast %554 : vector<8xf32> to vector<8x1xf32>
    %cst_212 = arith.constant 8.000000e+00 : f32
    %556 = vector.broadcast %cst_212 : f32 to vector<8x1xf32>
    %557 = arith.divf %555, %556 : vector<8x1xf32>
    %cst_213 = arith.constant dense<0.000000e+00> : vector<1xf32>
    %558 = vector.multi_reduction <add>, %557, %cst_213 [0] : vector<8x1xf32> to vector<1xf32>
    %559 = vector.shape_cast %558 : vector<1xf32> to vector<1x1xf32>
    %cst_214 = arith.constant 8.000000e+00 : f32
    %560 = vector.broadcast %cst_214 : f32 to vector<1x1xf32>
    %561 = arith.divf %559, %560 : vector<1x1xf32>
    %cst_215 = arith.constant 9.99999974E-6 : f32
    %562 = vector.broadcast %cst_215 : f32 to vector<1x1xf32>
    %563 = arith.addf %561, %562 : vector<1x1xf32>
    %564 = math.rsqrt %563 : vector<1x1xf32>
    %565 = vector.broadcast %564 : vector<1x1xf32> to vector<8x8xf32>
    %566 = arith.mulf %552, %565 : vector<8x8xf32>
    %567 = arith.mulf %566, %541 : vector<8x8xf32>
    %568 = arith.addf %567, %542 : vector<8x8xf32>
    %569 = vector.extract_strided_slice %539 {offsets = [0, 8], sizes = [8, 8], strides = [1, 1]} : vector<8x16xf32> to vector<8x8xf32>
    %c1048 = arith.constant 1048 : index
    %c0_216 = arith.constant 0 : index
    %570 = vector.load %arg5[%c1048, %c0_216] : memref<1176x128xf32, #tpu.memory_space<vmem>>, vector<8x8xf32>
    %c1056 = arith.constant 1056 : index
    %c0_217 = arith.constant 0 : index
    %571 = vector.load %arg5[%c1056, %c0_217] : memref<1176x128xf32, #tpu.memory_space<vmem>>, vector<8x8xf32>
    %cst_218 = arith.constant dense<0.000000e+00> : vector<8xf32>
    %572 = vector.multi_reduction <add>, %569, %cst_218 [1] : vector<8x8xf32> to vector<8xf32>
    %573 = vector.shape_cast %572 : vector<8xf32> to vector<8x1xf32>
    %cst_219 = arith.constant 8.000000e+00 : f32
    %574 = vector.broadcast %cst_219 : f32 to vector<8x1xf32>
    %575 = arith.divf %573, %574 : vector<8x1xf32>
    %cst_220 = arith.constant dense<0.000000e+00> : vector<1xf32>
    %576 = vector.multi_reduction <add>, %575, %cst_220 [0] : vector<8x1xf32> to vector<1xf32>
    %577 = vector.shape_cast %576 : vector<1xf32> to vector<1x1xf32>
    %cst_221 = arith.constant 8.000000e+00 : f32
    %578 = vector.broadcast %cst_221 : f32 to vector<1x1xf32>
    %579 = arith.divf %577, %578 : vector<1x1xf32>
    %580 = vector.broadcast %579 : vector<1x1xf32> to vector<8x8xf32>
    %581 = arith.subf %569, %580 : vector<8x8xf32>
    %582 = arith.mulf %581, %581 : vector<8x8xf32>
    %cst_222 = arith.constant dense<0.000000e+00> : vector<8xf32>
    %583 = vector.multi_reduction <add>, %582, %cst_222 [1] : vector<8x8xf32> to vector<8xf32>
    %584 = vector.shape_cast %583 : vector<8xf32> to vector<8x1xf32>
    %cst_223 = arith.constant 8.000000e+00 : f32
    %585 = vector.broadcast %cst_223 : f32 to vector<8x1xf32>
    %586 = arith.divf %584, %585 : vector<8x1xf32>
    %cst_224 = arith.constant dense<0.000000e+00> : vector<1xf32>
    %587 = vector.multi_reduction <add>, %586, %cst_224 [0] : vector<8x1xf32> to vector<1xf32>
    %588 = vector.shape_cast %587 : vector<1xf32> to vector<1x1xf32>
    %cst_225 = arith.constant 8.000000e+00 : f32
    %589 = vector.broadcast %cst_225 : f32 to vector<1x1xf32>
    %590 = arith.divf %588, %589 : vector<1x1xf32>
    %cst_226 = arith.constant 9.99999974E-6 : f32
    %591 = vector.broadcast %cst_226 : f32 to vector<1x1xf32>
    %592 = arith.addf %590, %591 : vector<1x1xf32>
    %593 = math.rsqrt %592 : vector<1x1xf32>
    %594 = vector.broadcast %593 : vector<1x1xf32> to vector<8x8xf32>
    %595 = arith.mulf %581, %594 : vector<8x8xf32>
    %596 = arith.mulf %595, %570 : vector<8x8xf32>
    %597 = arith.addf %596, %571 : vector<8x8xf32>
    %cst_227 = arith.constant 5.000000e-01 : f32
    %598 = vector.broadcast %cst_227 : f32 to vector<8x8xf32>
    %599 = arith.mulf %597, %598 : vector<8x8xf32>
    %600 = math.exp %599 : vector<8x8xf32>
    %601 = arith.mulf %600, %7 : vector<8x8xf32>
    %602 = arith.addf %568, %601 : vector<8x8xf32>
    %603 = tpu.concatenate %602, %568, %597 in 1 : vector<8x8xf32>, vector<8x8xf32>, vector<8x8xf32> -> vector<8x24xf32>
    %c0_228 = arith.constant 0 : index
    %c0_229 = arith.constant 0 : index
    %c0_230 = arith.constant 0 : index
    %604 = vector.load %arg6[%c0_228, %c0_229, %c0_230] : memref<2x8x24xf32, #tpu.memory_space<vmem>>, vector<1x8x24xf32>
    %605 = vector.shape_cast %604 : vector<1x8x24xf32> to vector<8x24xf32>
    %606 = vector.shape_cast %603 : vector<8x24xf32> to vector<1x8x24xf32>
    tpu.vector_store %arg6[%c0_228, %c0_229, %c0_230], %606 {strides = array<i32>} : memref<2x8x24xf32, #tpu.memory_space<vmem>>, vector<1x8x24xf32>,
    %c1 = arith.constant 1 : index
    %c0_231 = arith.constant 0 : index
    %c0_232 = arith.constant 0 : index
    %607 = vector.load %arg1[%c1, %c0_231, %c0_232] : memref<2x32x192xf32, #tpu.memory_space<vmem>>, vector<1x32x192xf32>
    %608 = vector.shape_cast %607 : vector<1x32x192xf32> to vector<32x192xf32>
    %c1_233 = arith.constant 1 : index
    %c0_234 = arith.constant 0 : index
    %c0_235 = arith.constant 0 : index
    %609 = vector.load %arg2[%c1_233, %c0_234, %c0_235] : memref<2x8x4xf32, #tpu.memory_space<vmem>>, vector<1x8x4xf32>
    %610 = vector.shape_cast %609 : vector<1x8x4xf32> to vector<8x4xf32>
    %c1_236 = arith.constant 1 : index
    %c0_237 = arith.constant 0 : index
    %c0_238 = arith.constant 0 : index
    %611 = vector.load %arg3[%c1_236, %c0_237, %c0_238] : memref<2x1x9xf32, #tpu.memory_space<vmem>>, vector<1x1x9xf32>
    %612 = vector.shape_cast %611 : vector<1x1x9xf32> to vector<1x9xf32>
    %c1_239 = arith.constant 1 : index
    %c0_240 = arith.constant 0 : index
    %c0_241 = arith.constant 0 : index
    %613 = vector.load %arg4[%c1_239, %c0_240, %c0_241] : memref<2x8x8xf32, #tpu.memory_space<vmem>>, vector<1x8x8xf32>
    %614 = vector.shape_cast %613 : vector<1x8x8xf32> to vector<8x8xf32>
    %c0_242 = arith.constant 0 : index
    %c0_243 = arith.constant 0 : index
    %615 = vector.load %arg5[%c0_242, %c0_243] : memref<1176x128xf32, #tpu.memory_space<vmem>>, vector<192x16xf32>
    %cst_244 = arith.constant dense<0.000000e+00> : vector<32x16xf32>
    %616 = tpu.matmul %608, %615, %cst_244 {dimension_numbers = #tpu.dot_dimension_numbers<[1], [0], [0], [1], [0, 0, 1, 1], [], []>} : vector<32x192xf32>, vector<192x16xf32>, vector<32x16xf32> -> vector<32x16xf32>
    %c192_245 = arith.constant 192 : index
    %c0_246 = arith.constant 0 : index
    %617 = vector.load %arg5[%c192_245, %c0_246] : memref<1176x128xf32, #tpu.memory_space<vmem>>, vector<1x16xf32>
    %618 = vector.broadcast %617 : vector<1x16xf32> to vector<32x16xf32>
    %619 = arith.addf %616, %618 : vector<32x16xf32>
    %c1072_247 = arith.constant 1072 : index
    %c0_248 = arith.constant 0 : index
    %620 = vector.load %arg5[%c1072_247, %c0_248] : memref<1176x128xf32, #tpu.memory_space<vmem>>, vector<32x32xf32>
    %c200_249 = arith.constant 200 : index
    %c0_250 = arith.constant 0 : index
    %621 = vector.load %arg5[%c200_249, %c0_250] : memref<1176x128xf32, #tpu.memory_space<vmem>>, vector<16x48xf32>
    %cst_251 = arith.constant dense<0.000000e+00> : vector<32x48xf32>
    %622 = tpu.matmul %619, %621, %cst_251 {dimension_numbers = #tpu.dot_dimension_numbers<[1], [0], [0], [1], [0, 0, 1, 1], [], []>} : vector<32x16xf32>, vector<16x48xf32>, vector<32x48xf32> -> vector<32x48xf32>
    %c216_252 = arith.constant 216 : index
    %c0_253 = arith.constant 0 : index
    %623 = vector.load %arg5[%c216_252, %c0_253] : memref<1176x128xf32, #tpu.memory_space<vmem>>, vector<1x48xf32>
    %624 = vector.broadcast %623 : vector<1x48xf32> to vector<32x48xf32>
    %625 = arith.addf %622, %624 : vector<32x48xf32>
    %c224_254 = arith.constant 224 : index
    %c0_255 = arith.constant 0 : index
    %626 = vector.load %arg5[%c224_254, %c0_255] : memref<1176x128xf32, #tpu.memory_space<vmem>>, vector<16x16xf32>
    %627 = vector.extract_strided_slice %625 {offsets = [0, 0], sizes = [32, 8], strides = [1, 1]} : vector<32x48xf32> to vector<32x8xf32>
    %628 = vector.extract_strided_slice %625 {offsets = [0, 16], sizes = [32, 8], strides = [1, 1]} : vector<32x48xf32> to vector<32x8xf32>
    %629 = vector.extract_strided_slice %625 {offsets = [0, 32], sizes = [32, 8], strides = [1, 1]} : vector<32x48xf32> to vector<32x8xf32>
    %cst_256 = arith.constant dense<0.000000e+00> : vector<32x32xf32>
    %630 = tpu.matmul %627, %628, %cst_256 {dimension_numbers = #tpu.dot_dimension_numbers<[1], [1], [0], [0], [0, 0, 1, 0], [], []>} : vector<32x8xf32>, vector<32x8xf32>, vector<32x32xf32> -> vector<32x32xf32>
    %cst_257 = arith.constant 0.353553385 : f32
    %631 = vector.broadcast %cst_257 : f32 to vector<32x32xf32>
    %632 = arith.mulf %630, %631 : vector<32x32xf32>
    %633 = arith.addf %632, %620 : vector<32x32xf32>
    %cst_258 = arith.constant dense<0xFF800000> : vector<32xf32>
    %634 = vector.multi_reduction <maximumf>, %633, %cst_258 [1] : vector<32x32xf32> to vector<32xf32>
    %635 = vector.shape_cast %634 : vector<32xf32> to vector<32x1xf32>
    %636 = vector.broadcast %635 : vector<32x1xf32> to vector<32x32xf32>
    %637 = arith.subf %633, %636 : vector<32x32xf32>
    %638 = math.exp %637 : vector<32x32xf32>
    %cst_259 = arith.constant dense<0.000000e+00> : vector<32xf32>
    %639 = vector.multi_reduction <add>, %638, %cst_259 [1] : vector<32x32xf32> to vector<32xf32>
    %640 = vector.shape_cast %639 : vector<32xf32> to vector<32x1xf32>
    %641 = vector.broadcast %640 : vector<32x1xf32> to vector<32x32xf32>
    %642 = arith.divf %638, %641 : vector<32x32xf32>
    %cst_260 = arith.constant dense<0.000000e+00> : vector<32x8xf32>
    %643 = tpu.matmul %642, %629, %cst_260 {dimension_numbers = #tpu.dot_dimension_numbers<[1], [0], [0], [1], [0, 0, 1, 1], [], []>} : vector<32x32xf32>, vector<32x8xf32>, vector<32x8xf32> -> vector<32x8xf32>
    %644 = vector.extract_strided_slice %626 {offsets = [0, 0], sizes = [8, 16], strides = [1, 1]} : vector<16x16xf32> to vector<8x16xf32>
    %cst_261 = arith.constant dense<0.000000e+00> : vector<32x16xf32>
    %645 = tpu.matmul %643, %644, %cst_261 {dimension_numbers = #tpu.dot_dimension_numbers<[1], [0], [0], [1], [0, 0, 1, 1], [], []>} : vector<32x8xf32>, vector<8x16xf32>, vector<32x16xf32> -> vector<32x16xf32>
    %646 = vector.extract_strided_slice %625 {offsets = [0, 8], sizes = [32, 8], strides = [1, 1]} : vector<32x48xf32> to vector<32x8xf32>
    %647 = vector.extract_strided_slice %625 {offsets = [0, 24], sizes = [32, 8], strides = [1, 1]} : vector<32x48xf32> to vector<32x8xf32>
    %648 = vector.extract_strided_slice %625 {offsets = [0, 40], sizes = [32, 8], strides = [1, 1]} : vector<32x48xf32> to vector<32x8xf32>
    %cst_262 = arith.constant dense<0.000000e+00> : vector<32x32xf32>
    %649 = tpu.matmul %646, %647, %cst_262 {dimension_numbers = #tpu.dot_dimension_numbers<[1], [1], [0], [0], [0, 0, 1, 0], [], []>} : vector<32x8xf32>, vector<32x8xf32>, vector<32x32xf32> -> vector<32x32xf32>
    %cst_263 = arith.constant 0.353553385 : f32
    %650 = vector.broadcast %cst_263 : f32 to vector<32x32xf32>
    %651 = arith.mulf %649, %650 : vector<32x32xf32>
    %652 = arith.addf %651, %620 : vector<32x32xf32>
    %cst_264 = arith.constant dense<0xFF800000> : vector<32xf32>
    %653 = vector.multi_reduction <maximumf>, %652, %cst_264 [1] : vector<32x32xf32> to vector<32xf32>
    %654 = vector.shape_cast %653 : vector<32xf32> to vector<32x1xf32>
    %655 = vector.broadcast %654 : vector<32x1xf32> to vector<32x32xf32>
    %656 = arith.subf %652, %655 : vector<32x32xf32>
    %657 = math.exp %656 : vector<32x32xf32>
    %cst_265 = arith.constant dense<0.000000e+00> : vector<32xf32>
    %658 = vector.multi_reduction <add>, %657, %cst_265 [1] : vector<32x32xf32> to vector<32xf32>
    %659 = vector.shape_cast %658 : vector<32xf32> to vector<32x1xf32>
    %660 = vector.broadcast %659 : vector<32x1xf32> to vector<32x32xf32>
    %661 = arith.divf %657, %660 : vector<32x32xf32>
    %cst_266 = arith.constant dense<0.000000e+00> : vector<32x8xf32>
    %662 = tpu.matmul %661, %648, %cst_266 {dimension_numbers = #tpu.dot_dimension_numbers<[1], [0], [0], [1], [0, 0, 1, 1], [], []>} : vector<32x32xf32>, vector<32x8xf32>, vector<32x8xf32> -> vector<32x8xf32>
    %663 = vector.extract_strided_slice %626 {offsets = [8, 0], sizes = [8, 16], strides = [1, 1]} : vector<16x16xf32> to vector<8x16xf32>
    %cst_267 = arith.constant dense<0.000000e+00> : vector<32x16xf32>
    %664 = tpu.matmul %662, %663, %cst_267 {dimension_numbers = #tpu.dot_dimension_numbers<[1], [0], [0], [1], [0, 0, 1, 1], [], []>} : vector<32x8xf32>, vector<8x16xf32>, vector<32x16xf32> -> vector<32x16xf32>
    %665 = arith.addf %645, %664 : vector<32x16xf32>
    %c240_268 = arith.constant 240 : index
    %c0_269 = arith.constant 0 : index
    %666 = vector.load %arg5[%c240_268, %c0_269] : memref<1176x128xf32, #tpu.memory_space<vmem>>, vector<1x16xf32>
    %667 = vector.broadcast %666 : vector<1x16xf32> to vector<32x16xf32>
    %668 = arith.addf %665, %667 : vector<32x16xf32>
    %669 = arith.addf %619, %668 : vector<32x16xf32>
    %c248_270 = arith.constant 248 : index
    %c0_271 = arith.constant 0 : index
    %670 = vector.load %arg5[%c248_270, %c0_271] : memref<1176x128xf32, #tpu.memory_space<vmem>>, vector<1x16xf32>
    %c256_272 = arith.constant 256 : index
    %c0_273 = arith.constant 0 : index
    %671 = vector.load %arg5[%c256_272, %c0_273] : memref<1176x128xf32, #tpu.memory_space<vmem>>, vector<1x16xf32>
    %cst_274 = arith.constant dense<0.000000e+00> : vector<32xf32>
    %672 = vector.multi_reduction <add>, %669, %cst_274 [1] : vector<32x16xf32> to vector<32xf32>
    %673 = vector.shape_cast %672 : vector<32xf32> to vector<32x1xf32>
    %cst_275 = arith.constant 1.600000e+01 : f32
    %674 = vector.broadcast %cst_275 : f32 to vector<32x1xf32>
    %675 = arith.divf %673, %674 : vector<32x1xf32>
    %676 = vector.broadcast %675 : vector<32x1xf32> to vector<32x16xf32>
    %677 = arith.subf %669, %676 : vector<32x16xf32>
    %678 = arith.mulf %677, %677 : vector<32x16xf32>
    %cst_276 = arith.constant dense<0.000000e+00> : vector<32xf32>
    %679 = vector.multi_reduction <add>, %678, %cst_276 [1] : vector<32x16xf32> to vector<32xf32>
    %680 = vector.shape_cast %679 : vector<32xf32> to vector<32x1xf32>
    %cst_277 = arith.constant 1.600000e+01 : f32
    %681 = vector.broadcast %cst_277 : f32 to vector<32x1xf32>
    %682 = arith.divf %680, %681 : vector<32x1xf32>
    %cst_278 = arith.constant 9.99999974E-6 : f32
    %683 = vector.broadcast %cst_278 : f32 to vector<32x1xf32>
    %684 = arith.addf %682, %683 : vector<32x1xf32>
    %685 = math.rsqrt %684 : vector<32x1xf32>
    %686 = vector.broadcast %685 : vector<32x1xf32> to vector<32x16xf32>
    %687 = arith.mulf %677, %686 : vector<32x16xf32>
    %688 = vector.broadcast %670 : vector<1x16xf32> to vector<32x16xf32>
    %689 = arith.mulf %687, %688 : vector<32x16xf32>
    %690 = vector.broadcast %671 : vector<1x16xf32> to vector<32x16xf32>
    %691 = arith.addf %689, %690 : vector<32x16xf32>
    %c264_279 = arith.constant 264 : index
    %c0_280 = arith.constant 0 : index
    %692 = vector.load %arg5[%c264_279, %c0_280] : memref<1176x128xf32, #tpu.memory_space<vmem>>, vector<16x16xf32>
    %cst_281 = arith.constant dense<0.000000e+00> : vector<32x16xf32>
    %693 = tpu.matmul %691, %692, %cst_281 {dimension_numbers = #tpu.dot_dimension_numbers<[1], [0], [0], [1], [0, 0, 1, 1], [], []>} : vector<32x16xf32>, vector<16x16xf32>, vector<32x16xf32> -> vector<32x16xf32>
    %c280_282 = arith.constant 280 : index
    %c0_283 = arith.constant 0 : index
    %694 = vector.load %arg5[%c280_282, %c0_283] : memref<1176x128xf32, #tpu.memory_space<vmem>>, vector<1x16xf32>
    %695 = vector.broadcast %694 : vector<1x16xf32> to vector<32x16xf32>
    %696 = arith.addf %693, %695 : vector<32x16xf32>
    %697 = arith.negf %696 : vector<32x16xf32>
    %698 = math.exp %697 : vector<32x16xf32>
    %cst_284 = arith.constant 1.000000e+00 : f32
    %699 = vector.broadcast %cst_284 : f32 to vector<32x16xf32>
    %700 = arith.addf %699, %698 : vector<32x16xf32>
    %701 = arith.divf %699, %700 : vector<32x16xf32>
    %702 = arith.mulf %696, %701 : vector<32x16xf32>
    %c288_285 = arith.constant 288 : index
    %c0_286 = arith.constant 0 : index
    %703 = vector.load %arg5[%c288_285, %c0_286] : memref<1176x128xf32, #tpu.memory_space<vmem>>, vector<16x16xf32>
    %cst_287 = arith.constant dense<0.000000e+00> : vector<32x16xf32>
    %704 = tpu.matmul %702, %703, %cst_287 {dimension_numbers = #tpu.dot_dimension_numbers<[1], [0], [0], [1], [0, 0, 1, 1], [], []>} : vector<32x16xf32>, vector<16x16xf32>, vector<32x16xf32> -> vector<32x16xf32>
    %c304_288 = arith.constant 304 : index
    %c0_289 = arith.constant 0 : index
    %705 = vector.load %arg5[%c304_288, %c0_289] : memref<1176x128xf32, #tpu.memory_space<vmem>>, vector<1x16xf32>
    %706 = vector.broadcast %705 : vector<1x16xf32> to vector<32x16xf32>
    %707 = arith.addf %704, %706 : vector<32x16xf32>
    %708 = arith.addf %691, %707 : vector<32x16xf32>
    %c312_290 = arith.constant 312 : index
    %c0_291 = arith.constant 0 : index
    %709 = vector.load %arg5[%c312_290, %c0_291] : memref<1176x128xf32, #tpu.memory_space<vmem>>, vector<1x16xf32>
    %c320_292 = arith.constant 320 : index
    %c0_293 = arith.constant 0 : index
    %710 = vector.load %arg5[%c320_292, %c0_293] : memref<1176x128xf32, #tpu.memory_space<vmem>>, vector<1x16xf32>
    %cst_294 = arith.constant dense<0.000000e+00> : vector<32xf32>
    %711 = vector.multi_reduction <add>, %708, %cst_294 [1] : vector<32x16xf32> to vector<32xf32>
    %712 = vector.shape_cast %711 : vector<32xf32> to vector<32x1xf32>
    %cst_295 = arith.constant 1.600000e+01 : f32
    %713 = vector.broadcast %cst_295 : f32 to vector<32x1xf32>
    %714 = arith.divf %712, %713 : vector<32x1xf32>
    %715 = vector.broadcast %714 : vector<32x1xf32> to vector<32x16xf32>
    %716 = arith.subf %708, %715 : vector<32x16xf32>
    %717 = arith.mulf %716, %716 : vector<32x16xf32>
    %cst_296 = arith.constant dense<0.000000e+00> : vector<32xf32>
    %718 = vector.multi_reduction <add>, %717, %cst_296 [1] : vector<32x16xf32> to vector<32xf32>
    %719 = vector.shape_cast %718 : vector<32xf32> to vector<32x1xf32>
    %cst_297 = arith.constant 1.600000e+01 : f32
    %720 = vector.broadcast %cst_297 : f32 to vector<32x1xf32>
    %721 = arith.divf %719, %720 : vector<32x1xf32>
    %cst_298 = arith.constant 9.99999974E-6 : f32
    %722 = vector.broadcast %cst_298 : f32 to vector<32x1xf32>
    %723 = arith.addf %721, %722 : vector<32x1xf32>
    %724 = math.rsqrt %723 : vector<32x1xf32>
    %725 = vector.broadcast %724 : vector<32x1xf32> to vector<32x16xf32>
    %726 = arith.mulf %716, %725 : vector<32x16xf32>
    %727 = vector.broadcast %709 : vector<1x16xf32> to vector<32x16xf32>
    %728 = arith.mulf %726, %727 : vector<32x16xf32>
    %729 = vector.broadcast %710 : vector<1x16xf32> to vector<32x16xf32>
    %730 = arith.addf %728, %729 : vector<32x16xf32>
    %c1104_299 = arith.constant 1104 : index
    %c0_300 = arith.constant 0 : index
    %731 = vector.load %arg5[%c1104_299, %c0_300] : memref<1176x128xf32, #tpu.memory_space<vmem>>, vector<8x32xf32>
    %cst_301 = arith.constant dense<0.000000e+00> : vector<8x16xf32>
    %732 = tpu.matmul %731, %730, %cst_301 {dimension_numbers = #tpu.dot_dimension_numbers<[1], [0], [0], [1], [0, 0, 1, 1], [], []>} : vector<8x32xf32>, vector<32x16xf32>, vector<8x16xf32> -> vector<8x16xf32>
    %c328_302 = arith.constant 328 : index
    %c0_303 = arith.constant 0 : index
    %733 = vector.load %arg5[%c328_302, %c0_303] : memref<1176x128xf32, #tpu.memory_space<vmem>>, vector<4x16xf32>
    %cst_304 = arith.constant dense<0.000000e+00> : vector<8x16xf32>
    %734 = tpu.matmul %610, %733, %cst_304 {dimension_numbers = #tpu.dot_dimension_numbers<[1], [0], [0], [1], [0, 0, 1, 1], [], []>} : vector<8x4xf32>, vector<4x16xf32>, vector<8x16xf32> -> vector<8x16xf32>
    %c336_305 = arith.constant 336 : index
    %c0_306 = arith.constant 0 : index
    %735 = vector.load %arg5[%c336_305, %c0_306] : memref<1176x128xf32, #tpu.memory_space<vmem>>, vector<1x16xf32>
    %736 = vector.broadcast %735 : vector<1x16xf32> to vector<8x16xf32>
    %737 = arith.addf %734, %736 : vector<8x16xf32>
    %738 = arith.negf %737 : vector<8x16xf32>
    %739 = math.exp %738 : vector<8x16xf32>
    %cst_307 = arith.constant 1.000000e+00 : f32
    %740 = vector.broadcast %cst_307 : f32 to vector<8x16xf32>
    %741 = arith.addf %740, %739 : vector<8x16xf32>
    %742 = arith.divf %740, %741 : vector<8x16xf32>
    %743 = arith.mulf %737, %742 : vector<8x16xf32>
    %c344_308 = arith.constant 344 : index
    %c0_309 = arith.constant 0 : index
    %744 = vector.load %arg5[%c344_308, %c0_309] : memref<1176x128xf32, #tpu.memory_space<vmem>>, vector<16x16xf32>
    %cst_310 = arith.constant dense<0.000000e+00> : vector<8x16xf32>
    %745 = tpu.matmul %743, %744, %cst_310 {dimension_numbers = #tpu.dot_dimension_numbers<[1], [0], [0], [1], [0, 0, 1, 1], [], []>} : vector<8x16xf32>, vector<16x16xf32>, vector<8x16xf32> -> vector<8x16xf32>
    %c360_311 = arith.constant 360 : index
    %c0_312 = arith.constant 0 : index
    %746 = vector.load %arg5[%c360_311, %c0_312] : memref<1176x128xf32, #tpu.memory_space<vmem>>, vector<1x16xf32>
    %747 = vector.broadcast %746 : vector<1x16xf32> to vector<8x16xf32>
    %748 = arith.addf %745, %747 : vector<8x16xf32>
    %c368_313 = arith.constant 368 : index
    %c0_314 = arith.constant 0 : index
    %749 = vector.load %arg5[%c368_313, %c0_314] : memref<1176x128xf32, #tpu.memory_space<vmem>>, vector<16x32xf32>
    %cst_315 = arith.constant dense<0.000000e+00> : vector<8x32xf32>
    %750 = tpu.matmul %732, %749, %cst_315 {dimension_numbers = #tpu.dot_dimension_numbers<[1], [0], [0], [1], [0, 0, 1, 1], [], []>} : vector<8x16xf32>, vector<16x32xf32>, vector<8x32xf32> -> vector<8x32xf32>
    %c384_316 = arith.constant 384 : index
    %c0_317 = arith.constant 0 : index
    %751 = vector.load %arg5[%c384_316, %c0_317] : memref<1176x128xf32, #tpu.memory_space<vmem>>, vector<16x32xf32>
    %cst_318 = arith.constant dense<0.000000e+00> : vector<8x32xf32>
    %752 = tpu.matmul %748, %751, %cst_318 {dimension_numbers = #tpu.dot_dimension_numbers<[1], [0], [0], [1], [0, 0, 1, 1], [], []>} : vector<8x16xf32>, vector<16x32xf32>, vector<8x32xf32> -> vector<8x32xf32>
    %753 = arith.addf %750, %752 : vector<8x32xf32>
    %c400_319 = arith.constant 400 : index
    %c0_320 = arith.constant 0 : index
    %754 = vector.load %arg5[%c400_319, %c0_320] : memref<1176x128xf32, #tpu.memory_space<vmem>>, vector<1x32xf32>
    %755 = vector.broadcast %754 : vector<1x32xf32> to vector<8x32xf32>
    %756 = arith.addf %753, %755 : vector<8x32xf32>
    %757 = arith.negf %756 : vector<8x32xf32>
    %758 = math.exp %757 : vector<8x32xf32>
    %cst_321 = arith.constant 1.000000e+00 : f32
    %759 = vector.broadcast %cst_321 : f32 to vector<8x32xf32>
    %760 = arith.addf %759, %758 : vector<8x32xf32>
    %761 = arith.divf %759, %760 : vector<8x32xf32>
    %762 = arith.mulf %756, %761 : vector<8x32xf32>
    %c408_322 = arith.constant 408 : index
    %c0_323 = arith.constant 0 : index
    %763 = vector.load %arg5[%c408_322, %c0_323] : memref<1176x128xf32, #tpu.memory_space<vmem>>, vector<32x32xf32>
    %cst_324 = arith.constant dense<0.000000e+00> : vector<8x32xf32>
    %764 = tpu.matmul %762, %763, %cst_324 {dimension_numbers = #tpu.dot_dimension_numbers<[1], [0], [0], [1], [0, 0, 1, 1], [], []>} : vector<8x32xf32>, vector<32x32xf32>, vector<8x32xf32> -> vector<8x32xf32>
    %c440_325 = arith.constant 440 : index
    %c0_326 = arith.constant 0 : index
    %765 = vector.load %arg5[%c440_325, %c0_326] : memref<1176x128xf32, #tpu.memory_space<vmem>>, vector<1x32xf32>
    %766 = vector.broadcast %765 : vector<1x32xf32> to vector<8x32xf32>
    %767 = arith.addf %764, %766 : vector<8x32xf32>
    %c1064_327 = arith.constant 1064 : index
    %c0_328 = arith.constant 0 : index
    %768 = vector.load %arg5[%c1064_327, %c0_328] : memref<1176x128xf32, #tpu.memory_space<vmem>>, vector<1x32xf32>
    %769 = tpu.concatenate %767, %768 in 0 : vector<8x32xf32>, vector<1x32xf32> -> vector<9x32xf32>
    %c1112_329 = arith.constant 1112 : index
    %c0_330 = arith.constant 0 : index
    %770 = vector.load %arg5[%c1112_329, %c0_330] : memref<1176x128xf32, #tpu.memory_space<vmem>>, vector<9x32xf32>
    %771 = arith.mulf %769, %770 : vector<9x32xf32>
    %c1144_331 = arith.constant 1144 : index
    %c0_332 = arith.constant 0 : index
    %772 = vector.load %arg5[%c1144_331, %c0_332] : memref<1176x128xf32, #tpu.memory_space<vmem>>, vector<32x32xf32>
    %cst_333 = arith.constant dense<0.000000e+00> : vector<9x32xf32>
    %773 = tpu.matmul %769, %772, %cst_333 {dimension_numbers = #tpu.dot_dimension_numbers<[1], [0], [0], [1], [0, 0, 1, 1], [], []>} : vector<9x32xf32>, vector<32x32xf32>, vector<9x32xf32> -> vector<9x32xf32>
    %c1128_334 = arith.constant 1128 : index
    %c0_335 = arith.constant 0 : index
    %774 = vector.load %arg5[%c1128_334, %c0_335] : memref<1176x128xf32, #tpu.memory_space<vmem>>, vector<9x32xf32>
    %775 = arith.mulf %773, %774 : vector<9x32xf32>
    %776 = arith.addf %771, %775 : vector<9x32xf32>
    %777 = vector.shape_cast %612 : vector<1x9xf32> to vector<1x9xf32>
    %778 = vector.broadcast %777 : vector<1x9xf32> to vector<9x9xf32>
    %c448_336 = arith.constant 448 : index
    %c0_337 = arith.constant 0 : index
    %779 = vector.load %arg5[%c448_336, %c0_337] : memref<1176x128xf32, #tpu.memory_space<vmem>>, vector<32x96xf32>
    %cst_338 = arith.constant dense<0.000000e+00> : vector<9x96xf32>
    %780 = tpu.matmul %776, %779, %cst_338 {dimension_numbers = #tpu.dot_dimension_numbers<[1], [0], [0], [1], [0, 0, 1, 1], [], []>} : vector<9x32xf32>, vector<32x96xf32>, vector<9x96xf32> -> vector<9x96xf32>
    %c480_339 = arith.constant 480 : index
    %c0_340 = arith.constant 0 : index
    %781 = vector.load %arg5[%c480_339, %c0_340] : memref<1176x128xf32, #tpu.memory_space<vmem>>, vector<1x96xf32>
    %782 = vector.broadcast %781 : vector<1x96xf32> to vector<9x96xf32>
    %783 = arith.addf %780, %782 : vector<9x96xf32>
    %c488_341 = arith.constant 488 : index
    %c0_342 = arith.constant 0 : index
    %784 = vector.load %arg5[%c488_341, %c0_342] : memref<1176x128xf32, #tpu.memory_space<vmem>>, vector<32x32xf32>
    %785 = vector.extract_strided_slice %783 {offsets = [0, 0], sizes = [9, 8], strides = [1, 1]} : vector<9x96xf32> to vector<9x8xf32>
    %786 = vector.extract_strided_slice %783 {offsets = [0, 32], sizes = [9, 8], strides = [1, 1]} : vector<9x96xf32> to vector<9x8xf32>
    %787 = vector.extract_strided_slice %783 {offsets = [0, 64], sizes = [9, 8], strides = [1, 1]} : vector<9x96xf32> to vector<9x8xf32>
    %cst_343 = arith.constant dense<0.000000e+00> : vector<9x9xf32>
    %788 = tpu.matmul %785, %786, %cst_343 {dimension_numbers = #tpu.dot_dimension_numbers<[1], [1], [0], [0], [0, 0, 1, 0], [], []>} : vector<9x8xf32>, vector<9x8xf32>, vector<9x9xf32> -> vector<9x9xf32>
    %cst_344 = arith.constant 0.353553385 : f32
    %789 = vector.broadcast %cst_344 : f32 to vector<9x9xf32>
    %790 = arith.mulf %788, %789 : vector<9x9xf32>
    %791 = arith.addf %790, %778 : vector<9x9xf32>
    %cst_345 = arith.constant dense<0xFF800000> : vector<9xf32>
    %792 = vector.multi_reduction <maximumf>, %791, %cst_345 [1] : vector<9x9xf32> to vector<9xf32>
    %793 = vector.shape_cast %792 : vector<9xf32> to vector<9x1xf32>
    %794 = vector.broadcast %793 : vector<9x1xf32> to vector<9x9xf32>
    %795 = arith.subf %791, %794 : vector<9x9xf32>
    %796 = math.exp %795 : vector<9x9xf32>
    %cst_346 = arith.constant dense<0.000000e+00> : vector<9xf32>
    %797 = vector.multi_reduction <add>, %796, %cst_346 [1] : vector<9x9xf32> to vector<9xf32>
    %798 = vector.shape_cast %797 : vector<9xf32> to vector<9x1xf32>
    %799 = vector.broadcast %798 : vector<9x1xf32> to vector<9x9xf32>
    %800 = arith.divf %796, %799 : vector<9x9xf32>
    %cst_347 = arith.constant dense<0.000000e+00> : vector<9x8xf32>
    %801 = tpu.matmul %800, %787, %cst_347 {dimension_numbers = #tpu.dot_dimension_numbers<[1], [0], [0], [1], [0, 0, 1, 1], [], []>} : vector<9x9xf32>, vector<9x8xf32>, vector<9x8xf32> -> vector<9x8xf32>
    %802 = vector.extract_strided_slice %784 {offsets = [0, 0], sizes = [8, 32], strides = [1, 1]} : vector<32x32xf32> to vector<8x32xf32>
    %cst_348 = arith.constant dense<0.000000e+00> : vector<9x32xf32>
    %803 = tpu.matmul %801, %802, %cst_348 {dimension_numbers = #tpu.dot_dimension_numbers<[1], [0], [0], [1], [0, 0, 1, 1], [], []>} : vector<9x8xf32>, vector<8x32xf32>, vector<9x32xf32> -> vector<9x32xf32>
    %804 = vector.extract_strided_slice %783 {offsets = [0, 8], sizes = [9, 8], strides = [1, 1]} : vector<9x96xf32> to vector<9x8xf32>
    %805 = vector.extract_strided_slice %783 {offsets = [0, 40], sizes = [9, 8], strides = [1, 1]} : vector<9x96xf32> to vector<9x8xf32>
    %806 = vector.extract_strided_slice %783 {offsets = [0, 72], sizes = [9, 8], strides = [1, 1]} : vector<9x96xf32> to vector<9x8xf32>
    %cst_349 = arith.constant dense<0.000000e+00> : vector<9x9xf32>
    %807 = tpu.matmul %804, %805, %cst_349 {dimension_numbers = #tpu.dot_dimension_numbers<[1], [1], [0], [0], [0, 0, 1, 0], [], []>} : vector<9x8xf32>, vector<9x8xf32>, vector<9x9xf32> -> vector<9x9xf32>
    %cst_350 = arith.constant 0.353553385 : f32
    %808 = vector.broadcast %cst_350 : f32 to vector<9x9xf32>
    %809 = arith.mulf %807, %808 : vector<9x9xf32>
    %810 = arith.addf %809, %778 : vector<9x9xf32>
    %cst_351 = arith.constant dense<0xFF800000> : vector<9xf32>
    %811 = vector.multi_reduction <maximumf>, %810, %cst_351 [1] : vector<9x9xf32> to vector<9xf32>
    %812 = vector.shape_cast %811 : vector<9xf32> to vector<9x1xf32>
    %813 = vector.broadcast %812 : vector<9x1xf32> to vector<9x9xf32>
    %814 = arith.subf %810, %813 : vector<9x9xf32>
    %815 = math.exp %814 : vector<9x9xf32>
    %cst_352 = arith.constant dense<0.000000e+00> : vector<9xf32>
    %816 = vector.multi_reduction <add>, %815, %cst_352 [1] : vector<9x9xf32> to vector<9xf32>
    %817 = vector.shape_cast %816 : vector<9xf32> to vector<9x1xf32>
    %818 = vector.broadcast %817 : vector<9x1xf32> to vector<9x9xf32>
    %819 = arith.divf %815, %818 : vector<9x9xf32>
    %cst_353 = arith.constant dense<0.000000e+00> : vector<9x8xf32>
    %820 = tpu.matmul %819, %806, %cst_353 {dimension_numbers = #tpu.dot_dimension_numbers<[1], [0], [0], [1], [0, 0, 1, 1], [], []>} : vector<9x9xf32>, vector<9x8xf32>, vector<9x8xf32> -> vector<9x8xf32>
    %821 = vector.extract_strided_slice %784 {offsets = [8, 0], sizes = [8, 32], strides = [1, 1]} : vector<32x32xf32> to vector<8x32xf32>
    %cst_354 = arith.constant dense<0.000000e+00> : vector<9x32xf32>
    %822 = tpu.matmul %820, %821, %cst_354 {dimension_numbers = #tpu.dot_dimension_numbers<[1], [0], [0], [1], [0, 0, 1, 1], [], []>} : vector<9x8xf32>, vector<8x32xf32>, vector<9x32xf32> -> vector<9x32xf32>
    %823 = arith.addf %803, %822 : vector<9x32xf32>
    %824 = vector.extract_strided_slice %783 {offsets = [0, 16], sizes = [9, 8], strides = [1, 1]} : vector<9x96xf32> to vector<9x8xf32>
    %825 = vector.extract_strided_slice %783 {offsets = [0, 48], sizes = [9, 8], strides = [1, 1]} : vector<9x96xf32> to vector<9x8xf32>
    %826 = vector.extract_strided_slice %783 {offsets = [0, 80], sizes = [9, 8], strides = [1, 1]} : vector<9x96xf32> to vector<9x8xf32>
    %cst_355 = arith.constant dense<0.000000e+00> : vector<9x9xf32>
    %827 = tpu.matmul %824, %825, %cst_355 {dimension_numbers = #tpu.dot_dimension_numbers<[1], [1], [0], [0], [0, 0, 1, 0], [], []>} : vector<9x8xf32>, vector<9x8xf32>, vector<9x9xf32> -> vector<9x9xf32>
    %cst_356 = arith.constant 0.353553385 : f32
    %828 = vector.broadcast %cst_356 : f32 to vector<9x9xf32>
    %829 = arith.mulf %827, %828 : vector<9x9xf32>
    %830 = arith.addf %829, %778 : vector<9x9xf32>
    %cst_357 = arith.constant dense<0xFF800000> : vector<9xf32>
    %831 = vector.multi_reduction <maximumf>, %830, %cst_357 [1] : vector<9x9xf32> to vector<9xf32>
    %832 = vector.shape_cast %831 : vector<9xf32> to vector<9x1xf32>
    %833 = vector.broadcast %832 : vector<9x1xf32> to vector<9x9xf32>
    %834 = arith.subf %830, %833 : vector<9x9xf32>
    %835 = math.exp %834 : vector<9x9xf32>
    %cst_358 = arith.constant dense<0.000000e+00> : vector<9xf32>
    %836 = vector.multi_reduction <add>, %835, %cst_358 [1] : vector<9x9xf32> to vector<9xf32>
    %837 = vector.shape_cast %836 : vector<9xf32> to vector<9x1xf32>
    %838 = vector.broadcast %837 : vector<9x1xf32> to vector<9x9xf32>
    %839 = arith.divf %835, %838 : vector<9x9xf32>
    %cst_359 = arith.constant dense<0.000000e+00> : vector<9x8xf32>
    %840 = tpu.matmul %839, %826, %cst_359 {dimension_numbers = #tpu.dot_dimension_numbers<[1], [0], [0], [1], [0, 0, 1, 1], [], []>} : vector<9x9xf32>, vector<9x8xf32>, vector<9x8xf32> -> vector<9x8xf32>
    %841 = vector.extract_strided_slice %784 {offsets = [16, 0], sizes = [8, 32], strides = [1, 1]} : vector<32x32xf32> to vector<8x32xf32>
    %cst_360 = arith.constant dense<0.000000e+00> : vector<9x32xf32>
    %842 = tpu.matmul %840, %841, %cst_360 {dimension_numbers = #tpu.dot_dimension_numbers<[1], [0], [0], [1], [0, 0, 1, 1], [], []>} : vector<9x8xf32>, vector<8x32xf32>, vector<9x32xf32> -> vector<9x32xf32>
    %843 = arith.addf %823, %842 : vector<9x32xf32>
    %844 = vector.extract_strided_slice %783 {offsets = [0, 24], sizes = [9, 8], strides = [1, 1]} : vector<9x96xf32> to vector<9x8xf32>
    %845 = vector.extract_strided_slice %783 {offsets = [0, 56], sizes = [9, 8], strides = [1, 1]} : vector<9x96xf32> to vector<9x8xf32>
    %846 = vector.extract_strided_slice %783 {offsets = [0, 88], sizes = [9, 8], strides = [1, 1]} : vector<9x96xf32> to vector<9x8xf32>
    %cst_361 = arith.constant dense<0.000000e+00> : vector<9x9xf32>
    %847 = tpu.matmul %844, %845, %cst_361 {dimension_numbers = #tpu.dot_dimension_numbers<[1], [1], [0], [0], [0, 0, 1, 0], [], []>} : vector<9x8xf32>, vector<9x8xf32>, vector<9x9xf32> -> vector<9x9xf32>
    %cst_362 = arith.constant 0.353553385 : f32
    %848 = vector.broadcast %cst_362 : f32 to vector<9x9xf32>
    %849 = arith.mulf %847, %848 : vector<9x9xf32>
    %850 = arith.addf %849, %778 : vector<9x9xf32>
    %cst_363 = arith.constant dense<0xFF800000> : vector<9xf32>
    %851 = vector.multi_reduction <maximumf>, %850, %cst_363 [1] : vector<9x9xf32> to vector<9xf32>
    %852 = vector.shape_cast %851 : vector<9xf32> to vector<9x1xf32>
    %853 = vector.broadcast %852 : vector<9x1xf32> to vector<9x9xf32>
    %854 = arith.subf %850, %853 : vector<9x9xf32>
    %855 = math.exp %854 : vector<9x9xf32>
    %cst_364 = arith.constant dense<0.000000e+00> : vector<9xf32>
    %856 = vector.multi_reduction <add>, %855, %cst_364 [1] : vector<9x9xf32> to vector<9xf32>
    %857 = vector.shape_cast %856 : vector<9xf32> to vector<9x1xf32>
    %858 = vector.broadcast %857 : vector<9x1xf32> to vector<9x9xf32>
    %859 = arith.divf %855, %858 : vector<9x9xf32>
    %cst_365 = arith.constant dense<0.000000e+00> : vector<9x8xf32>
    %860 = tpu.matmul %859, %846, %cst_365 {dimension_numbers = #tpu.dot_dimension_numbers<[1], [0], [0], [1], [0, 0, 1, 1], [], []>} : vector<9x9xf32>, vector<9x8xf32>, vector<9x8xf32> -> vector<9x8xf32>
    %861 = vector.extract_strided_slice %784 {offsets = [24, 0], sizes = [8, 32], strides = [1, 1]} : vector<32x32xf32> to vector<8x32xf32>
    %cst_366 = arith.constant dense<0.000000e+00> : vector<9x32xf32>
    %862 = tpu.matmul %860, %861, %cst_366 {dimension_numbers = #tpu.dot_dimension_numbers<[1], [0], [0], [1], [0, 0, 1, 1], [], []>} : vector<9x8xf32>, vector<8x32xf32>, vector<9x32xf32> -> vector<9x32xf32>
    %863 = arith.addf %843, %862 : vector<9x32xf32>
    %c520_367 = arith.constant 520 : index
    %c0_368 = arith.constant 0 : index
    %864 = vector.load %arg5[%c520_367, %c0_368] : memref<1176x128xf32, #tpu.memory_space<vmem>>, vector<1x32xf32>
    %865 = vector.broadcast %864 : vector<1x32xf32> to vector<9x32xf32>
    %866 = arith.addf %863, %865 : vector<9x32xf32>
    %867 = arith.addf %776, %866 : vector<9x32xf32>
    %c528_369 = arith.constant 528 : index
    %c0_370 = arith.constant 0 : index
    %868 = vector.load %arg5[%c528_369, %c0_370] : memref<1176x128xf32, #tpu.memory_space<vmem>>, vector<1x32xf32>
    %c536_371 = arith.constant 536 : index
    %c0_372 = arith.constant 0 : index
    %869 = vector.load %arg5[%c536_371, %c0_372] : memref<1176x128xf32, #tpu.memory_space<vmem>>, vector<1x32xf32>
    %cst_373 = arith.constant dense<0.000000e+00> : vector<9xf32>
    %870 = vector.multi_reduction <add>, %867, %cst_373 [1] : vector<9x32xf32> to vector<9xf32>
    %871 = vector.shape_cast %870 : vector<9xf32> to vector<9x1xf32>
    %cst_374 = arith.constant 3.200000e+01 : f32
    %872 = vector.broadcast %cst_374 : f32 to vector<9x1xf32>
    %873 = arith.divf %871, %872 : vector<9x1xf32>
    %874 = vector.broadcast %873 : vector<9x1xf32> to vector<9x32xf32>
    %875 = arith.subf %867, %874 : vector<9x32xf32>
    %876 = arith.mulf %875, %875 : vector<9x32xf32>
    %cst_375 = arith.constant dense<0.000000e+00> : vector<9xf32>
    %877 = vector.multi_reduction <add>, %876, %cst_375 [1] : vector<9x32xf32> to vector<9xf32>
    %878 = vector.shape_cast %877 : vector<9xf32> to vector<9x1xf32>
    %cst_376 = arith.constant 3.200000e+01 : f32
    %879 = vector.broadcast %cst_376 : f32 to vector<9x1xf32>
    %880 = arith.divf %878, %879 : vector<9x1xf32>
    %cst_377 = arith.constant 9.99999974E-6 : f32
    %881 = vector.broadcast %cst_377 : f32 to vector<9x1xf32>
    %882 = arith.addf %880, %881 : vector<9x1xf32>
    %883 = math.rsqrt %882 : vector<9x1xf32>
    %884 = vector.broadcast %883 : vector<9x1xf32> to vector<9x32xf32>
    %885 = arith.mulf %875, %884 : vector<9x32xf32>
    %886 = vector.broadcast %868 : vector<1x32xf32> to vector<9x32xf32>
    %887 = arith.mulf %885, %886 : vector<9x32xf32>
    %888 = vector.broadcast %869 : vector<1x32xf32> to vector<9x32xf32>
    %889 = arith.addf %887, %888 : vector<9x32xf32>
    %c544_378 = arith.constant 544 : index
    %c0_379 = arith.constant 0 : index
    %890 = vector.load %arg5[%c544_378, %c0_379] : memref<1176x128xf32, #tpu.memory_space<vmem>>, vector<32x32xf32>
    %cst_380 = arith.constant dense<0.000000e+00> : vector<9x32xf32>
    %891 = tpu.matmul %889, %890, %cst_380 {dimension_numbers = #tpu.dot_dimension_numbers<[1], [0], [0], [1], [0, 0, 1, 1], [], []>} : vector<9x32xf32>, vector<32x32xf32>, vector<9x32xf32> -> vector<9x32xf32>
    %c576_381 = arith.constant 576 : index
    %c0_382 = arith.constant 0 : index
    %892 = vector.load %arg5[%c576_381, %c0_382] : memref<1176x128xf32, #tpu.memory_space<vmem>>, vector<1x32xf32>
    %893 = vector.broadcast %892 : vector<1x32xf32> to vector<9x32xf32>
    %894 = arith.addf %891, %893 : vector<9x32xf32>
    %895 = arith.negf %894 : vector<9x32xf32>
    %896 = math.exp %895 : vector<9x32xf32>
    %cst_383 = arith.constant 1.000000e+00 : f32
    %897 = vector.broadcast %cst_383 : f32 to vector<9x32xf32>
    %898 = arith.addf %897, %896 : vector<9x32xf32>
    %899 = arith.divf %897, %898 : vector<9x32xf32>
    %900 = arith.mulf %894, %899 : vector<9x32xf32>
    %c584_384 = arith.constant 584 : index
    %c0_385 = arith.constant 0 : index
    %901 = vector.load %arg5[%c584_384, %c0_385] : memref<1176x128xf32, #tpu.memory_space<vmem>>, vector<32x32xf32>
    %cst_386 = arith.constant dense<0.000000e+00> : vector<9x32xf32>
    %902 = tpu.matmul %900, %901, %cst_386 {dimension_numbers = #tpu.dot_dimension_numbers<[1], [0], [0], [1], [0, 0, 1, 1], [], []>} : vector<9x32xf32>, vector<32x32xf32>, vector<9x32xf32> -> vector<9x32xf32>
    %c616_387 = arith.constant 616 : index
    %c0_388 = arith.constant 0 : index
    %903 = vector.load %arg5[%c616_387, %c0_388] : memref<1176x128xf32, #tpu.memory_space<vmem>>, vector<1x32xf32>
    %904 = vector.broadcast %903 : vector<1x32xf32> to vector<9x32xf32>
    %905 = arith.addf %902, %904 : vector<9x32xf32>
    %906 = arith.addf %889, %905 : vector<9x32xf32>
    %c624_389 = arith.constant 624 : index
    %c0_390 = arith.constant 0 : index
    %907 = vector.load %arg5[%c624_389, %c0_390] : memref<1176x128xf32, #tpu.memory_space<vmem>>, vector<1x32xf32>
    %c632_391 = arith.constant 632 : index
    %c0_392 = arith.constant 0 : index
    %908 = vector.load %arg5[%c632_391, %c0_392] : memref<1176x128xf32, #tpu.memory_space<vmem>>, vector<1x32xf32>
    %cst_393 = arith.constant dense<0.000000e+00> : vector<9xf32>
    %909 = vector.multi_reduction <add>, %906, %cst_393 [1] : vector<9x32xf32> to vector<9xf32>
    %910 = vector.shape_cast %909 : vector<9xf32> to vector<9x1xf32>
    %cst_394 = arith.constant 3.200000e+01 : f32
    %911 = vector.broadcast %cst_394 : f32 to vector<9x1xf32>
    %912 = arith.divf %910, %911 : vector<9x1xf32>
    %913 = vector.broadcast %912 : vector<9x1xf32> to vector<9x32xf32>
    %914 = arith.subf %906, %913 : vector<9x32xf32>
    %915 = arith.mulf %914, %914 : vector<9x32xf32>
    %cst_395 = arith.constant dense<0.000000e+00> : vector<9xf32>
    %916 = vector.multi_reduction <add>, %915, %cst_395 [1] : vector<9x32xf32> to vector<9xf32>
    %917 = vector.shape_cast %916 : vector<9xf32> to vector<9x1xf32>
    %cst_396 = arith.constant 3.200000e+01 : f32
    %918 = vector.broadcast %cst_396 : f32 to vector<9x1xf32>
    %919 = arith.divf %917, %918 : vector<9x1xf32>
    %cst_397 = arith.constant 9.99999974E-6 : f32
    %920 = vector.broadcast %cst_397 : f32 to vector<9x1xf32>
    %921 = arith.addf %919, %920 : vector<9x1xf32>
    %922 = math.rsqrt %921 : vector<9x1xf32>
    %923 = vector.broadcast %922 : vector<9x1xf32> to vector<9x32xf32>
    %924 = arith.mulf %914, %923 : vector<9x32xf32>
    %925 = vector.broadcast %907 : vector<1x32xf32> to vector<9x32xf32>
    %926 = arith.mulf %924, %925 : vector<9x32xf32>
    %927 = vector.broadcast %908 : vector<1x32xf32> to vector<9x32xf32>
    %928 = arith.addf %926, %927 : vector<9x32xf32>
    %c640_398 = arith.constant 640 : index
    %c0_399 = arith.constant 0 : index
    %929 = vector.load %arg5[%c640_398, %c0_399] : memref<1176x128xf32, #tpu.memory_space<vmem>>, vector<32x96xf32>
    %cst_400 = arith.constant dense<0.000000e+00> : vector<9x96xf32>
    %930 = tpu.matmul %928, %929, %cst_400 {dimension_numbers = #tpu.dot_dimension_numbers<[1], [0], [0], [1], [0, 0, 1, 1], [], []>} : vector<9x32xf32>, vector<32x96xf32>, vector<9x96xf32> -> vector<9x96xf32>
    %c672_401 = arith.constant 672 : index
    %c0_402 = arith.constant 0 : index
    %931 = vector.load %arg5[%c672_401, %c0_402] : memref<1176x128xf32, #tpu.memory_space<vmem>>, vector<1x96xf32>
    %932 = vector.broadcast %931 : vector<1x96xf32> to vector<9x96xf32>
    %933 = arith.addf %930, %932 : vector<9x96xf32>
    %c680_403 = arith.constant 680 : index
    %c0_404 = arith.constant 0 : index
    %934 = vector.load %arg5[%c680_403, %c0_404] : memref<1176x128xf32, #tpu.memory_space<vmem>>, vector<32x32xf32>
    %935 = vector.extract_strided_slice %933 {offsets = [0, 0], sizes = [9, 8], strides = [1, 1]} : vector<9x96xf32> to vector<9x8xf32>
    %936 = vector.extract_strided_slice %933 {offsets = [0, 32], sizes = [9, 8], strides = [1, 1]} : vector<9x96xf32> to vector<9x8xf32>
    %937 = vector.extract_strided_slice %933 {offsets = [0, 64], sizes = [9, 8], strides = [1, 1]} : vector<9x96xf32> to vector<9x8xf32>
    %cst_405 = arith.constant dense<0.000000e+00> : vector<9x9xf32>
    %938 = tpu.matmul %935, %936, %cst_405 {dimension_numbers = #tpu.dot_dimension_numbers<[1], [1], [0], [0], [0, 0, 1, 0], [], []>} : vector<9x8xf32>, vector<9x8xf32>, vector<9x9xf32> -> vector<9x9xf32>
    %cst_406 = arith.constant 0.353553385 : f32
    %939 = vector.broadcast %cst_406 : f32 to vector<9x9xf32>
    %940 = arith.mulf %938, %939 : vector<9x9xf32>
    %941 = arith.addf %940, %778 : vector<9x9xf32>
    %cst_407 = arith.constant dense<0xFF800000> : vector<9xf32>
    %942 = vector.multi_reduction <maximumf>, %941, %cst_407 [1] : vector<9x9xf32> to vector<9xf32>
    %943 = vector.shape_cast %942 : vector<9xf32> to vector<9x1xf32>
    %944 = vector.broadcast %943 : vector<9x1xf32> to vector<9x9xf32>
    %945 = arith.subf %941, %944 : vector<9x9xf32>
    %946 = math.exp %945 : vector<9x9xf32>
    %cst_408 = arith.constant dense<0.000000e+00> : vector<9xf32>
    %947 = vector.multi_reduction <add>, %946, %cst_408 [1] : vector<9x9xf32> to vector<9xf32>
    %948 = vector.shape_cast %947 : vector<9xf32> to vector<9x1xf32>
    %949 = vector.broadcast %948 : vector<9x1xf32> to vector<9x9xf32>
    %950 = arith.divf %946, %949 : vector<9x9xf32>
    %cst_409 = arith.constant dense<0.000000e+00> : vector<9x8xf32>
    %951 = tpu.matmul %950, %937, %cst_409 {dimension_numbers = #tpu.dot_dimension_numbers<[1], [0], [0], [1], [0, 0, 1, 1], [], []>} : vector<9x9xf32>, vector<9x8xf32>, vector<9x8xf32> -> vector<9x8xf32>
    %952 = vector.extract_strided_slice %934 {offsets = [0, 0], sizes = [8, 32], strides = [1, 1]} : vector<32x32xf32> to vector<8x32xf32>
    %cst_410 = arith.constant dense<0.000000e+00> : vector<9x32xf32>
    %953 = tpu.matmul %951, %952, %cst_410 {dimension_numbers = #tpu.dot_dimension_numbers<[1], [0], [0], [1], [0, 0, 1, 1], [], []>} : vector<9x8xf32>, vector<8x32xf32>, vector<9x32xf32> -> vector<9x32xf32>
    %954 = vector.extract_strided_slice %933 {offsets = [0, 8], sizes = [9, 8], strides = [1, 1]} : vector<9x96xf32> to vector<9x8xf32>
    %955 = vector.extract_strided_slice %933 {offsets = [0, 40], sizes = [9, 8], strides = [1, 1]} : vector<9x96xf32> to vector<9x8xf32>
    %956 = vector.extract_strided_slice %933 {offsets = [0, 72], sizes = [9, 8], strides = [1, 1]} : vector<9x96xf32> to vector<9x8xf32>
    %cst_411 = arith.constant dense<0.000000e+00> : vector<9x9xf32>
    %957 = tpu.matmul %954, %955, %cst_411 {dimension_numbers = #tpu.dot_dimension_numbers<[1], [1], [0], [0], [0, 0, 1, 0], [], []>} : vector<9x8xf32>, vector<9x8xf32>, vector<9x9xf32> -> vector<9x9xf32>
    %cst_412 = arith.constant 0.353553385 : f32
    %958 = vector.broadcast %cst_412 : f32 to vector<9x9xf32>
    %959 = arith.mulf %957, %958 : vector<9x9xf32>
    %960 = arith.addf %959, %778 : vector<9x9xf32>
    %cst_413 = arith.constant dense<0xFF800000> : vector<9xf32>
    %961 = vector.multi_reduction <maximumf>, %960, %cst_413 [1] : vector<9x9xf32> to vector<9xf32>
    %962 = vector.shape_cast %961 : vector<9xf32> to vector<9x1xf32>
    %963 = vector.broadcast %962 : vector<9x1xf32> to vector<9x9xf32>
    %964 = arith.subf %960, %963 : vector<9x9xf32>
    %965 = math.exp %964 : vector<9x9xf32>
    %cst_414 = arith.constant dense<0.000000e+00> : vector<9xf32>
    %966 = vector.multi_reduction <add>, %965, %cst_414 [1] : vector<9x9xf32> to vector<9xf32>
    %967 = vector.shape_cast %966 : vector<9xf32> to vector<9x1xf32>
    %968 = vector.broadcast %967 : vector<9x1xf32> to vector<9x9xf32>
    %969 = arith.divf %965, %968 : vector<9x9xf32>
    %cst_415 = arith.constant dense<0.000000e+00> : vector<9x8xf32>
    %970 = tpu.matmul %969, %956, %cst_415 {dimension_numbers = #tpu.dot_dimension_numbers<[1], [0], [0], [1], [0, 0, 1, 1], [], []>} : vector<9x9xf32>, vector<9x8xf32>, vector<9x8xf32> -> vector<9x8xf32>
    %971 = vector.extract_strided_slice %934 {offsets = [8, 0], sizes = [8, 32], strides = [1, 1]} : vector<32x32xf32> to vector<8x32xf32>
    %cst_416 = arith.constant dense<0.000000e+00> : vector<9x32xf32>
    %972 = tpu.matmul %970, %971, %cst_416 {dimension_numbers = #tpu.dot_dimension_numbers<[1], [0], [0], [1], [0, 0, 1, 1], [], []>} : vector<9x8xf32>, vector<8x32xf32>, vector<9x32xf32> -> vector<9x32xf32>
    %973 = arith.addf %953, %972 : vector<9x32xf32>
    %974 = vector.extract_strided_slice %933 {offsets = [0, 16], sizes = [9, 8], strides = [1, 1]} : vector<9x96xf32> to vector<9x8xf32>
    %975 = vector.extract_strided_slice %933 {offsets = [0, 48], sizes = [9, 8], strides = [1, 1]} : vector<9x96xf32> to vector<9x8xf32>
    %976 = vector.extract_strided_slice %933 {offsets = [0, 80], sizes = [9, 8], strides = [1, 1]} : vector<9x96xf32> to vector<9x8xf32>
    %cst_417 = arith.constant dense<0.000000e+00> : vector<9x9xf32>
    %977 = tpu.matmul %974, %975, %cst_417 {dimension_numbers = #tpu.dot_dimension_numbers<[1], [1], [0], [0], [0, 0, 1, 0], [], []>} : vector<9x8xf32>, vector<9x8xf32>, vector<9x9xf32> -> vector<9x9xf32>
    %cst_418 = arith.constant 0.353553385 : f32
    %978 = vector.broadcast %cst_418 : f32 to vector<9x9xf32>
    %979 = arith.mulf %977, %978 : vector<9x9xf32>
    %980 = arith.addf %979, %778 : vector<9x9xf32>
    %cst_419 = arith.constant dense<0xFF800000> : vector<9xf32>
    %981 = vector.multi_reduction <maximumf>, %980, %cst_419 [1] : vector<9x9xf32> to vector<9xf32>
    %982 = vector.shape_cast %981 : vector<9xf32> to vector<9x1xf32>
    %983 = vector.broadcast %982 : vector<9x1xf32> to vector<9x9xf32>
    %984 = arith.subf %980, %983 : vector<9x9xf32>
    %985 = math.exp %984 : vector<9x9xf32>
    %cst_420 = arith.constant dense<0.000000e+00> : vector<9xf32>
    %986 = vector.multi_reduction <add>, %985, %cst_420 [1] : vector<9x9xf32> to vector<9xf32>
    %987 = vector.shape_cast %986 : vector<9xf32> to vector<9x1xf32>
    %988 = vector.broadcast %987 : vector<9x1xf32> to vector<9x9xf32>
    %989 = arith.divf %985, %988 : vector<9x9xf32>
    %cst_421 = arith.constant dense<0.000000e+00> : vector<9x8xf32>
    %990 = tpu.matmul %989, %976, %cst_421 {dimension_numbers = #tpu.dot_dimension_numbers<[1], [0], [0], [1], [0, 0, 1, 1], [], []>} : vector<9x9xf32>, vector<9x8xf32>, vector<9x8xf32> -> vector<9x8xf32>
    %991 = vector.extract_strided_slice %934 {offsets = [16, 0], sizes = [8, 32], strides = [1, 1]} : vector<32x32xf32> to vector<8x32xf32>
    %cst_422 = arith.constant dense<0.000000e+00> : vector<9x32xf32>
    %992 = tpu.matmul %990, %991, %cst_422 {dimension_numbers = #tpu.dot_dimension_numbers<[1], [0], [0], [1], [0, 0, 1, 1], [], []>} : vector<9x8xf32>, vector<8x32xf32>, vector<9x32xf32> -> vector<9x32xf32>
    %993 = arith.addf %973, %992 : vector<9x32xf32>
    %994 = vector.extract_strided_slice %933 {offsets = [0, 24], sizes = [9, 8], strides = [1, 1]} : vector<9x96xf32> to vector<9x8xf32>
    %995 = vector.extract_strided_slice %933 {offsets = [0, 56], sizes = [9, 8], strides = [1, 1]} : vector<9x96xf32> to vector<9x8xf32>
    %996 = vector.extract_strided_slice %933 {offsets = [0, 88], sizes = [9, 8], strides = [1, 1]} : vector<9x96xf32> to vector<9x8xf32>
    %cst_423 = arith.constant dense<0.000000e+00> : vector<9x9xf32>
    %997 = tpu.matmul %994, %995, %cst_423 {dimension_numbers = #tpu.dot_dimension_numbers<[1], [1], [0], [0], [0, 0, 1, 0], [], []>} : vector<9x8xf32>, vector<9x8xf32>, vector<9x9xf32> -> vector<9x9xf32>
    %cst_424 = arith.constant 0.353553385 : f32
    %998 = vector.broadcast %cst_424 : f32 to vector<9x9xf32>
    %999 = arith.mulf %997, %998 : vector<9x9xf32>
    %1000 = arith.addf %999, %778 : vector<9x9xf32>
    %cst_425 = arith.constant dense<0xFF800000> : vector<9xf32>
    %1001 = vector.multi_reduction <maximumf>, %1000, %cst_425 [1] : vector<9x9xf32> to vector<9xf32>
    %1002 = vector.shape_cast %1001 : vector<9xf32> to vector<9x1xf32>
    %1003 = vector.broadcast %1002 : vector<9x1xf32> to vector<9x9xf32>
    %1004 = arith.subf %1000, %1003 : vector<9x9xf32>
    %1005 = math.exp %1004 : vector<9x9xf32>
    %cst_426 = arith.constant dense<0.000000e+00> : vector<9xf32>
    %1006 = vector.multi_reduction <add>, %1005, %cst_426 [1] : vector<9x9xf32> to vector<9xf32>
    %1007 = vector.shape_cast %1006 : vector<9xf32> to vector<9x1xf32>
    %1008 = vector.broadcast %1007 : vector<9x1xf32> to vector<9x9xf32>
    %1009 = arith.divf %1005, %1008 : vector<9x9xf32>
    %cst_427 = arith.constant dense<0.000000e+00> : vector<9x8xf32>
    %1010 = tpu.matmul %1009, %996, %cst_427 {dimension_numbers = #tpu.dot_dimension_numbers<[1], [0], [0], [1], [0, 0, 1, 1], [], []>} : vector<9x9xf32>, vector<9x8xf32>, vector<9x8xf32> -> vector<9x8xf32>
    %1011 = vector.extract_strided_slice %934 {offsets = [24, 0], sizes = [8, 32], strides = [1, 1]} : vector<32x32xf32> to vector<8x32xf32>
    %cst_428 = arith.constant dense<0.000000e+00> : vector<9x32xf32>
    %1012 = tpu.matmul %1010, %1011, %cst_428 {dimension_numbers = #tpu.dot_dimension_numbers<[1], [0], [0], [1], [0, 0, 1, 1], [], []>} : vector<9x8xf32>, vector<8x32xf32>, vector<9x32xf32> -> vector<9x32xf32>
    %1013 = arith.addf %993, %1012 : vector<9x32xf32>
    %c712_429 = arith.constant 712 : index
    %c0_430 = arith.constant 0 : index
    %1014 = vector.load %arg5[%c712_429, %c0_430] : memref<1176x128xf32, #tpu.memory_space<vmem>>, vector<1x32xf32>
    %1015 = vector.broadcast %1014 : vector<1x32xf32> to vector<9x32xf32>
    %1016 = arith.addf %1013, %1015 : vector<9x32xf32>
    %1017 = arith.addf %928, %1016 : vector<9x32xf32>
    %c720_431 = arith.constant 720 : index
    %c0_432 = arith.constant 0 : index
    %1018 = vector.load %arg5[%c720_431, %c0_432] : memref<1176x128xf32, #tpu.memory_space<vmem>>, vector<1x32xf32>
    %c728_433 = arith.constant 728 : index
    %c0_434 = arith.constant 0 : index
    %1019 = vector.load %arg5[%c728_433, %c0_434] : memref<1176x128xf32, #tpu.memory_space<vmem>>, vector<1x32xf32>
    %cst_435 = arith.constant dense<0.000000e+00> : vector<9xf32>
    %1020 = vector.multi_reduction <add>, %1017, %cst_435 [1] : vector<9x32xf32> to vector<9xf32>
    %1021 = vector.shape_cast %1020 : vector<9xf32> to vector<9x1xf32>
    %cst_436 = arith.constant 3.200000e+01 : f32
    %1022 = vector.broadcast %cst_436 : f32 to vector<9x1xf32>
    %1023 = arith.divf %1021, %1022 : vector<9x1xf32>
    %1024 = vector.broadcast %1023 : vector<9x1xf32> to vector<9x32xf32>
    %1025 = arith.subf %1017, %1024 : vector<9x32xf32>
    %1026 = arith.mulf %1025, %1025 : vector<9x32xf32>
    %cst_437 = arith.constant dense<0.000000e+00> : vector<9xf32>
    %1027 = vector.multi_reduction <add>, %1026, %cst_437 [1] : vector<9x32xf32> to vector<9xf32>
    %1028 = vector.shape_cast %1027 : vector<9xf32> to vector<9x1xf32>
    %cst_438 = arith.constant 3.200000e+01 : f32
    %1029 = vector.broadcast %cst_438 : f32 to vector<9x1xf32>
    %1030 = arith.divf %1028, %1029 : vector<9x1xf32>
    %cst_439 = arith.constant 9.99999974E-6 : f32
    %1031 = vector.broadcast %cst_439 : f32 to vector<9x1xf32>
    %1032 = arith.addf %1030, %1031 : vector<9x1xf32>
    %1033 = math.rsqrt %1032 : vector<9x1xf32>
    %1034 = vector.broadcast %1033 : vector<9x1xf32> to vector<9x32xf32>
    %1035 = arith.mulf %1025, %1034 : vector<9x32xf32>
    %1036 = vector.broadcast %1018 : vector<1x32xf32> to vector<9x32xf32>
    %1037 = arith.mulf %1035, %1036 : vector<9x32xf32>
    %1038 = vector.broadcast %1019 : vector<1x32xf32> to vector<9x32xf32>
    %1039 = arith.addf %1037, %1038 : vector<9x32xf32>
    %c736_440 = arith.constant 736 : index
    %c0_441 = arith.constant 0 : index
    %1040 = vector.load %arg5[%c736_440, %c0_441] : memref<1176x128xf32, #tpu.memory_space<vmem>>, vector<32x32xf32>
    %cst_442 = arith.constant dense<0.000000e+00> : vector<9x32xf32>
    %1041 = tpu.matmul %1039, %1040, %cst_442 {dimension_numbers = #tpu.dot_dimension_numbers<[1], [0], [0], [1], [0, 0, 1, 1], [], []>} : vector<9x32xf32>, vector<32x32xf32>, vector<9x32xf32> -> vector<9x32xf32>
    %c768_443 = arith.constant 768 : index
    %c0_444 = arith.constant 0 : index
    %1042 = vector.load %arg5[%c768_443, %c0_444] : memref<1176x128xf32, #tpu.memory_space<vmem>>, vector<1x32xf32>
    %1043 = vector.broadcast %1042 : vector<1x32xf32> to vector<9x32xf32>
    %1044 = arith.addf %1041, %1043 : vector<9x32xf32>
    %1045 = arith.negf %1044 : vector<9x32xf32>
    %1046 = math.exp %1045 : vector<9x32xf32>
    %cst_445 = arith.constant 1.000000e+00 : f32
    %1047 = vector.broadcast %cst_445 : f32 to vector<9x32xf32>
    %1048 = arith.addf %1047, %1046 : vector<9x32xf32>
    %1049 = arith.divf %1047, %1048 : vector<9x32xf32>
    %1050 = arith.mulf %1044, %1049 : vector<9x32xf32>
    %c776_446 = arith.constant 776 : index
    %c0_447 = arith.constant 0 : index
    %1051 = vector.load %arg5[%c776_446, %c0_447] : memref<1176x128xf32, #tpu.memory_space<vmem>>, vector<32x32xf32>
    %cst_448 = arith.constant dense<0.000000e+00> : vector<9x32xf32>
    %1052 = tpu.matmul %1050, %1051, %cst_448 {dimension_numbers = #tpu.dot_dimension_numbers<[1], [0], [0], [1], [0, 0, 1, 1], [], []>} : vector<9x32xf32>, vector<32x32xf32>, vector<9x32xf32> -> vector<9x32xf32>
    %c808_449 = arith.constant 808 : index
    %c0_450 = arith.constant 0 : index
    %1053 = vector.load %arg5[%c808_449, %c0_450] : memref<1176x128xf32, #tpu.memory_space<vmem>>, vector<1x32xf32>
    %1054 = vector.broadcast %1053 : vector<1x32xf32> to vector<9x32xf32>
    %1055 = arith.addf %1052, %1054 : vector<9x32xf32>
    %1056 = arith.addf %1039, %1055 : vector<9x32xf32>
    %c816_451 = arith.constant 816 : index
    %c0_452 = arith.constant 0 : index
    %1057 = vector.load %arg5[%c816_451, %c0_452] : memref<1176x128xf32, #tpu.memory_space<vmem>>, vector<1x32xf32>
    %c824_453 = arith.constant 824 : index
    %c0_454 = arith.constant 0 : index
    %1058 = vector.load %arg5[%c824_453, %c0_454] : memref<1176x128xf32, #tpu.memory_space<vmem>>, vector<1x32xf32>
    %cst_455 = arith.constant dense<0.000000e+00> : vector<9xf32>
    %1059 = vector.multi_reduction <add>, %1056, %cst_455 [1] : vector<9x32xf32> to vector<9xf32>
    %1060 = vector.shape_cast %1059 : vector<9xf32> to vector<9x1xf32>
    %cst_456 = arith.constant 3.200000e+01 : f32
    %1061 = vector.broadcast %cst_456 : f32 to vector<9x1xf32>
    %1062 = arith.divf %1060, %1061 : vector<9x1xf32>
    %1063 = vector.broadcast %1062 : vector<9x1xf32> to vector<9x32xf32>
    %1064 = arith.subf %1056, %1063 : vector<9x32xf32>
    %1065 = arith.mulf %1064, %1064 : vector<9x32xf32>
    %cst_457 = arith.constant dense<0.000000e+00> : vector<9xf32>
    %1066 = vector.multi_reduction <add>, %1065, %cst_457 [1] : vector<9x32xf32> to vector<9xf32>
    %1067 = vector.shape_cast %1066 : vector<9xf32> to vector<9x1xf32>
    %cst_458 = arith.constant 3.200000e+01 : f32
    %1068 = vector.broadcast %cst_458 : f32 to vector<9x1xf32>
    %1069 = arith.divf %1067, %1068 : vector<9x1xf32>
    %cst_459 = arith.constant 9.99999974E-6 : f32
    %1070 = vector.broadcast %cst_459 : f32 to vector<9x1xf32>
    %1071 = arith.addf %1069, %1070 : vector<9x1xf32>
    %1072 = math.rsqrt %1071 : vector<9x1xf32>
    %1073 = vector.broadcast %1072 : vector<9x1xf32> to vector<9x32xf32>
    %1074 = arith.mulf %1064, %1073 : vector<9x32xf32>
    %1075 = vector.broadcast %1057 : vector<1x32xf32> to vector<9x32xf32>
    %1076 = arith.mulf %1074, %1075 : vector<9x32xf32>
    %1077 = vector.broadcast %1058 : vector<1x32xf32> to vector<9x32xf32>
    %1078 = arith.addf %1076, %1077 : vector<9x32xf32>
    %1079 = vector.extract_strided_slice %1078 {offsets = [0, 0], sizes = [8, 32], strides = [1, 1]} : vector<9x32xf32> to vector<8x32xf32>
    %1080 = vector.extract_strided_slice %1078 {offsets = [8, 0], sizes = [1, 32], strides = [1, 1]} : vector<9x32xf32> to vector<1x32xf32>
    %c832_460 = arith.constant 832 : index
    %c0_461 = arith.constant 0 : index
    %1081 = vector.load %arg5[%c832_460, %c0_461] : memref<1176x128xf32, #tpu.memory_space<vmem>>, vector<32x32xf32>
    %cst_462 = arith.constant dense<0.000000e+00> : vector<1x32xf32>
    %1082 = tpu.matmul %1080, %1081, %cst_462 {dimension_numbers = #tpu.dot_dimension_numbers<[1], [0], [0], [1], [0, 0, 1, 1], [], []>} : vector<1x32xf32>, vector<32x32xf32>, vector<1x32xf32> -> vector<1x32xf32>
    %c864_463 = arith.constant 864 : index
    %c0_464 = arith.constant 0 : index
    %1083 = vector.load %arg5[%c864_463, %c0_464] : memref<1176x128xf32, #tpu.memory_space<vmem>>, vector<1x32xf32>
    %1084 = arith.addf %1082, %1083 : vector<1x32xf32>
    %1085 = arith.negf %1084 : vector<1x32xf32>
    %1086 = math.exp %1085 : vector<1x32xf32>
    %cst_465 = arith.constant 1.000000e+00 : f32
    %1087 = vector.broadcast %cst_465 : f32 to vector<1x32xf32>
    %1088 = arith.addf %1087, %1086 : vector<1x32xf32>
    %1089 = arith.divf %1087, %1088 : vector<1x32xf32>
    %1090 = arith.mulf %1084, %1089 : vector<1x32xf32>
    %c872_466 = arith.constant 872 : index
    %c0_467 = arith.constant 0 : index
    %1091 = vector.load %arg5[%c872_466, %c0_467] : memref<1176x128xf32, #tpu.memory_space<vmem>>, vector<32x32xf32>
    %cst_468 = arith.constant dense<0.000000e+00> : vector<1x32xf32>
    %1092 = tpu.matmul %1090, %1091, %cst_468 {dimension_numbers = #tpu.dot_dimension_numbers<[1], [0], [0], [1], [0, 0, 1, 1], [], []>} : vector<1x32xf32>, vector<32x32xf32>, vector<1x32xf32> -> vector<1x32xf32>
    %c904_469 = arith.constant 904 : index
    %c0_470 = arith.constant 0 : index
    %1093 = vector.load %arg5[%c904_469, %c0_470] : memref<1176x128xf32, #tpu.memory_space<vmem>>, vector<1x32xf32>
    %1094 = arith.addf %1092, %1093 : vector<1x32xf32>
    %c912_471 = arith.constant 912 : index
    %c0_472 = arith.constant 0 : index
    %1095 = vector.load %arg5[%c912_471, %c0_472] : memref<1176x128xf32, #tpu.memory_space<vmem>>, vector<1x32xf32>
    %c920_473 = arith.constant 920 : index
    %c0_474 = arith.constant 0 : index
    %1096 = vector.load %arg5[%c920_473, %c0_474] : memref<1176x128xf32, #tpu.memory_space<vmem>>, vector<1x32xf32>
    %cst_475 = arith.constant dense<0.000000e+00> : vector<1xf32>
    %1097 = vector.multi_reduction <add>, %1094, %cst_475 [1] : vector<1x32xf32> to vector<1xf32>
    %1098 = vector.shape_cast %1097 : vector<1xf32> to vector<1x1xf32>
    %cst_476 = arith.constant 3.200000e+01 : f32
    %1099 = vector.broadcast %cst_476 : f32 to vector<1x1xf32>
    %1100 = arith.divf %1098, %1099 : vector<1x1xf32>
    %1101 = vector.broadcast %1100 : vector<1x1xf32> to vector<1x32xf32>
    %1102 = arith.subf %1094, %1101 : vector<1x32xf32>
    %1103 = arith.mulf %1102, %1102 : vector<1x32xf32>
    %cst_477 = arith.constant dense<0.000000e+00> : vector<1xf32>
    %1104 = vector.multi_reduction <add>, %1103, %cst_477 [1] : vector<1x32xf32> to vector<1xf32>
    %1105 = vector.shape_cast %1104 : vector<1xf32> to vector<1x1xf32>
    %cst_478 = arith.constant 3.200000e+01 : f32
    %1106 = vector.broadcast %cst_478 : f32 to vector<1x1xf32>
    %1107 = arith.divf %1105, %1106 : vector<1x1xf32>
    %cst_479 = arith.constant 9.99999974E-6 : f32
    %1108 = vector.broadcast %cst_479 : f32 to vector<1x1xf32>
    %1109 = arith.addf %1107, %1108 : vector<1x1xf32>
    %1110 = math.rsqrt %1109 : vector<1x1xf32>
    %1111 = vector.broadcast %1110 : vector<1x1xf32> to vector<1x32xf32>
    %1112 = arith.mulf %1102, %1111 : vector<1x32xf32>
    %1113 = arith.mulf %1112, %1095 : vector<1x32xf32>
    %1114 = arith.addf %1113, %1096 : vector<1x32xf32>
    %c928_480 = arith.constant 928 : index
    %c0_481 = arith.constant 0 : index
    %1115 = vector.load %arg5[%c928_480, %c0_481] : memref<1176x128xf32, #tpu.memory_space<vmem>>, vector<32x4xf32>
    %cst_482 = arith.constant dense<0.000000e+00> : vector<1x4xf32>
    %1116 = tpu.matmul %1114, %1115, %cst_482 {dimension_numbers = #tpu.dot_dimension_numbers<[1], [0], [0], [1], [0, 0, 1, 1], [], []>} : vector<1x32xf32>, vector<32x4xf32>, vector<1x4xf32> -> vector<1x4xf32>
    %c960_483 = arith.constant 960 : index
    %c0_484 = arith.constant 0 : index
    %1117 = vector.load %arg5[%c960_483, %c0_484] : memref<1176x128xf32, #tpu.memory_space<vmem>>, vector<1x4xf32>
    %1118 = arith.addf %1116, %1117 : vector<1x4xf32>
    %cst_485 = arith.constant dense<0xFF800000> : vector<1xf32>
    %1119 = vector.multi_reduction <maximumf>, %1118, %cst_485 [1] : vector<1x4xf32> to vector<1xf32>
    %1120 = vector.shape_cast %1119 : vector<1xf32> to vector<1x1xf32>
    %1121 = vector.broadcast %1120 : vector<1x1xf32> to vector<1x4xf32>
    %1122 = arith.subf %1118, %1121 : vector<1x4xf32>
    %1123 = math.exp %1122 : vector<1x4xf32>
    %cst_486 = arith.constant dense<0.000000e+00> : vector<1xf32>
    %1124 = vector.multi_reduction <add>, %1123, %cst_486 [1] : vector<1x4xf32> to vector<1xf32>
    %1125 = vector.shape_cast %1124 : vector<1xf32> to vector<1x1xf32>
    %1126 = vector.broadcast %1125 : vector<1x1xf32> to vector<1x4xf32>
    %1127 = arith.divf %1123, %1126 : vector<1x4xf32>
    %c1_487 = arith.constant 1 : index
    %c0_488 = arith.constant 0 : index
    %c0_489 = arith.constant 0 : index
    %1128 = vector.load %arg7[%c1_487, %c0_488, %c0_489] : memref<2x1x4xf32, #tpu.memory_space<vmem>>, vector<1x1x4xf32>
    %1129 = vector.shape_cast %1128 : vector<1x1x4xf32> to vector<1x4xf32>
    %1130 = vector.shape_cast %1127 : vector<1x4xf32> to vector<1x1x4xf32>
    tpu.vector_store %arg7[%c1_487, %c0_488, %c0_489], %1130 {strides = array<i32>} : memref<2x1x4xf32, #tpu.memory_space<vmem>>, vector<1x1x4xf32>,
    %c968_490 = arith.constant 968 : index
    %c0_491 = arith.constant 0 : index
    %1131 = vector.load %arg5[%c968_490, %c0_491] : memref<1176x128xf32, #tpu.memory_space<vmem>>, vector<32x16xf32>
    %cst_492 = arith.constant dense<0.000000e+00> : vector<8x16xf32>
    %1132 = tpu.matmul %1079, %1131, %cst_492 {dimension_numbers = #tpu.dot_dimension_numbers<[1], [0], [0], [1], [0, 0, 1, 1], [], []>} : vector<8x32xf32>, vector<32x16xf32>, vector<8x16xf32> -> vector<8x16xf32>
    %c1000_493 = arith.constant 1000 : index
    %c0_494 = arith.constant 0 : index
    %1133 = vector.load %arg5[%c1000_493, %c0_494] : memref<1176x128xf32, #tpu.memory_space<vmem>>, vector<1x16xf32>
    %1134 = vector.broadcast %1133 : vector<1x16xf32> to vector<8x16xf32>
    %1135 = arith.addf %1132, %1134 : vector<8x16xf32>
    %1136 = arith.negf %1135 : vector<8x16xf32>
    %1137 = math.exp %1136 : vector<8x16xf32>
    %cst_495 = arith.constant 1.000000e+00 : f32
    %1138 = vector.broadcast %cst_495 : f32 to vector<8x16xf32>
    %1139 = arith.addf %1138, %1137 : vector<8x16xf32>
    %1140 = arith.divf %1138, %1139 : vector<8x16xf32>
    %1141 = arith.mulf %1135, %1140 : vector<8x16xf32>
    %c1008_496 = arith.constant 1008 : index
    %c0_497 = arith.constant 0 : index
    %1142 = vector.load %arg5[%c1008_496, %c0_497] : memref<1176x128xf32, #tpu.memory_space<vmem>>, vector<16x16xf32>
    %cst_498 = arith.constant dense<0.000000e+00> : vector<8x16xf32>
    %1143 = tpu.matmul %1141, %1142, %cst_498 {dimension_numbers = #tpu.dot_dimension_numbers<[1], [0], [0], [1], [0, 0, 1, 1], [], []>} : vector<8x16xf32>, vector<16x16xf32>, vector<8x16xf32> -> vector<8x16xf32>
    %c1024_499 = arith.constant 1024 : index
    %c0_500 = arith.constant 0 : index
    %1144 = vector.load %arg5[%c1024_499, %c0_500] : memref<1176x128xf32, #tpu.memory_space<vmem>>, vector<1x16xf32>
    %1145 = vector.broadcast %1144 : vector<1x16xf32> to vector<8x16xf32>
    %1146 = arith.addf %1143, %1145 : vector<8x16xf32>
    %1147 = vector.extract_strided_slice %1146 {offsets = [0, 0], sizes = [8, 8], strides = [1, 1]} : vector<8x16xf32> to vector<8x8xf32>
    %c1032_501 = arith.constant 1032 : index
    %c0_502 = arith.constant 0 : index
    %1148 = vector.load %arg5[%c1032_501, %c0_502] : memref<1176x128xf32, #tpu.memory_space<vmem>>, vector<8x8xf32>
    %c1040_503 = arith.constant 1040 : index
    %c0_504 = arith.constant 0 : index
    %1149 = vector.load %arg5[%c1040_503, %c0_504] : memref<1176x128xf32, #tpu.memory_space<vmem>>, vector<8x8xf32>
    %cst_505 = arith.constant dense<0.000000e+00> : vector<8xf32>
    %1150 = vector.multi_reduction <add>, %1147, %cst_505 [1] : vector<8x8xf32> to vector<8xf32>
    %1151 = vector.shape_cast %1150 : vector<8xf32> to vector<8x1xf32>
    %cst_506 = arith.constant 8.000000e+00 : f32
    %1152 = vector.broadcast %cst_506 : f32 to vector<8x1xf32>
    %1153 = arith.divf %1151, %1152 : vector<8x1xf32>
    %cst_507 = arith.constant dense<0.000000e+00> : vector<1xf32>
    %1154 = vector.multi_reduction <add>, %1153, %cst_507 [0] : vector<8x1xf32> to vector<1xf32>
    %1155 = vector.shape_cast %1154 : vector<1xf32> to vector<1x1xf32>
    %cst_508 = arith.constant 8.000000e+00 : f32
    %1156 = vector.broadcast %cst_508 : f32 to vector<1x1xf32>
    %1157 = arith.divf %1155, %1156 : vector<1x1xf32>
    %1158 = vector.broadcast %1157 : vector<1x1xf32> to vector<8x8xf32>
    %1159 = arith.subf %1147, %1158 : vector<8x8xf32>
    %1160 = arith.mulf %1159, %1159 : vector<8x8xf32>
    %cst_509 = arith.constant dense<0.000000e+00> : vector<8xf32>
    %1161 = vector.multi_reduction <add>, %1160, %cst_509 [1] : vector<8x8xf32> to vector<8xf32>
    %1162 = vector.shape_cast %1161 : vector<8xf32> to vector<8x1xf32>
    %cst_510 = arith.constant 8.000000e+00 : f32
    %1163 = vector.broadcast %cst_510 : f32 to vector<8x1xf32>
    %1164 = arith.divf %1162, %1163 : vector<8x1xf32>
    %cst_511 = arith.constant dense<0.000000e+00> : vector<1xf32>
    %1165 = vector.multi_reduction <add>, %1164, %cst_511 [0] : vector<8x1xf32> to vector<1xf32>
    %1166 = vector.shape_cast %1165 : vector<1xf32> to vector<1x1xf32>
    %cst_512 = arith.constant 8.000000e+00 : f32
    %1167 = vector.broadcast %cst_512 : f32 to vector<1x1xf32>
    %1168 = arith.divf %1166, %1167 : vector<1x1xf32>
    %cst_513 = arith.constant 9.99999974E-6 : f32
    %1169 = vector.broadcast %cst_513 : f32 to vector<1x1xf32>
    %1170 = arith.addf %1168, %1169 : vector<1x1xf32>
    %1171 = math.rsqrt %1170 : vector<1x1xf32>
    %1172 = vector.broadcast %1171 : vector<1x1xf32> to vector<8x8xf32>
    %1173 = arith.mulf %1159, %1172 : vector<8x8xf32>
    %1174 = arith.mulf %1173, %1148 : vector<8x8xf32>
    %1175 = arith.addf %1174, %1149 : vector<8x8xf32>
    %1176 = vector.extract_strided_slice %1146 {offsets = [0, 8], sizes = [8, 8], strides = [1, 1]} : vector<8x16xf32> to vector<8x8xf32>
    %c1048_514 = arith.constant 1048 : index
    %c0_515 = arith.constant 0 : index
    %1177 = vector.load %arg5[%c1048_514, %c0_515] : memref<1176x128xf32, #tpu.memory_space<vmem>>, vector<8x8xf32>
    %c1056_516 = arith.constant 1056 : index
    %c0_517 = arith.constant 0 : index
    %1178 = vector.load %arg5[%c1056_516, %c0_517] : memref<1176x128xf32, #tpu.memory_space<vmem>>, vector<8x8xf32>
    %cst_518 = arith.constant dense<0.000000e+00> : vector<8xf32>
    %1179 = vector.multi_reduction <add>, %1176, %cst_518 [1] : vector<8x8xf32> to vector<8xf32>
    %1180 = vector.shape_cast %1179 : vector<8xf32> to vector<8x1xf32>
    %cst_519 = arith.constant 8.000000e+00 : f32
    %1181 = vector.broadcast %cst_519 : f32 to vector<8x1xf32>
    %1182 = arith.divf %1180, %1181 : vector<8x1xf32>
    %cst_520 = arith.constant dense<0.000000e+00> : vector<1xf32>
    %1183 = vector.multi_reduction <add>, %1182, %cst_520 [0] : vector<8x1xf32> to vector<1xf32>
    %1184 = vector.shape_cast %1183 : vector<1xf32> to vector<1x1xf32>
    %cst_521 = arith.constant 8.000000e+00 : f32
    %1185 = vector.broadcast %cst_521 : f32 to vector<1x1xf32>
    %1186 = arith.divf %1184, %1185 : vector<1x1xf32>
    %1187 = vector.broadcast %1186 : vector<1x1xf32> to vector<8x8xf32>
    %1188 = arith.subf %1176, %1187 : vector<8x8xf32>
    %1189 = arith.mulf %1188, %1188 : vector<8x8xf32>
    %cst_522 = arith.constant dense<0.000000e+00> : vector<8xf32>
    %1190 = vector.multi_reduction <add>, %1189, %cst_522 [1] : vector<8x8xf32> to vector<8xf32>
    %1191 = vector.shape_cast %1190 : vector<8xf32> to vector<8x1xf32>
    %cst_523 = arith.constant 8.000000e+00 : f32
    %1192 = vector.broadcast %cst_523 : f32 to vector<8x1xf32>
    %1193 = arith.divf %1191, %1192 : vector<8x1xf32>
    %cst_524 = arith.constant dense<0.000000e+00> : vector<1xf32>
    %1194 = vector.multi_reduction <add>, %1193, %cst_524 [0] : vector<8x1xf32> to vector<1xf32>
    %1195 = vector.shape_cast %1194 : vector<1xf32> to vector<1x1xf32>
    %cst_525 = arith.constant 8.000000e+00 : f32
    %1196 = vector.broadcast %cst_525 : f32 to vector<1x1xf32>
    %1197 = arith.divf %1195, %1196 : vector<1x1xf32>
    %cst_526 = arith.constant 9.99999974E-6 : f32
    %1198 = vector.broadcast %cst_526 : f32 to vector<1x1xf32>
    %1199 = arith.addf %1197, %1198 : vector<1x1xf32>
    %1200 = math.rsqrt %1199 : vector<1x1xf32>
    %1201 = vector.broadcast %1200 : vector<1x1xf32> to vector<8x8xf32>
    %1202 = arith.mulf %1188, %1201 : vector<8x8xf32>
    %1203 = arith.mulf %1202, %1177 : vector<8x8xf32>
    %1204 = arith.addf %1203, %1178 : vector<8x8xf32>
    %cst_527 = arith.constant 5.000000e-01 : f32
    %1205 = vector.broadcast %cst_527 : f32 to vector<8x8xf32>
    %1206 = arith.mulf %1204, %1205 : vector<8x8xf32>
    %1207 = math.exp %1206 : vector<8x8xf32>
    %1208 = arith.mulf %1207, %614 : vector<8x8xf32>
    %1209 = arith.addf %1175, %1208 : vector<8x8xf32>
    %1210 = tpu.concatenate %1209, %1175, %1204 in 1 : vector<8x8xf32>, vector<8x8xf32>, vector<8x8xf32> -> vector<8x24xf32>
    %c1_528 = arith.constant 1 : index
    %c0_529 = arith.constant 0 : index
    %c0_530 = arith.constant 0 : index
    %1211 = vector.load %arg6[%c1_528, %c0_529, %c0_530] : memref<2x8x24xf32, #tpu.memory_space<vmem>>, vector<1x8x24xf32>
    %1212 = vector.shape_cast %1211 : vector<1x8x24xf32> to vector<8x24xf32>
    %1213 = vector.shape_cast %1210 : vector<8x24xf32> to vector<1x8x24xf32>
    tpu.vector_store %arg6[%c1_528, %c0_529, %c0_530], %1213 {strides = array<i32>} : memref<2x8x24xf32, #tpu.memory_space<vmem>>, vector<1x8x24xf32>,
    return
  }
  func.func @transform_0(%arg0: i32) -> (i32, i32, i32) {
    %c0_i32 = arith.constant 0 : i32
    %c0_i32_0 = arith.constant 0 : i32
    %c0_i32_1 = arith.constant 0 : i32
    return %arg0, %c0_i32, %c0_i32_0 : i32, i32, i32
  }
  func.func @transform_1(%arg0: i32) -> (i32, i32, i32) {
    %c0_i32 = arith.constant 0 : i32
    %c0_i32_0 = arith.constant 0 : i32
    %c0_i32_1 = arith.constant 0 : i32
    return %arg0, %c0_i32, %c0_i32_0 : i32, i32, i32
  }
  func.func @transform_2(%arg0: i32) -> (i32, i32, i32) {
    %c0_i32 = arith.constant 0 : i32
    %c0_i32_0 = arith.constant 0 : i32
    %c0_i32_1 = arith.constant 0 : i32
    return %arg0, %c0_i32, %c0_i32_0 : i32, i32, i32
  }
  func.func @transform_3(%arg0: i32) -> (i32, i32, i32) {
    %c0_i32 = arith.constant 0 : i32
    %c0_i32_0 = arith.constant 0 : i32
    %c0_i32_1 = arith.constant 0 : i32
    return %arg0, %c0_i32, %c0_i32_0 : i32, i32, i32
  }
  func.func @transform_4(%arg0: i32) -> (i32, i32) {
    %c0_i32 = arith.constant 0 : i32
    %c0_i32_0 = arith.constant 0 : i32
    %c0_i32_1 = arith.constant 0 : i32
    return %c0_i32, %c0_i32_0 : i32, i32
  }
  func.func @transform_5(%arg0: i32) -> (i32, i32, i32) {
    %c0_i32 = arith.constant 0 : i32
    %c0_i32_0 = arith.constant 0 : i32
    %c0_i32_1 = arith.constant 0 : i32
    return %arg0, %c0_i32, %c0_i32_0 : i32, i32, i32
  }
  func.func @transform_6(%arg0: i32) -> (i32, i32, i32) {
    %c0_i32 = arith.constant 0 : i32
    %c0_i32_0 = arith.constant 0 : i32
    %c0_i32_1 = arith.constant 0 : i32
    return %arg0, %c0_i32, %c0_i32_0 : i32, i32, i32
  }
}

</mosaic_0001>

<bundles_post_ra>
// kernel: q_forward.1
= control target key start
LH: loop header
LB: loop body
LE: loop exit
PB: predicated region body
PF: predicated region fallthrough
CT: control target
= control target key end

     0   :  { %v13335_v1 = vmov 0.0   ;;  %vm63_vm0 = vcmask 523264   ;;  %s15575_s0 = inlined_call_operand.vmem [shape: f32[2,32,192], index: 0, kind: input, shape index: {}]   ;;  %s15576_s1 = inlined_call_operand.vmem [shape: f32[2,8,4], index: 1, kind: input, shape index: {}]   ;;  %s15577_s2 = inlined_call_operand.vmem [shape: f32[2,1,9], index: 2, kind: input, shape index: {}]   ;;  %s15578_s3 = inlined_call_operand.vmem [shape: f32[2,8,8], index: 3, kind: input, shape index: {}]   ;;  %s15579_s4 = inlined_call_operand.vmem [shape: f32[1176,128], index: 4, kind: input, shape index: {}]   ;;  %s15580_s5 = inlined_call_operand.vmem [shape: f32[2,8,24], index: 5, kind: output, shape index: {0}]   ;;  %s15581_s6 = inlined_call_operand.hbm [shape: f32[2,1,4], index: 6, kind: output, shape index: {1}]  }
   0x1   :  { %v49_v0 = vld [vmem:[%s15579_s4 + $0x78] sm:$0xff]  ;;  %76 = vmatprep.subr.mxu0 %v13335_v1  ;;  %v48_v2 = vld [vmem:[%s15579_s4 + $0x70] sm:$0xff]  ;;  %v47_v3 = vld [vmem:[%s15579_s4 + $0x68] sm:$0xff] }
   0x2   :  { %77 = vmatpush1.msra.mxu0 %v49_v0  ;;  %v46_v4 = vld [vmem:[%s15579_s4 + $0x60] sm:$0xff]  ;;  %v45_v5 = vld [vmem:[%s15579_s4 + $0x58] sm:$0xff]  ;;  %v24_v6 = vld [vmem:[%s15575_s0 + $0x8] sm:$0xff] }
   0x3   :  { %78 = vmatprep.subr.mxu0 %v13335_v1  ;;  %v44_v7 = vld [vmem:[%s15579_s4 + $0x50] sm:$0xff]  ;;  %11199 = vmatprep.mubr.msk.f32.mxu0 %vm63_vm0, %v24_v6  ;;  %v43_v8 = vld [vmem:[%s15579_s4 + $0x48] sm:$0xff] }
   0x4   :  { %79 = vmatpush1.msra.mxu0 %v48_v2 }
   0x5   :  { %80 = vmatprep.subr.mxu0 %v13335_v1 }
   0x6   :  { %81 = vmatpush1.msra.mxu0 %v47_v3 }
   0x7   :  { %82 = vmatprep.subr.mxu0 %v13335_v1 }
   0x8   :  { %83 = vmatpush1.msra.mxu0 %v46_v4 }
   0x9   :  { %84 = vmatprep.subr.mxu0 %v13335_v1 }
   0xa   :  { %85 = vmatpush1.msra.mxu0 %v45_v5 }
   0xb   :  { %86 = vmatprep.subr.mxu0 %v13335_v1 }
   0xc   :  { %12 = vsyncpa [#allocation3], 0  ;;  %87 = vmatpush1.msra.mxu0 %v44_v7  ;;  %v42_v9 = vld [vmem:[%s15579_s4 + $0x40] sm:$0xff]  ;;  %v41_v10 = vld [vmem:[%s15579_s4 + $0x38] sm:$0xff]  ;;  %vm172_vm1 = vcmask 130048   ;;  %vm284_vm2 = vcmask 64512  }
   0xd   :  { %88 = vmatprep.subr.mxu0 %v13335_v1  ;;  %v40_v11 = vld [vmem:[%s15579_s4 + $0x30] sm:$0xff]  ;;  %v39_v12 = vld [vmem:[%s15579_s4 + $0x28] sm:$0xff]  ;;  %v38_v13 = vld [vmem:[%s15579_s4 + $0x20] sm:$0xff]  ;;  %s13336_s21 = smov 112   ;;  %s13337_s22 = smov 96   ;;  %vm394_vm3 = vcmask 261120  }
   0xe   :  { %89 = vmatpush1.msra.mxu0 %v43_v8  ;;  %v37_v14 = vld [vmem:[%s15579_s4 + $0x18] sm:$0xff]  ;;  %v36_v15 = vld [vmem:[%s15579_s4 + $0x10] sm:$0xff]  ;;  %v35_v16 = vld [vmem:[%s15579_s4 + $0x8] sm:$0xff]  ;;  %s13338_s7 = smov 104   ;;  %s13339_s8 = smov 120   ;;  %vm1498_vm4 = vcmask 1043456  }
   0xf   :  { %90 = vmatprep.subr.mxu0 %v13335_v1  ;;  %v34_v17 = vld [vmem:[%s15579_s4] sm:$0xff]  ;;  %v57_v18 = vld [vmem:[%s15579_s4 + $0xb8] sm:$0xff]  ;;  %v56_v19 = vld [vmem:[%s15579_s4 + $0xb0] sm:$0xff]  ;;  %s13340_s11 = smov 88   ;;  %vm1494_vm5 = vcmask 31744   ;;  %vm13341_vm6 = vmmov 0  }
  0x10   :  { %91 = vmatpush1.msra.mxu0 %v42_v9  ;;  %v55_v20 = vld [vmem:[%s15579_s4 + $0xa8] sm:$0xff]  ;;  %v54_v21 = vld [vmem:[%s15579_s4 + $0xa0] sm:$0xff]  ;;  %v53_v22 = vld [vmem:[%s15579_s4 + $0x98] sm:$0xff]  ;;  %vm2197_vm7 = vcmask 65536   ;;  %vm2193_vm8 = vcmask 72704   ;;  %s13342_s26 = smov 64  }
  0x11   :  { %92 = vmatprep.subr.mxu0 %v13335_v1  ;;  %v52_v23 = vld [vmem:[%s15579_s4 + $0x90] sm:$0xff]  ;;  %v51_v24 = vld [vmem:[%s15579_s4 + $0x88] sm:$0xff]  ;;  %v50_v25 = vld [vmem:[%s15579_s4 + $0x80] sm:$0xff]  ;;  %vm2228_vm9 = vcmask 1040384   ;;  %s13343_s27 = smov 56   ;;  %s13344_s28 = smov 80  }
  0x12   :  { %93 = vmatpush1.msra.mxu0 %v41_v10  ;;  %v23_v26 = vld [vmem:[%s15575_s0] sm:$0xff]  ;;  %v26_v27 = vld [vmem:[%s15575_s0 + $0x18] sm:$0xff]  ;;  %v25_v28 = vld [vmem:[%s15575_s0 + $0x10] sm:$0xff]  ;;  %s13345_s29 = smov 72   ;;  %s13346_s13 = smov 48   ;;  %vm3263_vm10 = vcmask 253952  }
  0x13   :  { %94 = vmatprep.subr.mxu0 %v13335_v1  ;;  %v28_v29 = vld [vmem:[%s15575_s0 + $0x28] sm:$0xff]  ;;  %v27_v30 = vld [vmem:[%s15575_s0 + $0x20] sm:$0xff]  ;;  %v30_v31 = vld [vmem:[%s15575_s0 + $0x38] sm:$0xff]  ;;  %s13347_s14 = smov 40   ;;  %vm5319_vm11 = vcmask 24576   ;;  %s13348_s24 = smov 8  }
  0x14   :  { %95 = vmatpush1.msra.mxu0 %v40_v11  ;;  %v29_v32 = vld [vmem:[%s15575_s0 + $0x30] sm:$0xff]  ;;  %v165_v34 = vld [vmem:[%s15579_s4 + $0xc8] sm:$0xff]  ;;  %v11198_v35 = vld [vmem:[%s15579_s4 + $0xc0] ss:$0 sm:$0xff]  ;;  %vm5603_vm12 = vcmask 195584  }
  0x15   :  { %96 = vmatprep.subr.mxu0 %v13335_v1  ;;  %v166_v33 = vld [vmem:[%s15579_s4 + $0xd0] sm:$0xff]  ;;  %v11203_v48 = vld [vmem:[%s15579_s4 + $0xd8] ss:$0 sm:$0xff]  ;;  %v13593_v10 = vld [vmem:[%s15579_s4 + $0x448] sm:$0xff] }
  0x16   :  { %97 = vmatpush1.msra.mxu0 %v39_v12  ;;  %12058 = vmatprep.subr.mxu1 %v166_v33  ;;  %v13582_v3 = vld [vmem:[%s15579_s4 + $0x438] sm:$0xff]  ;;  %v13587_v6 = vld [vmem:[%s15579_s4 + $0x430] sm:$0xff] }
  0x17   :  { %98 = vmatprep.subr.mxu0 %v13335_v1  ;;  %12059 = vmatpush3.msra.mxu1 %v166_v33 }
  0x18   :  { %99 = vmatpush1.msra.mxu0 %v38_v13  ;;  %12060 = vmatprep.subr.mxu1 %v165_v34 }
  0x19   :  { %100 = vmatprep.subr.mxu0 %v13335_v1  ;;  %12061 = vmatpush3.msra.mxu1 %v165_v34 }
  0x1a   :  { %101 = vmatpush1.msra.mxu0 %v37_v14 }
  0x1b   :  { %102 = vmatprep.subr.mxu0 %v13335_v1 }
  0x1c   :  { %103 = vmatpush1.msra.mxu0 %v36_v15 }
  0x1d   :  { %104 = vmatprep.subr.mxu0 %v13335_v1 }
  0x1e   :  { %105 = vmatpush1.msra.mxu0 %v35_v16 }
  0x1f   :  { %106 = vmatprep.subr.mxu0 %v13335_v1 }
  0x20   :  { %107 = vmatpush1.msra.mxu0 %v34_v17 }
  0x21   :  { %124 = vmatprep.subr.mxu0 %v13335_v1 }
  0x22   :  { %125 = vmatpush2.msra.mxu0 %v57_v18  ;;  %v13602_v18 = vld [vmem:[%s15579_s4 + $0x440] sm:$0xff] }
  0x23   :  { %126 = vmatprep.subr.mxu0 %v13335_v1 }
  0x24   :  { %127 = vmatpush2.msra.mxu0 %v56_v19 }
  0x25   :  { %128 = vmatprep.subr.mxu0 %v13335_v1 }
  0x26   :  { %129 = vmatpush2.msra.mxu0 %v55_v20 }
  0x27   :  { %130 = vmatprep.subr.mxu0 %v13335_v1 }
  0x28   :  { %131 = vmatpush2.msra.mxu0 %v54_v21 }
  0x29   :  { %132 = vmatprep.subr.mxu0 %v13335_v1 }
  0x2a   :  { %133 = vmatpush2.msra.mxu0 %v53_v22 }
  0x2b   :  { %134 = vmatprep.subr.mxu0 %v13335_v1 }
  0x2c   :  { %135 = vmatpush2.msra.mxu0 %v52_v23 }
  0x2d   :  { %136 = vmatprep.subr.mxu0 %v13335_v1 }
  0x2e   :  { %137 = vmatpush2.msra.mxu0 %v51_v24 }
  0x2f   :  { %138 = vmatprep.subr.mxu0 %v13335_v1 }
  0x30   :  { %139 = vmatpush2.msra.mxu0 %v50_v25 }
  0x31   :  { %141 = vmatmul.mubr.f32.vlgmr.msra.gmra.mxu0 %v23_v26 }
  0x32   :  { %11200 = vmatprep.mubr.msk.f32.mxu0 %vm63_vm0, %v26_v27 }
  0x35   :  { %146 = vmatmul.mubr.f32.gmra.mxu0 %v25_v28 }
  0x36   :  { %11201 = vmatprep.mubr.msk.f32.mxu0 %vm63_vm0, %v28_v29 }
  0x39   :  { %151 = vmatmul.mubr.f32.gmra.mxu0 %v27_v30 }
  0x3a   :  { %11202 = vmatprep.mubr.msk.f32.mxu0 %vm63_vm0, %v30_v31 }
  0x3d   :  { %156 = vmatmul.mubr.f32.gmra.mxu0 %v29_v32 }
  0xf1   :  { %v142_v36 = vpop.f32.mrf.mxu0 }
  0xf2   :  { %v13520_v37 = vadd.f32 %v11198_v35, %v142_v36 }
  0xf3   :  { %v144_v38 = vpop.f32.mrf.mxu0 }
  0xf4   :  { %12062 = vmatprep.mubr.msk.f32.mxu1 %vm172_vm1, %v13520_v37 }
  0xf5   :  { %v147_v39 = vpop.f32.mrf.mxu0 }
  0xf6   :  { %v13524_v40 = vadd.f32 %v11198_v35, %v147_v39 }
  0xf7   :  { %v149_v41 = vpop.f32.mrf.mxu0 }
  0xf8   :  { %12063 = vmatmul.mubr.msk.f32.vlgmr.msra.gmra.mxu1 %vm172_vm1, %v13524_v40 }
  0xf9   :  { %v152_v42 = vpop.f32.mrf.mxu0 }
  0xfa   :  { %v13528_v43 = vadd.f32 %v11198_v35, %v152_v42 }
  0xfb   :  { %v154_v44 = vpop.f32.mrf.mxu0 }
  0xfc   :  { %12065 = vmatprep.mubr.msk.f32.mxu1 %vm172_vm1, %v13528_v43 }
  0xfd   :  { %v157_v45 = vpop.f32.mrf.mxu0 }
  0xfe   :  { %v13532_v46 = vadd.f32 %v11198_v35, %v157_v45 }
  0xff   :  { %v159_v47 = vpop.f32.mrf.mxu0 }
 0x100   :  { %12066 = vmatmul.mubr.msk.f32.gmra.mxu1 %vm172_vm1, %v13532_v46 }
 0x1b8   :  { %v12064_v49 = vpop.f32.mrf.mxu1 }
 0x1b9   :  { %v13539_v50 = vadd.f32 %v12064_v49, %v11203_v48 }
 0x1ba   :  { %v251_v51 = vpop.f32.mrf.mxu1 }
 0x1bb   :  { %v13541_v52 = vadd.f32 %v11203_v48, %v251_v51  ;;  %278 = vrot.lane.b32.xlu1 %v13539_v50, %s13336_s21 }
 0x1bd   :  { %12076 = vmatprep.mubr.msk.f32.mxu1 %vm284_vm2, %v13541_v52 }
 0x1bf   :  { %276 = vrot.lane.b32.xlu1 %v13541_v52, %s13336_s21 }
 0x1c0   :  { %v12067_v53 = vpop.f32.mrf.mxu1 }
 0x1c1   :  { %v13549_v54 = vadd.f32 %v12067_v53, %v11203_v48 }
 0x1c2   :  { %v261_v55 = vpop.f32.mrf.mxu1 }
 0x1c3   :  { %282 = vrot.lane.b32.xlu0 %v13549_v54, %s13336_s21  ;;  %445 = vrot.lane.b32.xlu1 %v13549_v54, %s13337_s22  ;;  %v13555_v56 = vadd.f32 %v11203_v48, %v261_v55 }
 0x1c7   :  { %280 = vrot.lane.b32.xlu0 %v13555_v56, %s13336_s21  ;;  %441 = vrot.lane.b32.xlu1 %v13539_v50, %s13337_s22 }
 0x1cb   :  { %443 = vrot.lane.b32.xlu0 %v13555_v56, %s13337_s22  ;;  %439 = vrot.lane.b32.xlu1 %v13541_v52, %s13337_s22 }
 0x22d   :  { %v279_v57 = vpop.permute.xlu1 %278 }
 0x231   :  { %v277_v59 = vpop.permute.xlu1 %276 }
 0x235   :  { %v283_v58 = vpop.permute.xlu0 %282  ;;  %v446_v61 = vpop.permute.xlu1 %445 }
 0x236   :  { %12068 = vmatprep.subr.msk.mxu1 %vm284_vm2, %v283_v58 }
 0x237   :  { %12069 = vmatpush3.xpose.msk.msra.mxu1 %vm284_vm2, %v283_v58 }
 0x239   :  { %v281_v60 = vpop.permute.xlu0 %280  ;;  %v442_v62 = vpop.permute.xlu1 %441 }
 0x23a   :  { %12070 = vmatprep.subr.msk.mxu1 %vm284_vm2, %v281_v60 }
 0x23b   :  { %12071 = vmatpush3.xpose.msk.msra.mxu1 %vm284_vm2, %v281_v60 }
 0x23c   :  { %12072 = vmatprep.subr.msk.mxu1 %vm284_vm2, %v279_v57 }
 0x23d   :  { %v444_v63 = vpop.permute.xlu0 %443  ;;  %v440_v0 = vpop.permute.xlu1 %439 }
 0x23f   :  { %12073 = vmatpush3.xpose.msk.msra.mxu1 %vm284_vm2, %v279_v57 }
 0x240   :  { %12074 = vmatprep.subr.msk.mxu1 %vm284_vm2, %v277_v59 }
 0x243   :  { %12075 = vmatpush3.xpose.msk.msra.mxu1 %vm284_vm2, %v277_v59 }
 0x244   :  { %12082 = vmatprep.subr.mxu1 %v446_v61 }
 0x246   :  { %12077 = vmatmul.mubr.msk.f32.vlgmr.msra.gmra.mxu1 %vm284_vm2, %v13539_v50 }
 0x247   :  { %12079 = vmatprep.mubr.msk.f32.mxu1 %vm284_vm2, %v13555_v56  ;;  %12083 = vmatpush3.msra.mxu1 %v446_v61 }
 0x248   :  { %12084 = vmatprep.subr.mxu1 %v444_v63 }
 0x249   :  { %12085 = vmatpush3.msra.mxu1 %v444_v63 }
 0x24a   :  { %12080 = vmatmul.mubr.msk.f32.gmra.mxu1 %vm284_vm2, %v13549_v54  ;;  %12086 = vmatprep.subr.mxu1 %v442_v62 }
 0x24b   :  { %12087 = vmatpush3.msra.mxu1 %v442_v62 }
 0x24c   :  { %12088 = vmatprep.subr.mxu1 %v440_v0 }
 0x24d   :  { %12089 = vmatpush3.msra.mxu1 %v440_v0 }
 0x306   :  { %v12078_v2 = vpop.f32.mrf.mxu1 }
 0x307   :  { %v387_v4 = vmul.f32 0.35355338, %v12078_v2 }
 0x308   :  { %v367_v5 = vpop.f32.mrf.mxu1 }
 0x309   :  { %v386_v7 = vmul.f32 0.35355338, %v367_v5  ;;  %v391_v8 = vadd.f32 %v387_v4, %v13582_v3 }
 0x30a   :  { %v12081_v9 = vpop.f32.mrf.mxu1 }
 0x30b   :  { %v389_v11 = vmul.f32 0.35355338, %v12081_v9  ;;  %v398_v12 = vsel %vm394_vm3, %v391_v8, -inf  ;;  %v390_v13 = vadd.f32 %v386_v7, %v13587_v6  ;;  %v270_v9 = vld [vmem:[%s15579_s4 + $0xe0] sm:$0xff] }
 0x30c   :  { %399 = vmax.xlane.f32.xlu1 %v398_v12  ;;  %v377_v14 = vpop.f32.mrf.mxu1  ;;  %12132 = vmatprep.subr.mxu0 %v270_v9 }
 0x30d   :  { %v388_v15 = vmul.f32 0.35355338, %v377_v14  ;;  %v395_v16 = vsel %vm394_vm3, %v390_v13, -inf  ;;  %v393_v17 = vadd.f32 %v389_v11, %v13593_v10  ;;  %12133 = vmatpush3.msra.mxu0 %v270_v9 }
 0x30e   :  { %396 = vmax.xlane.f32.xlu0 %v395_v16 }
 0x30f   :  { %v404_v19 = vsel %vm394_vm3, %v393_v17, -inf  ;;  %v392_v20 = vadd.f32 %v388_v15, %v13602_v18 }
 0x311   :  { %v401_v21 = vsel %vm394_vm3, %v392_v20, -inf }
 0x312   :  { %405 = vmax.xlane.f32.xlu0 %v404_v19 }
 0x316   :  { %402 = vmax.xlane.f32.xlu0 %v401_v21 }
 0x31d   :  { %560 = vrot.lane.b32.xlu1 %v13555_v56, %s13338_s7 }
 0x32c   :  { %562 = vrot.lane.b32.xlu0 %v13549_v54, %s13338_s7 }
 0x395   :  { %v400_v22 = vpop.xlane.xlu1 %399 }
 0x396   :  { %v408_v23 = vsub.f32 %v391_v8, %v400_v22 }
 0x397   :  { %v397_v24 = vpop.xlane.xlu0 %396 }
 0x398   :  { %v413_v25 = vmul.f32 1.442695, %v408_v23  ;;  %v407_v26 = vsub.f32 %v390_v13, %v397_v24 }
 0x399   :  { %v561_v47 = vpop.permute.xlu1 %560 }
 0x39a   :  { %12935 = vpow2.f32 %v413_v25  ;;  %v411_v27 = vmul.f32 1.442695, %v407_v26 }
 0x39b   :  { %v406_v28 = vpop.xlane.xlu0 %405 }
 0x39c   :  { %12937 = vpow2.f32 %v411_v27  ;;  %v410_v35 = vsub.f32 %v393_v17, %v406_v28 }
 0x39e   :  { %v417_v38 = vmul.f32 1.442695, %v410_v35 }
 0x39f   :  { %v403_v29 = vpop.xlane.xlu0 %402 }
 0x3a0   :  { %v409_v36 = vsub.f32 %v392_v20, %v403_v29  ;;  %12939 = vpow2.f32 %v417_v38 }
 0x3a2   :  { %v415_v39 = vmul.f32 1.442695, %v409_v36 }
 0x3a3   :  { %v563_v30 = vpop.permute.xlu0 %562 }
 0x3a4   :  { %12096 = vmatprep.subr.msk.mxu1 %vm284_vm2, %v563_v30  ;;  %12941 = vpow2.f32 %v415_v39 }
 0x3a7   :  { %v12936_v31 = vpop.eup %12935 }
 0x3a8   :  { %v422_v32 = vsel %vm394_vm3, %v12936_v31, 0.0 }
 0x3a9   :  { %v12938_v33 = vpop.eup %12937  ;;  %423 = vadd.xlane.f32.xlu0 %v422_v32 }
 0x3aa   :  { %v419_v34 = vsel %vm394_vm3, %v12938_v33, 0.0 }
 0x3ab   :  { %420 = vadd.xlane.f32.xlu1 %v419_v34 }
 0x3ad   :  { %v12940_v41 = vpop.eup %12939 }
 0x3ae   :  { %v428_v44 = vsel %vm394_vm3, %v12940_v41, 0.0 }
 0x3b1   :  { %v12942_v42 = vpop.eup %12941 }
 0x3b2   :  { %v425_v45 = vsel %vm394_vm3, %v12942_v42, 0.0 }
 0x3bc   :  { %556 = vrot.lane.b32.xlu1 %v13541_v52, %s13338_s7 }
 0x3bf   :  { %558 = vrot.lane.b32.xlu0 %v13539_v50, %s13338_s7 }
 0x3de   :  { %429 = vadd.xlane.f32.xlu0 %v428_v44 }
 0x3e0   :  { %426 = vadd.xlane.f32.xlu1 %v425_v45 }
 0x3f1   :  { %550 = vrot.lane.b32.xlu1 %v13539_v50, %s13339_s8 }
 0x3f4   :  { %548 = vrot.lane.b32.xlu0 %v13541_v52, %s13339_s8 }
 0x3f5   :  { %554 = vrot.lane.b32.xlu1 %v13549_v54, %s13339_s8 }
 0x3f8   :  { %552 = vrot.lane.b32.xlu0 %v13555_v56, %s13339_s8 }
 0x432   :  { %v424_v48 = vpop.xlane.xlu0 %423 }
 0x433   :  { %12943 = vrcp.f32 %v424_v48 }
 0x434   :  { %v421_v49 = vpop.xlane.xlu1 %420 }
 0x435   :  { %12945 = vrcp.f32 %v421_v49 }
 0x436   :  { %v559_v58 = vpop.permute.xlu0 %558 }
 0x438   :  { %v557_v59 = vpop.permute.xlu1 %556 }
 0x440   :  { %v12944_v51 = vpop.eup %12943 }
 0x441   :  { %v434_v57 = vmul.f32 %v12944_v51, %v12936_v31 }
 0x442   :  { %v12946_v53 = vpop.eup %12945 }
 0x443   :  { %v432_v55 = vmul.f32 %v12946_v53, %v12938_v33 }
 0x445   :  { %12090 = vmatprep.mubr.msk.f32.mxu1 %vm394_vm3, %v432_v55 }
 0x446   :  { %12091 = vmatmul.mubr.msk.f32.vlgmr.msra.gmra.mxu1 %vm394_vm3, %v434_v57 }
 0x447   :  { %12097 = vmatpush3.xpose.msk.msra.mxu1 %vm284_vm2, %v563_v30 }
 0x448   :  { %12098 = vmatprep.subr.msk.mxu1 %vm284_vm2, %v561_v47 }
 0x44b   :  { %12099 = vmatpush3.xpose.msk.msra.mxu1 %vm284_vm2, %v561_v47 }
 0x44c   :  { %12100 = vmatprep.subr.msk.mxu1 %vm284_vm2, %v559_v58 }
 0x44f   :  { %12101 = vmatpush3.xpose.msk.msra.mxu1 %vm284_vm2, %v559_v58 }
 0x450   :  { %12102 = vmatprep.subr.msk.mxu1 %vm284_vm2, %v557_v59 }
 0x453   :  { %12103 = vmatpush3.xpose.msk.msra.mxu1 %vm284_vm2, %v557_v59 }
 0x467   :  { %v430_v60 = vpop.xlane.xlu0 %429 }
 0x468   :  { %12947 = vrcp.f32 %v430_v60 }
 0x469   :  { %v427_v61 = vpop.xlane.xlu1 %426 }
 0x46a   :  { %12949 = vrcp.f32 %v427_v61 }
 0x46b   :  { %v549_v2 = vpop.permute.xlu0 %548 }
 0x46d   :  { %v551_v5 = vpop.permute.xlu1 %550 }
 0x46f   :  { %v553_v7 = vpop.permute.xlu0 %552 }
 0x471   :  { %v555_v8 = vpop.permute.xlu1 %554 }
 0x475   :  { %v12948_v62 = vpop.eup %12947 }
 0x476   :  { %v438_v4 = vmul.f32 %v12948_v62, %v12940_v41 }
 0x477   :  { %v12950_v63 = vpop.eup %12949 }
 0x478   :  { %v436_v0 = vmul.f32 %v12950_v63, %v12942_v42 }
 0x47a   :  { %12093 = vmatprep.mubr.msk.f32.mxu1 %vm394_vm3, %v436_v0 }
 0x47b   :  { %12094 = vmatmul.mubr.msk.f32.gmra.mxu1 %vm394_vm3, %v438_v4 }
 0x47c   :  { %12104 = vmatprep.mubr.msk.f32.mxu1 %vm284_vm2, %v549_v2 }
 0x47f   :  { %12105 = vmatmul.mubr.msk.f32.vlgmr.msra.gmra.mxu1 %vm284_vm2, %v551_v5 }
 0x480   :  { %12107 = vmatprep.mubr.msk.f32.mxu1 %vm284_vm2, %v553_v7  ;;  %v271_v7 = vld [vmem:[%s15579_s4 + $0xe8] sm:$0xff] }
 0x483   :  { %12108 = vmatmul.mubr.msk.f32.gmra.mxu1 %vm284_vm2, %v555_v8 }
 0x506   :  { %v12092_v11 = vpop.f32.mrf.mxu1 }
 0x508   :  { %v529_v12 = vpop.f32.mrf.mxu1 }
 0x509   :  { %12134 = vmatprep.mubr.msk.f32.mxu0 %vm284_vm2, %v529_v12 }
 0x50a   :  { %12135 = vmatmul.mubr.msk.f32.vlgmr.msra.gmra.mxu0 %vm284_vm2, %v12092_v11 }
 0x53b   :  { %v12095_v13 = vpop.f32.mrf.mxu1 }
 0x53d   :  { %v539_v14 = vpop.f32.mrf.mxu1 }
 0x53e   :  { %12137 = vmatprep.mubr.msk.f32.mxu0 %vm284_vm2, %v539_v14 }
 0x53f   :  { %v12106_v15 = vpop.f32.mrf.mxu1  ;;  %12138 = vmatmul.mubr.msk.f32.gmra.mxu0 %vm284_vm2, %v12095_v13 }
 0x540   :  { %v666_v16 = vmul.f32 0.35355338, %v12106_v15  ;;  %v11240_v15 = vld [vmem:[%s15579_s4 + $0xf0] ss:$0 sm:$0xff] }
 0x541   :  { %v646_v17 = vpop.f32.mrf.mxu1 }
 0x542   :  { %v665_v19 = vmul.f32 0.35355338, %v646_v17  ;;  %v670_v20 = vadd.f32 %v666_v16, %v13582_v3 }
 0x543   :  { %v12109_v21 = vpop.f32.mrf.mxu1 }
 0x544   :  { %v676_v22 = vsel %vm394_vm3, %v670_v20, -inf  ;;  %v669_v23 = vadd.f32 %v665_v19, %v13587_v6  ;;  %v668_v25 = vmul.f32 0.35355338, %v12109_v21 }
 0x545   :  { %677 = vmax.xlane.f32.xlu1 %v676_v22  ;;  %v656_v24 = vpop.f32.mrf.mxu1 }
 0x546   :  { %v667_v26 = vmul.f32 0.35355338, %v656_v24  ;;  %v673_v27 = vsel %vm394_vm3, %v669_v23, -inf  ;;  %v672_v30 = vadd.f32 %v668_v25, %v13593_v10 }
 0x547   :  { %674 = vmax.xlane.f32.xlu0 %v673_v27 }
 0x548   :  { %v671_v28 = vadd.f32 %v667_v26, %v13602_v18  ;;  %v682_v3 = vsel %vm394_vm3, %v672_v30, -inf }
 0x54a   :  { %v679_v29 = vsel %vm394_vm3, %v671_v28, -inf }
 0x54b   :  { %680 = vmax.xlane.f32.xlu0 %v679_v29 }
 0x54f   :  { %683 = vmax.xlane.f32.xlu0 %v682_v3 }
 0x556   :  { %723 = vrot.lane.b32.xlu1 %v13549_v54, %s13340_s11 }
 0x5ca   :  { %v12136_v13 = vpop.f32.mrf.mxu0 }
 0x5cc   :  { %v1001_v17 = vpop.f32.mrf.mxu0 }
 0x5ce   :  { %v678_v6 = vpop.xlane.xlu1 %677 }
 0x5cf   :  { %v686_v31 = vsub.f32 %v670_v20, %v678_v6 }
 0x5d0   :  { %v675_v32 = vpop.xlane.xlu0 %674 }
 0x5d1   :  { %v691_v33 = vmul.f32 1.442695, %v686_v31  ;;  %v685_v34 = vsub.f32 %v669_v23, %v675_v32 }
 0x5d2   :  { %v724_v35 = vpop.permute.xlu1 %723 }
 0x5d3   :  { %12951 = vpow2.f32 %v691_v33  ;;  %v689_v18 = vmul.f32 1.442695, %v685_v34  ;;  %12110 = vmatprep.subr.mxu1 %v724_v35 }
 0x5d4   :  { %12111 = vmatpush3.msra.mxu1 %v724_v35  ;;  %v681_v36 = vpop.xlane.xlu0 %680 }
 0x5d5   :  { %12953 = vpow2.f32 %v689_v18  ;;  %v687_v48 = vsub.f32 %v671_v28, %v681_v36 }
 0x5d7   :  { %v693_v49 = vmul.f32 1.442695, %v687_v48 }
 0x5d8   :  { %v684_v10 = vpop.xlane.xlu0 %683 }
 0x5d9   :  { %v688_v38 = vsub.f32 %v672_v30, %v684_v10 }
 0x5db   :  { %v695_v39 = vmul.f32 1.442695, %v688_v38 }
 0x5dd   :  { %12955 = vpow2.f32 %v695_v39 }
 0x5de   :  { %12957 = vpow2.f32 %v693_v49 }
 0x5e0   :  { %v12952_v41 = vpop.eup %12951 }
 0x5e1   :  { %v700_v42 = vsel %vm394_vm3, %v12952_v41, 0.0 }
 0x5e2   :  { %v12954_v54 = vpop.eup %12953  ;;  %701 = vadd.xlane.f32.xlu0 %v700_v42 }
 0x5e3   :  { %v697_v44 = vsel %vm394_vm3, %v12954_v54, 0.0 }
 0x5e4   :  { %698 = vadd.xlane.f32.xlu1 %v697_v44 }
 0x5ea   :  { %v12956_v45 = vpop.eup %12955 }
 0x5eb   :  { %v706_v47 = vsel %vm394_vm3, %v12956_v45, 0.0  ;;  %v12958_v51 = vpop.eup %12957 }
 0x5ec   :  { %707 = vadd.xlane.f32.xlu0 %v706_v47  ;;  %v703_v53 = vsel %vm394_vm3, %v12958_v51, 0.0 }
 0x5f5   :  { %719 = vrot.lane.b32.xlu1 %v13539_v50, %s13340_s11 }
 0x5ff   :  { %v12139_v26 = vpop.f32.mrf.mxu0 }
 0x601   :  { %v1011_v30 = vpop.f32.mrf.mxu0 }
 0x602   :  { %721 = vrot.lane.b32.xlu0 %v13555_v56, %s13340_s11 }
 0x619   :  { %704 = vadd.xlane.f32.xlu1 %v703_v53 }
 0x62a   :  { %717 = vrot.lane.b32.xlu1 %v13541_v52, %s13340_s11 }
 0x66b   :  { %v702_v57 = vpop.xlane.xlu0 %701 }
 0x66d   :  { %v699_v55 = vpop.xlane.xlu1 %698 }
 0x66e   :  { %12959 = vrcp.f32 %v699_v55 }
 0x66f   :  { %12961 = vrcp.f32 %v702_v57 }
 0x671   :  { %v720_v60 = vpop.permute.xlu1 %719 }
 0x675   :  { %v708_v58 = vpop.xlane.xlu0 %707 }
 0x676   :  { %12963 = vrcp.f32 %v708_v58  ;;  %v1105_v58 = vld [vmem:[%s15579_s4 + $0x110] sm:$0xff] }
 0x679   :  { %v722_v59 = vpop.permute.xlu0 %721 }
 0x67a   :  { %12112 = vmatprep.subr.mxu1 %v722_v59 }
 0x67b   :  { %v12960_v50 = vpop.eup %12959  ;;  %12113 = vmatpush3.msra.mxu1 %v722_v59  ;;  %v1104_v59 = vld [vmem:[%s15579_s4 + $0x108] sm:$0xff] }
 0x67c   :  { %12114 = vmatprep.subr.mxu1 %v720_v60  ;;  %v710_v56 = vmul.f32 %v12960_v50, %v12954_v54  ;;  %v12962_v62 = vpop.eup %12961 }
 0x67d   :  { %12115 = vmatpush3.msra.mxu1 %v720_v60  ;;  %v712_v63 = vmul.f32 %v12962_v62, %v12952_v41 }
 0x67e   :  { %12118 = vmatprep.mubr.msk.f32.mxu1 %vm394_vm3, %v710_v56 }
 0x683   :  { %v12964_v0 = vpop.eup %12963 }
 0x684   :  { %v716_v5 = vmul.f32 %v12964_v0, %v12956_v45 }
 0x6a2   :  { %v705_v61 = vpop.xlane.xlu1 %704 }
 0x6a3   :  { %12965 = vrcp.f32 %v705_v61 }
 0x6a6   :  { %v718_v52 = vpop.permute.xlu1 %717 }
 0x6a7   :  { %12116 = vmatprep.subr.mxu1 %v718_v52 }
 0x6a8   :  { %12117 = vmatpush3.msra.mxu1 %v718_v52 }
 0x6a9   :  { %12119 = vmatmul.mubr.msk.f32.vlgmr.msra.gmra.mxu1 %vm394_vm3, %v712_v63  ;;  %12124 = vmatprep.subr.mxu1 %v271_v7 }
 0x6aa   :  { %12125 = vmatpush3.msra.mxu1 %v271_v7 }
 0x6ab   :  { %12140 = vmatprep.subr.mxu1 %v1105_v58 }
 0x6b0   :  { %v12966_v2 = vpop.eup %12965 }
 0x6b1   :  { %v714_v4 = vmul.f32 %v12966_v2, %v12958_v51 }
 0x6b3   :  { %12121 = vmatprep.mubr.msk.f32.mxu1 %vm394_vm3, %v714_v4 }
 0x6b4   :  { %12122 = vmatmul.mubr.msk.f32.gmra.mxu1 %vm394_vm3, %v716_v5 }
 0x769   :  { %v12120_v8 = vpop.f32.mrf.mxu1 }
 0x76b   :  { %v807_v9 = vpop.f32.mrf.mxu1 }
 0x76c   :  { %12126 = vmatprep.mubr.msk.f32.mxu1 %vm284_vm2, %v807_v9  ;;  %v11241_v9 = vld [vmem:[%s15579_s4 + $0xf8] ss:$0 sm:$0xff] }
 0x76d   :  { %12127 = vmatmul.mubr.msk.f32.vlgmr.msra.gmra.mxu1 %vm284_vm2, %v12120_v8 }
 0x76e   :  { %12141 = vmatpush3.msra.mxu1 %v1105_v58  ;;  %v1488_v58 = vld [vmem:[%s15579_s4 + $0x148] sm:$0xf] }
 0x76f   :  { %12142 = vmatprep.subr.mxu1 %v1104_v59 }
 0x770   :  { %12143 = vmatpush3.msra.mxu1 %v1104_v59  ;;  %v31_v59 = vld [vmem:[%s15576_s1] sm:$0xff] }
 0x771   :  { %12160 = vmatprep.subr.mxu1 %v13335_v1 }
 0x774   :  { %v12123_v11 = vpop.f32.mrf.mxu1 }
 0x776   :  { %v817_v12 = vpop.f32.mrf.mxu1 }
 0x777   :  { %12129 = vmatprep.mubr.msk.f32.mxu1 %vm284_vm2, %v817_v12 }
 0x778   :  { %12130 = vmatmul.mubr.msk.f32.gmra.mxu1 %vm284_vm2, %v12123_v11 }
 0x82d   :  { %v12128_v14 = vpop.f32.mrf.mxu1 }
 0x82e   :  { %v1007_v16 = vadd.f32 %v12136_v13, %v12128_v14 }
 0x82f   :  { %v904_v19 = vpop.f32.mrf.mxu1 }
 0x830   :  { %v1026_v20 = vadd.f32 %v11240_v15, %v1007_v16  ;;  %v1002_v21 = vadd.f32 %v1001_v17, %v904_v19 }
 0x832   :  { %v1025_v22 = vadd.f32 %v11240_v15, %v1002_v21  ;;  %v1030_v23 = vadd.f32 %v1026_v20, %v13524_v40 }
 0x834   :  { %v1038_v24 = vsel %vm172_vm1, %v1030_v23, 0.0  ;;  %v1029_v25 = vadd.f32 %v1025_v22, %v13520_v37 }
 0x835   :  { %1039 = vadd.xlane.f32.xlu1 %v1038_v24 }
 0x836   :  { %v1035_v27 = vsel %vm172_vm1, %v1029_v25, 0.0 }
 0x837   :  { %1036 = vadd.xlane.f32.xlu0 %v1035_v27 }
 0x838   :  { %v12131_v28 = vpop.f32.mrf.mxu1 }
 0x839   :  { %v1017_v29 = vadd.f32 %v12139_v26, %v12131_v28  ;;  %v1237_v28 = vld [vmem:[%s15579_s4 + $0x128] sm:$0xff] }
 0x83a   :  { %v914_v3 = vpop.f32.mrf.mxu1  ;;  %12150 = vmatprep.subr.mxu0 %v1237_v28 }
 0x83b   :  { %v1012_v6 = vadd.f32 %v1011_v30, %v914_v3  ;;  %v1028_v31 = vadd.f32 %v11240_v15, %v1017_v29  ;;  %12151 = vmatpush3.msra.mxu0 %v1237_v28  ;;  %v1236_v29 = vld [vmem:[%s15579_s4 + $0x120] sm:$0xff]  ;;  %v11243_v30 = vld [vmem:[%s15579_s4 + $0x118] ss:$0 sm:$0xff] }
 0x83c   :  { %12152 = vmatprep.subr.mxu0 %v1236_v29 }
 0x83d   :  { %v1027_v32 = vadd.f32 %v11240_v15, %v1012_v6  ;;  %v1032_v34 = vadd.f32 %v1028_v31, %v13532_v46  ;;  %v11242_v15 = vld [vmem:[%s15579_s4 + $0x100] ss:$0 sm:$0xff]  ;;  %12153 = vmatpush3.msra.mxu0 %v1236_v29 }
 0x83e   :  { %12171 = vmatprep.subr.mxu0 %v13335_v1 }
 0x83f   :  { %v1031_v33 = vadd.f32 %v1027_v32, %v13528_v43  ;;  %v1044_v37 = vsel %vm172_vm1, %v1032_v34, 0.0 }
 0x841   :  { %v1041_v40 = vsel %vm172_vm1, %v1031_v33, 0.0 }
 0x842   :  { %1042 = vadd.xlane.f32.xlu0 %v1041_v40 }
 0x846   :  { %1045 = vadd.xlane.f32.xlu0 %v1044_v37 }
 0x8be   :  { %v1040_v35 = vpop.xlane.xlu1 %1039 }
 0x8bf   :  { %v1049_v18 = vmul.f32 0.0625, %v1040_v35 }
 0x8c0   :  { %v1037_v36 = vpop.xlane.xlu0 %1036 }
 0x8c1   :  { %v1053_v10 = vsub.f32 %v1030_v23, %v1049_v18  ;;  %v1048_v38 = vmul.f32 0.0625, %v1037_v36 }
 0x8c3   :  { %v1052_v39 = vsub.f32 %v1029_v25, %v1048_v38  ;;  %v1057_v41 = vmul.f32 %v1053_v10, %v1053_v10 }
 0x8c5   :  { %v1063_v42 = vsel %vm172_vm1, %v1057_v41, 0.0  ;;  %v1056_v54 = vmul.f32 %v1052_v39, %v1052_v39 }
 0x8c6   :  { %1064 = vadd.xlane.f32.xlu0 %v1063_v42 }
 0x8c7   :  { %v1060_v43 = vsel %vm172_vm1, %v1056_v54, 0.0 }
 0x8c8   :  { %1061 = vadd.xlane.f32.xlu1 %v1060_v43 }
 0x8cb   :  { %v1043_v44 = vpop.xlane.xlu0 %1042 }
 0x8cc   :  { %v1050_v46 = vmul.f32 0.0625, %v1043_v44 }
 0x8ce   :  { %v1054_v45 = vsub.f32 %v1031_v33, %v1050_v46 }
 0x8cf   :  { %v1046_v47 = vpop.xlane.xlu0 %1045 }
 0x8d0   :  { %v1051_v48 = vmul.f32 0.0625, %v1046_v47  ;;  %v1058_v49 = vmul.f32 %v1054_v45, %v1054_v45 }
 0x8d2   :  { %v1055_v51 = vsub.f32 %v1032_v34, %v1051_v48  ;;  %v1066_v53 = vsel %vm172_vm1, %v1058_v49, 0.0 }
 0x8d3   :  { %1067 = vadd.xlane.f32.xlu1 %v1066_v53 }
 0x8d4   :  { %v1059_v55 = vmul.f32 %v1055_v51, %v1055_v51 }
 0x8d6   :  { %v1069_v57 = vsel %vm172_vm1, %v1059_v55, 0.0 }
 0x8d7   :  { %1070 = vadd.xlane.f32.xlu0 %v1069_v57 }
 0x94f   :  { %v1065_v50 = vpop.xlane.xlu0 %1064 }
 0x950   :  { %v1073_v60 = vmul.f32 0.0625, %v1065_v50 }
 0x951   :  { %v1062_v56 = vpop.xlane.xlu1 %1061 }
 0x952   :  { %v1077_v61 = vadd.f32 1e-05, %v1073_v60  ;;  %v1072_v62 = vmul.f32 0.0625, %v1062_v56  ;;  %v11252_v60 = vld [vmem:[%s15579_s4 + $0x130] ss:$0 sm:$0xff] }
 0x954   :  { %12967 = vrsqrt.f32 %v1077_v61  ;;  %v1076_v52 = vadd.f32 1e-05, %v1072_v62 }
 0x956   :  { %12969 = vrsqrt.f32 %v1076_v52 }
 0x95c   :  { %v1068_v63 = vpop.xlane.xlu1 %1067 }
 0x95d   :  { %v1074_v0 = vmul.f32 0.0625, %v1068_v63 }
 0x95f   :  { %v1078_v2 = vadd.f32 1e-05, %v1074_v0 }
 0x960   :  { %v1071_v4 = vpop.xlane.xlu0 %1070 }
 0x961   :  { %v12968_v5 = vpop.eup %12967  ;;  %12971 = vrsqrt.f32 %v1078_v2  ;;  %v1075_v7 = vmul.f32 0.0625, %v1071_v4 }
 0x962   :  { %v1085_v8 = vmul.f32 %v12968_v5, %v1053_v10 }
 0x963   :  { %v12970_v11 = vpop.eup %12969  ;;  %v1079_v12 = vadd.f32 1e-05, %v1075_v7 }
 0x964   :  { %v1084_v13 = vmul.f32 %v12970_v11, %v1052_v39  ;;  %v1093_v14 = vmul.f32 %v11241_v9, %v1085_v8 }
 0x965   :  { %12973 = vrsqrt.f32 %v1079_v12 }
 0x966   :  { %v1092_v16 = vmul.f32 %v11241_v9, %v1084_v13  ;;  %v13711_v19 = vadd.f32 %v11242_v15, %v1093_v14 }
 0x968   :  { %v13709_v17 = vadd.f32 %v11242_v15, %v1092_v16 }
 0x96a   :  { %12144 = vmatprep.mubr.msk.f32.mxu1 %vm172_vm1, %v13709_v17 }
 0x96b   :  { %12145 = vmatmul.mubr.msk.f32.vlgmr.msra.gmra.mxu1 %vm172_vm1, %v13711_v19 }
 0x96e   :  { %v12972_v20 = vpop.eup %12971 }
 0x96f   :  { %v1086_v21 = vmul.f32 %v12972_v20, %v1054_v45 }
 0x971   :  { %v1094_v22 = vmul.f32 %v11241_v9, %v1086_v21 }
 0x972   :  { %v12974_v23 = vpop.eup %12973 }
 0x973   :  { %v13717_v24 = vadd.f32 %v11242_v15, %v1094_v22  ;;  %v1087_v25 = vmul.f32 %v12974_v23, %v1055_v51 }
 0x975   :  { %12147 = vmatprep.mubr.msk.f32.mxu1 %vm172_vm1, %v13717_v24  ;;  %v1095_v26 = vmul.f32 %v11241_v9, %v1087_v25 }
 0x977   :  { %v13721_v27 = vadd.f32 %v11242_v15, %v1095_v26 }
 0x979   :  { %12148 = vmatmul.mubr.msk.f32.gmra.mxu1 %vm172_vm1, %v13721_v27 }
 0x97a   :  { %12168 = vmatprep.mubr.msk.f32.mxu1 %vm13341_vm6, %v13335_v1 }
 0xa2b   :  { %v12146_v3 = vpop.f32.mrf.mxu1 }
 0xa2c   :  { %v1195_v6 = vadd.f32 %v12146_v3, %v11243_v30 }
 0xa2d   :  { %v1189_v31 = vpop.f32.mrf.mxu1 }
 0xa2e   :  { %v11249_v32 = vmul.f32 -1.442695, %v1195_v6  ;;  %v1190_v33 = vadd.f32 %v11243_v30, %v1189_v31 }
 0xa30   :  { %12975 = vpow2.f32 %v11249_v32  ;;  %v11248_v40 = vmul.f32 -1.442695, %v1190_v33 }
 0xa32   :  { %12977 = vpow2.f32 %v11248_v40 }
 0xa39   :  { %v12149_v34 = vpop.f32.mrf.mxu1 }
 0xa3a   :  { %v1205_v37 = vadd.f32 %v12149_v34, %v11243_v30  ;;  %v11260_v34 = vld [vmem:[%s15579_s4 + $0x150] ss:$0 sm:$0xff] }
 0xa3b   :  { %v1199_v35 = vpop.f32.mrf.mxu1 }
 0xa3c   :  { %v11251_v18 = vmul.f32 -1.442695, %v1205_v37  ;;  %v1200_v36 = vadd.f32 %v11243_v30, %v1199_v35 }
 0xa3d   :  { %v12976_v10 = vpop.eup %12975 }
 0xa3e   :  { %v1221_v38 = vadd.f32 1.0, %v12976_v10  ;;  %12979 = vpow2.f32 %v11251_v18  ;;  %v11250_v39 = vmul.f32 -1.442695, %v1200_v36 }
 0xa3f   :  { %v12978_v41 = vpop.eup %12977 }
 0xa40   :  { %12981 = vrcp.f32 %v1221_v38  ;;  %v1220_v42 = vadd.f32 1.0, %v12978_v41 }
 0xa41   :  { %12983 = vpow2.f32 %v11250_v39 }
 0xa42   :  { %12985 = vrcp.f32 %v1220_v42 }
 0xa4b   :  { %v12980_v54 = vpop.eup %12979 }
 0xa4c   :  { %v1223_v43 = vadd.f32 1.0, %v12980_v54 }
 0xa4d   :  { %v12982_v44 = vpop.eup %12981 }
 0xa4e   :  { %v12984_v46 = vpop.eup %12983  ;;  %12987 = vrcp.f32 %v1223_v43  ;;  %v1233_v49 = vmul.f32 %v12982_v44, %v1195_v6 }
 0xa4f   :  { %v12986_v45 = vpop.eup %12985  ;;  %v1222_v47 = vadd.f32 1.0, %v12984_v46 }
 0xa50   :  { %v1232_v48 = vmul.f32 %v12986_v45, %v1190_v33 }
 0xa51   :  { %12989 = vrcp.f32 %v1222_v47 }
 0xa52   :  { %12154 = vmatprep.mubr.msk.f32.mxu0 %vm172_vm1, %v1232_v48 }
 0xa53   :  { %12155 = vmatmul.mubr.msk.f32.vlgmr.msra.gmra.mxu0 %vm172_vm1, %v1233_v49 }
 0xa54   :  { %12172 = vmatpush3.msk.msra.mxu0 %vm1498_vm4, %v1488_v58 }
 0xa55   :  { %12183 = vmatprep.subr.mxu0 %v13335_v1 }
 0xa5b   :  { %v12988_v51 = vpop.eup %12987 }
 0xa5c   :  { %v1235_v57 = vmul.f32 %v12988_v51, %v1205_v37  ;;  %v11257_v51 = vld [vmem:[%s15579_s4 + $0x138] ss:$0 sm:$0xff] }
 0xa5e   :  { %v12990_v53 = vpop.eup %12989 }
 0xa5f   :  { %v1234_v55 = vmul.f32 %v12990_v53, %v1200_v36 }
 0xa61   :  { %12157 = vmatprep.mubr.msk.f32.mxu0 %vm172_vm1, %v1234_v55 }
 0xa62   :  { %12158 = vmatmul.mubr.msk.f32.gmra.mxu0 %vm172_vm1, %v1235_v57  ;;  %v11258_v57 = vld [vmem:[%s15579_s4 + $0x140] ss:$0 sm:$0xff] }
 0xa63   :  { %12173 = vmatprep.mubr.msk.f32.mxu0 %vm13341_vm6, %v13335_v1 }
 0xa66   :  { %12174 = vmatmul.mubr.msk.f32.vlgmr.msra.gmra.mxu0 %vm1494_vm5, %v31_v59 }
 0xa67   :  { %12187 = vmatprep.mubr.msk.f32.mxu0 %vm13341_vm6, %v13335_v1 }
 0xb13   :  { %v12156_v50 = vpop.f32.mrf.mxu0 }
 0xb14   :  { %v1327_v62 = vadd.f32 %v12156_v50, %v11252_v60 }
 0xb15   :  { %v1321_v56 = vpop.f32.mrf.mxu0 }
 0xb16   :  { %v1322_v0 = vadd.f32 %v11252_v60, %v1321_v56  ;;  %v1341_v8 = vadd.f32 %v1327_v62, %v13711_v19 }
 0xb18   :  { %v1340_v11 = vadd.f32 %v1322_v0, %v13709_v17  ;;  %v1349_v12 = vsel %vm172_vm1, %v1341_v8, 0.0 }
 0xb1a   :  { %v1346_v13 = vsel %vm172_vm1, %v1340_v11, 0.0 }
 0xb22   :  { %v12159_v61 = vpop.f32.mrf.mxu0 }
 0xb23   :  { %v1337_v52 = vadd.f32 %v12159_v61, %v11252_v60 }
 0xb24   :  { %v1331_v63 = vpop.f32.mrf.mxu0 }
 0xb25   :  { %v1332_v2 = vadd.f32 %v11252_v60, %v1331_v63  ;;  %v1343_v4 = vadd.f32 %v1337_v52, %v13721_v27 }
 0xb26   :  { %v1568_v14 = vpop.f32.mrf.mxu0 }
 0xb27   :  { %v1355_v5 = vsel %vm172_vm1, %v1343_v4, 0.0  ;;  %v1342_v7 = vadd.f32 %v1332_v2, %v13717_v24  ;;  %v1569_v37 = vadd.f32 %v11260_v34, %v1568_v14  ;;  %v1659_v14 = vld [vmem:[%s15579_s4 + $0x170] sm:$0xff] }
 0xb28   :  { %1356 = vadd.xlane.f32.xlu1 %v1355_v5  ;;  %v12175_v15 = vpop.f32.mrf.mxu0 }
 0xb29   :  { %v1352_v9 = vsel %vm172_vm1, %v1342_v7, 0.0  ;;  %v11263_v35 = vmul.f32 -1.442695, %v1569_v37  ;;  %v1662_v15 = vld [vmem:[%s15579_s4 + $0x188] sm:$0xff] }
 0xb2a   :  { %1353 = vadd.xlane.f32.xlu0 %v1352_v9  ;;  %12184 = vmatpush3.msra.mxu0 %v1662_v15 }
 0xb2b   :  { %12991 = vpow2.f32 %v11263_v35  ;;  %12185 = vmatprep.subr.mxu0 %v13335_v1 }
 0xb2c   :  { %1350 = vadd.xlane.f32.xlu1 %v1349_v12 }
 0xb2e   :  { %1347 = vadd.xlane.f32.xlu0 %v1346_v13  ;;  %v1660_v13 = vld [vmem:[%s15579_s4 + $0x178] sm:$0xff] }
 0xb38   :  { %v12992_v47 = vpop.eup %12991 }
 0xb39   :  { %v1575_v48 = vadd.f32 1.0, %v12992_v47  ;;  %v2006_v47 = vld [vmem:[%s15579_s4 + $0x1c0] sm:$0xff] }
 0xbb1   :  { %v1357_v16 = vpop.xlane.xlu1 %1356 }
 0xbb2   :  { %v1361_v20 = vmul.f32 0.0625, %v1357_v16  ;;  %v1661_v16 = vld [vmem:[%s15579_s4 + $0x180] sm:$0xff] }
 0xbb3   :  { %v1354_v21 = vpop.xlane.xlu0 %1353  ;;  %12186 = vmatpush3.msra.mxu0 %v1661_v16 }
 0xbb4   :  { %v1365_v22 = vsub.f32 %v1343_v4, %v1361_v20  ;;  %v1360_v23 = vmul.f32 0.0625, %v1354_v21  ;;  %12197 = vmatprep.subr.mxu0 %v13335_v1 }
 0xbb5   :  { %v1351_v19 = vpop.xlane.xlu1 %1350 }
 0xbb6   :  { %v1364_v24 = vsub.f32 %v1342_v7, %v1360_v23  ;;  %v1359_v25 = vmul.f32 0.0625, %v1351_v19  ;;  %v1369_v26 = vmul.f32 %v1365_v22, %v1365_v22  ;;  %v1414_v7 = vld [vmem:[%s15579_s4 + $0x450] sm:$0xff] }
 0xbb7   :  { %v1348_v27 = vpop.xlane.xlu0 %1347 }
 0xbb8   :  { %v1363_v17 = vsub.f32 %v1341_v8, %v1359_v25  ;;  %v1358_v28 = vmul.f32 0.0625, %v1348_v27  ;;  %v1379_v29 = vsel %vm172_vm1, %v1369_v26, 0.0  ;;  %v1368_v30 = vmul.f32 %v1364_v24, %v1364_v24  ;;  %v1580_v8 = vld [vmem:[%s15579_s4 + $0x160] sm:$0xff]  ;;  %v1825_v25 = vld [vmem:[%s15579_s4 + $0x1b0] sm:$0xff]  ;;  %v1824_v26 = vld [vmem:[%s15579_s4 + $0x1a8] sm:$0xff] }
 0xbb9   :  { %1380 = vadd.xlane.f32.xlu1 %v1379_v29  ;;  %v1823_v27 = vld [vmem:[%s15579_s4 + $0x1a0] sm:$0xff]  ;;  %v1911_v29 = vld [vmem:[%s15579_s4 + $0x488] sm:$0xff] }
 0xbba   :  { %v1362_v3 = vsub.f32 %v1340_v11, %v1358_v28  ;;  %v1376_v6 = vsel %vm172_vm1, %v1368_v30, 0.0  ;;  %v1367_v31 = vmul.f32 %v1363_v17, %v1363_v17  ;;  %v1579_v11 = vld [vmem:[%s15579_s4 + $0x158] sm:$0xff]  ;;  %v1912_v28 = vld [vmem:[%s15579_s4 + $0x490] sm:$0xff] }
 0xbbb   :  { %1377 = vadd.xlane.f32.xlu0 %v1376_v6 }
 0xbbc   :  { %v1373_v32 = vsel %vm172_vm1, %v1367_v31, 0.0  ;;  %v1366_v33 = vmul.f32 %v1362_v3, %v1362_v3  ;;  %v11268_v31 = vld [vmem:[%s15579_s4 + $0x190] ss:$0 sm:$0xff] }
 0xbbd   :  { %1374 = vadd.xlane.f32.xlu1 %v1373_v32 }
 0xbbe   :  { %v1370_v40 = vsel %vm172_vm1, %v1366_v33, 0.0 }
 0xbbf   :  { %1371 = vadd.xlane.f32.xlu0 %v1370_v40 }
 0xc42   :  { %v1381_v18 = vpop.xlane.xlu1 %1380 }
 0xc43   :  { %v1385_v36 = vmul.f32 0.0625, %v1381_v18 }
 0xc44   :  { %v1378_v10 = vpop.xlane.xlu0 %1377 }
 0xc45   :  { %v1389_v38 = vadd.f32 1e-05, %v1385_v36  ;;  %v1384_v39 = vmul.f32 0.0625, %v1378_v10  ;;  %v1910_v10 = vld [vmem:[%s15579_s4 + $0x480] sm:$0xff] }
 0xc46   :  { %v1375_v41 = vpop.xlane.xlu1 %1374 }
 0xc47   :  { %12993 = vrsqrt.f32 %v1389_v38  ;;  %v1388_v42 = vadd.f32 1e-05, %v1384_v39  ;;  %v1383_v54 = vmul.f32 0.0625, %v1375_v41  ;;  %v1909_v38 = vld [vmem:[%s15579_s4 + $0x478] sm:$0xff] }
 0xc48   :  { %v1372_v43 = vpop.xlane.xlu0 %1371  ;;  %v11270_v39 = vld [vmem:[%s15579_s4 + $0x1b8] ss:$0 sm:$0xff] }
 0xc49   :  { %12995 = vrsqrt.f32 %v1388_v42  ;;  %v1387_v44 = vadd.f32 1e-05, %v1383_v54  ;;  %v1382_v46 = vmul.f32 0.0625, %v1372_v43  ;;  %v1904_v54 = vld [vmem:[%s15579_s4 + $0x428] sm:$0x1] }
 0xc4b   :  { %12997 = vrsqrt.f32 %v1387_v44  ;;  %v1386_v45 = vadd.f32 1e-05, %v1382_v46  ;;  %v2009_v44 = vld [vmem:[%s15579_s4 + $0x1d8] sm:$0xff]  ;;  %v2008_v46 = vld [vmem:[%s15579_s4 + $0x1d0] sm:$0xff] }
 0xc4d   :  { %12999 = vrsqrt.f32 %v1386_v45  ;;  %v2007_v45 = vld [vmem:[%s15579_s4 + $0x1c8] sm:$0xff] }
 0xc4e   :  { %13001 = vrcp.f32 %v1575_v48  ;;  %v1906_v48 = vld [vmem:[%s15579_s4 + $0x460] sm:$0x1] }
 0xc54   :  { %v12994_v49 = vpop.eup %12993 }
 0xc55   :  { %v1397_v53 = vmul.f32 %v12994_v49, %v1365_v22  ;;  %v11264_v22 = vld [vmem:[%s15579_s4 + $0x168] ss:$0 sm:$0xff]  ;;  %v1995_v49 = vld [vmem:[%s15579_s4 + $0x470] sm:$0x1] }
 0xc56   :  { %v12996_v55 = vpop.eup %12995 }
 0xc57   :  { %v1405_v58 = vmul.f32 %v11257_v51, %v1397_v53  ;;  %v1396_v59 = vmul.f32 %v12996_v55, %v1364_v24  ;;  %v1994_v55 = vld [vmem:[%s15579_s4 + $0x468] sm:$0xff] }
 0xc58   :  { %v12998_v50 = vpop.eup %12997 }
 0xc59   :  { %v1413_v60 = vadd.f32 %v11258_v57, %v1405_v58  ;;  %v1404_v56 = vmul.f32 %v11257_v51, %v1396_v59  ;;  %v1395_v61 = vmul.f32 %v12998_v50, %v1363_v17  ;;  %v1822_v17 = vld [vmem:[%s15579_s4 + $0x198] sm:$0xff] }
 0xc5a   :  { %v13000_v62 = vpop.eup %12999 }
 0xc5b   :  { %12161 = vmatpush3.msra.mxu1 %v1413_v60  ;;  %v1412_v52 = vadd.f32 %v11258_v57, %v1404_v56  ;;  %v1403_v63 = vmul.f32 %v11257_v51, %v1395_v61  ;;  %v1394_v0 = vmul.f32 %v13000_v62, %v1362_v3  ;;  %v13002_v9 = vpop.eup %13001  ;;  %v11275_v62 = vld [vmem:[%s15579_s4 + $0x1e0] ss:$0 sm:$0xff] }
 0xc5c   :  { %12162 = vmatprep.subr.mxu1 %v13335_v1  ;;  %v1578_v12 = vmul.f32 %v13002_v9, %v1569_v37 }
 0xc5d   :  { %12163 = vmatpush3.msra.mxu1 %v1412_v52  ;;  %v1411_v2 = vadd.f32 %v11258_v57, %v1403_v63  ;;  %v1402_v4 = vmul.f32 %v11257_v51, %v1394_v0  ;;  %v1905_v51 = vld [vmem:[%s15579_s4 + $0x458] sm:$0xff] }
 0xc5e   :  { %12164 = vmatprep.subr.mxu1 %v13335_v1 }
 0xc5f   :  { %12165 = vmatpush3.msra.mxu1 %v1411_v2  ;;  %v1410_v5 = vadd.f32 %v11258_v57, %v1402_v4  ;;  %v1908_v57 = vmul.f32 %v1906_v48, %v1904_v54 }
 0xc60   :  { %12166 = vmatprep.subr.mxu1 %v13335_v1 }
 0xc61   :  { %12167 = vmatpush3.msra.mxu1 %v1410_v5 }
 0xc62   :  { %12169 = vmatmul.mubr.msk.f32.vlgmr.msra.gmra.mxu1 %vm394_vm3, %v1414_v7  ;;  %12176 = vmatprep.subr.mxu1 %v13335_v1 }
 0xc63   :  { %12177 = vmatpush3.msra.mxu1 %v1580_v8  ;;  %12180 = vmatprep.mubr.msk.f32.mxu1 %vm13341_vm6, %v13335_v1 }
 0xc64   :  { %12178 = vmatprep.subr.mxu1 %v13335_v1 }
 0xc65   :  { %12179 = vmatpush3.msra.mxu1 %v1579_v11 }
 0xc66   :  { %12181 = vmatmul.mubr.msk.f32.vlgmr.msra.gmra.mxu1 %vm172_vm1, %v1578_v12  ;;  %12190 = vmatprep.subr.mxu1 %v13335_v1 }
 0xc67   :  { %12191 = vmatpush3.msra.mxu1 %v1660_v13  ;;  %12194 = vmatprep.mubr.msk.f32.mxu1 %vm13341_vm6, %v13335_v1  ;;  %v13928_v13 = vld [vmem:[%s15577_s2] ss:$0 sm:$0xff] }
 0xc68   :  { %12192 = vmatprep.subr.mxu1 %v13335_v1 }
 0xc69   :  { %12193 = vmatpush3.msra.mxu1 %v1659_v14 }
 0xc6a   :  { %12208 = vmatprep.subr.mxu1 %v1912_v28 }
 0xd22   :  { %v1484_v20 = vpop.f32.mrf.mxu1 }
 0xd23   :  { %12195 = vmatmul.mubr.msk.f32.vlgmr.msra.gmra.mxu1 %vm172_vm1, %v1484_v20 }
 0xd24   :  { %v12170_v21 = vpop.f32.mrf.mxu1  ;;  %12209 = vmatpush3.msra.mxu1 %v1912_v28 }
 0xd25   :  { %12210 = vmatprep.subr.mxu1 %v1911_v29 }
 0xd26   :  { %v1655_v23 = vpop.f32.mrf.mxu1  ;;  %12211 = vmatpush3.msra.mxu1 %v1911_v29 }
 0xd27   :  { %v1656_v19 = vadd.f32 %v11264_v22, %v1655_v23  ;;  %12212 = vmatprep.subr.mxu1 %v1910_v10 }
 0xd28   :  { %v12182_v24 = vpop.f32.mrf.mxu1  ;;  %12213 = vmatpush3.msra.mxu1 %v1910_v10 }
 0xd29   :  { %12188 = vmatmul.mubr.msk.f32.vlgmr.msra.gmra.mxu0 %vm172_vm1, %v1656_v19  ;;  %12214 = vmatprep.subr.mxu1 %v1909_v38 }
 0xd2a   :  { %12205 = vmatprep.mubr.msk.f32.mxu0 %vm13341_vm6, %v13335_v1  ;;  %12198 = vmatpush3.msra.mxu0 %v1825_v25 }
 0xd2b   :  { %12199 = vmatprep.subr.mxu0 %v13335_v1  ;;  %12215 = vmatpush3.msra.mxu1 %v1909_v38 }
 0xd2c   :  { %12200 = vmatpush3.msra.mxu0 %v1824_v26 }
 0xd2d   :  { %12201 = vmatprep.subr.mxu0 %v13335_v1 }
 0xd2e   :  { %12202 = vmatpush3.msra.mxu0 %v1823_v27 }
 0xd2f   :  { %12203 = vmatprep.subr.mxu0 %v13335_v1 }
 0xd30   :  { %12204 = vmatpush3.msra.mxu0 %v1822_v17 }
 0xd31   :  { %12219 = vmatprep.subr.mxu0 %v2009_v44 }
 0xde3   :  { %v1805_v30 = vpop.f32.mrf.mxu1 }
 0xde5   :  { %v12196_v3 = vpop.f32.mrf.mxu1 }
 0xde9   :  { %v1732_v6 = vpop.f32.mrf.mxu0 }
 0xdea   :  { %v1806_v32 = vadd.f32 %v1805_v30, %v1732_v6 }
 0xdeb   :  { %v12189_v33 = vpop.f32.mrf.mxu0 }
 0xdec   :  { %v1814_v40 = vadd.f32 %v11268_v31, %v1806_v32 }
 0xdee   :  { %v11269_v34 = vmul.f32 -1.442695, %v1814_v40 }
 0xdf0   :  { %13003 = vpow2.f32 %v11269_v34 }
 0xdfd   :  { %v13004_v37 = vpop.eup %13003 }
 0xdfe   :  { %v1818_v35 = vadd.f32 1.0, %v13004_v37 }
 0xe00   :  { %13005 = vrcp.f32 %v1818_v35 }
 0xe0d   :  { %v13006_v18 = vpop.eup %13005 }
 0xe0e   :  { %v1821_v36 = vmul.f32 %v13006_v18, %v1814_v40 }
 0xe10   :  { %12206 = vmatmul.mubr.msk.f32.vlgmr.msra.gmra.mxu0 %vm394_vm3, %v1821_v36 }
 0xe11   :  { %12220 = vmatpush3.msra.mxu0 %v2009_v44 }
 0xe12   :  { %12221 = vmatprep.subr.mxu0 %v2008_v46 }
 0xe13   :  { %12222 = vmatpush3.msra.mxu0 %v2008_v46 }
 0xe14   :  { %12223 = vmatprep.subr.mxu0 %v2007_v45 }
 0xe15   :  { %12224 = vmatpush3.msra.mxu0 %v2007_v45 }
 0xe16   :  { %12225 = vmatprep.subr.mxu0 %v2006_v47 }
 0xe17   :  { %12226 = vmatpush3.msra.mxu0 %v2006_v47 }
 0xed0   :  { %v1900_v41 = vpop.f32.mrf.mxu0 }
 0xed1   :  { %v1901_v42 = vadd.f32 %v11270_v39, %v1900_v41 }
 0xed2   :  { %v12207_v43 = vpop.f32.mrf.mxu0 }
 0xed3   :  { %12216 = vmatprep.mubr.msk.f32.mxu1 %vm394_vm3, %v1901_v42  ;;  %v1907_v50 = vmul.f32 %v1905_v51, %v1901_v42 }
 0xed4   :  { %12217 = vmatmul.mubr.msk.f32.vlgmr.msra.gmra.mxu1 %vm394_vm3, %v1904_v54 }
 0xf94   :  { %v12218_v53 = vpop.f32.mrf.mxu1 }
 0xf95   :  { %v1997_v58 = vmul.f32 %v12218_v53, %v1995_v49 }
 0xf96   :  { %v1985_v59 = vpop.f32.mrf.mxu1 }
 0xf97   :  { %v1996_v60 = vmul.f32 %v1994_v55, %v1985_v59  ;;  %v13886_v61 = vadd.f32 %v1997_v58, %v1908_v57 }
 0xf99   :  { %v13884_v56 = vadd.f32 %v1996_v60, %v1907_v50  ;;  %v2097_v60 = vld [vmem:[%s15579_s4 + $0x1f0] sm:$0xff] }
 0xf9b   :  { %12227 = vmatprep.mubr.msk.f32.mxu0 %vm394_vm3, %v13884_v56 }
 0xf9c   :  { %12228 = vmatmul.mubr.msk.f32.vlgmr.msra.gmra.mxu0 %vm394_vm3, %v13886_v61 }
0x105c   :  { %v12229_v52 = vpop.f32.mrf.mxu0 }
0x105d   :  { %v13895_v63 = vadd.f32 %v12229_v52, %v11275_v62 }
0x105e   :  { %v2087_v0 = vpop.f32.mrf.mxu0 }
0x105f   :  { %v13897_v2 = vadd.f32 %v11275_v62, %v2087_v0  ;;  %2104 = vrot.lane.b32.xlu1 %v13895_v63, %s13337_s22 }
0x1061   :  { %2102 = vrot.lane.b32.xlu0 %v13897_v2, %s13337_s22  ;;  %12234 = vmatprep.mubr.msk.f32.mxu1 %vm284_vm2, %v13897_v2 }
0x1063   :  { %2312 = vrot.lane.b32.xlu1 %v13895_v63, %s13340_s11 }
0x1065   :  { %2306 = vrot.lane.b32.xlu0 %v13897_v2, %s13339_s8 }
0x1067   :  { %2310 = vrot.lane.b32.xlu1 %v13897_v2, %s13340_s11 }
0x106b   :  { %2308 = vrot.lane.b32.xlu1 %v13895_v63, %s13339_s8 }
0x10d1   :  { %v2105_v4 = vpop.permute.xlu1 %2104 }
0x10d2   :  { %12230 = vmatprep.subr.msk.mxu1 %vm284_vm2, %v2105_v4 }
0x10d3   :  { %12231 = vmatpush3.xpose.msk.msra.mxu1 %vm284_vm2, %v2105_v4  ;;  %v2103_v5 = vpop.permute.xlu0 %2102 }
0x10d4   :  { %12232 = vmatprep.subr.msk.mxu1 %vm284_vm2, %v2103_v5 }
0x10d5   :  { %v2313_v7 = vpop.permute.xlu1 %2312 }
0x10d7   :  { %12233 = vmatpush3.xpose.msk.msra.mxu1 %vm284_vm2, %v2103_v5  ;;  %v2307_v8 = vpop.permute.xlu0 %2306 }
0x10d8   :  { %12244 = vmatprep.subr.msk.mxu1 %vm284_vm2, %v2313_v7 }
0x10d9   :  { %v2311_v9 = vpop.permute.xlu1 %2310 }
0x10da   :  { %12235 = vmatmul.mubr.msk.f32.vlgmr.msra.gmra.mxu1 %vm284_vm2, %v13895_v63 }
0x10db   :  { %12245 = vmatpush3.xpose.msk.msra.mxu1 %vm284_vm2, %v2313_v7  ;;  %12248 = vmatprep.mubr.msk.f32.mxu1 %vm284_vm2, %v2307_v8  ;;  %v2096_v7 = vld [vmem:[%s15579_s4 + $0x1e8] sm:$0xff] }
0x10dc   :  { %12246 = vmatprep.subr.msk.mxu1 %vm284_vm2, %v2311_v9 }
0x10dd   :  { %v2309_v11 = vpop.permute.xlu1 %2308 }
0x10df   :  { %12247 = vmatpush3.xpose.msk.msra.mxu1 %vm284_vm2, %v2311_v9 }
0x10e0   :  { %12263 = vmatprep.subr.mxu1 %v2096_v7 }
0x10e2   :  { %12249 = vmatmul.mubr.msk.f32.vlgmr.msra.gmra.mxu1 %vm284_vm2, %v2309_v11 }
0x10e3   :  { %12264 = vmatpush3.msra.mxu1 %v2096_v7 }
0x119a   :  { %v12236_v12 = vpop.f32.mrf.mxu1 }
0x119b   :  { %v2190_v14 = vmul.f32 0.35355338, %v12236_v12 }
0x119c   :  { %v2180_v15 = vpop.f32.mrf.mxu1 }
0x119d   :  { %v2189_v16 = vmul.f32 0.35355338, %v2180_v15  ;;  %v2192_v20 = vadd.f32 %v13928_v13, %v2190_v14 }
0x119f   :  { %v2198_v21 = vsel %vm2197_vm7, %v2192_v20, -inf  ;;  %v2191_v22 = vadd.f32 %v13928_v13, %v2189_v16 }
0x11a0   :  { %2199 = vmax.xlane.f32.xlu1 %v2198_v21 }
0x11a1   :  { %v2194_v23 = vsel %vm2193_vm8, %v2191_v22, -inf }
0x11a2   :  { %v12250_v19 = vpop.f32.mrf.mxu1  ;;  %2195 = vmax.xlane.f32.xlu0 %v2194_v23 }
0x11a3   :  { %v2398_v25 = vmul.f32 0.35355338, %v12250_v19 }
0x11a4   :  { %v2388_v24 = vpop.f32.mrf.mxu1 }
0x11a5   :  { %v2397_v26 = vmul.f32 0.35355338, %v2388_v24  ;;  %v2400_v28 = vadd.f32 %v13928_v13, %v2398_v25 }
0x11a7   :  { %v2399_v27 = vadd.f32 %v13928_v13, %v2397_v26  ;;  %v2404_v29 = vsel %vm2197_vm7, %v2400_v28, -inf }
0x11a9   :  { %v2401_v17 = vsel %vm2193_vm8, %v2399_v27, -inf }
0x11aa   :  { %2402 = vmax.xlane.f32.xlu0 %v2401_v17 }
0x11ae   :  { %2405 = vmax.xlane.f32.xlu0 %v2404_v29 }
0x11b1   :  { %2219 = vrot.lane.b32.xlu1 %v13895_v63, %s13342_s26 }
0x1229   :  { %v2200_v30 = vpop.xlane.xlu1 %2199 }
0x122a   :  { %v2202_v3 = vsub.f32 %v2192_v20, %v2200_v30 }
0x122b   :  { %v2196_v6 = vpop.xlane.xlu0 %2195 }
0x122c   :  { %v2205_v31 = vmul.f32 1.442695, %v2202_v3  ;;  %v2201_v32 = vsub.f32 %v2191_v22, %v2196_v6 }
0x122d   :  { %v2220_v33 = vpop.permute.xlu1 %2219 }
0x122e   :  { %13007 = vpow2.f32 %v2205_v31  ;;  %v2203_v40 = vmul.f32 1.442695, %v2201_v32  ;;  %12237 = vmatprep.subr.msk.mxu0 %vm2228_vm9, %v2220_v33 }
0x122f   :  { %12238 = vmatpush3.msk.msra.mxu0 %vm2228_vm9, %v2220_v33 }
0x1230   :  { %13009 = vpow2.f32 %v2203_v40 }
0x1233   :  { %v2403_v34 = vpop.xlane.xlu0 %2402 }
0x1234   :  { %v2407_v54 = vsub.f32 %v2399_v27, %v2403_v34 }
0x1236   :  { %v2409_v43 = vmul.f32 1.442695, %v2407_v54 }
0x1237   :  { %v2406_v37 = vpop.xlane.xlu0 %2405 }
0x1238   :  { %v2408_v35 = vsub.f32 %v2400_v28, %v2406_v37 }
0x123a   :  { %v2411_v18 = vmul.f32 1.442695, %v2408_v35 }
0x123b   :  { %v13008_v36 = vpop.eup %13007 }
0x123c   :  { %13011 = vpow2.f32 %v2411_v18  ;;  %v2210_v10 = vsel %vm2197_vm7, %v13008_v36, 0.0 }
0x123d   :  { %v13010_v38 = vpop.eup %13009  ;;  %2211 = vadd.xlane.f32.xlu0 %v2210_v10  ;;  %13013 = vpow2.f32 %v2409_v43 }
0x123e   :  { %v2207_v39 = vsel %vm2193_vm8, %v13010_v38, 0.0 }
0x123f   :  { %2208 = vadd.xlane.f32.xlu1 %v2207_v39 }
0x1249   :  { %v13012_v41 = vpop.eup %13011 }
0x124a   :  { %v2416_v42 = vsel %vm2197_vm7, %v13012_v41, 0.0  ;;  %v13014_v44 = vpop.eup %13013 }
0x124b   :  { %2417 = vadd.xlane.f32.xlu0 %v2416_v42  ;;  %v2413_v46 = vsel %vm2193_vm8, %v13014_v44, 0.0 }
0x1250   :  { %2425 = vrot.lane.b32.xlu1 %v13895_v63, %s13343_s27 }
0x1261   :  { %2217 = vrot.lane.b32.xlu0 %v13897_v2, %s13342_s26 }
0x1265   :  { %2679 = vrot.lane.b32.xlu0 %v13895_v63, %s13344_s28 }
0x1269   :  { %2673 = vrot.lane.b32.xlu0 %v13897_v2, %s13336_s21 }
0x126d   :  { %2967 = vrot.lane.b32.xlu0 %v13895_v63, %s13345_s29 }
0x1271   :  { %2961 = vrot.lane.b32.xlu0 %v13897_v2, %s13338_s7 }
0x1274   :  { %2414 = vadd.xlane.f32.xlu1 %v2413_v46 }
0x1285   :  { %2423 = vrot.lane.b32.xlu1 %v13897_v2, %s13343_s27 }
0x1289   :  { %2677 = vrot.lane.b32.xlu1 %v13897_v2, %s13344_s28 }
0x128d   :  { %2675 = vrot.lane.b32.xlu1 %v13895_v63, %s13336_s21 }
0x1291   :  { %2965 = vrot.lane.b32.xlu1 %v13897_v2, %s13345_s29 }
0x1295   :  { %2963 = vrot.lane.b32.xlu1 %v13895_v63, %s13338_s7 }
0x12c6   :  { %v2212_v45 = vpop.xlane.xlu0 %2211 }
0x12c7   :  { %13015 = vrcp.f32 %v2212_v45 }
0x12c8   :  { %v2209_v47 = vpop.xlane.xlu1 %2208 }
0x12c9   :  { %13017 = vrcp.f32 %v2209_v47 }
0x12cc   :  { %v2426_v58 = vpop.permute.xlu1 %2425 }
0x12d4   :  { %v2418_v48 = vpop.xlane.xlu0 %2417  ;;  %v13016_v49 = vpop.eup %13015 }
0x12d5   :  { %v2216_v57 = vmul.f32 %v13016_v49, %v13008_v36  ;;  %13019 = vrcp.f32 %v2418_v48 }
0x12d6   :  { %v13018_v51 = vpop.eup %13017 }
0x12d7   :  { %v2214_v53 = vmul.f32 %v13018_v51, %v13010_v38 }
0x12d8   :  { %v2218_v55 = vpop.permute.xlu0 %2217 }
0x12d9   :  { %12239 = vmatprep.subr.mxu0 %v2218_v55  ;;  %12241 = vmatprep.mubr.msk.f32.mxu0 %vm2193_vm8, %v2214_v53 }
0x12da   :  { %12240 = vmatpush3.msra.mxu0 %v2218_v55 }
0x12db   :  { %12242 = vmatmul.mubr.msk.f32.vlgmr.msra.gmra.mxu0 %vm2193_vm8, %v2216_v57  ;;  %12251 = vmatprep.subr.msk.mxu0 %vm2228_vm9, %v2426_v58 }
0x12dc   :  { %12252 = vmatpush3.msk.msra.mxu0 %vm2228_vm9, %v2426_v58  ;;  %v2680_v5 = vpop.permute.xlu0 %2679 }
0x12e0   :  { %v2674_v11 = vpop.permute.xlu0 %2673 }
0x12e2   :  { %v13020_v62 = vpop.eup %13019 }
0x12e3   :  { %v2422_v4 = vmul.f32 %v13020_v62, %v13012_v41 }
0x12e4   :  { %v2968_v16 = vpop.permute.xlu0 %2967 }
0x12e8   :  { %v2962_v21 = vpop.permute.xlu0 %2961 }
0x12fd   :  { %v2415_v59 = vpop.xlane.xlu1 %2414 }
0x12fe   :  { %13021 = vrcp.f32 %v2415_v59 }
0x1301   :  { %v2424_v50 = vpop.permute.xlu1 %2423 }
0x1302   :  { %12253 = vmatprep.subr.mxu0 %v2424_v50 }
0x1303   :  { %12254 = vmatpush3.msra.mxu0 %v2424_v50  ;;  %v2098_v50 = vld [vmem:[%s15579_s4 + $0x1f8] sm:$0xff] }
0x1304   :  { %12258 = vmatprep.subr.mxu0 %v2097_v60 }
0x1305   :  { %v2678_v14 = vpop.permute.xlu1 %2677 }
0x1309   :  { %v2676_v20 = vpop.permute.xlu1 %2675 }
0x130b   :  { %v13022_v52 = vpop.eup %13021 }
0x130c   :  { %v2420_v0 = vmul.f32 %v13022_v52, %v13014_v44 }
0x130d   :  { %v2966_v22 = vpop.permute.xlu1 %2965 }
0x130e   :  { %12255 = vmatprep.mubr.msk.f32.mxu0 %vm2193_vm8, %v2420_v0 }
0x130f   :  { %12256 = vmatmul.mubr.msk.f32.vlgmr.msra.gmra.mxu0 %vm2193_vm8, %v2422_v4 }
0x1310   :  { %12259 = vmatpush3.msra.mxu0 %v2097_v60 }
0x1311   :  { %12268 = vmatprep.subr.msk.mxu0 %vm284_vm2, %v2680_v5  ;;  %v2964_v23 = vpop.permute.xlu1 %2963 }
0x139b   :  { %v12243_v8 = vpop.f32.mrf.mxu0 }
0x139d   :  { %v2297_v9 = vpop.f32.mrf.mxu0 }
0x139e   :  { %12265 = vmatprep.mubr.msk.f32.mxu1 %vm284_vm2, %v2297_v9 }
0x139f   :  { %12266 = vmatmul.mubr.msk.f32.vlgmr.msra.gmra.mxu1 %vm284_vm2, %v12243_v8 }
0x13cf   :  { %v12257_v12 = vpop.f32.mrf.mxu0 }
0x13d1   :  { %v2502_v15 = vpop.f32.mrf.mxu0 }
0x13d2   :  { %12260 = vmatprep.mubr.msk.f32.mxu0 %vm284_vm2, %v2502_v15 }
0x13d3   :  { %12261 = vmatmul.mubr.msk.f32.vlgmr.msra.gmra.mxu0 %vm284_vm2, %v12257_v12 }
0x13d4   :  { %12269 = vmatpush3.xpose.msk.msra.mxu0 %vm284_vm2, %v2680_v5  ;;  %12272 = vmatprep.mubr.msk.f32.mxu0 %vm284_vm2, %v2674_v11 }
0x13d5   :  { %12270 = vmatprep.subr.msk.mxu0 %vm284_vm2, %v2678_v14 }
0x13d8   :  { %12271 = vmatpush3.xpose.msk.msra.mxu0 %vm284_vm2, %v2678_v14 }
0x13d9   :  { %12287 = vmatprep.subr.msk.mxu0 %vm284_vm2, %v2968_v16 }
0x13db   :  { %12273 = vmatmul.mubr.msk.f32.vlgmr.msra.gmra.mxu0 %vm284_vm2, %v2676_v20 }
0x13dc   :  { %12288 = vmatpush3.xpose.msk.msra.mxu0 %vm284_vm2, %v2968_v16  ;;  %12291 = vmatprep.mubr.msk.f32.mxu0 %vm284_vm2, %v2962_v21 }
0x13dd   :  { %12289 = vmatprep.subr.msk.mxu0 %vm284_vm2, %v2966_v22 }
0x13e0   :  { %12290 = vmatpush3.xpose.msk.msra.mxu0 %vm284_vm2, %v2966_v22 }
0x13e3   :  { %12292 = vmatmul.mubr.msk.f32.vlgmr.msra.gmra.mxu0 %vm284_vm2, %v2964_v23 }
0x145f   :  { %v12267_v19 = vpop.f32.mrf.mxu1 }
0x1461   :  { %v2664_v12 = vpop.f32.mrf.mxu1 }
0x1493   :  { %v12262_v24 = vpop.f32.mrf.mxu0 }
0x1494   :  { %v13996_v25 = vadd.f32 %v12267_v19, %v12262_v24  ;;  %v2099_v19 = vld [vmem:[%s15579_s4 + $0x200] sm:$0xff] }
0x1495   :  { %v13998_v26 = vpop.f32.mrf.mxu0 }
0x149b   :  { %v12274_v27 = vpop.f32.mrf.mxu0 }
0x149c   :  { %v2765_v17 = vmul.f32 0.35355338, %v12274_v27  ;;  %v2665_v27 = vadd.f32 %v2664_v12, %v13998_v26  ;;  %v11317_v12 = vld [vmem:[%s15579_s4 + $0x240] ss:$0 sm:$0xff] }
0x149d   :  { %v2755_v28 = vpop.f32.mrf.mxu0 }
0x149e   :  { %v2764_v29 = vmul.f32 0.35355338, %v2755_v28  ;;  %v2767_v30 = vadd.f32 %v13928_v13, %v2765_v17 }
0x14a0   :  { %v2771_v3 = vsel %vm2197_vm7, %v2767_v30, -inf  ;;  %v2766_v6 = vadd.f32 %v13928_v13, %v2764_v29 }
0x14a1   :  { %2772 = vmax.xlane.f32.xlu1 %v2771_v3 }
0x14a2   :  { %v2768_v31 = vsel %vm2193_vm8, %v2766_v6, -inf }
0x14a3   :  { %2769 = vmax.xlane.f32.xlu0 %v2768_v31  ;;  %v12293_v32 = vpop.f32.mrf.mxu0  ;;  %v11314_v31 = vld [vmem:[%s15579_s4 + $0x208] ss:$0 sm:$0xff] }
0x14a4   :  { %v3053_v48 = vmul.f32 0.35355338, %v12293_v32 }
0x14a5   :  { %v3043_v33 = vpop.f32.mrf.mxu0 }
0x14a6   :  { %v3052_v40 = vmul.f32 0.35355338, %v3043_v33  ;;  %v3055_v53 = vadd.f32 %v13928_v13, %v3053_v48 }
0x14a8   :  { %v3054_v34 = vadd.f32 %v13928_v13, %v3052_v40  ;;  %v3059_v55 = vsel %vm2197_vm7, %v3055_v53, -inf }
0x14aa   :  { %v3056_v37 = vsel %vm2193_vm8, %v3054_v34, -inf }
0x14b2   :  { %2792 = vrot.lane.b32.xlu1 %v13895_v63, %s13346_s13 }
0x14d6   :  { %3057 = vmax.xlane.f32.xlu1 %v3056_v37 }
0x152a   :  { %v2773_v35 = vpop.xlane.xlu1 %2772 }
0x152b   :  { %v2775_v18 = vsub.f32 %v2767_v30, %v2773_v35 }
0x152c   :  { %v2770_v36 = vpop.xlane.xlu0 %2769 }
0x152d   :  { %v2778_v10 = vmul.f32 1.442695, %v2775_v18  ;;  %v2774_v38 = vsub.f32 %v2766_v6, %v2770_v36 }
0x152e   :  { %v2793_v39 = vpop.permute.xlu1 %2792 }
0x152f   :  { %13023 = vpow2.f32 %v2778_v10  ;;  %v2776_v41 = vmul.f32 1.442695, %v2774_v38  ;;  %12275 = vmatprep.subr.msk.mxu1 %vm2228_vm9, %v2793_v39 }
0x1530   :  { %12276 = vmatpush3.msk.msra.mxu1 %vm2228_vm9, %v2793_v39 }
0x1531   :  { %13025 = vpow2.f32 %v2776_v41 }
0x153c   :  { %v13024_v42 = vpop.eup %13023 }
0x153d   :  { %v2783_v54 = vsel %vm2197_vm7, %v13024_v42, 0.0 }
0x153e   :  { %v13026_v43 = vpop.eup %13025  ;;  %2784 = vadd.xlane.f32.xlu0 %v2783_v54 }
0x153f   :  { %v2780_v44 = vsel %vm2193_vm8, %v13026_v43, 0.0 }
0x1542   :  { %2781 = vadd.xlane.f32.xlu0 %v2780_v44 }
0x1558   :  { %2790 = vrot.lane.b32.xlu0 %v13897_v2, %s13346_s13 }
0x155f   :  { %v3058_v46 = vpop.xlane.xlu1 %3057 }
0x1560   :  { %v3062_v45 = vsub.f32 %v3054_v34, %v3058_v46  ;;  %v3302_v46 = vld [vmem:[%s15579_s4 + $0x230] sm:$0xff] }
0x1562   :  { %v3064_v47 = vmul.f32 1.442695, %v3062_v45  ;;  %v3301_v45 = vld [vmem:[%s15579_s4 + $0x228] sm:$0xff] }
0x1564   :  { %13027 = vpow2.f32 %v3064_v47  ;;  %v3300_v47 = vld [vmem:[%s15579_s4 + $0x220] sm:$0xff] }
0x1571   :  { %v13028_v49 = vpop.eup %13027 }
0x1572   :  { %v3068_v51 = vsel %vm2193_vm8, %v13028_v49, 0.0 }
0x1573   :  { %3069 = vadd.xlane.f32.xlu1 %v3068_v51 }
0x1577   :  { %3060 = vmax.xlane.f32.xlu0 %v3059_v55 }
0x1584   :  { %3080 = vrot.lane.b32.xlu1 %v13895_v63, %s13347_s14 }
0x15c7   :  { %v2785_v57 = vpop.xlane.xlu0 %2784 }
0x15c8   :  { %13029 = vrcp.f32 %v2785_v57 }
0x15cb   :  { %v2782_v58 = vpop.xlane.xlu0 %2781 }
0x15cc   :  { %13031 = vrcp.f32 %v2782_v58 }
0x15cf   :  { %v2791_v59 = vpop.permute.xlu0 %2790 }
0x15d0   :  { %12277 = vmatprep.subr.mxu1 %v2791_v59 }
0x15d1   :  { %12278 = vmatpush3.msra.mxu1 %v2791_v59  ;;  %v11315_v59 = vld [vmem:[%s15579_s4 + $0x210] ss:$0 sm:$0xff] }
0x15d2   :  { %12282 = vmatprep.subr.mxu1 %v2098_v50 }
0x15d5   :  { %v13030_v60 = vpop.eup %13029 }
0x15d6   :  { %v2789_v0 = vmul.f32 %v13030_v60, %v13024_v42 }
0x15d9   :  { %v13032_v62 = vpop.eup %13031 }
0x15da   :  { %v2787_v52 = vmul.f32 %v13032_v62, %v13026_v43 }
0x15dc   :  { %12279 = vmatprep.mubr.msk.f32.mxu1 %vm2193_vm8, %v2787_v52 }
0x15dd   :  { %12280 = vmatmul.mubr.msk.f32.vlgmr.msra.gmra.mxu1 %vm2193_vm8, %v2789_v0  ;;  %v11316_v0 = vld [vmem:[%s15579_s4 + $0x218] ss:$0 sm:$0xff] }
0x15de   :  { %12283 = vmatpush3.msra.mxu1 %v2098_v50 }
0x15fc   :  { %v3070_v63 = vpop.xlane.xlu1 %3069 }
0x1600   :  { %v3081_v4 = vpop.permute.xlu1 %3080  ;;  %v3061_v5 = vpop.xlane.xlu0 %3060 }
0x1601   :  { %v3063_v7 = vsub.f32 %v3055_v53, %v3061_v5  ;;  %12294 = vmatprep.subr.msk.mxu1 %vm2228_vm9, %v3081_v4 }
0x1603   :  { %v3066_v8 = vmul.f32 1.442695, %v3063_v7  ;;  %v3407_v7 = vld [vmem:[%s15579_s4 + $0x260] sm:$0xff] }
0x1605   :  { %13033 = vpow2.f32 %v3066_v8  ;;  %v3406_v8 = vld [vmem:[%s15579_s4 + $0x258] sm:$0xff] }
0x1606   :  { %13035 = vrcp.f32 %v3070_v63 }
0x1612   :  { %v13034_v9 = vpop.eup %13033 }
0x1613   :  { %v3071_v11 = vsel %vm2197_vm7, %v13034_v9, 0.0  ;;  %v13036_v14 = vpop.eup %13035 }
0x1614   :  { %3072 = vadd.xlane.f32.xlu0 %v3071_v11  ;;  %v3075_v21 = vmul.f32 %v13036_v14, %v13028_v49  ;;  %v3404_v11 = vld [vmem:[%s15579_s4 + $0x248] sm:$0xff] }
0x162a   :  { %3078 = vrot.lane.b32.xlu0 %v13897_v2, %s13347_s14 }
0x169d   :  { %v12281_v15 = vpop.f32.mrf.mxu1  ;;  %v3073_v16 = vpop.xlane.xlu0 %3072 }
0x169e   :  { %13037 = vrcp.f32 %v3073_v16 }
0x169f   :  { %v2869_v20 = vpop.f32.mrf.mxu1 }
0x16a0   :  { %12284 = vmatprep.mubr.msk.f32.mxu1 %vm284_vm2, %v2869_v20 }
0x16a1   :  { %12285 = vmatmul.mubr.msk.f32.vlgmr.msra.gmra.mxu1 %vm284_vm2, %v12281_v15  ;;  %v3079_v22 = vpop.permute.xlu0 %3078 }
0x16a2   :  { %12295 = vmatpush3.msk.msra.mxu1 %vm2228_vm9, %v3081_v4  ;;  %12298 = vmatprep.mubr.msk.f32.mxu1 %vm2193_vm8, %v3075_v21 }
0x16a3   :  { %12296 = vmatprep.subr.mxu1 %v3079_v22 }
0x16a4   :  { %12297 = vmatpush3.msra.mxu1 %v3079_v22 }
0x16a5   :  { %12301 = vmatprep.subr.mxu1 %v2099_v19 }
0x16ab   :  { %v13038_v2 = vpop.eup %13037 }
0x16ac   :  { %v3077_v23 = vmul.f32 %v13038_v2, %v13034_v9  ;;  %v3405_v9 = vld [vmem:[%s15579_s4 + $0x250] sm:$0xff] }
0x16ae   :  { %12299 = vmatmul.mubr.msk.f32.vlgmr.msra.gmra.mxu1 %vm2193_vm8, %v3077_v23 }
0x16af   :  { %12302 = vmatpush3.msra.mxu1 %v2099_v19 }
0x16b0   :  { %12317 = vmatprep.subr.mxu1 %v3407_v7 }
0x1761   :  { %v12286_v24 = vpop.f32.mrf.mxu1 }
0x1762   :  { %v2960_v17 = vadd.f32 %v12286_v24, %v13996_v25 }
0x1763   :  { %v2950_v28 = vpop.f32.mrf.mxu1 }
0x1764   :  { %v2959_v29 = vadd.f32 %v2950_v28, %v2665_v27 }
0x176e   :  { %v12300_v30 = vpop.f32.mrf.mxu1 }
0x1770   :  { %v3157_v3 = vpop.f32.mrf.mxu1 }
0x1771   :  { %12303 = vmatprep.mubr.msk.f32.mxu1 %vm284_vm2, %v3157_v3 }
0x1772   :  { %12304 = vmatmul.mubr.msk.f32.vlgmr.msra.gmra.mxu1 %vm284_vm2, %v12300_v30  ;;  %v11322_v30 = vld [vmem:[%s15579_s4 + $0x268] ss:$0 sm:$0xff] }
0x1773   :  { %12318 = vmatpush3.msra.mxu1 %v3407_v7 }
0x1774   :  { %12319 = vmatprep.subr.mxu1 %v3406_v8 }
0x1775   :  { %12320 = vmatpush3.msra.mxu1 %v3406_v8 }
0x1776   :  { %12321 = vmatprep.subr.mxu1 %v3405_v9 }
0x1777   :  { %12322 = vmatpush3.msra.mxu1 %v3405_v9 }
0x1778   :  { %12323 = vmatprep.subr.mxu1 %v3404_v11 }
0x1779   :  { %12324 = vmatpush3.msra.mxu1 %v3404_v11 }
0x1832   :  { %v12305_v6 = vpop.f32.mrf.mxu1 }
0x1833   :  { %v3248_v32 = vadd.f32 %v12305_v6, %v2960_v17 }
0x1834   :  { %v3238_v33 = vpop.f32.mrf.mxu1 }
0x1835   :  { %v3255_v40 = vadd.f32 %v11314_v31, %v3248_v32  ;;  %v3247_v34 = vadd.f32 %v3238_v33, %v2959_v29 }
0x1837   :  { %v3254_v26 = vadd.f32 %v11314_v31, %v3247_v34  ;;  %v3257_v25 = vadd.f32 %v3255_v40, %v13886_v61 }
0x1839   :  { %v3264_v37 = vsel %vm3263_vm10, %v3257_v25, 0.0  ;;  %v3256_v35 = vadd.f32 %v3254_v26, %v13884_v56  ;;  %v3303_v56 = vld [vmem:[%s15579_s4 + $0x238] sm:$0xff] }
0x183a   :  { %3265 = vadd.xlane.f32.xlu0 %v3264_v37  ;;  %12306 = vmatprep.subr.mxu0 %v3303_v56 }
0x183b   :  { %v3260_v18 = vsel %vm394_vm3, %v3256_v35, 0.0  ;;  %12307 = vmatpush3.msra.mxu0 %v3303_v56 }
0x183c   :  { %3261 = vadd.xlane.f32.xlu1 %v3260_v18  ;;  %12308 = vmatprep.subr.mxu0 %v3302_v46 }
0x183d   :  { %12309 = vmatpush3.msra.mxu0 %v3302_v46 }
0x183e   :  { %12310 = vmatprep.subr.mxu0 %v3301_v45 }
0x183f   :  { %12311 = vmatpush3.msra.mxu0 %v3301_v45 }
0x1840   :  { %12312 = vmatprep.subr.mxu0 %v3300_v47 }
0x1841   :  { %12313 = vmatpush3.msra.mxu0 %v3300_v47 }
0x18c3   :  { %v3266_v36 = vpop.xlane.xlu0 %3265 }
0x18c4   :  { %v3269_v10 = vmul.f32 0.03125, %v3266_v36 }
0x18c5   :  { %v3262_v38 = vpop.xlane.xlu1 %3261 }
0x18c6   :  { %v3271_v39 = vsub.f32 %v3257_v25, %v3269_v10  ;;  %v3268_v41 = vmul.f32 0.03125, %v3262_v38 }
0x18c8   :  { %v3270_v42 = vsub.f32 %v3256_v35, %v3268_v41  ;;  %v3273_v54 = vmul.f32 %v3271_v39, %v3271_v39 }
0x18ca   :  { %v3277_v43 = vsel %vm3263_vm10, %v3273_v54, 0.0  ;;  %v3272_v44 = vmul.f32 %v3270_v42, %v3270_v42  ;;  %v3539_v54 = vld [vmem:[%s15579_s4 + $0x298] sm:$0xff] }
0x18cb   :  { %3278 = vadd.xlane.f32.xlu0 %v3277_v43  ;;  %v3538_v43 = vld [vmem:[%s15579_s4 + $0x290] sm:$0xff]  ;;  %12328 = vmatprep.subr.mxu0 %v3539_v54 }
0x18cc   :  { %v3274_v61 = vsel %vm394_vm3, %v3272_v44, 0.0  ;;  %v3537_v44 = vld [vmem:[%s15579_s4 + $0x288] sm:$0xff] }
0x18cd   :  { %3275 = vadd.xlane.f32.xlu1 %v3274_v61  ;;  %v3536_v61 = vld [vmem:[%s15579_s4 + $0x280] sm:$0xff] }
0x1954   :  { %v3279_v48 = vpop.xlane.xlu0 %3278 }
0x1955   :  { %v3281_v49 = vmul.f32 0.03125, %v3279_v48 }
0x1956   :  { %v3276_v51 = vpop.xlane.xlu1 %3275 }
0x1957   :  { %v3283_v53 = vadd.f32 1e-05, %v3281_v49  ;;  %v3280_v55 = vmul.f32 0.03125, %v3276_v51 }
0x1959   :  { %13039 = vrsqrt.f32 %v3283_v53  ;;  %v3282_v57 = vadd.f32 1e-05, %v3280_v55  ;;  %v11325_v53 = vld [vmem:[%s15579_s4 + $0x270] ss:$0 sm:$0xff] }
0x195b   :  { %13041 = vrsqrt.f32 %v3282_v57 }
0x1966   :  { %v13040_v58 = vpop.eup %13039 }
0x1967   :  { %v3287_v50 = vmul.f32 %v13040_v58, %v3271_v39 }
0x1968   :  { %v13042_v60 = vpop.eup %13041 }
0x1969   :  { %v3286_v62 = vmul.f32 %v13042_v60, %v3270_v42  ;;  %v3293_v52 = vmul.f32 %v11315_v59, %v3287_v50  ;;  %v11326_v50 = vld [vmem:[%s15579_s4 + $0x278] ss:$0 sm:$0xff] }
0x196b   :  { %v3292_v63 = vmul.f32 %v11315_v59, %v3286_v62  ;;  %v3299_v5 = vadd.f32 %v11316_v0, %v3293_v52 }
0x196d   :  { %v3298_v4 = vadd.f32 %v11316_v0, %v3292_v63  ;;  %v11327_v0 = vld [vmem:[%s15579_s4 + $0x2a0] ss:$0 sm:$0xff] }
0x196f   :  { %12314 = vmatprep.mubr.msk.f32.mxu0 %vm394_vm3, %v3298_v4 }
0x1970   :  { %12315 = vmatmul.mubr.msk.f32.vlgmr.msra.gmra.mxu0 %vm394_vm3, %v3299_v5 }
0x1971   :  { %12329 = vmatpush3.msra.mxu0 %v3539_v54 }
0x1972   :  { %12330 = vmatprep.subr.mxu0 %v3538_v43 }
0x1973   :  { %12331 = vmatpush3.msra.mxu0 %v3538_v43 }
0x1974   :  { %12332 = vmatprep.subr.mxu0 %v3537_v44 }
0x1975   :  { %12333 = vmatpush3.msra.mxu0 %v3537_v44 }
0x1976   :  { %12334 = vmatprep.subr.mxu0 %v3536_v61 }
0x1977   :  { %12335 = vmatpush3.msra.mxu0 %v3536_v61 }
0x1a30   :  { %v12316_v14 = vpop.f32.mrf.mxu0 }
0x1a31   :  { %v3387_v15 = vadd.f32 %v12316_v14, %v11317_v12 }
0x1a32   :  { %v3381_v16 = vpop.f32.mrf.mxu0 }
0x1a33   :  { %v11321_v20 = vmul.f32 -1.442695, %v3387_v15  ;;  %v3382_v21 = vadd.f32 %v11317_v12, %v3381_v16 }
0x1a35   :  { %13043 = vpow2.f32 %v11321_v20  ;;  %v11320_v22 = vmul.f32 -1.442695, %v3382_v21 }
0x1a37   :  { %13045 = vpow2.f32 %v11320_v22 }
0x1a42   :  { %v13044_v2 = vpop.eup %13043 }
0x1a43   :  { %v3397_v23 = vadd.f32 1.0, %v13044_v2 }
0x1a44   :  { %v13046_v19 = vpop.eup %13045 }
0x1a45   :  { %v3396_v24 = vadd.f32 1.0, %v13046_v19  ;;  %13047 = vrcp.f32 %v3397_v23 }
0x1a47   :  { %13049 = vrcp.f32 %v3396_v24 }
0x1a52   :  { %v13048_v27 = vpop.eup %13047 }
0x1a53   :  { %v3403_v29 = vmul.f32 %v13048_v27, %v3387_v15 }
0x1a54   :  { %v13050_v17 = vpop.eup %13049 }
0x1a55   :  { %v3402_v28 = vmul.f32 %v13050_v17, %v3382_v21 }
0x1a57   :  { %12325 = vmatprep.mubr.msk.f32.mxu1 %vm394_vm3, %v3402_v28 }
0x1a58   :  { %12326 = vmatmul.mubr.msk.f32.vlgmr.msra.gmra.mxu1 %vm394_vm3, %v3403_v29 }
0x1b18   :  { %v12327_v3 = vpop.f32.mrf.mxu1 }
0x1b19   :  { %v3491_v6 = vadd.f32 %v12327_v3, %v11322_v30 }
0x1b1a   :  { %v3485_v31 = vpop.f32.mrf.mxu1 }
0x1b1b   :  { %v3486_v32 = vadd.f32 %v11322_v30, %v3485_v31  ;;  %v3495_v33 = vadd.f32 %v3491_v6, %v3299_v5 }
0x1b1d   :  { %v3501_v40 = vsel %vm3263_vm10, %v3495_v33, 0.0  ;;  %v3494_v34 = vadd.f32 %v3486_v32, %v3298_v4 }
0x1b1e   :  { %3502 = vadd.xlane.f32.xlu0 %v3501_v40 }
0x1b1f   :  { %v3498_v26 = vsel %vm394_vm3, %v3494_v34, 0.0 }
0x1b20   :  { %3499 = vadd.xlane.f32.xlu1 %v3498_v26 }
0x1ba7   :  { %v3503_v25 = vpop.xlane.xlu0 %3502 }
0x1ba8   :  { %v3505_v37 = vmul.f32 0.03125, %v3503_v25 }
0x1ba9   :  { %v3500_v35 = vpop.xlane.xlu1 %3499 }
0x1baa   :  { %v3507_v18 = vsub.f32 %v3495_v33, %v3505_v37  ;;  %v3504_v36 = vmul.f32 0.03125, %v3500_v35 }
0x1bac   :  { %v3506_v10 = vsub.f32 %v3494_v34, %v3504_v36  ;;  %v3509_v38 = vmul.f32 %v3507_v18, %v3507_v18 }
0x1bae   :  { %v3513_v39 = vsel %vm3263_vm10, %v3509_v38, 0.0  ;;  %v3508_v41 = vmul.f32 %v3506_v10, %v3506_v10 }
0x1baf   :  { %3514 = vadd.xlane.f32.xlu0 %v3513_v39 }
0x1bb0   :  { %v3510_v42 = vsel %vm394_vm3, %v3508_v41, 0.0 }
0x1bb1   :  { %3511 = vadd.xlane.f32.xlu1 %v3510_v42 }
0x1c38   :  { %v3515_v56 = vpop.xlane.xlu0 %3514 }
0x1c39   :  { %v3517_v46 = vmul.f32 0.03125, %v3515_v56 }
0x1c3a   :  { %v3512_v45 = vpop.xlane.xlu1 %3511 }
0x1c3b   :  { %v3519_v47 = vadd.f32 1e-05, %v3517_v46  ;;  %v3516_v48 = vmul.f32 0.03125, %v3512_v45 }
0x1c3d   :  { %13051 = vrsqrt.f32 %v3519_v47  ;;  %v3518_v49 = vadd.f32 1e-05, %v3516_v48 }
0x1c3f   :  { %13053 = vrsqrt.f32 %v3518_v49 }
0x1c4a   :  { %v13052_v51 = vpop.eup %13051 }
0x1c4b   :  { %v3523_v55 = vmul.f32 %v13052_v51, %v3507_v18 }
0x1c4c   :  { %v13054_v57 = vpop.eup %13053 }
0x1c4d   :  { %v3522_v58 = vmul.f32 %v13054_v57, %v3506_v10  ;;  %v3529_v59 = vmul.f32 %v11325_v53, %v3523_v55 }
0x1c4f   :  { %v3528_v60 = vmul.f32 %v11325_v53, %v3522_v58  ;;  %v14113_v52 = vadd.f32 %v11326_v50, %v3529_v59 }
0x1c51   :  { %v14111_v62 = vadd.f32 %v11326_v50, %v3528_v60  ;;  %v3627_v50 = vld [vmem:[%s15579_s4 + $0x2b0] sm:$0xff] }
0x1c53   :  { %12336 = vmatprep.mubr.msk.f32.mxu0 %vm394_vm3, %v14111_v62 }
0x1c54   :  { %12337 = vmatmul.mubr.msk.f32.vlgmr.msra.gmra.mxu0 %vm394_vm3, %v14113_v52 }
0x1d14   :  { %v12338_v63 = vpop.f32.mrf.mxu0 }
0x1d15   :  { %v14122_v4 = vadd.f32 %v12338_v63, %v11327_v0 }
0x1d16   :  { %v3617_v5 = vpop.f32.mrf.mxu0 }
0x1d17   :  { %v14124_v7 = vadd.f32 %v11327_v0, %v3617_v5  ;;  %3634 = vrot.lane.b32.xlu1 %v14122_v4, %s13337_s22 }
0x1d19   :  { %3632 = vrot.lane.b32.xlu0 %v14124_v7, %s13337_s22  ;;  %12343 = vmatprep.mubr.msk.f32.mxu1 %vm284_vm2, %v14124_v7 }
0x1d1b   :  { %3839 = vrot.lane.b32.xlu1 %v14122_v4, %s13340_s11 }
0x1d1d   :  { %3833 = vrot.lane.b32.xlu0 %v14124_v7, %s13339_s8 }
0x1d1f   :  { %3837 = vrot.lane.b32.xlu1 %v14124_v7, %s13340_s11 }
0x1d23   :  { %3835 = vrot.lane.b32.xlu1 %v14122_v4, %s13339_s8 }
0x1d89   :  { %v3635_v8 = vpop.permute.xlu1 %3634 }
0x1d8a   :  { %12339 = vmatprep.subr.msk.mxu1 %vm284_vm2, %v3635_v8 }
0x1d8b   :  { %12340 = vmatpush3.xpose.msk.msra.mxu1 %vm284_vm2, %v3635_v8  ;;  %v3633_v9 = vpop.permute.xlu0 %3632 }
0x1d8c   :  { %12341 = vmatprep.subr.msk.mxu1 %vm284_vm2, %v3633_v9 }
0x1d8d   :  { %v3840_v11 = vpop.permute.xlu1 %3839 }
0x1d8f   :  { %12342 = vmatpush3.xpose.msk.msra.mxu1 %vm284_vm2, %v3633_v9  ;;  %v3834_v12 = vpop.permute.xlu0 %3833  ;;  %v3626_v9 = vld [vmem:[%s15579_s4 + $0x2a8] sm:$0xff] }
0x1d90   :  { %12353 = vmatprep.subr.msk.mxu1 %vm284_vm2, %v3840_v11 }
0x1d91   :  { %v3838_v14 = vpop.permute.xlu1 %3837 }
0x1d92   :  { %12344 = vmatmul.mubr.msk.f32.vlgmr.msra.gmra.mxu1 %vm284_vm2, %v14122_v4 }
0x1d93   :  { %12354 = vmatpush3.xpose.msk.msra.mxu1 %vm284_vm2, %v3840_v11  ;;  %12357 = vmatprep.mubr.msk.f32.mxu1 %vm284_vm2, %v3834_v12 }
0x1d94   :  { %12355 = vmatprep.subr.msk.mxu1 %vm284_vm2, %v3838_v14 }
0x1d95   :  { %v3836_v15 = vpop.permute.xlu1 %3835 }
0x1d97   :  { %12356 = vmatpush3.xpose.msk.msra.mxu1 %vm284_vm2, %v3838_v14 }
0x1d98   :  { %12372 = vmatprep.subr.mxu1 %v3626_v9 }
0x1d9a   :  { %12358 = vmatmul.mubr.msk.f32.vlgmr.msra.gmra.mxu1 %vm284_vm2, %v3836_v15 }
0x1d9b   :  { %12373 = vmatpush3.msra.mxu1 %v3626_v9 }
0x1e52   :  { %v12345_v16 = vpop.f32.mrf.mxu1 }
0x1e53   :  { %v3720_v20 = vmul.f32 0.35355338, %v12345_v16 }
0x1e54   :  { %v3710_v21 = vpop.f32.mrf.mxu1 }
0x1e55   :  { %v3722_v22 = vadd.f32 %v13928_v13, %v3720_v20  ;;  %v3719_v2 = vmul.f32 0.35355338, %v3710_v21 }
0x1e57   :  { %v3721_v23 = vadd.f32 %v13928_v13, %v3719_v2  ;;  %v3726_v19 = vsel %vm2197_vm7, %v3722_v22, -inf }
0x1e58   :  { %3727 = vmax.xlane.f32.xlu1 %v3726_v19 }
0x1e59   :  { %v3723_v24 = vsel %vm2193_vm8, %v3721_v23, -inf }
0x1e5a   :  { %v12359_v27 = vpop.f32.mrf.mxu1  ;;  %3724 = vmax.xlane.f32.xlu0 %v3723_v24 }
0x1e5b   :  { %v3925_v28 = vmul.f32 0.35355338, %v12359_v27 }
0x1e5c   :  { %v3915_v17 = vpop.f32.mrf.mxu1 }
0x1e5d   :  { %v3924_v29 = vmul.f32 0.35355338, %v3915_v17  ;;  %v3927_v3 = vadd.f32 %v13928_v13, %v3925_v28 }
0x1e5f   :  { %v3926_v30 = vadd.f32 %v13928_v13, %v3924_v29  ;;  %v3931_v31 = vsel %vm2197_vm7, %v3927_v3, -inf }
0x1e61   :  { %v3928_v6 = vsel %vm2193_vm8, %v3926_v30, -inf }
0x1e62   :  { %3929 = vmax.xlane.f32.xlu0 %v3928_v6  ;;  %v13311_v6 = vld [vmem:[%s15577_s2] ss:$0 sm:$0xff] }
0x1e66   :  { %3932 = vmax.xlane.f32.xlu0 %v3931_v31 }
0x1e69   :  { %3747 = vrot.lane.b32.xlu1 %v14122_v4, %s13342_s26 }
0x1ee1   :  { %v3728_v32 = vpop.xlane.xlu1 %3727 }
0x1ee2   :  { %v3730_v33 = vsub.f32 %v3722_v22, %v3728_v32 }
0x1ee3   :  { %v3725_v40 = vpop.xlane.xlu0 %3724 }
0x1ee4   :  { %v3733_v34 = vmul.f32 1.442695, %v3730_v33  ;;  %v3729_v26 = vsub.f32 %v3721_v23, %v3725_v40 }
0x1ee5   :  { %v3748_v25 = vpop.permute.xlu1 %3747 }
0x1ee6   :  { %13055 = vpow2.f32 %v3733_v34  ;;  %v3731_v37 = vmul.f32 1.442695, %v3729_v26  ;;  %12346 = vmatprep.subr.msk.mxu0 %vm2228_vm9, %v3748_v25 }
0x1ee7   :  { %12347 = vmatpush3.msk.msra.mxu0 %vm2228_vm9, %v3748_v25 }
0x1ee8   :  { %13057 = vpow2.f32 %v3731_v37 }
0x1eeb   :  { %v3930_v13 = vpop.xlane.xlu0 %3929 }
0x1eec   :  { %v3934_v43 = vsub.f32 %v3926_v30, %v3930_v13 }
0x1eee   :  { %v3936_v44 = vmul.f32 1.442695, %v3934_v43 }
0x1eef   :  { %v3933_v35 = vpop.xlane.xlu0 %3932 }
0x1ef0   :  { %v3935_v18 = vsub.f32 %v3927_v3, %v3933_v35 }
0x1ef2   :  { %v3938_v36 = vmul.f32 1.442695, %v3935_v18 }
0x1ef3   :  { %v13056_v10 = vpop.eup %13055 }
0x1ef4   :  { %13059 = vpow2.f32 %v3938_v36  ;;  %v3738_v38 = vsel %vm2197_vm7, %v13056_v10, 0.0 }
0x1ef5   :  { %v13058_v39 = vpop.eup %13057  ;;  %3739 = vadd.xlane.f32.xlu0 %v3738_v38  ;;  %13061 = vpow2.f32 %v3936_v44 }
0x1ef6   :  { %v3735_v41 = vsel %vm2193_vm8, %v13058_v39, 0.0 }
0x1ef7   :  { %3736 = vadd.xlane.f32.xlu1 %v3735_v41 }
0x1f01   :  { %v13060_v42 = vpop.eup %13059 }
0x1f02   :  { %v3943_v54 = vsel %vm2197_vm7, %v13060_v42, 0.0  ;;  %v13062_v61 = vpop.eup %13061 }
0x1f03   :  { %3944 = vadd.xlane.f32.xlu0 %v3943_v54  ;;  %v3940_v56 = vsel %vm2193_vm8, %v13062_v61, 0.0 }
0x1f08   :  { %3952 = vrot.lane.b32.xlu1 %v14122_v4, %s13343_s27 }
0x1f19   :  { %3745 = vrot.lane.b32.xlu0 %v14124_v7, %s13342_s26 }
0x1f1d   :  { %4206 = vrot.lane.b32.xlu0 %v14122_v4, %s13344_s28 }
0x1f21   :  { %4200 = vrot.lane.b32.xlu0 %v14124_v7, %s13336_s21 }
0x1f25   :  { %4494 = vrot.lane.b32.xlu0 %v14122_v4, %s13345_s29 }
0x1f29   :  { %4488 = vrot.lane.b32.xlu0 %v14124_v7, %s13338_s7 }
0x1f2c   :  { %3941 = vadd.xlane.f32.xlu1 %v3940_v56 }
0x1f3d   :  { %3950 = vrot.lane.b32.xlu1 %v14124_v7, %s13343_s27 }
0x1f41   :  { %4204 = vrot.lane.b32.xlu1 %v14124_v7, %s13344_s28 }
0x1f45   :  { %4202 = vrot.lane.b32.xlu1 %v14122_v4, %s13336_s21 }
0x1f49   :  { %4492 = vrot.lane.b32.xlu1 %v14124_v7, %s13345_s29 }
0x1f4d   :  { %4490 = vrot.lane.b32.xlu1 %v14122_v4, %s13338_s7 }
0x1f7e   :  { %v3740_v46 = vpop.xlane.xlu0 %3739 }
0x1f7f   :  { %13063 = vrcp.f32 %v3740_v46 }
0x1f80   :  { %v3737_v45 = vpop.xlane.xlu1 %3736 }
0x1f81   :  { %13065 = vrcp.f32 %v3737_v45 }
0x1f84   :  { %v3953_v57 = vpop.permute.xlu1 %3952 }
0x1f8c   :  { %v3945_v47 = vpop.xlane.xlu0 %3944  ;;  %v13064_v48 = vpop.eup %13063 }
0x1f8d   :  { %v3744_v55 = vmul.f32 %v13064_v48, %v13056_v10  ;;  %13067 = vrcp.f32 %v3945_v47 }
0x1f8e   :  { %v13066_v49 = vpop.eup %13065 }
0x1f8f   :  { %v3742_v51 = vmul.f32 %v13066_v49, %v13058_v39 }
0x1f90   :  { %v3746_v53 = vpop.permute.xlu0 %3745 }
0x1f91   :  { %12348 = vmatprep.subr.mxu0 %v3746_v53  ;;  %12350 = vmatprep.mubr.msk.f32.mxu0 %vm2193_vm8, %v3742_v51 }
0x1f92   :  { %12349 = vmatpush3.msra.mxu0 %v3746_v53 }
0x1f93   :  { %12351 = vmatmul.mubr.msk.f32.vlgmr.msra.gmra.mxu0 %vm2193_vm8, %v3744_v55  ;;  %12360 = vmatprep.subr.msk.mxu0 %vm2228_vm9, %v3953_v57 }
0x1f94   :  { %12361 = vmatpush3.msk.msra.mxu0 %vm2228_vm9, %v3953_v57  ;;  %v4207_v8 = vpop.permute.xlu0 %4206 }
0x1f98   :  { %v4201_v14 = vpop.permute.xlu0 %4200 }
0x1f9a   :  { %v13068_v60 = vpop.eup %13067 }
0x1f9b   :  { %v3949_v5 = vmul.f32 %v13068_v60, %v13060_v42 }
0x1f9c   :  { %v4495_v21 = vpop.permute.xlu0 %4494 }
0x1fa0   :  { %v4489_v2 = vpop.permute.xlu0 %4488 }
0x1fb5   :  { %v3942_v58 = vpop.xlane.xlu1 %3941 }
0x1fb6   :  { %13069 = vrcp.f32 %v3942_v58 }
0x1fb9   :  { %v3951_v59 = vpop.permute.xlu1 %3950 }
0x1fba   :  { %12362 = vmatprep.subr.mxu0 %v3951_v59 }
0x1fbb   :  { %12363 = vmatpush3.msra.mxu0 %v3951_v59  ;;  %v3628_v59 = vld [vmem:[%s15579_s4 + $0x2b8] sm:$0xff] }
0x1fbc   :  { %12367 = vmatprep.subr.mxu0 %v3627_v50 }
0x1fbd   :  { %v4205_v16 = vpop.permute.xlu1 %4204 }
0x1fc1   :  { %v4203_v22 = vpop.permute.xlu1 %4202 }
0x1fc3   :  { %v13070_v0 = vpop.eup %13069 }
0x1fc4   :  { %v3947_v63 = vmul.f32 %v13070_v0, %v13062_v61 }
0x1fc5   :  { %v4493_v23 = vpop.permute.xlu1 %4492 }
0x1fc6   :  { %12364 = vmatprep.mubr.msk.f32.mxu0 %vm2193_vm8, %v3947_v63 }
0x1fc7   :  { %12365 = vmatmul.mubr.msk.f32.vlgmr.msra.gmra.mxu0 %vm2193_vm8, %v3949_v5 }
0x1fc8   :  { %12368 = vmatpush3.msra.mxu0 %v3627_v50 }
0x1fc9   :  { %12377 = vmatprep.subr.msk.mxu0 %vm284_vm2, %v4207_v8  ;;  %v4491_v19 = vpop.permute.xlu1 %4490 }
0x2053   :  { %v12352_v11 = vpop.f32.mrf.mxu0 }
0x2055   :  { %v3824_v12 = vpop.f32.mrf.mxu0 }
0x2056   :  { %12374 = vmatprep.mubr.msk.f32.mxu1 %vm284_vm2, %v3824_v12 }
0x2057   :  { %12375 = vmatmul.mubr.msk.f32.vlgmr.msra.gmra.mxu1 %vm284_vm2, %v12352_v11 }
0x2087   :  { %v12366_v15 = vpop.f32.mrf.mxu0 }
0x2089   :  { %v4029_v20 = vpop.f32.mrf.mxu0 }
0x208a   :  { %12369 = vmatprep.mubr.msk.f32.mxu0 %vm284_vm2, %v4029_v20 }
0x208b   :  { %12370 = vmatmul.mubr.msk.f32.vlgmr.msra.gmra.mxu0 %vm284_vm2, %v12366_v15 }
0x208c   :  { %12378 = vmatpush3.xpose.msk.msra.mxu0 %vm284_vm2, %v4207_v8  ;;  %12381 = vmatprep.mubr.msk.f32.mxu0 %vm284_vm2, %v4201_v14 }
0x208d   :  { %12379 = vmatprep.subr.msk.mxu0 %vm284_vm2, %v4205_v16 }
0x2090   :  { %12380 = vmatpush3.xpose.msk.msra.mxu0 %vm284_vm2, %v4205_v16 }
0x2091   :  { %12396 = vmatprep.subr.msk.mxu0 %vm284_vm2, %v4495_v21 }
0x2093   :  { %12382 = vmatmul.mubr.msk.f32.vlgmr.msra.gmra.mxu0 %vm284_vm2, %v4203_v22 }
0x2094   :  { %12397 = vmatpush3.xpose.msk.msra.mxu0 %vm284_vm2, %v4495_v21  ;;  %12400 = vmatprep.mubr.msk.f32.mxu0 %vm284_vm2, %v4489_v2 }
0x2095   :  { %12398 = vmatprep.subr.msk.mxu0 %vm284_vm2, %v4493_v23 }
0x2098   :  { %12399 = vmatpush3.xpose.msk.msra.mxu0 %vm284_vm2, %v4493_v23 }
0x209b   :  { %12401 = vmatmul.mubr.msk.f32.vlgmr.msra.gmra.mxu0 %vm284_vm2, %v4491_v19 }
0x2117   :  { %v12376_v24 = vpop.f32.mrf.mxu1 }
0x2119   :  { %v4191_v15 = vpop.f32.mrf.mxu1 }
0x214b   :  { %v12371_v27 = vpop.f32.mrf.mxu0 }
0x214c   :  { %v14218_v17 = vadd.f32 %v12376_v24, %v12371_v27  ;;  %v3629_v24 = vld [vmem:[%s15579_s4 + $0x2c0] sm:$0xff] }
0x214d   :  { %v14220_v28 = vpop.f32.mrf.mxu0 }
0x2153   :  { %v12383_v29 = vpop.f32.mrf.mxu0 }
0x2154   :  { %v4292_v30 = vmul.f32 0.35355338, %v12383_v29  ;;  %v4192_v29 = vadd.f32 %v4191_v15, %v14220_v28 }
0x2155   :  { %v4282_v3 = vpop.f32.mrf.mxu0 }
0x2156   :  { %v4294_v31 = vadd.f32 %v13311_v6, %v4292_v30  ;;  %v4291_v32 = vmul.f32 0.35355338, %v4282_v3 }
0x2158   :  { %v4293_v33 = vadd.f32 %v13311_v6, %v4291_v32  ;;  %v4298_v40 = vsel %vm2197_vm7, %v4294_v31, -inf }
0x2159   :  { %4299 = vmax.xlane.f32.xlu1 %v4298_v40  ;;  %v11366_v40 = vld [vmem:[%s15579_s4 + $0x2c8] ss:$0 sm:$0xff] }
0x215a   :  { %v4295_v34 = vsel %vm2193_vm8, %v4293_v33, -inf }
0x215b   :  { %4296 = vmax.xlane.f32.xlu0 %v4295_v34  ;;  %v12402_v26 = vpop.f32.mrf.mxu0 }
0x215c   :  { %v4580_v47 = vmul.f32 0.35355338, %v12402_v26 }
0x215d   :  { %v4570_v25 = vpop.f32.mrf.mxu0 }
0x215e   :  { %v4579_v37 = vmul.f32 0.35355338, %v4570_v25  ;;  %v4582_v49 = vadd.f32 %v13311_v6, %v4580_v47 }
0x2160   :  { %v4581_v13 = vadd.f32 %v13311_v6, %v4579_v37  ;;  %v4586_v53 = vsel %vm2197_vm7, %v4582_v49, -inf }
0x2162   :  { %v4583_v35 = vsel %vm2193_vm8, %v4581_v13, -inf }
0x216a   :  { %4319 = vrot.lane.b32.xlu1 %v14122_v4, %s13346_s13 }
0x218e   :  { %4584 = vmax.xlane.f32.xlu1 %v4583_v35 }
0x21e2   :  { %v4300_v18 = vpop.xlane.xlu1 %4299 }
0x21e3   :  { %v4302_v36 = vsub.f32 %v4294_v31, %v4300_v18 }
0x21e4   :  { %v4297_v10 = vpop.xlane.xlu0 %4296 }
0x21e5   :  { %v4305_v38 = vmul.f32 1.442695, %v4302_v36  ;;  %v4301_v39 = vsub.f32 %v4293_v33, %v4297_v10 }
0x21e6   :  { %v4320_v41 = vpop.permute.xlu1 %4319 }
0x21e7   :  { %13071 = vpow2.f32 %v4305_v38  ;;  %v4303_v42 = vmul.f32 1.442695, %v4301_v39  ;;  %12384 = vmatprep.subr.msk.mxu1 %vm2228_vm9, %v4320_v41 }
0x21e8   :  { %12385 = vmatpush3.msk.msra.mxu1 %vm2228_vm9, %v4320_v41 }
0x21e9   :  { %13073 = vpow2.f32 %v4303_v42 }
0x21f4   :  { %v13072_v54 = vpop.eup %13071 }
0x21f5   :  { %v4310_v43 = vsel %vm2197_vm7, %v13072_v54, 0.0 }
0x21f6   :  { %v13074_v44 = vpop.eup %13073  ;;  %4311 = vadd.xlane.f32.xlu0 %v4310_v43 }
0x21f7   :  { %v4307_v61 = vsel %vm2193_vm8, %v13074_v44, 0.0 }
0x21fa   :  { %4308 = vadd.xlane.f32.xlu0 %v4307_v61  ;;  %v4827_v61 = vld [vmem:[%s15579_s4 + $0x2f0] sm:$0xff] }
0x2210   :  { %4317 = vrot.lane.b32.xlu0 %v14124_v7, %s13346_s13 }
0x2217   :  { %v4585_v56 = vpop.xlane.xlu1 %4584 }
0x2218   :  { %v4589_v46 = vsub.f32 %v4581_v13, %v4585_v56  ;;  %v4826_v56 = vld [vmem:[%s15579_s4 + $0x2e8] sm:$0xff] }
0x221a   :  { %v4591_v45 = vmul.f32 1.442695, %v4589_v46  ;;  %v4825_v46 = vld [vmem:[%s15579_s4 + $0x2e0] sm:$0xff] }
0x221c   :  { %13075 = vpow2.f32 %v4591_v45 }
0x2229   :  { %v13076_v48 = vpop.eup %13075 }
0x222a   :  { %v4595_v51 = vsel %vm2193_vm8, %v13076_v48, 0.0 }
0x222b   :  { %4596 = vadd.xlane.f32.xlu1 %v4595_v51 }
0x222f   :  { %4587 = vmax.xlane.f32.xlu0 %v4586_v53 }
0x223c   :  { %4607 = vrot.lane.b32.xlu1 %v14122_v4, %s13347_s14 }
0x227f   :  { %v4312_v55 = vpop.xlane.xlu0 %4311 }
0x2280   :  { %13077 = vrcp.f32 %v4312_v55 }
0x2283   :  { %v4309_v57 = vpop.xlane.xlu0 %4308 }
0x2284   :  { %13079 = vrcp.f32 %v4309_v57  ;;  %v11367_v57 = vld [vmem:[%s15579_s4 + $0x2d0] ss:$0 sm:$0xff] }
0x2287   :  { %v4318_v58 = vpop.permute.xlu0 %4317 }
0x2288   :  { %12386 = vmatprep.subr.mxu1 %v4318_v58 }
0x2289   :  { %12387 = vmatpush3.msra.mxu1 %v4318_v58 }
0x228a   :  { %12391 = vmatprep.subr.mxu1 %v3628_v59 }
0x228d   :  { %v13078_v50 = vpop.eup %13077 }
0x228e   :  { %v4316_v63 = vmul.f32 %v13078_v50, %v13072_v54 }
0x2291   :  { %v13080_v60 = vpop.eup %13079 }
0x2292   :  { %v4314_v0 = vmul.f32 %v13080_v60, %v13074_v44 }
0x2294   :  { %12388 = vmatprep.mubr.msk.f32.mxu1 %vm2193_vm8, %v4314_v0  ;;  %v11368_v0 = vld [vmem:[%s15579_s4 + $0x2d8] ss:$0 sm:$0xff] }
0x2295   :  { %12389 = vmatmul.mubr.msk.f32.vlgmr.msra.gmra.mxu1 %vm2193_vm8, %v4316_v63 }
0x2296   :  { %12392 = vmatpush3.msra.mxu1 %v3628_v59 }
0x22b4   :  { %v4597_v4 = vpop.xlane.xlu1 %4596 }
0x22b8   :  { %v4608_v5 = vpop.permute.xlu1 %4607  ;;  %v4588_v8 = vpop.xlane.xlu0 %4587 }
0x22b9   :  { %v4590_v9 = vsub.f32 %v4582_v49, %v4588_v8  ;;  %12403 = vmatprep.subr.msk.mxu1 %vm2228_vm9, %v4608_v5  ;;  %v4932_v8 = vld [vmem:[%s15579_s4 + $0x320] sm:$0xff] }
0x22bb   :  { %v4593_v11 = vmul.f32 1.442695, %v4590_v9  ;;  %v4931_v9 = vld [vmem:[%s15579_s4 + $0x318] sm:$0xff] }
0x22bd   :  { %13081 = vpow2.f32 %v4593_v11  ;;  %v4930_v11 = vld [vmem:[%s15579_s4 + $0x310] sm:$0xff] }
0x22be   :  { %13083 = vrcp.f32 %v4597_v4 }
0x22ca   :  { %v13082_v12 = vpop.eup %13081 }
0x22cb   :  { %v4598_v14 = vsel %vm2197_vm7, %v13082_v12, 0.0  ;;  %v13084_v16 = vpop.eup %13083 }
0x22cc   :  { %4599 = vadd.xlane.f32.xlu0 %v4598_v14  ;;  %v4602_v2 = vmul.f32 %v13084_v16, %v13076_v48  ;;  %v11369_v14 = vld [vmem:[%s15579_s4 + $0x300] ss:$0 sm:$0xff] }
0x22e2   :  { %4605 = vrot.lane.b32.xlu0 %v14124_v7, %s13347_s14 }
0x2355   :  { %v12390_v20 = vpop.f32.mrf.mxu1  ;;  %v4600_v21 = vpop.xlane.xlu0 %4599 }
0x2356   :  { %13085 = vrcp.f32 %v4600_v21 }
0x2357   :  { %v4396_v22 = vpop.f32.mrf.mxu1 }
0x2358   :  { %12393 = vmatprep.mubr.msk.f32.mxu1 %vm284_vm2, %v4396_v22 }
0x2359   :  { %12394 = vmatmul.mubr.msk.f32.vlgmr.msra.gmra.mxu1 %vm284_vm2, %v12390_v20  ;;  %v4606_v23 = vpop.permute.xlu0 %4605 }
0x235a   :  { %12404 = vmatpush3.msk.msra.mxu1 %vm2228_vm9, %v4608_v5  ;;  %12407 = vmatprep.mubr.msk.f32.mxu1 %vm2193_vm8, %v4602_v2 }
0x235b   :  { %12405 = vmatprep.subr.mxu1 %v4606_v23 }
0x235c   :  { %12406 = vmatpush3.msra.mxu1 %v4606_v23 }
0x235d   :  { %12410 = vmatprep.subr.mxu1 %v3629_v24 }
0x2363   :  { %v13086_v7 = vpop.eup %13085 }
0x2364   :  { %v4604_v19 = vmul.f32 %v13086_v7, %v13082_v12  ;;  %v4929_v12 = vld [vmem:[%s15579_s4 + $0x308] sm:$0xff] }
0x2366   :  { %12408 = vmatmul.mubr.msk.f32.vlgmr.msra.gmra.mxu1 %vm2193_vm8, %v4604_v19 }
0x2367   :  { %12411 = vmatpush3.msra.mxu1 %v3629_v24 }
0x2368   :  { %12426 = vmatprep.subr.mxu1 %v4932_v8 }
0x2419   :  { %v12395_v27 = vpop.f32.mrf.mxu1 }
0x241a   :  { %v4487_v30 = vadd.f32 %v12395_v27, %v14218_v17 }
0x241b   :  { %v4477_v3 = vpop.f32.mrf.mxu1 }
0x241c   :  { %v4486_v6 = vadd.f32 %v4477_v3, %v4192_v29 }
0x2426   :  { %v12409_v31 = vpop.f32.mrf.mxu1 }
0x2428   :  { %v4684_v32 = vpop.f32.mrf.mxu1 }
0x2429   :  { %12412 = vmatprep.mubr.msk.f32.mxu1 %vm284_vm2, %v4684_v32 }
0x242a   :  { %12413 = vmatmul.mubr.msk.f32.vlgmr.msra.gmra.mxu1 %vm284_vm2, %v12409_v31 }
0x242b   :  { %12427 = vmatpush3.msra.mxu1 %v4932_v8 }
0x242c   :  { %12428 = vmatprep.subr.mxu1 %v4931_v9 }
0x242d   :  { %12429 = vmatpush3.msra.mxu1 %v4931_v9 }
0x242e   :  { %12430 = vmatprep.subr.mxu1 %v4930_v11 }
0x242f   :  { %12431 = vmatpush3.msra.mxu1 %v4930_v11 }
0x2430   :  { %12432 = vmatprep.subr.mxu1 %v4929_v12 }
0x2431   :  { %12433 = vmatpush3.msra.mxu1 %v4929_v12 }
0x2432   :  { %12448 = vmatprep.subr.mxu1 %v13335_v1 }
0x24ea   :  { %v12414_v33 = vpop.f32.mrf.mxu1 }
0x24eb   :  { %v4775_v34 = vadd.f32 %v12414_v33, %v4487_v30 }
0x24ec   :  { %v4765_v26 = vpop.f32.mrf.mxu1 }
0x24ed   :  { %v4782_v25 = vadd.f32 %v11366_v40, %v4775_v34  ;;  %v4774_v37 = vadd.f32 %v4765_v26, %v4486_v6  ;;  %v11374_v6 = vld [vmem:[%s15579_s4 + $0x328] ss:$0 sm:$0xff] }
0x24ef   :  { %v4781_v28 = vadd.f32 %v11366_v40, %v4774_v37  ;;  %v4784_v17 = vadd.f32 %v4782_v25, %v14113_v52 }
0x24f1   :  { %v4790_v13 = vsel %vm3263_vm10, %v4784_v17, 0.0  ;;  %v4783_v35 = vadd.f32 %v4781_v28, %v14111_v62  ;;  %v4828_v62 = vld [vmem:[%s15579_s4 + $0x2f8] sm:$0xff] }
0x24f2   :  { %4791 = vadd.xlane.f32.xlu0 %v4790_v13  ;;  %12415 = vmatprep.subr.mxu0 %v4828_v62 }
0x24f3   :  { %v4787_v18 = vsel %vm394_vm3, %v4783_v35, 0.0  ;;  %12416 = vmatpush3.msra.mxu0 %v4828_v62 }
0x24f4   :  { %4788 = vadd.xlane.f32.xlu1 %v4787_v18  ;;  %12417 = vmatprep.subr.mxu0 %v4827_v61 }
0x24f5   :  { %12418 = vmatpush3.msra.mxu0 %v4827_v61 }
0x24f6   :  { %12419 = vmatprep.subr.mxu0 %v4826_v56 }
0x24f7   :  { %12420 = vmatpush3.msra.mxu0 %v4826_v56 }
0x24f8   :  { %12421 = vmatprep.subr.mxu0 %v4825_v46 }
0x24f9   :  { %12422 = vmatpush3.msra.mxu0 %v4825_v46 }
0x24fa   :  { %12437 = vmatprep.subr.mxu0 %v13335_v1 }
0x257b   :  { %v4792_v36 = vpop.xlane.xlu0 %4791 }
0x257c   :  { %v4794_v10 = vmul.f32 0.03125, %v4792_v36 }
0x257d   :  { %v4789_v38 = vpop.xlane.xlu1 %4788 }
0x257e   :  { %v4796_v39 = vsub.f32 %v4784_v17, %v4794_v10  ;;  %v4793_v41 = vmul.f32 0.03125, %v4789_v38 }
0x2580   :  { %v4795_v42 = vsub.f32 %v4783_v35, %v4793_v41  ;;  %v4798_v54 = vmul.f32 %v4796_v39, %v4796_v39 }
0x2582   :  { %v4802_v43 = vsel %vm3263_vm10, %v4798_v54, 0.0  ;;  %v4797_v44 = vmul.f32 %v4795_v42, %v4795_v42  ;;  %v5063_v54 = vld [vmem:[%s15579_s4 + $0x350] sm:$0xff] }
0x2583   :  { %4803 = vadd.xlane.f32.xlu0 %v4802_v43  ;;  %v5062_v43 = vld [vmem:[%s15579_s4 + $0x348] sm:$0xff] }
0x2584   :  { %v4799_v52 = vsel %vm394_vm3, %v4797_v44, 0.0  ;;  %v5061_v44 = vld [vmem:[%s15579_s4 + $0x340] sm:$0xff] }
0x2585   :  { %4800 = vadd.xlane.f32.xlu1 %v4799_v52 }
0x260c   :  { %v4804_v45 = vpop.xlane.xlu0 %4803 }
0x260d   :  { %v4806_v47 = vmul.f32 0.03125, %v4804_v45 }
0x260e   :  { %v4801_v48 = vpop.xlane.xlu1 %4800 }
0x260f   :  { %v4808_v49 = vadd.f32 1e-05, %v4806_v47  ;;  %v4805_v51 = vmul.f32 0.03125, %v4801_v48  ;;  %v11377_v48 = vld [vmem:[%s15579_s4 + $0x330] ss:$0 sm:$0xff] }
0x2611   :  { %13087 = vrsqrt.f32 %v4808_v49  ;;  %v4807_v53 = vadd.f32 1e-05, %v4805_v51  ;;  %v11378_v51 = vld [vmem:[%s15579_s4 + $0x338] ss:$0 sm:$0xff] }
0x2613   :  { %13089 = vrsqrt.f32 %v4807_v53 }
0x261e   :  { %v13088_v55 = vpop.eup %13087 }
0x261f   :  { %v4812_v58 = vmul.f32 %v13088_v55, %v4796_v39 }
0x2620   :  { %v13090_v59 = vpop.eup %13089 }
0x2621   :  { %v4811_v50 = vmul.f32 %v13090_v59, %v4795_v42  ;;  %v4818_v60 = vmul.f32 %v11367_v57, %v4812_v58  ;;  %v5064_v42 = vld [vmem:[%s15579_s4 + $0x358] sm:$0xff] }
0x2623   :  { %v4817_v63 = vmul.f32 %v11367_v57, %v4811_v50  ;;  %v4824_v5 = vadd.f32 %v11368_v0, %v4818_v60  ;;  %v5149_v60 = vld [vmem:[%s15579_s4 + $0x380] sm:$0xff] }
0x2625   :  { %v4823_v4 = vadd.f32 %v11368_v0, %v4817_v63  ;;  %v5148_v0 = vld [vmem:[%s15579_s4 + $0x378] sm:$0xff]  ;;  %v5147_v63 = vld [vmem:[%s15579_s4 + $0x370] sm:$0xff] }
0x2627   :  { %12423 = vmatprep.mubr.msk.f32.mxu0 %vm394_vm3, %v4823_v4 }
0x2628   :  { %12424 = vmatmul.mubr.msk.f32.vlgmr.msra.gmra.mxu0 %vm394_vm3, %v4824_v5 }
0x2629   :  { %12445 = vmatprep.mubr.msk.f32.mxu0 %vm13341_vm6, %v13335_v1  ;;  %12438 = vmatpush3.msra.mxu0 %v5064_v42  ;;  %v11391_v42 = vld [vmem:[%s15575_s0 + $0x58] sm:$0xff] }
0x262a   :  { %12439 = vmatprep.subr.mxu0 %v13335_v1 }
0x262b   :  { %12440 = vmatpush3.msra.mxu0 %v5063_v54  ;;  %v11390_v54 = vld [vmem:[%s15575_s0 + $0x50] sm:$0xff] }
0x262c   :  { %12441 = vmatprep.subr.mxu0 %v13335_v1 }
0x262d   :  { %12442 = vmatpush3.msra.mxu0 %v5062_v43  ;;  %v11393_v43 = vld [vmem:[%s15575_s0 + $0x68] sm:$0xff] }
0x262e   :  { %12443 = vmatprep.subr.mxu0 %v13335_v1 }
0x262f   :  { %12444 = vmatpush3.msra.mxu0 %v5061_v44  ;;  %v11392_v44 = vld [vmem:[%s15575_s0 + $0x60] sm:$0xff] }
0x2630   :  { %12459 = vmatprep.subr.mxu0 %v13335_v1 }
0x26e8   :  { %v12425_v15 = vpop.f32.mrf.mxu0 }
0x26e9   :  { %v4912_v16 = vadd.f32 %v12425_v15, %v11369_v14 }
0x26ea   :  { %v4906_v20 = vpop.f32.mrf.mxu0 }
0x26eb   :  { %v11373_v21 = vmul.f32 -1.442695, %v4912_v16  ;;  %v4907_v22 = vadd.f32 %v11369_v14, %v4906_v20 }
0x26ed   :  { %13091 = vpow2.f32 %v11373_v21  ;;  %v11372_v2 = vmul.f32 -1.442695, %v4907_v22  ;;  %v5335_v21 = vld [vmem:[%s15579_s4 + $0x3e0] sm:$0xff] }
0x26ef   :  { %13093 = vpow2.f32 %v11372_v2  ;;  %v5333_v2 = vld [vmem:[%s15579_s4 + $0x3d0] sm:$0xff] }
0x26fa   :  { %v13092_v23 = vpop.eup %13091 }
0x26fb   :  { %v4922_v7 = vadd.f32 1.0, %v13092_v23  ;;  %v5332_v23 = vld [vmem:[%s15579_s4 + $0x3c8] sm:$0xff] }
0x26fc   :  { %v13094_v19 = vpop.eup %13093 }
0x26fd   :  { %v4921_v24 = vadd.f32 1.0, %v13094_v19  ;;  %13095 = vrcp.f32 %v4922_v7  ;;  %v5635_v7 = vld [vmem:[%s15579_s4 + $0x78] sm:$0xff]  ;;  %v5634_v19 = vld [vmem:[%s15579_s4 + $0x70] sm:$0xff] }
0x26ff   :  { %13097 = vrcp.f32 %v4921_v24  ;;  %v5633_v24 = vld [vmem:[%s15579_s4 + $0x68] sm:$0xff] }
0x270a   :  { %v13096_v27 = vpop.eup %13095 }
0x270b   :  { %v4928_v3 = vmul.f32 %v13096_v27, %v4912_v16  ;;  %v5632_v27 = vld [vmem:[%s15579_s4 + $0x60] sm:$0xff] }
0x270c   :  { %v13098_v29 = vpop.eup %13097 }
0x270d   :  { %v4927_v30 = vmul.f32 %v13098_v29, %v4907_v22  ;;  %v5334_v22 = vld [vmem:[%s15579_s4 + $0x3d8] sm:$0xff] }
0x270e   :  { %v5631_v29 = vld [vmem:[%s15579_s4 + $0x58] sm:$0xff] }
0x270f   :  { %12434 = vmatprep.mubr.msk.f32.mxu1 %vm394_vm3, %v4927_v30  ;;  %v5630_v30 = vld [vmem:[%s15579_s4 + $0x50] sm:$0xff] }
0x2710   :  { %12435 = vmatmul.mubr.msk.f32.vlgmr.msra.gmra.mxu1 %vm394_vm3, %v4928_v3  ;;  %v11389_v3 = vld [vmem:[%s15575_s0 + $0x48] sm:$0xff] }
0x2711   :  { %12456 = vmatprep.mubr.msk.f32.mxu1 %vm13341_vm6, %v13335_v1  ;;  %12449 = vmatpush3.msra.mxu1 %v5149_v60 }
0x2712   :  { %12450 = vmatprep.subr.mxu1 %v13335_v1 }
0x2713   :  { %12451 = vmatpush3.msra.mxu1 %v5148_v0  ;;  %v5242_v0 = vld [vmem:[%s15579_s4 + $0x3a8] sm:$0xff] }
0x2714   :  { %12452 = vmatprep.subr.mxu1 %v13335_v1 }
0x2715   :  { %12453 = vmatpush3.msra.mxu1 %v5147_v63 }
0x2716   :  { %12454 = vmatprep.subr.mxu1 %v13335_v1 }
0x27d0   :  { %v12436_v31 = vpop.f32.mrf.mxu1 }
0x27d1   :  { %v5016_v32 = vadd.f32 %v12436_v31, %v11374_v6  ;;  %v5628_v31 = vld [vmem:[%s15579_s4 + $0x40] sm:$0xff] }
0x27d2   :  { %v5010_v33 = vpop.f32.mrf.mxu1 }
0x27d3   :  { %v5020_v40 = vadd.f32 %v5016_v32, %v4824_v5  ;;  %v5011_v34 = vadd.f32 %v11374_v6, %v5010_v33  ;;  %v5065_v5 = vld [vmem:[%s15579_s4 + $0x360] sm:$0x1]  ;;  %v5629_v6 = vld [vmem:[%s15579_s4 + $0x48] sm:$0xff]  ;;  %v5627_v32 = vld [vmem:[%s15579_s4 + $0x38] sm:$0xff] }
0x27d4   :  { %v5626_v33 = vld [vmem:[%s15579_s4 + $0x30] sm:$0xff] }
0x27d5   :  { %v5019_v26 = vadd.f32 %v5011_v34, %v4823_v4  ;;  %v5026_v25 = vsel %vm3263_vm10, %v5020_v40, 0.0  ;;  %v5146_v4 = vld [vmem:[%s15579_s4 + $0x368] sm:$0xff]  ;;  %v5624_v34 = vld [vmem:[%s15579_s4 + $0x20] sm:$0xff] }
0x27d6   :  { %5027 = vadd.xlane.f32.xlu1 %v5026_v25  ;;  %12455 = vmatpush3.msra.mxu1 %v5146_v4  ;;  %v5622_v25 = vld [vmem:[%s15579_s4 + $0x10] sm:$0xff]  ;;  %v5241_v4 = vld [vmem:[%s15579_s4 + $0x3a0] sm:$0xff] }
0x27d7   :  { %v5023_v37 = vsel %vm394_vm3, %v5019_v26, 0.0  ;;  %12470 = vmatprep.subr.mxu1 %v13335_v1 }
0x27da   :  { %5024 = vadd.xlane.f32.xlu1 %v5023_v37  ;;  %v5621_v37 = vld [vmem:[%s15579_s4 + $0x8] sm:$0xff] }
0x285f   :  { %v5028_v28 = vpop.xlane.xlu1 %5027 }
0x2860   :  { %v5030_v17 = vmul.f32 0.03125, %v5028_v28  ;;  %v5620_v28 = vld [vmem:[%s15579_s4] sm:$0xff] }
0x2862   :  { %v5032_v13 = vsub.f32 %v5020_v40, %v5030_v17  ;;  %v5625_v40 = vld [vmem:[%s15579_s4 + $0x28] sm:$0xff]  ;;  %v5643_v17 = vld [vmem:[%s15579_s4 + $0xb8] sm:$0xff] }
0x2863   :  { %v5025_v35 = vpop.xlane.xlu1 %5024 }
0x2864   :  { %v5029_v18 = vmul.f32 0.03125, %v5025_v35  ;;  %v5034_v36 = vmul.f32 %v5032_v13, %v5032_v13  ;;  %v5641_v35 = vld [vmem:[%s15579_s4 + $0xa8] sm:$0xff] }
0x2866   :  { %v5031_v10 = vsub.f32 %v5019_v26, %v5029_v18  ;;  %v5038_v38 = vsel %vm3263_vm10, %v5034_v36, 0.0  ;;  %v5623_v26 = vld [vmem:[%s15579_s4 + $0x18] sm:$0xff]  ;;  %v5640_v18 = vld [vmem:[%s15579_s4 + $0xa0] sm:$0xff] }
0x2867   :  { %5039 = vadd.xlane.f32.xlu0 %v5038_v38  ;;  %v5639_v36 = vld [vmem:[%s15579_s4 + $0x98] sm:$0xff]  ;;  %v5637_v38 = vld [vmem:[%s15579_s4 + $0x88] sm:$0xff] }
0x2868   :  { %v5033_v39 = vmul.f32 %v5031_v10, %v5031_v10 }
0x286a   :  { %v5035_v41 = vsel %vm394_vm3, %v5033_v39, 0.0  ;;  %v5636_v39 = vld [vmem:[%s15579_s4 + $0x80] sm:$0xff] }
0x286b   :  { %5036 = vadd.xlane.f32.xlu0 %v5035_v41  ;;  %v11388_v41 = vld [vmem:[%s15575_s0 + $0x40] sm:$0xff] }
0x28f0   :  { %v5040_v52 = vpop.xlane.xlu0 %5039 }
0x28f1   :  { %v5042_v62 = vmul.f32 0.03125, %v5040_v52  ;;  %v11395_v52 = vld [vmem:[%s15575_s0 + $0x78] sm:$0xff] }
0x28f3   :  { %v5044_v61 = vadd.f32 1e-05, %v5042_v62  ;;  %v11394_v62 = vld [vmem:[%s15575_s0 + $0x70] sm:$0xff] }
0x28f4   :  { %v5037_v56 = vpop.xlane.xlu0 %5036 }
0x28f5   :  { %13099 = vrsqrt.f32 %v5044_v61  ;;  %v5041_v46 = vmul.f32 0.03125, %v5037_v56  ;;  %v5150_v61 = vld [vmem:[%s15579_s4 + $0x388] sm:$0x1] }
0x28f7   :  { %v5043_v45 = vadd.f32 1e-05, %v5041_v46 }
0x28f9   :  { %13101 = vrsqrt.f32 %v5043_v45 }
0x2902   :  { %v13100_v47 = vpop.eup %13099 }
0x2903   :  { %v5048_v49 = vmul.f32 %v13100_v47, %v5032_v13  ;;  %v5642_v13 = vld [vmem:[%s15579_s4 + $0xb0] sm:$0xff] }
0x2905   :  { %v5054_v53 = vmul.f32 %v11377_v48, %v5048_v49 }
0x2906   :  { %v13102_v55 = vpop.eup %13101 }
0x2907   :  { %v5060_v57 = vadd.f32 %v11378_v51, %v5054_v53  ;;  %v5047_v58 = vmul.f32 %v13102_v55, %v5031_v10  ;;  %v5638_v10 = vld [vmem:[%s15579_s4 + $0x90] sm:$0xff] }
0x2909   :  { %12446 = vmatmul.mubr.msk.f32.vlgmr.msra.gmra.mxu0 %vm394_vm3, %v5060_v57  ;;  %v5053_v59 = vmul.f32 %v11377_v48, %v5047_v58 }
0x290a   :  { %12467 = vmatprep.mubr.msk.f32.mxu0 %vm13341_vm6, %v13335_v1 }
0x290b   :  { %v5059_v50 = vadd.f32 %v11378_v51, %v5053_v59  ;;  %v5244_v59 = vld [vmem:[%s15579_s4 + $0x3b8] sm:$0xff] }
0x290c   :  { %12460 = vmatpush3.msra.mxu0 %v5244_v59 }
0x290d   :  { %12461 = vmatprep.subr.mxu0 %v13335_v1 }
0x29c9   :  { %v5135_v8 = vpop.f32.mrf.mxu0 }
0x29ca   :  { %v5136_v9 = vadd.f32 %v5135_v8, %v5065_v5 }
0x29cb   :  { %v12447_v11 = vpop.f32.mrf.mxu0 }
0x29cc   :  { %v11380_v12 = vmul.f32 -1.442695, %v5136_v9 }
0x29ce   :  { %13103 = vpow2.f32 %v11380_v12 }
0x29db   :  { %v13104_v14 = vpop.eup %13103 }
0x29dc   :  { %v5142_v15 = vadd.f32 1.0, %v13104_v14 }
0x29de   :  { %13105 = vrcp.f32 %v5142_v15  ;;  %v11383_v15 = vld [vmem:[%s15579_s4 + $0x3e8] ss:$0 sm:$0xff] }
0x29eb   :  { %v13106_v16 = vpop.eup %13105 }
0x29ec   :  { %v5145_v20 = vmul.f32 %v13106_v16, %v5136_v9 }
0x29ee   :  { %12457 = vmatmul.mubr.msk.f32.vlgmr.msra.gmra.mxu1 %vm394_vm3, %v5145_v20 }
0x29ef   :  { %12471 = vmatpush3.msra.mxu1 %v5335_v21  ;;  %12478 = vmatprep.mubr.msk.f32.mxu1 %vm13341_vm6, %v13335_v1 }
0x29f0   :  { %12472 = vmatprep.subr.mxu1 %v13335_v1 }
0x29f1   :  { %12473 = vmatpush3.msra.mxu1 %v5334_v22 }
0x29f2   :  { %12474 = vmatprep.subr.mxu1 %v13335_v1 }
0x29f3   :  { %12475 = vmatpush3.msra.mxu1 %v5333_v2 }
0x29f4   :  { %12476 = vmatprep.subr.mxu1 %v13335_v1 }
0x29f5   :  { %12477 = vmatpush3.msra.mxu1 %v5332_v23 }
0x29f6   :  { %12479 = vmatmul.mubr.msk.f32.vlgmr.msra.gmra.mxu1 %vm394_vm3, %v5059_v50  ;;  %5661 = vmatprep.subr.mxu1 %v13335_v1  ;;  %v5243_v50 = vld [vmem:[%s15579_s4 + $0x3b0] sm:$0xff] }
0x29f7   :  { %5662 = vmatpush1.msra.mxu1 %v5635_v7  ;;  %11400 = vmatprep.mubr.msk.f32.mxu1 %vm63_vm0, %v11389_v3 }
0x29f8   :  { %5663 = vmatprep.subr.mxu1 %v13335_v1  ;;  %12462 = vmatpush3.msra.mxu0 %v5243_v50 }
0x29f9   :  { %5664 = vmatpush1.msra.mxu1 %v5634_v19  ;;  %12463 = vmatprep.subr.mxu0 %v13335_v1 }
0x29fa   :  { %5665 = vmatprep.subr.mxu1 %v13335_v1  ;;  %12464 = vmatpush3.msra.mxu0 %v5242_v0 }
0x29fb   :  { %5666 = vmatpush1.msra.mxu1 %v5633_v24  ;;  %12465 = vmatprep.subr.mxu0 %v13335_v1  ;;  %v5224_v24 = vld [vmem:[%s15579_s4 + $0x390] sm:$0x1] }
0x29fc   :  { %5667 = vmatprep.subr.mxu1 %v13335_v1  ;;  %12466 = vmatpush3.msra.mxu0 %v5241_v4 }
0x29fd   :  { %5668 = vmatpush1.msra.mxu1 %v5632_v27  ;;  %12481 = vmatprep.subr.mxu0 %v13335_v1 }
0x29fe   :  { %5669 = vmatprep.subr.mxu1 %v13335_v1 }
0x29ff   :  { %5670 = vmatpush1.msra.mxu1 %v5631_v29  ;;  %v5225_v29 = vld [vmem:[%s15579_s4 + $0x398] sm:$0x1] }
0x2a00   :  { %5671 = vmatprep.subr.mxu1 %v13335_v1 }
0x2a01   :  { %5672 = vmatpush1.msra.mxu1 %v5630_v30 }
0x2a02   :  { %5673 = vmatprep.subr.mxu1 %v13335_v1 }
0x2a03   :  { %5674 = vmatpush1.msra.mxu1 %v5629_v6  ;;  %v5422_v6 = vld [vmem:[%s15579_s4 + $0x3f8] sm:$0xff] }
0x2a04   :  { %5675 = vmatprep.subr.mxu1 %v13335_v1 }
0x2a05   :  { %5676 = vmatpush1.msra.mxu1 %v5628_v31 }
0x2a06   :  { %5677 = vmatprep.subr.mxu1 %v13335_v1 }
0x2a07   :  { %5678 = vmatpush1.msra.mxu1 %v5627_v32  ;;  %v11399_v32 = vld [vmem:[%s15579_s4 + $0xc0] ss:$0 sm:$0xff] }
0x2a08   :  { %5679 = vmatprep.subr.mxu1 %v13335_v1 }
0x2a09   :  { %5680 = vmatpush1.msra.mxu1 %v5626_v33  ;;  %v5421_v33 = vld [vmem:[%s15579_s4 + $0x3f0] sm:$0xff] }
0x2a0a   :  { %5681 = vmatprep.subr.mxu1 %v13335_v1 }
0x2a0b   :  { %5682 = vmatpush1.msra.mxu1 %v5625_v40  ;;  %v5751_v40 = vld [vmem:[%s15579_s4 + $0xd0] sm:$0xff] }
0x2a0c   :  { %5683 = vmatprep.subr.mxu1 %v13335_v1 }
0x2a0d   :  { %5684 = vmatpush1.msra.mxu1 %v5624_v34 }
0x2a0e   :  { %5685 = vmatprep.subr.mxu1 %v13335_v1 }
0x2a0f   :  { %5686 = vmatpush1.msra.mxu1 %v5623_v26 }
0x2a10   :  { %5687 = vmatprep.subr.mxu1 %v13335_v1 }
0x2a11   :  { %5688 = vmatpush1.msra.mxu1 %v5622_v25  ;;  %v5750_v25 = vld [vmem:[%s15579_s4 + $0xc8] sm:$0xff] }
0x2a12   :  { %5689 = vmatprep.subr.mxu1 %v13335_v1 }
0x2a13   :  { %5690 = vmatpush1.msra.mxu1 %v5621_v37 }
0x2a14   :  { %5691 = vmatprep.subr.mxu1 %v13335_v1 }
0x2a15   :  { %5692 = vmatpush1.msra.mxu1 %v5620_v28 }
0x2a16   :  { %5709 = vmatprep.subr.mxu1 %v13335_v1 }
0x2a17   :  { %5710 = vmatpush2.msra.mxu1 %v5643_v17 }
0x2a18   :  { %5711 = vmatprep.subr.mxu1 %v13335_v1 }
0x2a19   :  { %5712 = vmatpush2.msra.mxu1 %v5642_v13 }
0x2a1a   :  { %5713 = vmatprep.subr.mxu1 %v13335_v1 }
0x2a1b   :  { %5714 = vmatpush2.msra.mxu1 %v5641_v35 }
0x2a1c   :  { %5715 = vmatprep.subr.mxu1 %v13335_v1 }
0x2a1d   :  { %5716 = vmatpush2.msra.mxu1 %v5640_v18 }
0x2a1e   :  { %5717 = vmatprep.subr.mxu1 %v13335_v1 }
0x2a1f   :  { %5718 = vmatpush2.msra.mxu1 %v5639_v36 }
0x2a20   :  { %5719 = vmatprep.subr.mxu1 %v13335_v1 }
0x2a21   :  { %5720 = vmatpush2.msra.mxu1 %v5638_v10 }
0x2a22   :  { %5721 = vmatprep.subr.mxu1 %v13335_v1 }
0x2a23   :  { %5722 = vmatpush2.msra.mxu1 %v5637_v38  ;;  %v11404_v38 = vld [vmem:[%s15579_s4 + $0xd8] ss:$0 sm:$0xff] }
0x2a24   :  { %5723 = vmatprep.subr.mxu1 %v13335_v1 }
0x2a25   :  { %5724 = vmatpush2.msra.mxu1 %v5636_v39 }
0x2a26   :  { %5726 = vmatmul.mubr.f32.vlgmr.msra.gmra.mxu1 %v11388_v41 }
0x2a27   :  { %11401 = vmatprep.mubr.msk.f32.mxu1 %vm63_vm0, %v11391_v42 }
0x2a2a   :  { %5731 = vmatmul.mubr.f32.gmra.mxu1 %v11390_v54 }
0x2a2b   :  { %11402 = vmatprep.mubr.msk.f32.mxu1 %vm63_vm0, %v11393_v43 }
0x2a2e   :  { %5736 = vmatmul.mubr.f32.gmra.mxu1 %v11392_v44 }
0x2a2f   :  { %11403 = vmatprep.mubr.msk.f32.mxu1 %vm63_vm0, %v11395_v52 }
0x2a32   :  { %5741 = vmatmul.mubr.f32.gmra.mxu1 %v11394_v62 }
0x2aae   :  { %v5220_v56 = vpop.f32.mrf.mxu1 }
0x2aaf   :  { %v5221_v46 = vadd.f32 %v5220_v56, %v5150_v61 }
0x2ab0   :  { %v12458_v45 = vpop.f32.mrf.mxu1 }
0x2ab1   :  { %v5226_v47 = vsel %vm3263_vm10, %v5221_v46, 0.0 }
0x2ab2   :  { %5227 = vadd.xlane.f32.xlu1 %v5226_v47 }
0x2ab6   :  { %v5410_v48 = vpop.f32.mrf.mxu1 }
0x2ab7   :  { %v5411_v16 = vadd.f32 %v11383_v15, %v5410_v48 }
0x2ab8   :  { %v12480_v49 = vpop.f32.mrf.mxu1 }
0x2ab9   :  { %v11385_v20 = vmul.f32 -1.442695, %v5411_v16 }
0x2abb   :  { %13107 = vpow2.f32 %v11385_v20 }
0x2ac8   :  { %v13108_v23 = vpop.eup %13107 }
0x2ac9   :  { %v5417_v7 = vadd.f32 1.0, %v13108_v23 }
0x2ae6   :  { %v5727_v60 = vpop.f32.mrf.mxu1 }
0x2ae7   :  { %v14553_v26 = vadd.f32 %v11399_v32, %v5727_v60  ;;  %v14634_v60 = vld [vmem:[%s15579_s4 + $0x448] sm:$0xff] }
0x2ae8   :  { %v5729_v63 = vpop.f32.mrf.mxu1 }
0x2aea   :  { %v5732_v5 = vpop.f32.mrf.mxu1 }
0x2aeb   :  { %v14563_v28 = vadd.f32 %v11399_v32, %v5732_v5 }
0x2aec   :  { %v5734_v8 = vpop.f32.mrf.mxu1 }
0x2aee   :  { %v5737_v9 = vpop.f32.mrf.mxu1 }
0x2aef   :  { %v14559_v37 = vadd.f32 %v11399_v32, %v5737_v9 }
0x2af0   :  { %v5739_v11 = vpop.f32.mrf.mxu1 }
0x2af2   :  { %v5742_v12 = vpop.f32.mrf.mxu1 }
0x2af3   :  { %v14565_v17 = vadd.f32 %v11399_v32, %v5742_v12 }
0x2af4   :  { %v5744_v14 = vpop.f32.mrf.mxu1 }
0x2af5   :  { %v14643_v14 = vld [vmem:[%s15579_s4 + $0x440] sm:$0xff] }
0x2b3b   :  { %v5228_v51 = vpop.xlane.xlu1 %5227 }
0x2b3c   :  { %v5229_v53 = vmul.f32 0.03125, %v5228_v51  ;;  %v14623_v51 = vld [vmem:[%s15579_s4 + $0x438] sm:$0xff] }
0x2b3e   :  { %v5230_v55 = vsub.f32 %v5221_v46, %v5229_v53 }
0x2b40   :  { %v5231_v57 = vmul.f32 %v5230_v55, %v5230_v55 }
0x2b42   :  { %v5232_v58 = vsel %vm3263_vm10, %v5231_v57, 0.0  ;;  %v14628_v57 = vld [vmem:[%s15579_s4 + $0x430] sm:$0xff] }
0x2b43   :  { %5233 = vadd.xlane.f32.xlu0 %v5232_v58 }
0x2bcc   :  { %v5234_v21 = vpop.xlane.xlu0 %5233 }
0x2bcd   :  { %v5235_v22 = vmul.f32 0.03125, %v5234_v21 }
0x2bcf   :  { %v5236_v2 = vadd.f32 1e-05, %v5235_v22 }
0x2bd1   :  { %13109 = vrsqrt.f32 %v5236_v2 }
0x2bd2   :  { %13111 = vrcp.f32 %v5417_v7 }
0x2bde   :  { %v13110_v19 = vpop.eup %13109 }
0x2bdf   :  { %v5238_v27 = vmul.f32 %v13110_v19, %v5230_v55  ;;  %v13112_v31 = vpop.eup %13111 }
0x2be0   :  { %v5420_v34 = vmul.f32 %v13112_v31, %v5411_v16 }
0x2be1   :  { %v5239_v30 = vmul.f32 %v5238_v27, %v5224_v24 }
0x2be3   :  { %v5240_v3 = vadd.f32 %v5239_v30, %v5225_v29 }
0x2be5   :  { %12468 = vmatmul.mubr.msk.f32.vlgmr.msra.gmra.mxu0 %vm394_vm3, %v5240_v3 }
0x2be6   :  { %12482 = vmatpush3.msra.mxu0 %v5422_v6  ;;  %12485 = vmatprep.mubr.msk.f32.mxu0 %vm13341_vm6, %v13335_v1 }
0x2be7   :  { %12483 = vmatprep.subr.mxu0 %v13335_v1 }
0x2be8   :  { %12484 = vmatpush3.msra.mxu0 %v5421_v33 }
0x2be9   :  { %12486 = vmatmul.mubr.msk.f32.vlgmr.msra.gmra.mxu0 %vm172_vm1, %v5420_v34  ;;  %12488 = vmatprep.subr.mxu0 %v5751_v40 }
0x2bea   :  { %12489 = vmatpush3.msra.mxu0 %v5751_v40  ;;  %12492 = vmatprep.mubr.msk.f32.mxu0 %vm172_vm1, %v14553_v26 }
0x2beb   :  { %12490 = vmatprep.subr.mxu0 %v5750_v25 }
0x2bec   :  { %12491 = vmatpush3.msra.mxu0 %v5750_v25 }
0x2bed   :  { %12493 = vmatmul.mubr.msk.f32.vlgmr.msra.gmra.mxu0 %vm172_vm1, %v14563_v28 }
0x2bee   :  { %12495 = vmatprep.mubr.msk.f32.mxu0 %vm172_vm1, %v14559_v37 }
0x2bf1   :  { %12496 = vmatmul.mubr.msk.f32.gmra.mxu0 %vm172_vm1, %v14565_v17 }
0x2ca5   :  { %v14573_v13 = vpop.f32.mrf.mxu0 }
0x2ca7   :  { %v12469_v35 = vpop.f32.mrf.mxu0 }
0x2ca9   :  { %v14575_v18 = vpop.f32.mrf.mxu0 }
0x2cab   :  { %v12487_v36 = vpop.f32.mrf.mxu0 }
0x2cad   :  { %v12494_v10 = vpop.f32.mrf.mxu0 }
0x2cae   :  { %v14590_v52 = vadd.f32 %v12494_v10, %v11404_v38 }
0x2caf   :  { %v5835_v39 = vpop.f32.mrf.mxu0 }
0x2cb0   :  { %v14580_v41 = vadd.f32 %v11404_v38, %v5835_v39 }
0x2cb1   :  { %v12497_v42 = vpop.f32.mrf.mxu0 }
0x2cb2   :  { %v14582_v54 = vadd.f32 %v12497_v42, %v11404_v38  ;;  %12506 = vmatprep.mubr.msk.f32.mxu0 %vm284_vm2, %v14580_v41 }
0x2cb3   :  { %v5845_v43 = vpop.f32.mrf.mxu0 }
0x2cb4   :  { %v14586_v44 = vadd.f32 %v11404_v38, %v5845_v43  ;;  %5866 = vrot.lane.b32.xlu1 %v14582_v54, %s13336_s21 }
0x2cb6   :  { %5864 = vrot.lane.b32.xlu0 %v14586_v44, %s13336_s21 }
0x2cb8   :  { %5862 = vrot.lane.b32.xlu1 %v14590_v52, %s13336_s21 }
0x2cba   :  { %6025 = vrot.lane.b32.xlu0 %v14586_v44, %s13337_s22 }
0x2cbc   :  { %5860 = vrot.lane.b32.xlu1 %v14580_v41, %s13336_s21 }
0x2cc0   :  { %6027 = vrot.lane.b32.xlu1 %v14582_v54, %s13337_s22 }
0x2cc4   :  { %6023 = vrot.lane.b32.xlu1 %v14590_v52, %s13337_s22 }
0x2cc8   :  { %6021 = vrot.lane.b32.xlu1 %v14580_v41, %s13337_s22 }
0x2d26   :  { %v5867_v62 = vpop.permute.xlu1 %5866 }
0x2d27   :  { %12498 = vmatprep.subr.msk.mxu0 %vm284_vm2, %v5867_v62 }
0x2d28   :  { %12499 = vmatpush3.xpose.msk.msra.mxu0 %vm284_vm2, %v5867_v62  ;;  %v5865_v61 = vpop.permute.xlu0 %5864 }
0x2d29   :  { %12500 = vmatprep.subr.msk.mxu0 %vm284_vm2, %v5865_v61 }
0x2d2a   :  { %v5863_v56 = vpop.permute.xlu1 %5862 }
0x2d2c   :  { %12501 = vmatpush3.xpose.msk.msra.mxu0 %vm284_vm2, %v5865_v61  ;;  %v6026_v48 = vpop.permute.xlu0 %6025 }
0x2d2d   :  { %12502 = vmatprep.subr.msk.mxu0 %vm284_vm2, %v5863_v56 }
0x2d2e   :  { %v5861_v46 = vpop.permute.xlu1 %5860 }
0x2d30   :  { %12503 = vmatpush3.xpose.msk.msra.mxu0 %vm284_vm2, %v5863_v56 }
0x2d31   :  { %12504 = vmatprep.subr.msk.mxu0 %vm284_vm2, %v5861_v46 }
0x2d32   :  { %v6028_v45 = vpop.permute.xlu1 %6027 }
0x2d34   :  { %12505 = vmatpush3.xpose.msk.msra.mxu0 %vm284_vm2, %v5861_v46 }
0x2d35   :  { %12512 = vmatprep.subr.mxu0 %v6028_v45 }
0x2d36   :  { %v6024_v47 = vpop.permute.xlu1 %6023 }
0x2d37   :  { %12507 = vmatmul.mubr.msk.f32.vlgmr.msra.gmra.mxu0 %vm284_vm2, %v14590_v52 }
0x2d38   :  { %12509 = vmatprep.mubr.msk.f32.mxu0 %vm284_vm2, %v14586_v44  ;;  %12513 = vmatpush3.msra.mxu0 %v6028_v45 }
0x2d39   :  { %12514 = vmatprep.subr.mxu0 %v6026_v48 }
0x2d3a   :  { %12515 = vmatpush3.msra.mxu0 %v6026_v48  ;;  %v6022_v49 = vpop.permute.xlu1 %6021 }
0x2d3b   :  { %12510 = vmatmul.mubr.msk.f32.gmra.mxu0 %vm284_vm2, %v14582_v54  ;;  %12516 = vmatprep.subr.mxu0 %v6024_v47 }
0x2d3c   :  { %12517 = vmatpush3.msra.mxu0 %v6024_v47 }
0x2d3d   :  { %12518 = vmatprep.subr.mxu0 %v6022_v49 }
0x2d3e   :  { %12519 = vmatpush3.msra.mxu0 %v6022_v49 }
0x2df7   :  { %v12508_v53 = vpop.f32.mrf.mxu0 }
0x2df8   :  { %v5970_v55 = vmul.f32 0.35355338, %v12508_v53 }
0x2df9   :  { %v5950_v58 = vpop.f32.mrf.mxu0 }
0x2dfa   :  { %v5974_v59 = vadd.f32 %v5970_v55, %v14623_v51  ;;  %v5969_v50 = vmul.f32 0.35355338, %v5950_v58 }
0x2dfb   :  { %v12511_v0 = vpop.f32.mrf.mxu0 }
0x2dfc   :  { %v5973_v63 = vadd.f32 %v5969_v50, %v14628_v57  ;;  %v5972_v4 = vmul.f32 0.35355338, %v12511_v0  ;;  %v5980_v5 = vsel %vm394_vm3, %v5974_v59, -inf }
0x2dfd   :  { %5981 = vmax.xlane.f32.xlu1 %v5980_v5  ;;  %v5960_v8 = vpop.f32.mrf.mxu0 }
0x2dfe   :  { %v5976_v9 = vadd.f32 %v5972_v4, %v14634_v60  ;;  %v5971_v11 = vmul.f32 0.35355338, %v5960_v8  ;;  %v5977_v12 = vsel %vm394_vm3, %v5973_v63, -inf  ;;  %v5854_v4 = vld [vmem:[%s15579_s4 + $0xe0] sm:$0xff] }
0x2dff   :  { %5978 = vmax.xlane.f32.xlu0 %v5977_v12  ;;  %12562 = vmatprep.subr.mxu1 %v5854_v4 }
0x2e00   :  { %v5975_v15 = vadd.f32 %v5971_v11, %v14643_v14  ;;  %v5986_v16 = vsel %vm394_vm3, %v5976_v9, -inf  ;;  %12563 = vmatpush3.msra.mxu1 %v5854_v4  ;;  %v5855_v4 = vld [vmem:[%s15579_s4 + $0xe8] sm:$0xff] }
0x2e02   :  { %v5983_v20 = vsel %vm394_vm3, %v5975_v15, -inf }
0x2e03   :  { %5987 = vmax.xlane.f32.xlu0 %v5986_v16 }
0x2e07   :  { %5984 = vmax.xlane.f32.xlu0 %v5983_v20 }
0x2e0e   :  { %6142 = vrot.lane.b32.xlu1 %v14586_v44, %s13338_s7 }
0x2e1d   :  { %6144 = vrot.lane.b32.xlu0 %v14582_v54, %s13338_s7 }
0x2e86   :  { %v5982_v21 = vpop.xlane.xlu1 %5981 }
0x2e87   :  { %v5990_v22 = vsub.f32 %v5974_v59, %v5982_v21 }
0x2e88   :  { %v5979_v2 = vpop.xlane.xlu0 %5978 }
0x2e89   :  { %v5995_v23 = vmul.f32 1.442695, %v5990_v22  ;;  %v5989_v7 = vsub.f32 %v5973_v63, %v5979_v2 }
0x2e8a   :  { %v6143_v38 = vpop.permute.xlu1 %6142 }
0x2e8b   :  { %13113 = vpow2.f32 %v5995_v23  ;;  %v5993_v19 = vmul.f32 1.442695, %v5989_v7 }
0x2e8c   :  { %v5988_v24 = vpop.xlane.xlu0 %5987 }
0x2e8d   :  { %13115 = vpow2.f32 %v5993_v19  ;;  %v5992_v32 = vsub.f32 %v5976_v9, %v5988_v24 }
0x2e8f   :  { %v5999_v40 = vmul.f32 1.442695, %v5992_v32 }
0x2e90   :  { %v5985_v27 = vpop.xlane.xlu0 %5984 }
0x2e91   :  { %v5991_v33 = vsub.f32 %v5975_v15, %v5985_v27  ;;  %13117 = vpow2.f32 %v5999_v40 }
0x2e93   :  { %v5997_v34 = vmul.f32 1.442695, %v5991_v33 }
0x2e94   :  { %v6145_v29 = vpop.permute.xlu0 %6144 }
0x2e95   :  { %12526 = vmatprep.subr.msk.mxu0 %vm284_vm2, %v6145_v29  ;;  %13119 = vpow2.f32 %v5997_v34 }
0x2e98   :  { %v13114_v30 = vpop.eup %13113 }
0x2e99   :  { %v6004_v3 = vsel %vm394_vm3, %v13114_v30, 0.0 }
0x2e9a   :  { %v13116_v6 = vpop.eup %13115  ;;  %6005 = vadd.xlane.f32.xlu0 %v6004_v3 }
0x2e9b   :  { %v6001_v31 = vsel %vm394_vm3, %v13116_v6, 0.0 }
0x2e9c   :  { %6002 = vadd.xlane.f32.xlu1 %v6001_v31 }
0x2e9e   :  { %v13118_v25 = vpop.eup %13117 }
0x2e9f   :  { %v6010_v36 = vsel %vm394_vm3, %v13118_v25, 0.0 }
0x2ea2   :  { %v13120_v35 = vpop.eup %13119 }
0x2ea3   :  { %v6007_v10 = vsel %vm394_vm3, %v13120_v35, 0.0 }
0x2ead   :  { %6138 = vrot.lane.b32.xlu1 %v14580_v41, %s13338_s7 }
0x2eb0   :  { %6140 = vrot.lane.b32.xlu0 %v14590_v52, %s13338_s7 }
0x2ecf   :  { %6011 = vadd.xlane.f32.xlu0 %v6010_v36 }
0x2ed1   :  { %6008 = vadd.xlane.f32.xlu1 %v6007_v10 }
0x2ee2   :  { %6132 = vrot.lane.b32.xlu1 %v14590_v52, %s13339_s8 }
0x2ee5   :  { %6130 = vrot.lane.b32.xlu0 %v14580_v41, %s13339_s8 }
0x2ee6   :  { %6136 = vrot.lane.b32.xlu1 %v14582_v54, %s13339_s8 }
0x2ee9   :  { %6134 = vrot.lane.b32.xlu0 %v14586_v44, %s13339_s8 }
0x2f23   :  { %v6006_v39 = vpop.xlane.xlu0 %6005 }
0x2f24   :  { %13121 = vrcp.f32 %v6006_v39 }
0x2f25   :  { %v6003_v42 = vpop.xlane.xlu1 %6002 }
0x2f26   :  { %13123 = vrcp.f32 %v6003_v42 }
0x2f27   :  { %v6141_v46 = vpop.permute.xlu0 %6140 }
0x2f29   :  { %v6139_v45 = vpop.permute.xlu1 %6138 }
0x2f31   :  { %v13122_v43 = vpop.eup %13121 }
0x2f32   :  { %v6016_v56 = vmul.f32 %v13122_v43, %v13114_v30 }
0x2f33   :  { %v13124_v62 = vpop.eup %13123 }
0x2f34   :  { %v6014_v61 = vmul.f32 %v13124_v62, %v13116_v6 }
0x2f36   :  { %12520 = vmatprep.mubr.msk.f32.mxu0 %vm394_vm3, %v6014_v61 }
0x2f37   :  { %12521 = vmatmul.mubr.msk.f32.vlgmr.msra.gmra.mxu0 %vm394_vm3, %v6016_v56 }
0x2f38   :  { %12527 = vmatpush3.xpose.msk.msra.mxu0 %vm284_vm2, %v6145_v29 }
0x2f39   :  { %12528 = vmatprep.subr.msk.mxu0 %vm284_vm2, %v6143_v38 }
0x2f3c   :  { %12529 = vmatpush3.xpose.msk.msra.mxu0 %vm284_vm2, %v6143_v38 }
0x2f3d   :  { %12530 = vmatprep.subr.msk.mxu0 %vm284_vm2, %v6141_v46 }
0x2f40   :  { %12531 = vmatpush3.xpose.msk.msra.mxu0 %vm284_vm2, %v6141_v46 }
0x2f41   :  { %12532 = vmatprep.subr.msk.mxu0 %vm284_vm2, %v6139_v45 }
0x2f44   :  { %12533 = vmatpush3.xpose.msk.msra.mxu0 %vm284_vm2, %v6139_v45 }
0x2f58   :  { %v6012_v47 = vpop.xlane.xlu0 %6011 }
0x2f59   :  { %13125 = vrcp.f32 %v6012_v47 }
0x2f5a   :  { %v6009_v48 = vpop.xlane.xlu1 %6008 }
0x2f5b   :  { %13127 = vrcp.f32 %v6009_v48 }
0x2f5c   :  { %v6131_v58 = vpop.permute.xlu0 %6130 }
0x2f5e   :  { %v6133_v50 = vpop.permute.xlu1 %6132 }
0x2f60   :  { %v6135_v0 = vpop.permute.xlu0 %6134 }
0x2f62   :  { %v6137_v63 = vpop.permute.xlu1 %6136 }
0x2f66   :  { %v13126_v49 = vpop.eup %13125 }
0x2f67   :  { %v6020_v59 = vmul.f32 %v13126_v49, %v13118_v25 }
0x2f68   :  { %v13128_v53 = vpop.eup %13127 }
0x2f69   :  { %v6018_v55 = vmul.f32 %v13128_v53, %v13120_v35 }
0x2f6b   :  { %12523 = vmatprep.mubr.msk.f32.mxu0 %vm394_vm3, %v6018_v55 }
0x2f6c   :  { %12524 = vmatmul.mubr.msk.f32.gmra.mxu0 %vm394_vm3, %v6020_v59 }
0x2f6d   :  { %12534 = vmatprep.mubr.msk.f32.mxu0 %vm284_vm2, %v6131_v58 }
0x2f70   :  { %12535 = vmatmul.mubr.msk.f32.vlgmr.msra.gmra.mxu0 %vm284_vm2, %v6133_v50 }
0x2f71   :  { %12537 = vmatprep.mubr.msk.f32.mxu0 %vm284_vm2, %v6135_v0 }
0x2f74   :  { %12538 = vmatmul.mubr.msk.f32.gmra.mxu0 %vm284_vm2, %v6137_v63 }
0x2ff7   :  { %v12522_v5 = vpop.f32.mrf.mxu0 }
0x2ff9   :  { %v6111_v8 = vpop.f32.mrf.mxu0 }
0x2ffa   :  { %12564 = vmatprep.mubr.msk.f32.mxu1 %vm284_vm2, %v6111_v8 }
0x2ffb   :  { %12565 = vmatmul.mubr.msk.f32.vlgmr.msra.gmra.mxu1 %vm284_vm2, %v12522_v5 }
0x302c   :  { %v12525_v9 = vpop.f32.mrf.mxu0 }
0x302e   :  { %v6121_v11 = vpop.f32.mrf.mxu0 }
0x302f   :  { %12567 = vmatprep.mubr.msk.f32.mxu1 %vm284_vm2, %v6121_v11 }
0x3030   :  { %v12536_v12 = vpop.f32.mrf.mxu0  ;;  %12568 = vmatmul.mubr.msk.f32.gmra.mxu1 %vm284_vm2, %v12525_v9 }
0x3031   :  { %v6248_v15 = vmul.f32 0.35355338, %v12536_v12 }
0x3032   :  { %v6228_v16 = vpop.f32.mrf.mxu0 }
0x3033   :  { %v6252_v20 = vadd.f32 %v6248_v15, %v14623_v51  ;;  %v6247_v21 = vmul.f32 0.35355338, %v6228_v16  ;;  %v11441_v16 = vld [vmem:[%s15579_s4 + $0xf0] ss:$0 sm:$0xff] }
0x3034   :  { %v12539_v22 = vpop.f32.mrf.mxu0 }
0x3035   :  { %v6251_v2 = vadd.f32 %v6247_v21, %v14628_v57  ;;  %v6258_v23 = vsel %vm394_vm3, %v6252_v20, -inf  ;;  %v6250_v19 = vmul.f32 0.35355338, %v12539_v22 }
0x3036   :  { %6259 = vmax.xlane.f32.xlu1 %v6258_v23  ;;  %v6238_v7 = vpop.f32.mrf.mxu0 }
0x3037   :  { %v6249_v24 = vmul.f32 0.35355338, %v6238_v7  ;;  %v6255_v27 = vsel %vm394_vm3, %v6251_v2, -inf  ;;  %v6254_v30 = vadd.f32 %v6250_v19, %v14634_v60 }
0x3038   :  { %6256 = vmax.xlane.f32.xlu0 %v6255_v27 }
0x3039   :  { %v6253_v29 = vadd.f32 %v6249_v24, %v14643_v14  ;;  %v6264_v51 = vsel %vm394_vm3, %v6254_v30, -inf }
0x303b   :  { %v6261_v3 = vsel %vm394_vm3, %v6253_v29, -inf }
0x303c   :  { %6262 = vmax.xlane.f32.xlu0 %v6261_v3 }
0x3040   :  { %6265 = vmax.xlane.f32.xlu0 %v6264_v51 }
0x3047   :  { %6305 = vrot.lane.b32.xlu1 %v14582_v54, %s13340_s11 }
0x30bb   :  { %v12566_v12 = vpop.f32.mrf.mxu1 }
0x30bd   :  { %v6583_v21 = vpop.f32.mrf.mxu1 }
0x30bf   :  { %v6260_v57 = vpop.xlane.xlu1 %6259 }
0x30c0   :  { %v6268_v6 = vsub.f32 %v6252_v20, %v6260_v57 }
0x30c1   :  { %v6257_v31 = vpop.xlane.xlu0 %6256 }
0x30c2   :  { %v6273_v32 = vmul.f32 1.442695, %v6268_v6  ;;  %v6267_v33 = vsub.f32 %v6251_v2, %v6257_v31 }
0x30c3   :  { %v6306_v40 = vpop.permute.xlu1 %6305 }
0x30c4   :  { %13129 = vpow2.f32 %v6273_v32  ;;  %v6271_v34 = vmul.f32 1.442695, %v6267_v33  ;;  %12540 = vmatprep.subr.mxu0 %v6306_v40 }
0x30c5   :  { %12541 = vmatpush3.msra.mxu0 %v6306_v40  ;;  %v6263_v60 = vpop.xlane.xlu0 %6262 }
0x30c6   :  { %13131 = vpow2.f32 %v6271_v34  ;;  %v6269_v43 = vsub.f32 %v6253_v29, %v6263_v60 }
0x30c8   :  { %v6275_v62 = vmul.f32 1.442695, %v6269_v43 }
0x30c9   :  { %v6266_v14 = vpop.xlane.xlu0 %6265 }
0x30ca   :  { %v6270_v25 = vsub.f32 %v6254_v30, %v6266_v14 }
0x30cc   :  { %v6277_v35 = vmul.f32 1.442695, %v6270_v25 }
0x30ce   :  { %13133 = vpow2.f32 %v6277_v35 }
0x30cf   :  { %13135 = vpow2.f32 %v6275_v62 }
0x30d1   :  { %v13130_v36 = vpop.eup %13129 }
0x30d2   :  { %v6282_v10 = vsel %vm394_vm3, %v13130_v36, 0.0 }
0x30d3   :  { %v13132_v54 = vpop.eup %13131  ;;  %6283 = vadd.xlane.f32.xlu0 %v6282_v10 }
0x30d4   :  { %v6279_v38 = vsel %vm394_vm3, %v13132_v54, 0.0 }
0x30d5   :  { %6280 = vadd.xlane.f32.xlu1 %v6279_v38 }
0x30db   :  { %v13134_v39 = vpop.eup %13133 }
0x30dc   :  { %v6288_v42 = vsel %vm394_vm3, %v13134_v39, 0.0  ;;  %v13136_v61 = vpop.eup %13135 }
0x30dd   :  { %6289 = vadd.xlane.f32.xlu0 %v6288_v42  ;;  %v6285_v56 = vsel %vm394_vm3, %v13136_v61, 0.0 }
0x30e6   :  { %6301 = vrot.lane.b32.xlu1 %v14590_v52, %s13340_s11 }
0x30f0   :  { %v12569_v29 = vpop.f32.mrf.mxu1 }
0x30f2   :  { %v6593_v57 = vpop.f32.mrf.mxu1 }
0x30f3   :  { %6303 = vrot.lane.b32.xlu0 %v14586_v44, %s13340_s11 }
0x310a   :  { %6286 = vadd.xlane.f32.xlu1 %v6285_v56 }
0x311b   :  { %6299 = vrot.lane.b32.xlu1 %v14580_v41, %s13340_s11 }
0x315c   :  { %v6284_v45 = vpop.xlane.xlu0 %6283 }
0x315e   :  { %v6281_v46 = vpop.xlane.xlu1 %6280 }
0x315f   :  { %13137 = vrcp.f32 %v6281_v46 }
0x3160   :  { %13139 = vrcp.f32 %v6284_v45 }
0x3162   :  { %v6302_v49 = vpop.permute.xlu1 %6301 }
0x3166   :  { %v6290_v47 = vpop.xlane.xlu0 %6289 }
0x3167   :  { %13141 = vrcp.f32 %v6290_v47 }
0x316a   :  { %v6304_v48 = vpop.permute.xlu0 %6303 }
0x316b   :  { %12542 = vmatprep.subr.mxu0 %v6304_v48 }
0x316c   :  { %v13138_v52 = vpop.eup %13137  ;;  %12543 = vmatpush3.msra.mxu0 %v6304_v48 }
0x316d   :  { %12544 = vmatprep.subr.mxu0 %v6302_v49  ;;  %v6292_v44 = vmul.f32 %v13138_v52, %v13132_v54  ;;  %v13140_v55 = vpop.eup %13139  ;;  %v6686_v52 = vld [vmem:[%s15579_s4 + $0x110] sm:$0xff] }
0x316e   :  { %12545 = vmatpush3.msra.mxu0 %v6302_v49  ;;  %v6294_v58 = vmul.f32 %v13140_v55, %v13130_v36  ;;  %v6685_v49 = vld [vmem:[%s15579_s4 + $0x108] sm:$0xff] }
0x316f   :  { %12548 = vmatprep.mubr.msk.f32.mxu0 %vm394_vm3, %v6292_v44 }
0x3174   :  { %v13142_v59 = vpop.eup %13141 }
0x3175   :  { %v6298_v63 = vmul.f32 %v13142_v59, %v13134_v39 }
0x3193   :  { %v6287_v53 = vpop.xlane.xlu1 %6286 }
0x3194   :  { %13143 = vrcp.f32 %v6287_v53 }
0x3197   :  { %v6300_v41 = vpop.permute.xlu1 %6299 }
0x3198   :  { %12546 = vmatprep.subr.mxu0 %v6300_v41 }
0x3199   :  { %12547 = vmatpush3.msra.mxu0 %v6300_v41 }
0x319a   :  { %12549 = vmatmul.mubr.msk.f32.vlgmr.msra.gmra.mxu0 %vm394_vm3, %v6294_v58  ;;  %12554 = vmatprep.subr.mxu0 %v5855_v4 }
0x319b   :  { %12555 = vmatpush3.msra.mxu0 %v5855_v4 }
0x319c   :  { %12570 = vmatprep.subr.mxu0 %v6686_v52 }
0x31a1   :  { %v13144_v50 = vpop.eup %13143 }
0x31a2   :  { %v6296_v0 = vmul.f32 %v13144_v50, %v13136_v61 }
0x31a4   :  { %12551 = vmatprep.mubr.msk.f32.mxu0 %vm394_vm3, %v6296_v0 }
0x31a5   :  { %12552 = vmatmul.mubr.msk.f32.gmra.mxu0 %vm394_vm3, %v6298_v63 }
0x325a   :  { %v12550_v5 = vpop.f32.mrf.mxu0 }
0x325c   :  { %v6389_v8 = vpop.f32.mrf.mxu0 }
0x325d   :  { %12556 = vmatprep.mubr.msk.f32.mxu0 %vm284_vm2, %v6389_v8 }
0x325e   :  { %12557 = vmatmul.mubr.msk.f32.vlgmr.msra.gmra.mxu0 %vm284_vm2, %v12550_v5 }
0x325f   :  { %12571 = vmatpush3.msra.mxu0 %v6686_v52 }
0x3260   :  { %12572 = vmatprep.subr.mxu0 %v6685_v49 }
0x3261   :  { %12573 = vmatpush3.msra.mxu0 %v6685_v49 }
0x3262   :  { %12590 = vmatprep.subr.mxu0 %v13335_v1 }
0x3265   :  { %v12553_v9 = vpop.f32.mrf.mxu0 }
0x3267   :  { %v6399_v11 = vpop.f32.mrf.mxu0 }
0x3268   :  { %12559 = vmatprep.mubr.msk.f32.mxu0 %vm284_vm2, %v6399_v11  ;;  %v11442_v11 = vld [vmem:[%s15579_s4 + $0xf8] ss:$0 sm:$0xff] }
0x3269   :  { %12560 = vmatmul.mubr.msk.f32.gmra.mxu0 %vm284_vm2, %v12553_v9 }
0x331e   :  { %v12558_v15 = vpop.f32.mrf.mxu0 }
0x331f   :  { %v6589_v20 = vadd.f32 %v12566_v12, %v12558_v15 }
0x3320   :  { %v6486_v22 = vpop.f32.mrf.mxu0 }
0x3321   :  { %v6608_v2 = vadd.f32 %v11441_v16, %v6589_v20  ;;  %v6584_v23 = vadd.f32 %v6583_v21, %v6486_v22  ;;  %v11443_v21 = vld [vmem:[%s15579_s4 + $0x100] ss:$0 sm:$0xff] }
0x3323   :  { %v6607_v7 = vadd.f32 %v11441_v16, %v6584_v23  ;;  %v6612_v19 = vadd.f32 %v6608_v2, %v14563_v28 }
0x3325   :  { %v6620_v24 = vsel %vm172_vm1, %v6612_v19, 0.0  ;;  %v6611_v27 = vadd.f32 %v6607_v7, %v14553_v26 }
0x3326   :  { %6621 = vadd.xlane.f32.xlu1 %v6620_v24 }
0x3327   :  { %v6617_v30 = vsel %vm172_vm1, %v6611_v27, 0.0 }
0x3328   :  { %6618 = vadd.xlane.f32.xlu0 %v6617_v30 }
0x3329   :  { %v12561_v3 = vpop.f32.mrf.mxu0 }
0x332a   :  { %v6599_v51 = vadd.f32 %v12569_v29, %v12561_v3 }
0x332b   :  { %v6496_v6 = vpop.f32.mrf.mxu0 }
0x332c   :  { %v6594_v31 = vadd.f32 %v6593_v57, %v6496_v6  ;;  %v6610_v32 = vadd.f32 %v11441_v16, %v6599_v51  ;;  %v6818_v57 = vld [vmem:[%s15579_s4 + $0x128] sm:$0xff]  ;;  %v6817_v6 = vld [vmem:[%s15579_s4 + $0x120] sm:$0xff] }
0x332d   :  { %12580 = vmatprep.subr.mxu1 %v6818_v57 }
0x332e   :  { %v6609_v33 = vadd.f32 %v11441_v16, %v6594_v31  ;;  %v6614_v34 = vadd.f32 %v6610_v32, %v14565_v17  ;;  %12581 = vmatpush3.msra.mxu1 %v6818_v57  ;;  %v11444_v31 = vld [vmem:[%s15579_s4 + $0x118] ss:$0 sm:$0xff] }
0x332f   :  { %12582 = vmatprep.subr.mxu1 %v6817_v6 }
0x3330   :  { %v6613_v40 = vadd.f32 %v6609_v33, %v14559_v37  ;;  %v6626_v26 = vsel %vm172_vm1, %v6614_v34, 0.0  ;;  %12583 = vmatpush3.msra.mxu1 %v6817_v6 }
0x3331   :  { %12601 = vmatprep.subr.mxu1 %v13335_v1 }
0x3332   :  { %v6623_v28 = vsel %vm172_vm1, %v6613_v40, 0.0 }
0x3333   :  { %6624 = vadd.xlane.f32.xlu0 %v6623_v28 }
0x3337   :  { %6627 = vadd.xlane.f32.xlu0 %v6626_v26 }
0x33af   :  { %v6622_v60 = vpop.xlane.xlu1 %6621 }
0x33b0   :  { %v6630_v14 = vmul.f32 0.0625, %v6622_v60 }
0x33b1   :  { %v6619_v25 = vpop.xlane.xlu0 %6618 }
0x33b2   :  { %v6634_v35 = vsub.f32 %v6612_v19, %v6630_v14  ;;  %v6629_v36 = vmul.f32 0.0625, %v6619_v25 }
0x33b4   :  { %v6633_v10 = vsub.f32 %v6611_v27, %v6629_v36  ;;  %v6638_v54 = vmul.f32 %v6634_v35, %v6634_v35 }
0x33b6   :  { %v6644_v38 = vsel %vm172_vm1, %v6638_v54, 0.0  ;;  %v6637_v39 = vmul.f32 %v6633_v10, %v6633_v10 }
0x33b7   :  { %6645 = vadd.xlane.f32.xlu0 %v6644_v38 }
0x33b8   :  { %v6641_v37 = vsel %vm172_vm1, %v6637_v39, 0.0 }
0x33b9   :  { %6642 = vadd.xlane.f32.xlu1 %v6641_v37 }
0x33bc   :  { %v6625_v42 = vpop.xlane.xlu0 %6624 }
0x33bd   :  { %v6631_v17 = vmul.f32 0.0625, %v6625_v42 }
0x33bf   :  { %v6635_v43 = vsub.f32 %v6613_v40, %v6631_v17 }
0x33c0   :  { %v6628_v62 = vpop.xlane.xlu0 %6627 }
0x33c1   :  { %v6632_v61 = vmul.f32 0.0625, %v6628_v62  ;;  %v6639_v56 = vmul.f32 %v6635_v43, %v6635_v43 }
0x33c3   :  { %v6636_v46 = vsub.f32 %v6614_v34, %v6632_v61  ;;  %v6647_v45 = vsel %vm172_vm1, %v6639_v56, 0.0 }
0x33c4   :  { %6648 = vadd.xlane.f32.xlu1 %v6647_v45 }
0x33c5   :  { %v6640_v47 = vmul.f32 %v6636_v46, %v6636_v46 }
0x33c7   :  { %v6650_v48 = vsel %vm172_vm1, %v6640_v47, 0.0 }
0x33c8   :  { %6651 = vadd.xlane.f32.xlu0 %v6650_v48 }
0x3440   :  { %v6646_v44 = vpop.xlane.xlu0 %6645 }
0x3441   :  { %v6654_v53 = vmul.f32 0.0625, %v6646_v44  ;;  %v7069_v44 = vld [vmem:[%s15579_s4 + $0x148] sm:$0xf] }
0x3442   :  { %v6643_v55 = vpop.xlane.xlu1 %6642 }
0x3443   :  { %v6658_v41 = vadd.f32 1e-05, %v6654_v53  ;;  %v6653_v58 = vmul.f32 0.0625, %v6643_v55  ;;  %v11396_v53 = vld [vmem:[%s15576_s1 + $0x8] sm:$0xff] }
0x3445   :  { %13145 = vrsqrt.f32 %v6658_v41  ;;  %v6657_v59 = vadd.f32 1e-05, %v6653_v58  ;;  %v11453_v41 = vld [vmem:[%s15579_s4 + $0x130] ss:$0 sm:$0xff] }
0x3447   :  { %13147 = vrsqrt.f32 %v6657_v59 }
0x344d   :  { %v6649_v50 = vpop.xlane.xlu1 %6648 }
0x344e   :  { %v6655_v0 = vmul.f32 0.0625, %v6649_v50 }
0x3450   :  { %v6659_v63 = vadd.f32 1e-05, %v6655_v0 }
0x3451   :  { %v6652_v4 = vpop.xlane.xlu0 %6651 }
0x3452   :  { %v13146_v5 = vpop.eup %13145  ;;  %13149 = vrsqrt.f32 %v6659_v63  ;;  %v6656_v8 = vmul.f32 0.0625, %v6652_v4 }
0x3453   :  { %v6666_v9 = vmul.f32 %v13146_v5, %v6634_v35 }
0x3454   :  { %v13148_v12 = vpop.eup %13147  ;;  %v6660_v15 = vadd.f32 1e-05, %v6656_v8 }
0x3455   :  { %v6665_v16 = vmul.f32 %v13148_v12, %v6633_v10  ;;  %v6674_v20 = vmul.f32 %v11442_v11, %v6666_v9 }
0x3456   :  { %13151 = vrsqrt.f32 %v6660_v15 }
0x3457   :  { %v6673_v22 = vmul.f32 %v11442_v11, %v6665_v16  ;;  %v14752_v23 = vadd.f32 %v11443_v21, %v6674_v20 }
0x3459   :  { %v14750_v2 = vadd.f32 %v11443_v21, %v6673_v22 }
0x345b   :  { %12574 = vmatprep.mubr.msk.f32.mxu0 %vm172_vm1, %v14750_v2 }
0x345c   :  { %12575 = vmatmul.mubr.msk.f32.vlgmr.msra.gmra.mxu0 %vm172_vm1, %v14752_v23 }
0x345f   :  { %v13150_v7 = vpop.eup %13149 }
0x3460   :  { %v6667_v19 = vmul.f32 %v13150_v7, %v6635_v43 }
0x3462   :  { %v6675_v24 = vmul.f32 %v11442_v11, %v6667_v19 }
0x3463   :  { %v13152_v27 = vpop.eup %13151 }
0x3464   :  { %v14758_v29 = vadd.f32 %v11443_v21, %v6675_v24  ;;  %v6668_v30 = vmul.f32 %v13152_v27, %v6636_v46 }
0x3466   :  { %12577 = vmatprep.mubr.msk.f32.mxu0 %vm172_vm1, %v14758_v29  ;;  %v6676_v3 = vmul.f32 %v11442_v11, %v6668_v30 }
0x3468   :  { %v14762_v51 = vadd.f32 %v11443_v21, %v6676_v3 }
0x346a   :  { %12578 = vmatmul.mubr.msk.f32.gmra.mxu0 %vm172_vm1, %v14762_v51 }
0x346b   :  { %12598 = vmatprep.mubr.msk.f32.mxu0 %vm13341_vm6, %v13335_v1 }
0x351c   :  { %v12576_v32 = vpop.f32.mrf.mxu0 }
0x351d   :  { %v6776_v33 = vadd.f32 %v12576_v32, %v11444_v31 }
0x351e   :  { %v6770_v40 = vpop.f32.mrf.mxu0 }
0x351f   :  { %v11450_v28 = vmul.f32 -1.442695, %v6776_v33  ;;  %v6771_v34 = vadd.f32 %v11444_v31, %v6770_v40 }
0x3521   :  { %13153 = vpow2.f32 %v11450_v28  ;;  %v11449_v26 = vmul.f32 -1.442695, %v6771_v34 }
0x3523   :  { %13155 = vpow2.f32 %v11449_v26 }
0x352a   :  { %v12579_v60 = vpop.f32.mrf.mxu0 }
0x352b   :  { %v6786_v14 = vadd.f32 %v12579_v60, %v11444_v31 }
0x352c   :  { %v6780_v25 = vpop.f32.mrf.mxu0 }
0x352d   :  { %v11452_v35 = vmul.f32 -1.442695, %v6786_v14  ;;  %v6781_v36 = vadd.f32 %v11444_v31, %v6780_v25  ;;  %v11461_v25 = vld [vmem:[%s15579_s4 + $0x150] ss:$0 sm:$0xff] }
0x352e   :  { %v13154_v10 = vpop.eup %13153 }
0x352f   :  { %v6802_v54 = vadd.f32 1.0, %v13154_v10  ;;  %13157 = vpow2.f32 %v11452_v35  ;;  %v11451_v38 = vmul.f32 -1.442695, %v6781_v36 }
0x3530   :  { %v13156_v39 = vpop.eup %13155 }
0x3531   :  { %13159 = vrcp.f32 %v6802_v54  ;;  %v6801_v37 = vadd.f32 1.0, %v13156_v39 }
0x3532   :  { %13161 = vpow2.f32 %v11451_v38 }
0x3533   :  { %13163 = vrcp.f32 %v6801_v37 }
0x353c   :  { %v13158_v42 = vpop.eup %13157 }
0x353d   :  { %v6804_v17 = vadd.f32 1.0, %v13158_v42 }
0x353e   :  { %v13160_v43 = vpop.eup %13159 }
0x353f   :  { %v13162_v62 = vpop.eup %13161  ;;  %13165 = vrcp.f32 %v6804_v17  ;;  %v6814_v45 = vmul.f32 %v13160_v43, %v6776_v33 }
0x3540   :  { %v13164_v61 = vpop.eup %13163  ;;  %v6803_v56 = vadd.f32 1.0, %v13162_v62 }
0x3541   :  { %v6813_v46 = vmul.f32 %v13164_v61, %v6771_v34 }
0x3542   :  { %13167 = vrcp.f32 %v6803_v56 }
0x3543   :  { %12584 = vmatprep.mubr.msk.f32.mxu1 %vm172_vm1, %v6813_v46 }
0x3544   :  { %12585 = vmatmul.mubr.msk.f32.vlgmr.msra.gmra.mxu1 %vm172_vm1, %v6814_v45 }
0x3545   :  { %12602 = vmatpush3.msk.msra.mxu1 %vm1498_vm4, %v7069_v44 }
0x3546   :  { %12613 = vmatprep.subr.mxu1 %v13335_v1 }
0x354c   :  { %v13166_v47 = vpop.eup %13165 }
0x354d   :  { %v6816_v49 = vmul.f32 %v13166_v47, %v6786_v14 }
0x354f   :  { %v13168_v48 = vpop.eup %13167 }
0x3550   :  { %v6815_v52 = vmul.f32 %v13168_v48, %v6781_v36 }
0x3552   :  { %12587 = vmatprep.mubr.msk.f32.mxu1 %vm172_vm1, %v6815_v52  ;;  %v11458_v52 = vld [vmem:[%s15579_s4 + $0x138] ss:$0 sm:$0xff] }
0x3553   :  { %12588 = vmatmul.mubr.msk.f32.gmra.mxu1 %vm172_vm1, %v6816_v49 }
0x3554   :  { %12603 = vmatprep.mubr.msk.f32.mxu1 %vm13341_vm6, %v13335_v1 }
0x3557   :  { %12604 = vmatmul.mubr.msk.f32.vlgmr.msra.gmra.mxu1 %vm1494_vm5, %v11396_v53  ;;  %v11459_v53 = vld [vmem:[%s15579_s4 + $0x140] ss:$0 sm:$0xff] }
0x3558   :  { %12617 = vmatprep.mubr.msk.f32.mxu1 %vm13341_vm6, %v13335_v1 }
0x3604   :  { %v12586_v55 = vpop.f32.mrf.mxu1 }
0x3605   :  { %v6908_v50 = vadd.f32 %v12586_v55, %v11453_v41 }
0x3606   :  { %v6902_v58 = vpop.f32.mrf.mxu1 }
0x3607   :  { %v6903_v4 = vadd.f32 %v11453_v41, %v6902_v58  ;;  %v6922_v9 = vadd.f32 %v6908_v50, %v14752_v23 }
0x3609   :  { %v6921_v15 = vadd.f32 %v6903_v4, %v14750_v2  ;;  %v6930_v20 = vsel %vm172_vm1, %v6922_v9, 0.0 }
0x360b   :  { %v6927_v21 = vsel %vm172_vm1, %v6921_v15, 0.0 }
0x3613   :  { %v12589_v59 = vpop.f32.mrf.mxu1 }
0x3614   :  { %v6918_v0 = vadd.f32 %v12589_v59, %v11453_v41 }
0x3615   :  { %v6912_v63 = vpop.f32.mrf.mxu1 }
0x3616   :  { %v6924_v5 = vadd.f32 %v6918_v0, %v14762_v51  ;;  %v6913_v8 = vadd.f32 %v11453_v41, %v6912_v63 }
0x3617   :  { %v7147_v22 = vpop.f32.mrf.mxu1 }
0x3618   :  { %v6923_v11 = vadd.f32 %v6913_v8, %v14758_v29  ;;  %v6936_v12 = vsel %vm172_vm1, %v6924_v5, 0.0  ;;  %v7148_v35 = vadd.f32 %v11461_v25, %v7147_v22 }
0x3619   :  { %6937 = vadd.xlane.f32.xlu1 %v6936_v12  ;;  %v12605_v7 = vpop.f32.mrf.mxu1 }
0x361a   :  { %v6933_v16 = vsel %vm172_vm1, %v6923_v11, 0.0  ;;  %v11464_v36 = vmul.f32 -1.442695, %v7148_v35  ;;  %v7239_v7 = vld [vmem:[%s15579_s4 + $0x178] sm:$0xff] }
0x361b   :  { %6934 = vadd.xlane.f32.xlu0 %v6933_v16  ;;  %v7159_v16 = vld [vmem:[%s15579_s4 + $0x160] sm:$0xff] }
0x361c   :  { %13169 = vpow2.f32 %v11464_v36 }
0x361d   :  { %6931 = vadd.xlane.f32.xlu1 %v6930_v20 }
0x361f   :  { %6928 = vadd.xlane.f32.xlu0 %v6927_v21  ;;  %v7158_v21 = vld [vmem:[%s15579_s4 + $0x158] sm:$0xff] }
0x3629   :  { %v13170_v45 = vpop.eup %13169 }
0x362a   :  { %v7154_v47 = vadd.f32 1.0, %v13170_v45  ;;  %v7587_v45 = vld [vmem:[%s15579_s4 + $0x1d0] sm:$0xff] }
0x36a2   :  { %v6938_v19 = vpop.xlane.xlu1 %6937 }
0x36a3   :  { %v6942_v23 = vmul.f32 0.0625, %v6938_v19  ;;  %v7238_v19 = vld [vmem:[%s15579_s4 + $0x170] sm:$0xff] }
0x36a4   :  { %v6935_v24 = vpop.xlane.xlu0 %6934 }
0x36a5   :  { %v6946_v27 = vsub.f32 %v6924_v5, %v6942_v23  ;;  %v6941_v29 = vmul.f32 0.0625, %v6935_v24  ;;  %v7241_v23 = vld [vmem:[%s15579_s4 + $0x188] sm:$0xff]  ;;  %v7240_v24 = vld [vmem:[%s15579_s4 + $0x180] sm:$0xff] }
0x36a6   :  { %v6932_v30 = vpop.xlane.xlu1 %6931  ;;  %12614 = vmatpush3.msra.mxu1 %v7241_v23 }
0x36a7   :  { %v6945_v3 = vsub.f32 %v6923_v11, %v6941_v29  ;;  %v6940_v51 = vmul.f32 0.0625, %v6932_v30  ;;  %v6950_v2 = vmul.f32 %v6946_v27, %v6946_v27  ;;  %12615 = vmatprep.subr.mxu1 %v13335_v1  ;;  %v11465_v30 = vld [vmem:[%s15579_s4 + $0x168] ss:$0 sm:$0xff] }
0x36a8   :  { %v6929_v57 = vpop.xlane.xlu0 %6928  ;;  %12616 = vmatpush3.msra.mxu1 %v7240_v24 }
0x36a9   :  { %v6944_v6 = vsub.f32 %v6922_v9, %v6940_v51  ;;  %v6939_v31 = vmul.f32 0.0625, %v6929_v57  ;;  %v6960_v32 = vsel %vm172_vm1, %v6950_v2, 0.0  ;;  %v6949_v33 = vmul.f32 %v6945_v3, %v6945_v3  ;;  %12627 = vmatprep.subr.mxu1 %v13335_v1  ;;  %v7404_v57 = vld [vmem:[%s15579_s4 + $0x1b0] sm:$0xff] }
0x36aa   :  { %6961 = vadd.xlane.f32.xlu1 %v6960_v32  ;;  %v7401_v32 = vld [vmem:[%s15579_s4 + $0x198] sm:$0xff] }
0x36ab   :  { %v6943_v40 = vsub.f32 %v6921_v15, %v6939_v31  ;;  %v6957_v28 = vsel %vm172_vm1, %v6949_v33, 0.0  ;;  %v6948_v34 = vmul.f32 %v6944_v6, %v6944_v6  ;;  %v6995_v15 = vld [vmem:[%s15579_s4 + $0x450] sm:$0xff]  ;;  %v7402_v31 = vld [vmem:[%s15579_s4 + $0x1a0] sm:$0xff] }
0x36ac   :  { %6958 = vadd.xlane.f32.xlu0 %v6957_v28  ;;  %v7491_v33 = vld [vmem:[%s15579_s4 + $0x490] sm:$0xff] }
0x36ad   :  { %v6954_v26 = vsel %vm172_vm1, %v6948_v34, 0.0  ;;  %v6947_v60 = vmul.f32 %v6943_v40, %v6943_v40 }
0x36ae   :  { %6955 = vadd.xlane.f32.xlu1 %v6954_v26 }
0x36af   :  { %v6951_v14 = vsel %vm172_vm1, %v6947_v60, 0.0  ;;  %v11469_v60 = vld [vmem:[%s15579_s4 + $0x190] ss:$0 sm:$0xff] }
0x36b0   :  { %6952 = vadd.xlane.f32.xlu0 %v6951_v14 }
0x3733   :  { %v6962_v10 = vpop.xlane.xlu1 %6961 }
0x3734   :  { %v6966_v54 = vmul.f32 0.0625, %v6962_v10 }
0x3735   :  { %v6959_v38 = vpop.xlane.xlu0 %6958 }
0x3736   :  { %v6970_v39 = vadd.f32 1e-05, %v6966_v54  ;;  %v6965_v37 = vmul.f32 0.0625, %v6959_v38 }
0x3737   :  { %v6956_v42 = vpop.xlane.xlu1 %6955 }
0x3738   :  { %13171 = vrsqrt.f32 %v6970_v39  ;;  %v6969_v17 = vadd.f32 1e-05, %v6965_v37  ;;  %v6964_v43 = vmul.f32 0.0625, %v6956_v42  ;;  %v7489_v37 = vld [vmem:[%s15579_s4 + $0x480] sm:$0xff]  ;;  %v7488_v42 = vld [vmem:[%s15579_s4 + $0x478] sm:$0xff] }
0x3739   :  { %v6953_v62 = vpop.xlane.xlu0 %6952 }
0x373a   :  { %13173 = vrsqrt.f32 %v6969_v17  ;;  %v6968_v61 = vadd.f32 1e-05, %v6964_v43  ;;  %v6963_v56 = vmul.f32 0.0625, %v6953_v62  ;;  %v11471_v17 = vld [vmem:[%s15579_s4 + $0x1b8] ss:$0 sm:$0xff] }
0x373c   :  { %13175 = vrsqrt.f32 %v6968_v61  ;;  %v6967_v46 = vadd.f32 1e-05, %v6963_v56  ;;  %v7483_v61 = vld [vmem:[%s15579_s4 + $0x428] sm:$0x1] }
0x373e   :  { %13177 = vrsqrt.f32 %v6967_v46  ;;  %v7588_v46 = vld [vmem:[%s15579_s4 + $0x1d8] sm:$0xff] }
0x373f   :  { %13179 = vrcp.f32 %v7154_v47  ;;  %v7586_v47 = vld [vmem:[%s15579_s4 + $0x1c8] sm:$0xff] }
0x3745   :  { %v13172_v48 = vpop.eup %13171 }
0x3746   :  { %v6978_v49 = vmul.f32 %v13172_v48, %v6946_v27  ;;  %v7585_v48 = vld [vmem:[%s15579_s4 + $0x1c0] sm:$0xff] }
0x3747   :  { %v13174_v44 = vpop.eup %13173 }
0x3748   :  { %v6986_v55 = vmul.f32 %v11458_v52, %v6978_v49  ;;  %v6977_v41 = vmul.f32 %v13174_v44, %v6945_v3  ;;  %v7574_v49 = vld [vmem:[%s15579_s4 + $0x470] sm:$0x1]  ;;  %v7484_v44 = vld [vmem:[%s15579_s4 + $0x458] sm:$0xff] }
0x3749   :  { %v13176_v58 = vpop.eup %13175 }
0x374a   :  { %v6994_v59 = vadd.f32 %v11459_v53, %v6986_v55  ;;  %v6985_v50 = vmul.f32 %v11458_v52, %v6977_v41  ;;  %v6976_v0 = vmul.f32 %v13176_v58, %v6944_v6  ;;  %v7403_v6 = vld [vmem:[%s15579_s4 + $0x1a8] sm:$0xff] }
0x374b   :  { %v13178_v63 = vpop.eup %13177  ;;  %v7573_v55 = vld [vmem:[%s15579_s4 + $0x468] sm:$0xff] }
0x374c   :  { %12591 = vmatpush3.msra.mxu0 %v6994_v59  ;;  %v6993_v4 = vadd.f32 %v11459_v53, %v6985_v50  ;;  %v6984_v5 = vmul.f32 %v11458_v52, %v6976_v0  ;;  %v6975_v8 = vmul.f32 %v13178_v63, %v6943_v40  ;;  %v13180_v20 = vpop.eup %13179  ;;  %v7490_v40 = vld [vmem:[%s15579_s4 + $0x488] sm:$0xff] }
0x374d   :  { %12592 = vmatprep.subr.mxu0 %v13335_v1  ;;  %v7157_v22 = vmul.f32 %v13180_v20, %v7148_v35 }
0x374e   :  { %12593 = vmatpush3.msra.mxu0 %v6993_v4  ;;  %v6992_v9 = vadd.f32 %v11459_v53, %v6984_v5  ;;  %v6983_v11 = vmul.f32 %v11458_v52, %v6975_v8  ;;  %v7485_v52 = vld [vmem:[%s15579_s4 + $0x460] sm:$0x1] }
0x374f   :  { %12594 = vmatprep.subr.mxu0 %v13335_v1  ;;  %v7487_v41 = vmul.f32 %v7485_v52, %v7483_v61  ;;  %v11476_v5 = vld [vmem:[%s15579_s4 + $0x1e0] ss:$0 sm:$0xff] }
0x3750   :  { %12595 = vmatpush3.msra.mxu0 %v6992_v9  ;;  %v6991_v12 = vadd.f32 %v11459_v53, %v6983_v11 }
0x3751   :  { %12596 = vmatprep.subr.mxu0 %v13335_v1 }
0x3752   :  { %12597 = vmatpush3.msra.mxu0 %v6991_v12 }
0x3753   :  { %12599 = vmatmul.mubr.msk.f32.vlgmr.msra.gmra.mxu0 %vm394_vm3, %v6995_v15  ;;  %12606 = vmatprep.subr.mxu0 %v13335_v1 }
0x3754   :  { %12607 = vmatpush3.msra.mxu0 %v7159_v16  ;;  %12610 = vmatprep.mubr.msk.f32.mxu0 %vm13341_vm6, %v13335_v1 }
0x3755   :  { %12608 = vmatprep.subr.mxu0 %v13335_v1 }
0x3756   :  { %12609 = vmatpush3.msra.mxu0 %v7158_v21 }
0x3757   :  { %12611 = vmatmul.mubr.msk.f32.vlgmr.msra.gmra.mxu0 %vm172_vm1, %v7157_v22  ;;  %12620 = vmatprep.subr.mxu0 %v13335_v1 }
0x3758   :  { %12621 = vmatpush3.msra.mxu0 %v7239_v7  ;;  %12624 = vmatprep.mubr.msk.f32.mxu0 %vm13341_vm6, %v13335_v1 }
0x3759   :  { %12622 = vmatprep.subr.mxu0 %v13335_v1 }
0x375a   :  { %12623 = vmatpush3.msra.mxu0 %v7238_v19  ;;  %v14969_v19 = vld [vmem:[%s15577_s2 + $0x1] ss:$0 sm:$0xff] }
0x375b   :  { %12638 = vmatprep.subr.mxu0 %v7491_v33 }
0x3813   :  { %v7065_v27 = vpop.f32.mrf.mxu0 }
0x3814   :  { %12625 = vmatmul.mubr.msk.f32.vlgmr.msra.gmra.mxu0 %vm172_vm1, %v7065_v27 }
0x3815   :  { %v12600_v29 = vpop.f32.mrf.mxu0  ;;  %12639 = vmatpush3.msra.mxu0 %v7491_v33 }
0x3816   :  { %12640 = vmatprep.subr.mxu0 %v7490_v40 }
0x3817   :  { %v7234_v3 = vpop.f32.mrf.mxu0  ;;  %12641 = vmatpush3.msra.mxu0 %v7490_v40 }
0x3818   :  { %v7235_v51 = vadd.f32 %v11465_v30, %v7234_v3  ;;  %12642 = vmatprep.subr.mxu0 %v7489_v37 }
0x3819   :  { %v12612_v2 = vpop.f32.mrf.mxu0  ;;  %12643 = vmatpush3.msra.mxu0 %v7489_v37 }
0x381a   :  { %12618 = vmatmul.mubr.msk.f32.vlgmr.msra.gmra.mxu1 %vm172_vm1, %v7235_v51  ;;  %12644 = vmatprep.subr.mxu0 %v7488_v42 }
0x381b   :  { %12635 = vmatprep.mubr.msk.f32.mxu1 %vm13341_vm6, %v13335_v1  ;;  %12628 = vmatpush3.msra.mxu1 %v7404_v57 }
0x381c   :  { %12629 = vmatprep.subr.mxu1 %v13335_v1  ;;  %12645 = vmatpush3.msra.mxu0 %v7488_v42 }
0x381d   :  { %12630 = vmatpush3.msra.mxu1 %v7403_v6 }
0x381e   :  { %12631 = vmatprep.subr.mxu1 %v13335_v1 }
0x381f   :  { %12632 = vmatpush3.msra.mxu1 %v7402_v31 }
0x3820   :  { %12633 = vmatprep.subr.mxu1 %v13335_v1 }
0x3821   :  { %12634 = vmatpush3.msra.mxu1 %v7401_v32 }
0x3822   :  { %12649 = vmatprep.subr.mxu1 %v7588_v46 }
0x38d4   :  { %v7384_v28 = vpop.f32.mrf.mxu0 }
0x38d6   :  { %v12626_v34 = vpop.f32.mrf.mxu0 }
0x38da   :  { %v7311_v26 = vpop.f32.mrf.mxu1 }
0x38db   :  { %v7385_v14 = vadd.f32 %v7384_v28, %v7311_v26 }
0x38dc   :  { %v12619_v25 = vpop.f32.mrf.mxu1 }
0x38dd   :  { %v7393_v35 = vadd.f32 %v11469_v60, %v7385_v14 }
0x38df   :  { %v11470_v36 = vmul.f32 -1.442695, %v7393_v35 }
0x38e1   :  { %13181 = vpow2.f32 %v11470_v36 }
0x38ee   :  { %v13182_v10 = vpop.eup %13181 }
0x38ef   :  { %v7397_v54 = vadd.f32 1.0, %v13182_v10 }
0x38f1   :  { %13183 = vrcp.f32 %v7397_v54 }
0x38fe   :  { %v13184_v38 = vpop.eup %13183 }
0x38ff   :  { %v7400_v39 = vmul.f32 %v13184_v38, %v7393_v35 }
0x3901   :  { %12636 = vmatmul.mubr.msk.f32.vlgmr.msra.gmra.mxu1 %vm394_vm3, %v7400_v39 }
0x3902   :  { %12650 = vmatpush3.msra.mxu1 %v7588_v46 }
0x3903   :  { %12651 = vmatprep.subr.mxu1 %v7587_v45 }
0x3904   :  { %12652 = vmatpush3.msra.mxu1 %v7587_v45 }
0x3905   :  { %12653 = vmatprep.subr.mxu1 %v7586_v47 }
0x3906   :  { %12654 = vmatpush3.msra.mxu1 %v7586_v47 }
0x3907   :  { %12655 = vmatprep.subr.mxu1 %v7585_v48 }
0x3908   :  { %12656 = vmatpush3.msra.mxu1 %v7585_v48 }
0x39c1   :  { %v7479_v43 = vpop.f32.mrf.mxu1 }
0x39c2   :  { %v7480_v62 = vadd.f32 %v11471_v17, %v7479_v43 }
0x39c3   :  { %v12637_v56 = vpop.f32.mrf.mxu1 }
0x39c4   :  { %12646 = vmatprep.mubr.msk.f32.mxu0 %vm394_vm3, %v7480_v62  ;;  %v7486_v50 = vmul.f32 %v7484_v44, %v7480_v62 }
0x39c5   :  { %12647 = vmatmul.mubr.msk.f32.vlgmr.msra.gmra.mxu0 %vm394_vm3, %v7483_v61 }
0x3a85   :  { %v12648_v53 = vpop.f32.mrf.mxu0 }
0x3a86   :  { %v7576_v58 = vmul.f32 %v12648_v53, %v7574_v49 }
0x3a87   :  { %v7564_v59 = vpop.f32.mrf.mxu0 }
0x3a88   :  { %v7575_v0 = vmul.f32 %v7573_v55, %v7564_v59  ;;  %v14927_v4 = vadd.f32 %v7576_v58, %v7487_v41 }
0x3a8a   :  { %v14925_v63 = vadd.f32 %v7575_v0, %v7486_v50 }
0x3a8c   :  { %12657 = vmatprep.mubr.msk.f32.mxu1 %vm394_vm3, %v14925_v63 }
0x3a8d   :  { %12658 = vmatmul.mubr.msk.f32.vlgmr.msra.gmra.mxu1 %vm394_vm3, %v14927_v4 }
0x3b4d   :  { %v12659_v8 = vpop.f32.mrf.mxu1 }
0x3b4e   :  { %v14936_v9 = vadd.f32 %v12659_v8, %v11476_v5  ;;  %v7676_v8 = vld [vmem:[%s15579_s4 + $0x1f0] sm:$0xff] }
0x3b4f   :  { %v7666_v11 = vpop.f32.mrf.mxu1 }
0x3b50   :  { %v14938_v12 = vadd.f32 %v11476_v5, %v7666_v11  ;;  %7683 = vrot.lane.b32.xlu1 %v14936_v9, %s13337_s22 }
0x3b52   :  { %7681 = vrot.lane.b32.xlu0 %v14938_v12, %s13337_s22  ;;  %12664 = vmatprep.mubr.msk.f32.mxu0 %vm284_vm2, %v14938_v12 }
0x3b54   :  { %7888 = vrot.lane.b32.xlu1 %v14936_v9, %s13340_s11 }
0x3b56   :  { %7882 = vrot.lane.b32.xlu0 %v14938_v12, %s13339_s8 }
0x3b58   :  { %7886 = vrot.lane.b32.xlu1 %v14938_v12, %s13340_s11 }
0x3b5c   :  { %7884 = vrot.lane.b32.xlu1 %v14936_v9, %s13339_s8 }
0x3bc2   :  { %v7684_v15 = vpop.permute.xlu1 %7683 }
0x3bc3   :  { %12660 = vmatprep.subr.msk.mxu0 %vm284_vm2, %v7684_v15 }
0x3bc4   :  { %12661 = vmatpush3.xpose.msk.msra.mxu0 %vm284_vm2, %v7684_v15  ;;  %v7682_v16 = vpop.permute.xlu0 %7681 }
0x3bc5   :  { %12662 = vmatprep.subr.msk.mxu0 %vm284_vm2, %v7682_v16 }
0x3bc6   :  { %v7889_v20 = vpop.permute.xlu1 %7888 }
0x3bc8   :  { %12663 = vmatpush3.xpose.msk.msra.mxu0 %vm284_vm2, %v7682_v16  ;;  %v7883_v21 = vpop.permute.xlu0 %7882 }
0x3bc9   :  { %12674 = vmatprep.subr.msk.mxu0 %vm284_vm2, %v7889_v20 }
0x3bca   :  { %v7887_v22 = vpop.permute.xlu1 %7886 }
0x3bcb   :  { %12665 = vmatmul.mubr.msk.f32.vlgmr.msra.gmra.mxu0 %vm284_vm2, %v14936_v9 }
0x3bcc   :  { %12675 = vmatpush3.xpose.msk.msra.mxu0 %vm284_vm2, %v7889_v20  ;;  %12678 = vmatprep.mubr.msk.f32.mxu0 %vm284_vm2, %v7883_v21 }
0x3bcd   :  { %12676 = vmatprep.subr.msk.mxu0 %vm284_vm2, %v7887_v22 }
0x3bce   :  { %v7885_v7 = vpop.permute.xlu1 %7884 }
0x3bd0   :  { %12677 = vmatpush3.xpose.msk.msra.mxu0 %vm284_vm2, %v7887_v22  ;;  %v7675_v22 = vld [vmem:[%s15579_s4 + $0x1e8] sm:$0xff] }
0x3bd1   :  { %12693 = vmatprep.subr.mxu0 %v7675_v22 }
0x3bd3   :  { %12679 = vmatmul.mubr.msk.f32.vlgmr.msra.gmra.mxu0 %vm284_vm2, %v7885_v7 }
0x3bd4   :  { %12694 = vmatpush3.msra.mxu0 %v7675_v22 }
0x3c8b   :  { %v12666_v23 = vpop.f32.mrf.mxu0 }
0x3c8c   :  { %v7769_v24 = vmul.f32 0.35355338, %v12666_v23 }
0x3c8d   :  { %v7759_v27 = vpop.f32.mrf.mxu0 }
0x3c8e   :  { %v7771_v29 = vadd.f32 %v14969_v19, %v7769_v24  ;;  %v7768_v30 = vmul.f32 0.35355338, %v7759_v27 }
0x3c90   :  { %v7770_v3 = vadd.f32 %v14969_v19, %v7768_v30  ;;  %v7775_v51 = vsel %vm2197_vm7, %v7771_v29, -inf }
0x3c91   :  { %7776 = vmax.xlane.f32.xlu1 %v7775_v51 }
0x3c92   :  { %v7772_v2 = vsel %vm2193_vm8, %v7770_v3, -inf }
0x3c93   :  { %v12680_v57 = vpop.f32.mrf.mxu0  ;;  %7773 = vmax.xlane.f32.xlu0 %v7772_v2 }
0x3c94   :  { %v7974_v31 = vmul.f32 0.35355338, %v12680_v57 }
0x3c95   :  { %v7964_v6 = vpop.f32.mrf.mxu0 }
0x3c96   :  { %v7973_v32 = vmul.f32 0.35355338, %v7964_v6  ;;  %v7976_v40 = vadd.f32 %v14969_v19, %v7974_v31 }
0x3c98   :  { %v7975_v33 = vadd.f32 %v14969_v19, %v7973_v32  ;;  %v7980_v34 = vsel %vm2197_vm7, %v7976_v40, -inf }
0x3c9a   :  { %v7977_v28 = vsel %vm2193_vm8, %v7975_v33, -inf }
0x3c9b   :  { %7978 = vmax.xlane.f32.xlu0 %v7977_v28 }
0x3c9f   :  { %7981 = vmax.xlane.f32.xlu0 %v7980_v34 }
0x3ca2   :  { %7796 = vrot.lane.b32.xlu1 %v14936_v9, %s13342_s26 }
0x3d1a   :  { %v7777_v26 = vpop.xlane.xlu1 %7776 }
0x3d1b   :  { %v7779_v60 = vsub.f32 %v7771_v29, %v7777_v26 }
0x3d1c   :  { %v7774_v14 = vpop.xlane.xlu0 %7773 }
0x3d1d   :  { %v7782_v25 = vmul.f32 1.442695, %v7779_v60  ;;  %v7778_v35 = vsub.f32 %v7770_v3, %v7774_v14 }
0x3d1e   :  { %v7797_v36 = vpop.permute.xlu1 %7796 }
0x3d1f   :  { %13185 = vpow2.f32 %v7782_v25  ;;  %v7780_v10 = vmul.f32 1.442695, %v7778_v35  ;;  %12667 = vmatprep.subr.msk.mxu1 %vm2228_vm9, %v7797_v36 }
0x3d20   :  { %12668 = vmatpush3.msk.msra.mxu1 %vm2228_vm9, %v7797_v36 }
0x3d21   :  { %13187 = vpow2.f32 %v7780_v10 }
0x3d24   :  { %v7979_v54 = vpop.xlane.xlu0 %7978 }
0x3d25   :  { %v7983_v46 = vsub.f32 %v7975_v33, %v7979_v54 }
0x3d27   :  { %v7985_v45 = vmul.f32 1.442695, %v7983_v46 }
0x3d28   :  { %v7982_v38 = vpop.xlane.xlu0 %7981 }
0x3d29   :  { %v7984_v39 = vsub.f32 %v7976_v40, %v7982_v38 }
0x3d2b   :  { %v7987_v37 = vmul.f32 1.442695, %v7984_v39 }
0x3d2c   :  { %v13186_v42 = vpop.eup %13185 }
0x3d2d   :  { %13189 = vpow2.f32 %v7987_v37  ;;  %v7787_v17 = vsel %vm2197_vm7, %v13186_v42, 0.0 }
0x3d2e   :  { %v13188_v43 = vpop.eup %13187  ;;  %7788 = vadd.xlane.f32.xlu0 %v7787_v17  ;;  %13191 = vpow2.f32 %v7985_v45 }
0x3d2f   :  { %v7784_v62 = vsel %vm2193_vm8, %v13188_v43, 0.0 }
0x3d30   :  { %7785 = vadd.xlane.f32.xlu1 %v7784_v62 }
0x3d3a   :  { %v13190_v61 = vpop.eup %13189 }
0x3d3b   :  { %v7992_v56 = vsel %vm2197_vm7, %v13190_v61, 0.0  ;;  %v13192_v47 = vpop.eup %13191 }
0x3d3c   :  { %7993 = vadd.xlane.f32.xlu0 %v7992_v56  ;;  %v7989_v48 = vsel %vm2193_vm8, %v13192_v47, 0.0 }
0x3d41   :  { %8001 = vrot.lane.b32.xlu1 %v14936_v9, %s13343_s27 }
0x3d52   :  { %7794 = vrot.lane.b32.xlu0 %v14938_v12, %s13342_s26 }
0x3d56   :  { %8255 = vrot.lane.b32.xlu0 %v14936_v9, %s13344_s28 }
0x3d5a   :  { %8249 = vrot.lane.b32.xlu0 %v14938_v12, %s13336_s21 }
0x3d5e   :  { %8543 = vrot.lane.b32.xlu0 %v14936_v9, %s13345_s29 }
0x3d62   :  { %8537 = vrot.lane.b32.xlu0 %v14938_v12, %s13338_s7 }
0x3d65   :  { %7990 = vadd.xlane.f32.xlu1 %v7989_v48 }
0x3d76   :  { %7999 = vrot.lane.b32.xlu1 %v14938_v12, %s13343_s27 }
0x3d7a   :  { %8253 = vrot.lane.b32.xlu1 %v14938_v12, %s13344_s28 }
0x3d7e   :  { %8251 = vrot.lane.b32.xlu1 %v14936_v9, %s13336_s21 }
0x3d82   :  { %8541 = vrot.lane.b32.xlu1 %v14938_v12, %s13345_s29 }
0x3d86   :  { %8539 = vrot.lane.b32.xlu1 %v14936_v9, %s13338_s7 }
0x3db7   :  { %v7789_v52 = vpop.xlane.xlu0 %7788 }
0x3db8   :  { %13193 = vrcp.f32 %v7789_v52 }
0x3db9   :  { %v7786_v49 = vpop.xlane.xlu1 %7785 }
0x3dba   :  { %13195 = vrcp.f32 %v7786_v49 }
0x3dbd   :  { %v8002_v50 = vpop.permute.xlu1 %8001 }
0x3dc5   :  { %v7994_v44 = vpop.xlane.xlu0 %7993  ;;  %v13194_v53 = vpop.eup %13193 }
0x3dc6   :  { %v7793_v59 = vmul.f32 %v13194_v53, %v13186_v42  ;;  %13197 = vrcp.f32 %v7994_v44 }
0x3dc7   :  { %v13196_v55 = vpop.eup %13195 }
0x3dc8   :  { %v7791_v41 = vmul.f32 %v13196_v55, %v13188_v43 }
0x3dc9   :  { %v7795_v58 = vpop.permute.xlu0 %7794 }
0x3dca   :  { %12669 = vmatprep.subr.mxu1 %v7795_v58  ;;  %12671 = vmatprep.mubr.msk.f32.mxu1 %vm2193_vm8, %v7791_v41 }
0x3dcb   :  { %12670 = vmatpush3.msra.mxu1 %v7795_v58 }
0x3dcc   :  { %12672 = vmatmul.mubr.msk.f32.vlgmr.msra.gmra.mxu1 %vm2193_vm8, %v7793_v59  ;;  %12681 = vmatprep.subr.msk.mxu1 %vm2228_vm9, %v8002_v50 }
0x3dcd   :  { %12682 = vmatpush3.msk.msra.mxu1 %vm2228_vm9, %v8002_v50  ;;  %v8256_v21 = vpop.permute.xlu0 %8255 }
0x3dd1   :  { %v8250_v24 = vpop.permute.xlu0 %8249 }
0x3dd3   :  { %v13198_v11 = vpop.eup %13197 }
0x3dd4   :  { %v7998_v20 = vmul.f32 %v13198_v11, %v13190_v61  ;;  %v7677_v11 = vld [vmem:[%s15579_s4 + $0x1f8] sm:$0xff] }
0x3dd5   :  { %v8544_v3 = vpop.permute.xlu0 %8543 }
0x3dd9   :  { %v8538_v2 = vpop.permute.xlu0 %8537 }
0x3dee   :  { %v7991_v0 = vpop.xlane.xlu1 %7990 }
0x3def   :  { %13199 = vrcp.f32 %v7991_v0 }
0x3df2   :  { %v8000_v5 = vpop.permute.xlu1 %7999 }
0x3df3   :  { %12683 = vmatprep.subr.mxu1 %v8000_v5 }
0x3df4   :  { %12684 = vmatpush3.msra.mxu1 %v8000_v5 }
0x3df5   :  { %12688 = vmatprep.subr.mxu1 %v7676_v8 }
0x3df6   :  { %v8254_v29 = vpop.permute.xlu1 %8253 }
0x3dfa   :  { %v8252_v51 = vpop.permute.xlu1 %8251 }
0x3dfc   :  { %v13200_v15 = vpop.eup %13199 }
0x3dfd   :  { %v7996_v16 = vmul.f32 %v13200_v15, %v13192_v47 }
0x3dfe   :  { %v8542_v57 = vpop.permute.xlu1 %8541 }
0x3dff   :  { %12685 = vmatprep.mubr.msk.f32.mxu1 %vm2193_vm8, %v7996_v16 }
0x3e00   :  { %12686 = vmatmul.mubr.msk.f32.vlgmr.msra.gmra.mxu1 %vm2193_vm8, %v7998_v20 }
0x3e01   :  { %12689 = vmatpush3.msra.mxu1 %v7676_v8 }
0x3e02   :  { %12698 = vmatprep.subr.msk.mxu1 %vm284_vm2, %v8256_v21  ;;  %v8540_v6 = vpop.permute.xlu1 %8539 }
0x3e8c   :  { %v12673_v7 = vpop.f32.mrf.mxu1 }
0x3e8e   :  { %v7873_v23 = vpop.f32.mrf.mxu1 }
0x3e8f   :  { %12695 = vmatprep.mubr.msk.f32.mxu0 %vm284_vm2, %v7873_v23 }
0x3e90   :  { %12696 = vmatmul.mubr.msk.f32.vlgmr.msra.gmra.mxu0 %vm284_vm2, %v12673_v7 }
0x3ec0   :  { %v12687_v27 = vpop.f32.mrf.mxu1 }
0x3ec2   :  { %v8078_v30 = vpop.f32.mrf.mxu1 }
0x3ec3   :  { %12690 = vmatprep.mubr.msk.f32.mxu1 %vm284_vm2, %v8078_v30 }
0x3ec4   :  { %12691 = vmatmul.mubr.msk.f32.vlgmr.msra.gmra.mxu1 %vm284_vm2, %v12687_v27 }
0x3ec5   :  { %12699 = vmatpush3.xpose.msk.msra.mxu1 %vm284_vm2, %v8256_v21  ;;  %12702 = vmatprep.mubr.msk.f32.mxu1 %vm284_vm2, %v8250_v24 }
0x3ec6   :  { %12700 = vmatprep.subr.msk.mxu1 %vm284_vm2, %v8254_v29 }
0x3ec9   :  { %12701 = vmatpush3.xpose.msk.msra.mxu1 %vm284_vm2, %v8254_v29 }
0x3eca   :  { %12717 = vmatprep.subr.msk.mxu1 %vm284_vm2, %v8544_v3 }
0x3ecc   :  { %12703 = vmatmul.mubr.msk.f32.vlgmr.msra.gmra.mxu1 %vm284_vm2, %v8252_v51 }
0x3ecd   :  { %12718 = vmatpush3.xpose.msk.msra.mxu1 %vm284_vm2, %v8544_v3  ;;  %12721 = vmatprep.mubr.msk.f32.mxu1 %vm284_vm2, %v8538_v2 }
0x3ece   :  { %12719 = vmatprep.subr.msk.mxu1 %vm284_vm2, %v8542_v57 }
0x3ed1   :  { %12720 = vmatpush3.xpose.msk.msra.mxu1 %vm284_vm2, %v8542_v57 }
0x3ed4   :  { %12722 = vmatmul.mubr.msk.f32.vlgmr.msra.gmra.mxu1 %vm284_vm2, %v8540_v6 }
0x3f50   :  { %v12697_v31 = vpop.f32.mrf.mxu0 }
0x3f52   :  { %v8240_v30 = vpop.f32.mrf.mxu0 }
0x3f84   :  { %v12692_v32 = vpop.f32.mrf.mxu1 }
0x3f85   :  { %v15037_v33 = vadd.f32 %v12697_v31, %v12692_v32 }
0x3f86   :  { %v15039_v40 = vpop.f32.mrf.mxu1 }
0x3f8c   :  { %v12704_v28 = vpop.f32.mrf.mxu1 }
0x3f8d   :  { %v8341_v34 = vmul.f32 0.35355338, %v12704_v28  ;;  %v7678_v28 = vld [vmem:[%s15579_s4 + $0x200] sm:$0xff] }
0x3f8e   :  { %v8331_v26 = vpop.f32.mrf.mxu1 }
0x3f8f   :  { %v8343_v60 = vadd.f32 %v14969_v19, %v8341_v34  ;;  %v8340_v14 = vmul.f32 0.35355338, %v8331_v26  ;;  %v8241_v26 = vadd.f32 %v8240_v30, %v15039_v40  ;;  %v8979_v30 = vld [vmem:[%s15579_s4 + $0x250] sm:$0xff] }
0x3f91   :  { %v8342_v25 = vadd.f32 %v14969_v19, %v8340_v14  ;;  %v8347_v35 = vsel %vm2197_vm7, %v8343_v60, -inf }
0x3f92   :  { %8348 = vmax.xlane.f32.xlu1 %v8347_v35 }
0x3f93   :  { %v8344_v36 = vsel %vm2193_vm8, %v8342_v25, -inf }
0x3f94   :  { %8345 = vmax.xlane.f32.xlu0 %v8344_v36  ;;  %v12723_v10 = vpop.f32.mrf.mxu1 }
0x3f95   :  { %v8629_v55 = vmul.f32 0.35355338, %v12723_v10 }
0x3f96   :  { %v8619_v54 = vpop.f32.mrf.mxu1 }
0x3f97   :  { %v8628_v38 = vmul.f32 0.35355338, %v8619_v54  ;;  %v8631_v58 = vadd.f32 %v14969_v19, %v8629_v55  ;;  %v11515_v54 = vld [vmem:[%s15579_s4 + $0x208] ss:$0 sm:$0xff] }
0x3f98   :  { %v8875_v55 = vld [vmem:[%s15579_s4 + $0x228] sm:$0xff] }
0x3f99   :  { %v8630_v39 = vadd.f32 %v14969_v19, %v8628_v38  ;;  %v8635_v50 = vsel %vm2197_vm7, %v8631_v58, -inf }
0x3f9b   :  { %v8632_v37 = vsel %vm2193_vm8, %v8630_v39, -inf }
0x3fa3   :  { %8368 = vrot.lane.b32.xlu1 %v14936_v9, %s13346_s13 }
0x3fc7   :  { %8633 = vmax.xlane.f32.xlu1 %v8632_v37 }
0x401b   :  { %v8349_v42 = vpop.xlane.xlu1 %8348 }
0x401c   :  { %v8351_v17 = vsub.f32 %v8343_v60, %v8349_v42 }
0x401d   :  { %v8346_v43 = vpop.xlane.xlu0 %8345 }
0x401e   :  { %v8354_v62 = vmul.f32 1.442695, %v8351_v17  ;;  %v8350_v61 = vsub.f32 %v8342_v25, %v8346_v43 }
0x401f   :  { %v8369_v56 = vpop.permute.xlu1 %8368 }
0x4020   :  { %13201 = vpow2.f32 %v8354_v62  ;;  %v8352_v46 = vmul.f32 1.442695, %v8350_v61  ;;  %12705 = vmatprep.subr.msk.mxu0 %vm2228_vm9, %v8369_v56 }
0x4021   :  { %12706 = vmatpush3.msk.msra.mxu0 %vm2228_vm9, %v8369_v56 }
0x4022   :  { %13203 = vpow2.f32 %v8352_v46 }
0x402d   :  { %v13202_v45 = vpop.eup %13201 }
0x402e   :  { %v8359_v47 = vsel %vm2197_vm7, %v13202_v45, 0.0 }
0x402f   :  { %v13204_v48 = vpop.eup %13203  ;;  %8360 = vadd.xlane.f32.xlu0 %v8359_v47 }
0x4030   :  { %v8356_v52 = vsel %vm2193_vm8, %v13204_v48, 0.0 }
0x4033   :  { %8357 = vadd.xlane.f32.xlu0 %v8356_v52 }
0x4049   :  { %8366 = vrot.lane.b32.xlu0 %v14938_v12, %s13346_s13 }
0x4050   :  { %v8634_v49 = vpop.xlane.xlu1 %8633 }
0x4051   :  { %v8638_v44 = vsub.f32 %v8630_v39, %v8634_v49 }
0x4053   :  { %v8640_v53 = vmul.f32 1.442695, %v8638_v44 }
0x4055   :  { %13205 = vpow2.f32 %v8640_v53  ;;  %v8876_v53 = vld [vmem:[%s15579_s4 + $0x230] sm:$0xff] }
0x4062   :  { %v13206_v41 = vpop.eup %13205 }
0x4063   :  { %v8644_v59 = vsel %vm2193_vm8, %v13206_v41, 0.0 }
0x4064   :  { %8645 = vadd.xlane.f32.xlu1 %v8644_v59 }
0x4068   :  { %8636 = vmax.xlane.f32.xlu0 %v8635_v50 }
0x4075   :  { %8656 = vrot.lane.b32.xlu1 %v14936_v9, %s13347_s14 }
0x40b8   :  { %v8361_v0 = vpop.xlane.xlu0 %8360 }
0x40b9   :  { %13207 = vrcp.f32 %v8361_v0 }
0x40bc   :  { %v8358_v5 = vpop.xlane.xlu0 %8357 }
0x40bd   :  { %13209 = vrcp.f32 %v8358_v5 }
0x40c0   :  { %v8367_v8 = vpop.permute.xlu0 %8366 }
0x40c1   :  { %12707 = vmatprep.subr.mxu0 %v8367_v8 }
0x40c2   :  { %12708 = vmatpush3.msra.mxu0 %v8367_v8 }
0x40c3   :  { %12712 = vmatprep.subr.mxu0 %v7677_v11 }
0x40c6   :  { %v13208_v15 = vpop.eup %13207 }
0x40c7   :  { %v8365_v21 = vmul.f32 %v13208_v15, %v13202_v45  ;;  %v11516_v15 = vld [vmem:[%s15579_s4 + $0x210] ss:$0 sm:$0xff] }
0x40ca   :  { %v13210_v16 = vpop.eup %13209 }
0x40cb   :  { %v8363_v20 = vmul.f32 %v13210_v16, %v13204_v48 }
0x40cd   :  { %12709 = vmatprep.mubr.msk.f32.mxu0 %vm2193_vm8, %v8363_v20 }
0x40ce   :  { %12710 = vmatmul.mubr.msk.f32.vlgmr.msra.gmra.mxu0 %vm2193_vm8, %v8365_v21 }
0x40cf   :  { %12713 = vmatpush3.msra.mxu0 %v7677_v11 }
0x40ed   :  { %v8646_v9 = vpop.xlane.xlu1 %8645 }
0x40f1   :  { %v8657_v22 = vpop.permute.xlu1 %8656  ;;  %v8637_v7 = vpop.xlane.xlu0 %8636 }
0x40f2   :  { %v8639_v23 = vsub.f32 %v8631_v58, %v8637_v7  ;;  %12724 = vmatprep.subr.msk.mxu0 %vm2228_vm9, %v8657_v22 }
0x40f4   :  { %v8642_v24 = vmul.f32 1.442695, %v8639_v23 }
0x40f6   :  { %13211 = vpow2.f32 %v8642_v24 }
0x40f7   :  { %13213 = vrcp.f32 %v8646_v9 }
0x4103   :  { %v13212_v27 = vpop.eup %13211 }
0x4104   :  { %v8647_v29 = vsel %vm2197_vm7, %v13212_v27, 0.0  ;;  %v13214_v3 = vpop.eup %13213 }
0x4105   :  { %8648 = vadd.xlane.f32.xlu0 %v8647_v29  ;;  %v8651_v6 = vmul.f32 %v13214_v3, %v13206_v41  ;;  %v8874_v41 = vld [vmem:[%s15579_s4 + $0x220] sm:$0xff]  ;;  %v8980_v29 = vld [vmem:[%s15579_s4 + $0x258] sm:$0xff]  ;;  %v8978_v3 = vld [vmem:[%s15579_s4 + $0x248] sm:$0xff] }
0x411b   :  { %8654 = vrot.lane.b32.xlu0 %v14938_v12, %s13347_s14 }
0x418e   :  { %v12711_v51 = vpop.f32.mrf.mxu0  ;;  %v8649_v2 = vpop.xlane.xlu0 %8648 }
0x418f   :  { %13215 = vrcp.f32 %v8649_v2 }
0x4190   :  { %v8445_v57 = vpop.f32.mrf.mxu0 }
0x4191   :  { %12714 = vmatprep.mubr.msk.f32.mxu0 %vm284_vm2, %v8445_v57 }
0x4192   :  { %12715 = vmatmul.mubr.msk.f32.vlgmr.msra.gmra.mxu0 %vm284_vm2, %v12711_v51  ;;  %v8655_v31 = vpop.permute.xlu0 %8654  ;;  %v11518_v51 = vld [vmem:[%s15579_s4 + $0x240] ss:$0 sm:$0xff] }
0x4193   :  { %12725 = vmatpush3.msk.msra.mxu0 %vm2228_vm9, %v8657_v22  ;;  %12728 = vmatprep.mubr.msk.f32.mxu0 %vm2193_vm8, %v8651_v6  ;;  %v11517_v22 = vld [vmem:[%s15579_s4 + $0x218] ss:$0 sm:$0xff] }
0x4194   :  { %12726 = vmatprep.subr.mxu0 %v8655_v31 }
0x4195   :  { %12727 = vmatpush3.msra.mxu0 %v8655_v31 }
0x4196   :  { %12731 = vmatprep.subr.mxu0 %v7678_v28 }
0x419c   :  { %v13216_v12 = vpop.eup %13215 }
0x419d   :  { %v8653_v32 = vmul.f32 %v13216_v12, %v13212_v27  ;;  %v8981_v27 = vld [vmem:[%s15579_s4 + $0x260] sm:$0xff] }
0x419f   :  { %12729 = vmatmul.mubr.msk.f32.vlgmr.msra.gmra.mxu0 %vm2193_vm8, %v8653_v32 }
0x41a0   :  { %12732 = vmatpush3.msra.mxu0 %v7678_v28 }
0x41a1   :  { %12747 = vmatprep.subr.mxu0 %v8981_v27 }
0x4252   :  { %v12716_v34 = vpop.f32.mrf.mxu0 }
0x4253   :  { %v8536_v60 = vadd.f32 %v12716_v34, %v15037_v33 }
0x4254   :  { %v8526_v14 = vpop.f32.mrf.mxu0 }
0x4255   :  { %v8535_v25 = vadd.f32 %v8526_v14, %v8241_v26 }
0x425f   :  { %v12730_v35 = vpop.f32.mrf.mxu0 }
0x4261   :  { %v8733_v36 = vpop.f32.mrf.mxu0 }
0x4262   :  { %12733 = vmatprep.mubr.msk.f32.mxu0 %vm284_vm2, %v8733_v36 }
0x4263   :  { %12734 = vmatmul.mubr.msk.f32.vlgmr.msra.gmra.mxu0 %vm284_vm2, %v12730_v35 }
0x4264   :  { %12748 = vmatpush3.msra.mxu0 %v8981_v27 }
0x4265   :  { %12749 = vmatprep.subr.mxu0 %v8980_v29 }
0x4266   :  { %12750 = vmatpush3.msra.mxu0 %v8980_v29 }
0x4267   :  { %12751 = vmatprep.subr.mxu0 %v8979_v30 }
0x4268   :  { %12752 = vmatpush3.msra.mxu0 %v8979_v30 }
0x4269   :  { %12753 = vmatprep.subr.mxu0 %v8978_v3 }
0x426a   :  { %12754 = vmatpush3.msra.mxu0 %v8978_v3 }
0x4323   :  { %v12735_v10 = vpop.f32.mrf.mxu0 }
0x4324   :  { %v8824_v38 = vadd.f32 %v12735_v10, %v8536_v60  ;;  %v11523_v10 = vld [vmem:[%s15579_s4 + $0x268] ss:$0 sm:$0xff] }
0x4325   :  { %v8814_v39 = vpop.f32.mrf.mxu0 }
0x4326   :  { %v8831_v37 = vadd.f32 %v11515_v54, %v8824_v38  ;;  %v8823_v42 = vadd.f32 %v8814_v39, %v8535_v25 }
0x4328   :  { %v8830_v40 = vadd.f32 %v11515_v54, %v8823_v42  ;;  %v8833_v33 = vadd.f32 %v8831_v37, %v14927_v4 }
0x432a   :  { %v8839_v17 = vsel %vm3263_vm10, %v8833_v33, 0.0  ;;  %v8832_v43 = vadd.f32 %v8830_v40, %v14925_v63  ;;  %v8877_v63 = vld [vmem:[%s15579_s4 + $0x238] sm:$0xff] }
0x432b   :  { %8840 = vadd.xlane.f32.xlu0 %v8839_v17  ;;  %12736 = vmatprep.subr.mxu1 %v8877_v63 }
0x432c   :  { %v8836_v62 = vsel %vm394_vm3, %v8832_v43, 0.0  ;;  %12737 = vmatpush3.msra.mxu1 %v8877_v63  ;;  %v9111_v63 = vld [vmem:[%s15579_s4 + $0x288] sm:$0xff] }
0x432d   :  { %8837 = vadd.xlane.f32.xlu1 %v8836_v62  ;;  %12738 = vmatprep.subr.mxu1 %v8876_v53 }
0x432e   :  { %12739 = vmatpush3.msra.mxu1 %v8876_v53  ;;  %v9110_v53 = vld [vmem:[%s15579_s4 + $0x280] sm:$0xff] }
0x432f   :  { %12740 = vmatprep.subr.mxu1 %v8875_v55 }
0x4330   :  { %12741 = vmatpush3.msra.mxu1 %v8875_v55 }
0x4331   :  { %12742 = vmatprep.subr.mxu1 %v8874_v41 }
0x4332   :  { %12743 = vmatpush3.msra.mxu1 %v8874_v41 }
0x43b4   :  { %v8841_v61 = vpop.xlane.xlu0 %8840 }
0x43b5   :  { %v8843_v56 = vmul.f32 0.03125, %v8841_v61 }
0x43b6   :  { %v8838_v46 = vpop.xlane.xlu1 %8837 }
0x43b7   :  { %v8845_v45 = vsub.f32 %v8833_v33, %v8843_v56  ;;  %v8842_v47 = vmul.f32 0.03125, %v8838_v46 }
0x43b9   :  { %v8844_v48 = vsub.f32 %v8832_v43, %v8842_v47  ;;  %v8847_v52 = vmul.f32 %v8845_v45, %v8845_v45 }
0x43bb   :  { %v8851_v49 = vsel %vm3263_vm10, %v8847_v52, 0.0  ;;  %v8846_v44 = vmul.f32 %v8844_v48, %v8844_v48 }
0x43bc   :  { %8852 = vadd.xlane.f32.xlu0 %v8851_v49 }
0x43bd   :  { %v8848_v4 = vsel %vm394_vm3, %v8846_v44, 0.0  ;;  %v9113_v44 = vld [vmem:[%s15579_s4 + $0x298] sm:$0xff] }
0x43be   :  { %8849 = vadd.xlane.f32.xlu1 %v8848_v4  ;;  %v9112_v4 = vld [vmem:[%s15579_s4 + $0x290] sm:$0xff]  ;;  %12758 = vmatprep.subr.mxu1 %v9113_v44 }
0x4445   :  { %v8853_v58 = vpop.xlane.xlu0 %8852 }
0x4446   :  { %v8855_v59 = vmul.f32 0.03125, %v8853_v58 }
0x4447   :  { %v8850_v50 = vpop.xlane.xlu1 %8849 }
0x4448   :  { %v8857_v0 = vadd.f32 1e-05, %v8855_v59  ;;  %v8854_v5 = vmul.f32 0.03125, %v8850_v50 }
0x444a   :  { %13217 = vrsqrt.f32 %v8857_v0  ;;  %v8856_v8 = vadd.f32 1e-05, %v8854_v5 }
0x444c   :  { %13219 = vrsqrt.f32 %v8856_v8  ;;  %v11526_v8 = vld [vmem:[%s15579_s4 + $0x270] ss:$0 sm:$0xff] }
0x4457   :  { %v13218_v11 = vpop.eup %13217 }
0x4458   :  { %v8861_v16 = vmul.f32 %v13218_v11, %v8845_v45 }
0x4459   :  { %v13220_v20 = vpop.eup %13219 }
0x445a   :  { %v8860_v21 = vmul.f32 %v13220_v20, %v8844_v48  ;;  %v8867_v9 = vmul.f32 %v11516_v15, %v8861_v16 }
0x445c   :  { %v8866_v7 = vmul.f32 %v11516_v15, %v8860_v21  ;;  %v8873_v24 = vadd.f32 %v11517_v22, %v8867_v9  ;;  %v11527_v21 = vld [vmem:[%s15579_s4 + $0x278] ss:$0 sm:$0xff] }
0x445e   :  { %v8872_v23 = vadd.f32 %v11517_v22, %v8866_v7 }
0x4460   :  { %12744 = vmatprep.mubr.msk.f32.mxu1 %vm394_vm3, %v8872_v23 }
0x4461   :  { %12745 = vmatmul.mubr.msk.f32.vlgmr.msra.gmra.mxu1 %vm394_vm3, %v8873_v24 }
0x4462   :  { %12759 = vmatpush3.msra.mxu1 %v9113_v44 }
0x4463   :  { %12760 = vmatprep.subr.mxu1 %v9112_v4 }
0x4464   :  { %12761 = vmatpush3.msra.mxu1 %v9112_v4 }
0x4465   :  { %12762 = vmatprep.subr.mxu1 %v9111_v63 }
0x4466   :  { %12763 = vmatpush3.msra.mxu1 %v9111_v63 }
0x4467   :  { %12764 = vmatprep.subr.mxu1 %v9110_v53 }
0x4468   :  { %12765 = vmatpush3.msra.mxu1 %v9110_v53 }
0x4521   :  { %v12746_v2 = vpop.f32.mrf.mxu1 }
0x4522   :  { %v8961_v57 = vadd.f32 %v12746_v2, %v11518_v51 }
0x4523   :  { %v8955_v6 = vpop.f32.mrf.mxu1 }
0x4524   :  { %v11522_v31 = vmul.f32 -1.442695, %v8961_v57  ;;  %v8956_v12 = vadd.f32 %v11518_v51, %v8955_v6 }
0x4526   :  { %13221 = vpow2.f32 %v11522_v31  ;;  %v11521_v32 = vmul.f32 -1.442695, %v8956_v12 }
0x4528   :  { %13223 = vpow2.f32 %v11521_v32 }
0x4533   :  { %v13222_v28 = vpop.eup %13221 }
0x4534   :  { %v8971_v34 = vadd.f32 1.0, %v13222_v28 }
0x4535   :  { %v13224_v26 = vpop.eup %13223 }
0x4536   :  { %v8970_v60 = vadd.f32 1.0, %v13224_v26  ;;  %13225 = vrcp.f32 %v8971_v34 }
0x4538   :  { %13227 = vrcp.f32 %v8970_v60 }
0x4543   :  { %v13226_v14 = vpop.eup %13225 }
0x4544   :  { %v8977_v36 = vmul.f32 %v13226_v14, %v8961_v57 }
0x4545   :  { %v13228_v25 = vpop.eup %13227 }
0x4546   :  { %v8976_v35 = vmul.f32 %v13228_v25, %v8956_v12 }
0x4548   :  { %12755 = vmatprep.mubr.msk.f32.mxu0 %vm394_vm3, %v8976_v35 }
0x4549   :  { %12756 = vmatmul.mubr.msk.f32.vlgmr.msra.gmra.mxu0 %vm394_vm3, %v8977_v36 }
0x4609   :  { %v12757_v54 = vpop.f32.mrf.mxu0 }
0x460a   :  { %v9065_v38 = vadd.f32 %v12757_v54, %v11523_v10 }
0x460b   :  { %v9059_v39 = vpop.f32.mrf.mxu0 }
0x460c   :  { %v9069_v37 = vadd.f32 %v9065_v38, %v8873_v24  ;;  %v9060_v42 = vadd.f32 %v11523_v10, %v9059_v39 }
0x460e   :  { %v9068_v40 = vadd.f32 %v9060_v42, %v8872_v23  ;;  %v9075_v33 = vsel %vm3263_vm10, %v9069_v37, 0.0  ;;  %v11528_v23 = vld [vmem:[%s15579_s4 + $0x2a0] ss:$0 sm:$0xff] }
0x460f   :  { %9076 = vadd.xlane.f32.xlu0 %v9075_v33 }
0x4610   :  { %v9072_v17 = vsel %vm394_vm3, %v9068_v40, 0.0 }
0x4611   :  { %9073 = vadd.xlane.f32.xlu1 %v9072_v17 }
0x4698   :  { %v9077_v43 = vpop.xlane.xlu0 %9076 }
0x4699   :  { %v9079_v62 = vmul.f32 0.03125, %v9077_v43 }
0x469a   :  { %v9074_v61 = vpop.xlane.xlu1 %9073 }
0x469b   :  { %v9081_v56 = vsub.f32 %v9069_v37, %v9079_v62  ;;  %v9078_v46 = vmul.f32 0.03125, %v9074_v61 }
0x469d   :  { %v9080_v45 = vsub.f32 %v9068_v40, %v9078_v46  ;;  %v9083_v47 = vmul.f32 %v9081_v56, %v9081_v56 }
0x469f   :  { %v9087_v48 = vsel %vm3263_vm10, %v9083_v47, 0.0  ;;  %v9082_v52 = vmul.f32 %v9080_v45, %v9080_v45 }
0x46a0   :  { %9088 = vadd.xlane.f32.xlu0 %v9087_v48 }
0x46a1   :  { %v9084_v49 = vsel %vm394_vm3, %v9082_v52, 0.0 }
0x46a2   :  { %9085 = vadd.xlane.f32.xlu1 %v9084_v49 }
0x4729   :  { %v9089_v55 = vpop.xlane.xlu0 %9088 }
0x472a   :  { %v9091_v41 = vmul.f32 0.03125, %v9089_v55 }
0x472b   :  { %v9086_v58 = vpop.xlane.xlu1 %9085 }
0x472c   :  { %v9093_v59 = vadd.f32 1e-05, %v9091_v41  ;;  %v9090_v50 = vmul.f32 0.03125, %v9086_v58 }
0x472e   :  { %13229 = vrsqrt.f32 %v9093_v59  ;;  %v9092_v0 = vadd.f32 1e-05, %v9090_v50 }
0x4730   :  { %13231 = vrsqrt.f32 %v9092_v0 }
0x473b   :  { %v13230_v5 = vpop.eup %13229 }
0x473c   :  { %v9097_v11 = vmul.f32 %v13230_v5, %v9081_v56 }
0x473d   :  { %v13232_v15 = vpop.eup %13231 }
0x473e   :  { %v9096_v16 = vmul.f32 %v13232_v15, %v9080_v45  ;;  %v9103_v20 = vmul.f32 %v11526_v8, %v9097_v11 }
0x4740   :  { %v9102_v9 = vmul.f32 %v11526_v8, %v9096_v16  ;;  %v15154_v7 = vadd.f32 %v11527_v21, %v9103_v20 }
0x4742   :  { %v15152_v22 = vadd.f32 %v11527_v21, %v9102_v9 }
0x4744   :  { %12766 = vmatprep.mubr.msk.f32.mxu1 %vm394_vm3, %v15152_v22 }
0x4745   :  { %12767 = vmatmul.mubr.msk.f32.vlgmr.msra.gmra.mxu1 %vm394_vm3, %v15154_v7 }
0x4805   :  { %v12768_v24 = vpop.f32.mrf.mxu1 }
0x4806   :  { %v15163_v27 = vadd.f32 %v12768_v24, %v11528_v23 }
0x4807   :  { %v9191_v29 = vpop.f32.mrf.mxu1 }
0x4808   :  { %v15165_v30 = vadd.f32 %v11528_v23, %v9191_v29  ;;  %9208 = vrot.lane.b32.xlu1 %v15163_v27, %s13337_s22  ;;  %v9201_v23 = vld [vmem:[%s15579_s4 + $0x2b0] sm:$0xff] }
0x480a   :  { %9206 = vrot.lane.b32.xlu0 %v15165_v30, %s13337_s22  ;;  %12773 = vmatprep.mubr.msk.f32.mxu0 %vm284_vm2, %v15165_v30 }
0x480c   :  { %9413 = vrot.lane.b32.xlu1 %v15163_v27, %s13340_s11 }
0x480e   :  { %9407 = vrot.lane.b32.xlu0 %v15165_v30, %s13339_s8 }
0x4810   :  { %9411 = vrot.lane.b32.xlu1 %v15165_v30, %s13340_s11  ;;  %s13349_s11 = smov [#allocation2]  }
0x4814   :  { %9409 = vrot.lane.b32.xlu1 %v15163_v27, %s13339_s8 }
0x487a   :  { %v9209_v3 = vpop.permute.xlu1 %9208 }
0x487b   :  { %12769 = vmatprep.subr.msk.mxu0 %vm284_vm2, %v9209_v3 }
0x487c   :  { %12770 = vmatpush3.xpose.msk.msra.mxu0 %vm284_vm2, %v9209_v3  ;;  %v9207_v51 = vpop.permute.xlu0 %9206 }
0x487d   :  { %12771 = vmatprep.subr.msk.mxu0 %vm284_vm2, %v9207_v51 }
0x487e   :  { %v9414_v2 = vpop.permute.xlu1 %9413 }
0x4880   :  { %12772 = vmatpush3.xpose.msk.msra.mxu0 %vm284_vm2, %v9207_v51  ;;  %v9408_v57 = vpop.permute.xlu0 %9407 }
0x4881   :  { %12783 = vmatprep.subr.msk.mxu0 %vm284_vm2, %v9414_v2 }
0x4882   :  { %v9412_v6 = vpop.permute.xlu1 %9411 }
0x4883   :  { %12774 = vmatmul.mubr.msk.f32.vlgmr.msra.gmra.mxu0 %vm284_vm2, %v15163_v27 }
0x4884   :  { %12784 = vmatpush3.xpose.msk.msra.mxu0 %vm284_vm2, %v9414_v2  ;;  %12787 = vmatprep.mubr.msk.f32.mxu0 %vm284_vm2, %v9408_v57  ;;  %v9200_v57 = vld [vmem:[%s15579_s4 + $0x2a8] sm:$0xff] }
0x4885   :  { %12785 = vmatprep.subr.msk.mxu0 %vm284_vm2, %v9412_v6 }
0x4886   :  { %v9410_v31 = vpop.permute.xlu1 %9409 }
0x4888   :  { %12786 = vmatpush3.xpose.msk.msra.mxu0 %vm284_vm2, %v9412_v6 }
0x4889   :  { %12802 = vmatprep.subr.mxu0 %v9200_v57 }
0x488b   :  { %12788 = vmatmul.mubr.msk.f32.vlgmr.msra.gmra.mxu0 %vm284_vm2, %v9410_v31 }
0x488c   :  { %12803 = vmatpush3.msra.mxu0 %v9200_v57 }
0x4943   :  { %v12775_v12 = vpop.f32.mrf.mxu0 }
0x4944   :  { %v9294_v32 = vmul.f32 0.35355338, %v12775_v12 }
0x4945   :  { %v9284_v28 = vpop.f32.mrf.mxu0 }
0x4946   :  { %v9296_v34 = vadd.f32 %v14969_v19, %v9294_v32  ;;  %v9293_v26 = vmul.f32 0.35355338, %v9284_v28 }
0x4948   :  { %v9295_v60 = vadd.f32 %v14969_v19, %v9293_v26  ;;  %v9300_v14 = vsel %vm2197_vm7, %v9296_v34, -inf }
0x4949   :  { %9301 = vmax.xlane.f32.xlu1 %v9300_v14 }
0x494a   :  { %v9297_v25 = vsel %vm2193_vm8, %v9295_v60, -inf }
0x494b   :  { %v12789_v35 = vpop.f32.mrf.mxu0  ;;  %9298 = vmax.xlane.f32.xlu0 %v9297_v25 }
0x494c   :  { %v9499_v10 = vmul.f32 0.35355338, %v12789_v35 }
0x494d   :  { %v9489_v36 = vpop.f32.mrf.mxu0 }
0x494e   :  { %v9498_v54 = vmul.f32 0.35355338, %v9489_v36  ;;  %v9501_v39 = vadd.f32 %v14969_v19, %v9499_v10 }
0x4950   :  { %v9500_v38 = vadd.f32 %v14969_v19, %v9498_v54  ;;  %v9505_v42 = vsel %vm2197_vm7, %v9501_v39, -inf }
0x4952   :  { %v9502_v37 = vsel %vm2193_vm8, %v9500_v38, -inf }
0x4953   :  { %9503 = vmax.xlane.f32.xlu0 %v9502_v37 }
0x4957   :  { %9506 = vmax.xlane.f32.xlu0 %v9505_v42 }
0x495a   :  { %9321 = vrot.lane.b32.xlu1 %v15163_v27, %s13342_s26 }
0x49d2   :  { %v9302_v40 = vpop.xlane.xlu1 %9301 }
0x49d3   :  { %v9304_v33 = vsub.f32 %v9296_v34, %v9302_v40  ;;  %v13312_v40 = vld [vmem:[%s15577_s2 + $0x1] ss:$0 sm:$0xff] }
0x49d4   :  { %v9299_v17 = vpop.xlane.xlu0 %9298 }
0x49d5   :  { %v9307_v43 = vmul.f32 1.442695, %v9304_v33  ;;  %v9303_v62 = vsub.f32 %v9295_v60, %v9299_v17 }
0x49d6   :  { %v9322_v61 = vpop.permute.xlu1 %9321 }
0x49d7   :  { %13233 = vpow2.f32 %v9307_v43  ;;  %v9305_v56 = vmul.f32 1.442695, %v9303_v62  ;;  %12776 = vmatprep.subr.msk.mxu1 %vm2228_vm9, %v9322_v61 }
0x49d8   :  { %12777 = vmatpush3.msk.msra.mxu1 %vm2228_vm9, %v9322_v61 }
0x49d9   :  { %13235 = vpow2.f32 %v9305_v56 }
0x49dc   :  { %v9504_v19 = vpop.xlane.xlu0 %9503 }
0x49dd   :  { %v9508_v53 = vsub.f32 %v9500_v38, %v9504_v19 }
0x49df   :  { %v9510_v55 = vmul.f32 1.442695, %v9508_v53 }
0x49e0   :  { %v9507_v46 = vpop.xlane.xlu0 %9506 }
0x49e1   :  { %v9509_v45 = vsub.f32 %v9501_v39, %v9507_v46 }
0x49e3   :  { %v9512_v47 = vmul.f32 1.442695, %v9509_v45 }
0x49e4   :  { %v13234_v48 = vpop.eup %13233 }
0x49e5   :  { %13237 = vpow2.f32 %v9512_v47  ;;  %v9312_v52 = vsel %vm2197_vm7, %v13234_v48, 0.0 }
0x49e6   :  { %v13236_v49 = vpop.eup %13235  ;;  %9313 = vadd.xlane.f32.xlu0 %v9312_v52  ;;  %13239 = vpow2.f32 %v9510_v55 }
0x49e7   :  { %v9309_v44 = vsel %vm2193_vm8, %v13236_v49, 0.0 }
0x49e8   :  { %9310 = vadd.xlane.f32.xlu1 %v9309_v44 }
0x49f2   :  { %v13238_v4 = vpop.eup %13237 }
0x49f3   :  { %v9517_v63 = vsel %vm2197_vm7, %v13238_v4, 0.0  ;;  %v13240_v41 = vpop.eup %13239 }
0x49f4   :  { %9518 = vadd.xlane.f32.xlu0 %v9517_v63  ;;  %v9514_v58 = vsel %vm2193_vm8, %v13240_v41, 0.0 }
0x49f9   :  { %9526 = vrot.lane.b32.xlu1 %v15163_v27, %s13343_s27 }
0x4a0a   :  { %9319 = vrot.lane.b32.xlu0 %v15165_v30, %s13342_s26  ;;  %s11185_s26 = sshll.u32 %s13349_s11, 4  ;;  %s11186_s26 = int_to_ptr.vmem [resolvable:$true] %s11185_s26 }
0x4a0b   :  { %p13318_p1 = scmp.lt.s32.totalorder %s11186_s26, %s11186_s26 }
0x4a0e   :  { %9780 = vrot.lane.b32.xlu0 %v15163_v27, %s13344_s28 }
0x4a12   :  { %9774 = vrot.lane.b32.xlu0 %v15165_v30, %s13336_s21 }
0x4a16   :  { %10068 = vrot.lane.b32.xlu0 %v15163_v27, %s13345_s29 }
0x4a1a   :  { %10062 = vrot.lane.b32.xlu0 %v15165_v30, %s13338_s7 }
0x4a1d   :  { %9515 = vadd.xlane.f32.xlu1 %v9514_v58 }
0x4a2e   :  { %9524 = vrot.lane.b32.xlu1 %v15165_v30, %s13343_s27  ;;  %s13313_s27 = scalar_lea.vmem %s11186_s26, 32 }
0x4a2f   :  { %p13314_p0 = scmp.ne.s32.totalorder %s11186_s26, %s13313_s27  ;;  %p13319_p2 = scmp.lt.s32.totalorder %s13313_s27, %s13313_s27 }
0x4a31   :  { %p13320_p3 = por %p13319_p2, %p13318_p1 }
0x4a32   :  { %9778 = vrot.lane.b32.xlu1 %v15165_v30, %s13344_s28 }
0x4a33   :  { %p13321_p4 = pnand %p13320_p3, %p13314_p0 }
0x4a36   :  { %9776 = vrot.lane.b32.xlu1 %v15163_v27, %s13336_s21 }
0x4a3a   :  { %10066 = vrot.lane.b32.xlu1 %v15165_v30, %s13345_s29 }
0x4a3e   :  { %10064 = vrot.lane.b32.xlu1 %v15163_v27, %s13338_s7 }
0x4a6f   :  { %v9314_v59 = vpop.xlane.xlu0 %9313 }
0x4a70   :  { %13241 = vrcp.f32 %v9314_v59 }
0x4a71   :  { %v9311_v50 = vpop.xlane.xlu1 %9310 }
0x4a72   :  { %13243 = vrcp.f32 %v9311_v50 }
0x4a75   :  { %v9527_v20 = vpop.permute.xlu1 %9526 }
0x4a7d   :  { %v9519_v0 = vpop.xlane.xlu0 %9518  ;;  %v13242_v5 = vpop.eup %13241 }
0x4a7e   :  { %v9318_v16 = vmul.f32 %v13242_v5, %v13234_v48  ;;  %13245 = vrcp.f32 %v9519_v0 }
0x4a7f   :  { %v13244_v8 = vpop.eup %13243 }
0x4a80   :  { %v9316_v11 = vmul.f32 %v13244_v8, %v13236_v49 }
0x4a81   :  { %v9320_v15 = vpop.permute.xlu0 %9319 }
0x4a82   :  { %12778 = vmatprep.subr.mxu1 %v9320_v15  ;;  %12780 = vmatprep.mubr.msk.f32.mxu1 %vm2193_vm8, %v9316_v11 }
0x4a83   :  { %12779 = vmatpush3.msra.mxu1 %v9320_v15 }
0x4a84   :  { %12781 = vmatmul.mubr.msk.f32.vlgmr.msra.gmra.mxu1 %vm2193_vm8, %v9318_v16  ;;  %12790 = vmatprep.subr.msk.mxu1 %vm2228_vm9, %v9527_v20 }
0x4a85   :  { %12791 = vmatpush3.msk.msra.mxu1 %vm2228_vm9, %v9527_v20  ;;  %v9781_v2 = vpop.permute.xlu0 %9780 }
0x4a89   :  { %v9775_v12 = vpop.permute.xlu0 %9774 }
0x4a8b   :  { %v13246_v24 = vpop.eup %13245 }
0x4a8c   :  { %v9523_v51 = vmul.f32 %v13246_v24, %v13238_v4  ;;  %v9202_v24 = vld [vmem:[%s15579_s4 + $0x2b8] sm:$0xff] }
0x4a8d   :  { %v10069_v26 = vpop.permute.xlu0 %10068 }
0x4a91   :  { %v10063_v14 = vpop.permute.xlu0 %10062 }
0x4aa6   :  { %v9516_v21 = vpop.xlane.xlu1 %9515 }
0x4aa7   :  { %13247 = vrcp.f32 %v9516_v21 }
0x4aaa   :  { %v9525_v9 = vpop.permute.xlu1 %9524 }
0x4aab   :  { %12792 = vmatprep.subr.mxu1 %v9525_v9 }
0x4aac   :  { %12793 = vmatpush3.msra.mxu1 %v9525_v9 }
0x4aad   :  { %12797 = vmatprep.subr.mxu1 %v9201_v23 }
0x4aae   :  { %v9779_v28 = vpop.permute.xlu1 %9778 }
0x4ab2   :  { %v9777_v60 = vpop.permute.xlu1 %9776 }
0x4ab4   :  { %v13248_v29 = vpop.eup %13247 }
0x4ab5   :  { %v9521_v3 = vmul.f32 %v13248_v29, %v13240_v41 }
0x4ab6   :  { %v10067_v25 = vpop.permute.xlu1 %10066 }
0x4ab7   :  { %12794 = vmatprep.mubr.msk.f32.mxu1 %vm2193_vm8, %v9521_v3 }
0x4ab8   :  { %12795 = vmatmul.mubr.msk.f32.vlgmr.msra.gmra.mxu1 %vm2193_vm8, %v9523_v51 }
0x4ab9   :  { %12798 = vmatpush3.msra.mxu1 %v9201_v23 }
0x4aba   :  { %12807 = vmatprep.subr.msk.mxu1 %vm284_vm2, %v9781_v2  ;;  %v10065_v35 = vpop.permute.xlu1 %10064 }
0x4b44   :  { %v12782_v6 = vpop.f32.mrf.mxu1 }
0x4b46   :  { %v9398_v31 = vpop.f32.mrf.mxu1 }
0x4b47   :  { %12804 = vmatprep.mubr.msk.f32.mxu0 %vm284_vm2, %v9398_v31 }
0x4b48   :  { %12805 = vmatmul.mubr.msk.f32.vlgmr.msra.gmra.mxu0 %vm284_vm2, %v12782_v6 }
0x4b78   :  { %v12796_v32 = vpop.f32.mrf.mxu1 }
0x4b7a   :  { %v9603_v34 = vpop.f32.mrf.mxu1 }
0x4b7b   :  { %12799 = vmatprep.mubr.msk.f32.mxu1 %vm284_vm2, %v9603_v34 }
0x4b7c   :  { %12800 = vmatmul.mubr.msk.f32.vlgmr.msra.gmra.mxu1 %vm284_vm2, %v12796_v32 }
0x4b7d   :  { %12808 = vmatpush3.xpose.msk.msra.mxu1 %vm284_vm2, %v9781_v2  ;;  %12811 = vmatprep.mubr.msk.f32.mxu1 %vm284_vm2, %v9775_v12 }
0x4b7e   :  { %12809 = vmatprep.subr.msk.mxu1 %vm284_vm2, %v9779_v28 }
0x4b81   :  { %12810 = vmatpush3.xpose.msk.msra.mxu1 %vm284_vm2, %v9779_v28 }
0x4b82   :  { %12826 = vmatprep.subr.msk.mxu1 %vm284_vm2, %v10069_v26 }
0x4b84   :  { %12812 = vmatmul.mubr.msk.f32.vlgmr.msra.gmra.mxu1 %vm284_vm2, %v9777_v60 }
0x4b85   :  { %12827 = vmatpush3.xpose.msk.msra.mxu1 %vm284_vm2, %v10069_v26  ;;  %12830 = vmatprep.mubr.msk.f32.mxu1 %vm284_vm2, %v10063_v14 }
0x4b86   :  { %12828 = vmatprep.subr.msk.mxu1 %vm284_vm2, %v10067_v25 }
0x4b89   :  { %12829 = vmatpush3.xpose.msk.msra.mxu1 %vm284_vm2, %v10067_v25 }
0x4b8c   :  { %12831 = vmatmul.mubr.msk.f32.vlgmr.msra.gmra.mxu1 %vm284_vm2, %v10065_v35 }
0x4c08   :  { %v12806_v36 = vpop.f32.mrf.mxu0 }
0x4c0a   :  { %v9765_v34 = vpop.f32.mrf.mxu0 }
0x4c3c   :  { %v12801_v10 = vpop.f32.mrf.mxu1 }
0x4c3d   :  { %v15259_v54 = vadd.f32 %v12806_v36, %v12801_v10 }
0x4c3e   :  { %v15261_v38 = vpop.f32.mrf.mxu1 }
0x4c44   :  { %v12813_v39 = vpop.f32.mrf.mxu1 }
0x4c45   :  { %v9866_v37 = vmul.f32 0.35355338, %v12813_v39  ;;  %v9203_v39 = vld [vmem:[%s15579_s4 + $0x2c0] sm:$0xff] }
0x4c46   :  { %v9856_v42 = vpop.f32.mrf.mxu1 }
0x4c47   :  { %v9868_v33 = vadd.f32 %v13312_v40, %v9866_v37  ;;  %v9865_v17 = vmul.f32 0.35355338, %v9856_v42  ;;  %v9766_v42 = vadd.f32 %v9765_v34, %v15261_v38  ;;  %v10503_v34 = vld [vmem:[%s15579_s4 + $0x308] sm:$0xff] }
0x4c49   :  { %v9867_v43 = vadd.f32 %v13312_v40, %v9865_v17  ;;  %v9872_v62 = vsel %vm2197_vm7, %v9868_v33, -inf }
0x4c4a   :  { %9873 = vmax.xlane.f32.xlu1 %v9872_v62 }
0x4c4b   :  { %v9869_v61 = vsel %vm2193_vm8, %v9867_v43, -inf }
0x4c4c   :  { %9870 = vmax.xlane.f32.xlu0 %v9869_v61  ;;  %v12832_v56 = vpop.f32.mrf.mxu1 }
0x4c4d   :  { %v10154_v8 = vmul.f32 0.35355338, %v12832_v56  ;;  %v11567_v56 = vld [vmem:[%s15579_s4 + $0x2c8] ss:$0 sm:$0xff] }
0x4c4e   :  { %v10144_v19 = vpop.f32.mrf.mxu1 }
0x4c4f   :  { %v10153_v46 = vmul.f32 0.35355338, %v10144_v19  ;;  %v10156_v15 = vadd.f32 %v13312_v40, %v10154_v8  ;;  %v10399_v8 = vld [vmem:[%s15579_s4 + $0x2e0] sm:$0xff] }
0x4c51   :  { %v10155_v45 = vadd.f32 %v13312_v40, %v10153_v46  ;;  %v10160_v20 = vsel %vm2197_vm7, %v10156_v15, -inf }
0x4c53   :  { %v10157_v47 = vsel %vm2193_vm8, %v10155_v45, -inf }
0x4c5b   :  { %9893 = vrot.lane.b32.xlu1 %v15163_v27, %s13346_s13 }
0x4c7f   :  { %10158 = vmax.xlane.f32.xlu1 %v10157_v47 }
0x4cd3   :  { %v9874_v48 = vpop.xlane.xlu1 %9873 }
0x4cd4   :  { %v9876_v52 = vsub.f32 %v9868_v33, %v9874_v48 }
0x4cd5   :  { %v9871_v49 = vpop.xlane.xlu0 %9870 }
0x4cd6   :  { %v9879_v44 = vmul.f32 1.442695, %v9876_v52  ;;  %v9875_v4 = vsub.f32 %v9867_v43, %v9871_v49 }
0x4cd7   :  { %v9894_v63 = vpop.permute.xlu1 %9893 }
0x4cd8   :  { %13249 = vpow2.f32 %v9879_v44  ;;  %v9877_v53 = vmul.f32 1.442695, %v9875_v4  ;;  %12814 = vmatprep.subr.msk.mxu0 %vm2228_vm9, %v9894_v63 }
0x4cd9   :  { %12815 = vmatpush3.msk.msra.mxu0 %vm2228_vm9, %v9894_v63 }
0x4cda   :  { %13251 = vpow2.f32 %v9877_v53 }
0x4ce5   :  { %v13250_v55 = vpop.eup %13249 }
0x4ce6   :  { %v9884_v41 = vsel %vm2197_vm7, %v13250_v55, 0.0 }
0x4ce7   :  { %v13252_v58 = vpop.eup %13251  ;;  %9885 = vadd.xlane.f32.xlu0 %v9884_v41 }
0x4ce8   :  { %v9881_v59 = vsel %vm2193_vm8, %v13252_v58, 0.0 }
0x4ceb   :  { %9882 = vadd.xlane.f32.xlu0 %v9881_v59 }
0x4d01   :  { %9891 = vrot.lane.b32.xlu0 %v15165_v30, %s13346_s13 }
0x4d08   :  { %v10159_v50 = vpop.xlane.xlu1 %10158 }
0x4d09   :  { %v10163_v0 = vsub.f32 %v10155_v45, %v10159_v50 }
0x4d0b   :  { %v10165_v5 = vmul.f32 1.442695, %v10163_v0  ;;  %v10401_v0 = vld [vmem:[%s15579_s4 + $0x2f0] sm:$0xff] }
0x4d0d   :  { %13253 = vpow2.f32 %v10165_v5  ;;  %v10400_v5 = vld [vmem:[%s15579_s4 + $0x2e8] sm:$0xff] }
0x4d1a   :  { %v13254_v11 = vpop.eup %13253 }
0x4d1b   :  { %v10169_v16 = vsel %vm2193_vm8, %v13254_v11, 0.0 }
0x4d1c   :  { %10170 = vadd.xlane.f32.xlu1 %v10169_v16 }
0x4d20   :  { %10161 = vmax.xlane.f32.xlu0 %v10160_v20 }
0x4d2d   :  { %10181 = vrot.lane.b32.xlu1 %v15163_v27, %s13347_s14 }
0x4d70   :  { %v9886_v21 = vpop.xlane.xlu0 %9885 }
0x4d71   :  { %13255 = vrcp.f32 %v9886_v21 }
0x4d74   :  { %v9883_v9 = vpop.xlane.xlu0 %9882 }
0x4d75   :  { %13257 = vrcp.f32 %v9883_v9 }
0x4d78   :  { %v9892_v23 = vpop.permute.xlu0 %9891 }
0x4d79   :  { %12816 = vmatprep.subr.mxu0 %v9892_v23 }
0x4d7a   :  { %12817 = vmatpush3.msra.mxu0 %v9892_v23 }
0x4d7b   :  { %12821 = vmatprep.subr.mxu0 %v9202_v24 }
0x4d7e   :  { %v13256_v29 = vpop.eup %13255 }
0x4d7f   :  { %v9890_v2 = vmul.f32 %v13256_v29, %v13250_v55 }
0x4d82   :  { %v13258_v3 = vpop.eup %13257 }
0x4d83   :  { %v9888_v51 = vmul.f32 %v13258_v3, %v13252_v58 }
0x4d85   :  { %12818 = vmatprep.mubr.msk.f32.mxu0 %vm2193_vm8, %v9888_v51 }
0x4d86   :  { %12819 = vmatmul.mubr.msk.f32.vlgmr.msra.gmra.mxu0 %vm2193_vm8, %v9890_v2 }
0x4d87   :  { %12822 = vmatpush3.msra.mxu0 %v9202_v24  ;;  %v11568_v24 = vld [vmem:[%s15579_s4 + $0x2d0] ss:$0 sm:$0xff] }
0x4da5   :  { %v10171_v27 = vpop.xlane.xlu1 %10170 }
0x4da9   :  { %v10182_v57 = vpop.permute.xlu1 %10181  ;;  %v10162_v6 = vpop.xlane.xlu0 %10161 }
0x4daa   :  { %v10164_v31 = vsub.f32 %v10156_v15, %v10162_v6  ;;  %12833 = vmatprep.subr.msk.mxu0 %vm2228_vm9, %v10182_v57 }
0x4dac   :  { %v10167_v12 = vmul.f32 1.442695, %v10164_v31 }
0x4dae   :  { %13259 = vpow2.f32 %v10167_v12  ;;  %v10506_v12 = vld [vmem:[%s15579_s4 + $0x320] sm:$0xff] }
0x4daf   :  { %13261 = vrcp.f32 %v10171_v27  ;;  %v11569_v27 = vld [vmem:[%s15579_s4 + $0x2d8] ss:$0 sm:$0xff] }
0x4dbb   :  { %v13260_v32 = vpop.eup %13259 }
0x4dbc   :  { %v10172_v28 = vsel %vm2197_vm7, %v13260_v32, 0.0  ;;  %v13262_v26 = vpop.eup %13261 }
0x4dbd   :  { %10173 = vadd.xlane.f32.xlu0 %v10172_v28  ;;  %v10176_v35 = vmul.f32 %v13262_v26, %v13254_v11  ;;  %v10504_v28 = vld [vmem:[%s15579_s4 + $0x310] sm:$0xff]  ;;  %v11570_v26 = vld [vmem:[%s15579_s4 + $0x300] ss:$0 sm:$0xff] }
0x4dd3   :  { %10179 = vrot.lane.b32.xlu0 %v15165_v30, %s13347_s14 }
0x4e46   :  { %v12820_v60 = vpop.f32.mrf.mxu0  ;;  %v10174_v14 = vpop.xlane.xlu0 %10173 }
0x4e47   :  { %13263 = vrcp.f32 %v10174_v14 }
0x4e48   :  { %v9970_v25 = vpop.f32.mrf.mxu0 }
0x4e49   :  { %12823 = vmatprep.mubr.msk.f32.mxu0 %vm284_vm2, %v9970_v25 }
0x4e4a   :  { %12824 = vmatmul.mubr.msk.f32.vlgmr.msra.gmra.mxu0 %vm284_vm2, %v12820_v60  ;;  %v10180_v36 = vpop.permute.xlu0 %10179 }
0x4e4b   :  { %12834 = vmatpush3.msk.msra.mxu0 %vm2228_vm9, %v10182_v57  ;;  %12837 = vmatprep.mubr.msk.f32.mxu0 %vm2193_vm8, %v10176_v35 }
0x4e4c   :  { %12835 = vmatprep.subr.mxu0 %v10180_v36 }
0x4e4d   :  { %12836 = vmatpush3.msra.mxu0 %v10180_v36 }
0x4e4e   :  { %12840 = vmatprep.subr.mxu0 %v9203_v39 }
0x4e54   :  { %v13264_v30 = vpop.eup %13263 }
0x4e55   :  { %v10178_v10 = vmul.f32 %v13264_v30, %v13260_v32  ;;  %v10505_v32 = vld [vmem:[%s15579_s4 + $0x318] sm:$0xff] }
0x4e57   :  { %12838 = vmatmul.mubr.msk.f32.vlgmr.msra.gmra.mxu0 %vm2193_vm8, %v10178_v10 }
0x4e58   :  { %12841 = vmatpush3.msra.mxu0 %v9203_v39 }
0x4e59   :  { %12856 = vmatprep.subr.mxu0 %v10506_v12 }
0x4f0a   :  { %v12825_v37 = vpop.f32.mrf.mxu0 }
0x4f0b   :  { %v10061_v40 = vadd.f32 %v12825_v37, %v15259_v54 }
0x4f0c   :  { %v10051_v33 = vpop.f32.mrf.mxu0 }
0x4f0d   :  { %v10060_v17 = vadd.f32 %v10051_v33, %v9766_v42 }
0x4f17   :  { %v12839_v43 = vpop.f32.mrf.mxu0 }
0x4f19   :  { %v10258_v62 = vpop.f32.mrf.mxu0 }
0x4f1a   :  { %12842 = vmatprep.mubr.msk.f32.mxu0 %vm284_vm2, %v10258_v62  ;;  %v11575_v62 = vld [vmem:[%s15579_s4 + $0x328] ss:$0 sm:$0xff] }
0x4f1b   :  { %12843 = vmatmul.mubr.msk.f32.vlgmr.msra.gmra.mxu0 %vm284_vm2, %v12839_v43 }
0x4f1c   :  { %12857 = vmatpush3.msra.mxu0 %v10506_v12  ;;  %v10720_v12 = vld [vmem:[%s15579_s4 + $0x368] sm:$0xff] }
0x4f1d   :  { %12858 = vmatprep.subr.mxu0 %v10505_v32 }
0x4f1e   :  { %12859 = vmatpush3.msra.mxu0 %v10505_v32  ;;  %v10639_v32 = vld [vmem:[%s15579_s4 + $0x360] sm:$0x1] }
0x4f1f   :  { %12860 = vmatprep.subr.mxu0 %v10504_v28 }
0x4f20   :  { %12861 = vmatpush3.msra.mxu0 %v10504_v28 }
0x4f21   :  { %12862 = vmatprep.subr.mxu0 %v10503_v34 }
0x4f22   :  { %12863 = vmatpush3.msra.mxu0 %v10503_v34 }
0x4f23   :  { %12878 = vmatprep.subr.mxu0 %v13335_v1 }
0x4fdb   :  { %v12844_v61 = vpop.f32.mrf.mxu0 }
0x4fdc   :  { %v10349_v19 = vadd.f32 %v12844_v61, %v10061_v40 }
0x4fdd   :  { %v10339_v46 = vpop.f32.mrf.mxu0 }
0x4fde   :  { %v10356_v45 = vadd.f32 %v11567_v56, %v10349_v19  ;;  %v10348_v47 = vadd.f32 %v10339_v46, %v10060_v17 }
0x4fe0   :  { %v10355_v38 = vadd.f32 %v11567_v56, %v10348_v47  ;;  %v10358_v54 = vadd.f32 %v10356_v45, %v15154_v7 }
0x4fe2   :  { %v10364_v48 = vsel %vm3263_vm10, %v10358_v54, 0.0  ;;  %v10357_v52 = vadd.f32 %v10355_v38, %v15152_v22  ;;  %v10402_v22 = vld [vmem:[%s15579_s4 + $0x2f8] sm:$0xff] }
0x4fe3   :  { %10365 = vadd.xlane.f32.xlu0 %v10364_v48  ;;  %12845 = vmatprep.subr.mxu1 %v10402_v22 }
0x4fe4   :  { %v10361_v49 = vsel %vm394_vm3, %v10357_v52, 0.0  ;;  %12846 = vmatpush3.msra.mxu1 %v10402_v22  ;;  %v10635_v22 = vld [vmem:[%s15579_s4 + $0x340] sm:$0xff] }
0x4fe5   :  { %10362 = vadd.xlane.f32.xlu1 %v10361_v49  ;;  %12847 = vmatprep.subr.mxu1 %v10401_v0 }
0x4fe6   :  { %12848 = vmatpush3.msra.mxu1 %v10401_v0 }
0x4fe7   :  { %12849 = vmatprep.subr.mxu1 %v10400_v5 }
0x4fe8   :  { %12850 = vmatpush3.msra.mxu1 %v10400_v5 }
0x4fe9   :  { %12851 = vmatprep.subr.mxu1 %v10399_v8 }
0x4fea   :  { %12852 = vmatpush3.msra.mxu1 %v10399_v8 }
0x4feb   :  { %12867 = vmatprep.subr.mxu1 %v13335_v1 }
0x506c   :  { %v10366_v44 = vpop.xlane.xlu0 %10365 }
0x506d   :  { %v10368_v4 = vmul.f32 0.03125, %v10366_v44 }
0x506e   :  { %v10363_v63 = vpop.xlane.xlu1 %10362 }
0x506f   :  { %v10370_v53 = vsub.f32 %v10358_v54, %v10368_v4  ;;  %v10367_v55 = vmul.f32 0.03125, %v10363_v63 }
0x5071   :  { %v10369_v41 = vsub.f32 %v10357_v52, %v10367_v55  ;;  %v10372_v58 = vmul.f32 %v10370_v53, %v10370_v53 }
0x5073   :  { %v10376_v59 = vsel %vm3263_vm10, %v10372_v58, 0.0  ;;  %v10371_v50 = vmul.f32 %v10369_v41, %v10369_v41 }
0x5074   :  { %10377 = vadd.xlane.f32.xlu0 %v10376_v59  ;;  %v10638_v59 = vld [vmem:[%s15579_s4 + $0x358] sm:$0xff] }
0x5075   :  { %v10373_v7 = vsel %vm394_vm3, %v10371_v50, 0.0  ;;  %v10637_v50 = vld [vmem:[%s15579_s4 + $0x350] sm:$0xff] }
0x5076   :  { %10374 = vadd.xlane.f32.xlu1 %v10373_v7  ;;  %v10636_v7 = vld [vmem:[%s15579_s4 + $0x348] sm:$0xff] }
0x50fd   :  { %v10378_v11 = vpop.xlane.xlu0 %10377 }
0x50fe   :  { %v10380_v15 = vmul.f32 0.03125, %v10378_v11 }
0x50ff   :  { %v10375_v16 = vpop.xlane.xlu1 %10374 }
0x5100   :  { %v10382_v20 = vadd.f32 1e-05, %v10380_v15  ;;  %v10379_v21 = vmul.f32 0.03125, %v10375_v16 }
0x5102   :  { %13265 = vrsqrt.f32 %v10382_v20  ;;  %v10381_v9 = vadd.f32 1e-05, %v10379_v21  ;;  %v11578_v21 = vld [vmem:[%s15579_s4 + $0x330] ss:$0 sm:$0xff] }
0x5104   :  { %13267 = vrsqrt.f32 %v10381_v9 }
0x510f   :  { %v13266_v23 = vpop.eup %13265 }
0x5110   :  { %v10386_v29 = vmul.f32 %v13266_v23, %v10370_v53  ;;  %v11579_v23 = vld [vmem:[%s15579_s4 + $0x338] ss:$0 sm:$0xff] }
0x5111   :  { %v13268_v3 = vpop.eup %13267 }
0x5112   :  { %v10385_v51 = vmul.f32 %v13268_v3, %v10369_v41  ;;  %v10392_v2 = vmul.f32 %v11568_v24, %v10386_v29 }
0x5114   :  { %v10391_v57 = vmul.f32 %v11568_v24, %v10385_v51  ;;  %v10398_v31 = vadd.f32 %v11569_v27, %v10392_v2 }
0x5116   :  { %v10397_v6 = vadd.f32 %v11569_v27, %v10391_v57  ;;  %v10723_v57 = vld [vmem:[%s15579_s4 + $0x380] sm:$0xff] }
0x5118   :  { %12853 = vmatprep.mubr.msk.f32.mxu1 %vm394_vm3, %v10397_v6 }
0x5119   :  { %12854 = vmatmul.mubr.msk.f32.vlgmr.msra.gmra.mxu1 %vm394_vm3, %v10398_v31 }
0x511a   :  { %12875 = vmatprep.mubr.msk.f32.mxu1 %vm13341_vm6, %v13335_v1  ;;  %12868 = vmatpush3.msra.mxu1 %v10638_v59 }
0x511b   :  { %12869 = vmatprep.subr.mxu1 %v13335_v1 }
0x511c   :  { %12870 = vmatpush3.msra.mxu1 %v10637_v50 }
0x511d   :  { %12871 = vmatprep.subr.mxu1 %v13335_v1 }
0x511e   :  { %12872 = vmatpush3.msra.mxu1 %v10636_v7 }
0x511f   :  { %12873 = vmatprep.subr.mxu1 %v13335_v1 }
0x5120   :  { %12874 = vmatpush3.msra.mxu1 %v10635_v22 }
0x5121   :  { %12889 = vmatprep.subr.mxu1 %v13335_v1 }
0x51d9   :  { %v12855_v60 = vpop.f32.mrf.mxu1 }
0x51da   :  { %v10486_v14 = vadd.f32 %v12855_v60, %v11570_v26 }
0x51db   :  { %v10480_v25 = vpop.f32.mrf.mxu1 }
0x51dc   :  { %v11574_v35 = vmul.f32 -1.442695, %v10486_v14  ;;  %v10481_v36 = vadd.f32 %v11570_v26, %v10480_v25 }
0x51de   :  { %13269 = vpow2.f32 %v11574_v35  ;;  %v11573_v30 = vmul.f32 -1.442695, %v10481_v36 }
0x51e0   :  { %13271 = vpow2.f32 %v11573_v30  ;;  %v10909_v30 = vld [vmem:[%s15579_s4 + $0x3e0] sm:$0xff] }
0x51eb   :  { %v13270_v10 = vpop.eup %13269 }
0x51ec   :  { %v10496_v39 = vadd.f32 1.0, %v13270_v10  ;;  %v10908_v10 = vld [vmem:[%s15579_s4 + $0x3d8] sm:$0xff] }
0x51ed   :  { %v13272_v37 = vpop.eup %13271 }
0x51ee   :  { %v10495_v42 = vadd.f32 1.0, %v13272_v37  ;;  %13273 = vrcp.f32 %v10496_v39  ;;  %v10907_v39 = vld [vmem:[%s15579_s4 + $0x3d0] sm:$0xff]  ;;  %v10906_v37 = vld [vmem:[%s15579_s4 + $0x3c8] sm:$0xff] }
0x51f0   :  { %13275 = vrcp.f32 %v10495_v42  ;;  %v10724_v42 = vld [vmem:[%s15579_s4 + $0x388] sm:$0x1] }
0x51fb   :  { %v13274_v40 = vpop.eup %13273 }
0x51fc   :  { %v10502_v43 = vmul.f32 %v13274_v40, %v10486_v14 }
0x51fd   :  { %v13276_v33 = vpop.eup %13275 }
0x51fe   :  { %v10501_v17 = vmul.f32 %v13276_v33, %v10481_v36 }
0x5200   :  { %12864 = vmatprep.mubr.msk.f32.mxu0 %vm394_vm3, %v10501_v17 }
0x5201   :  { %12865 = vmatmul.mubr.msk.f32.vlgmr.msra.gmra.mxu0 %vm394_vm3, %v10502_v43 }
0x5202   :  { %12886 = vmatprep.mubr.msk.f32.mxu0 %vm13341_vm6, %v13335_v1  ;;  %12879 = vmatpush3.msra.mxu0 %v10723_v57 }
0x5203   :  { %12880 = vmatprep.subr.mxu0 %v13335_v1 }
0x52c1   :  { %v12866_v61 = vpop.f32.mrf.mxu0 }
0x52c2   :  { %v10590_v56 = vadd.f32 %v12866_v61, %v11575_v62 }
0x52c3   :  { %v10584_v19 = vpop.f32.mrf.mxu0 }
0x52c4   :  { %v10594_v46 = vadd.f32 %v10590_v56, %v10398_v31  ;;  %v10585_v45 = vadd.f32 %v11575_v62, %v10584_v19  ;;  %v10721_v31 = vld [vmem:[%s15579_s4 + $0x370] sm:$0xff]  ;;  %v11386_v56 = vld [vmem:[%s15579_s4 + $0x400] ss:$0 sm:$0xff] }
0x52c5   :  { %v15432_v19 = vadd.f32 %v11386_v56, %v14575_v18  ;;  %v10818_v18 = vld [vmem:[%s15579_s4 + $0x3b8] sm:$0xff] }
0x52c6   :  { %v10593_v47 = vadd.f32 %v10585_v45, %v10397_v6  ;;  %v10600_v38 = vsel %vm3263_vm10, %v10594_v46, 0.0  ;;  %v10722_v6 = vld [vmem:[%s15579_s4 + $0x378] sm:$0xff] }
0x52c7   :  { %10601 = vadd.xlane.f32.xlu1 %v10600_v38  ;;  %12881 = vmatpush3.msra.mxu0 %v10722_v6  ;;  %v10996_v6 = vld [vmem:[%s15579_s4 + $0x3f8] sm:$0xff] }
0x52c8   :  { %v10597_v54 = vsel %vm394_vm3, %v10593_v47, 0.0  ;;  %12882 = vmatprep.subr.mxu0 %v13335_v1 }
0x52c9   :  { %12883 = vmatpush3.msra.mxu0 %v10721_v31 }
0x52ca   :  { %12884 = vmatprep.subr.mxu0 %v13335_v1 }
0x52cb   :  { %10598 = vadd.xlane.f32.xlu1 %v10597_v54  ;;  %12885 = vmatpush3.msra.mxu0 %v10720_v12  ;;  %v10995_v12 = vld [vmem:[%s15579_s4 + $0x3f0] sm:$0xff] }
0x52cc   :  { %12900 = vmatprep.subr.mxu0 %v13335_v1 }
0x5350   :  { %v10602_v48 = vpop.xlane.xlu1 %10601 }
0x5351   :  { %v10604_v52 = vmul.f32 0.03125, %v10602_v48 }
0x5353   :  { %v10606_v49 = vsub.f32 %v10594_v46, %v10604_v52 }
0x5354   :  { %v10599_v44 = vpop.xlane.xlu1 %10598 }
0x5355   :  { %v10603_v4 = vmul.f32 0.03125, %v10599_v44  ;;  %v10608_v63 = vmul.f32 %v10606_v49, %v10606_v49  ;;  %v10817_v44 = vld [vmem:[%s15579_s4 + $0x3b0] sm:$0xff] }
0x5357   :  { %v10605_v53 = vsub.f32 %v10593_v47, %v10603_v4  ;;  %v10612_v55 = vsel %vm3263_vm10, %v10608_v63, 0.0  ;;  %v10816_v4 = vld [vmem:[%s15579_s4 + $0x3a8] sm:$0xff]  ;;  %v10815_v63 = vld [vmem:[%s15579_s4 + $0x3a0] sm:$0xff] }
0x5358   :  { %10613 = vadd.xlane.f32.xlu0 %v10612_v55 }
0x5359   :  { %v10607_v41 = vmul.f32 %v10605_v53, %v10605_v53 }
0x535b   :  { %v10609_v58 = vsel %vm394_vm3, %v10607_v41, 0.0 }
0x535c   :  { %10610 = vadd.xlane.f32.xlu0 %v10609_v58 }
0x53e1   :  { %v10614_v0 = vpop.xlane.xlu0 %10613 }
0x53e2   :  { %v10616_v5 = vmul.f32 0.03125, %v10614_v0 }
0x53e4   :  { %v10618_v8 = vadd.f32 1e-05, %v10616_v5 }
0x53e5   :  { %v10611_v11 = vpop.xlane.xlu0 %10610 }
0x53e6   :  { %13277 = vrsqrt.f32 %v10618_v8  ;;  %v10615_v15 = vmul.f32 0.03125, %v10611_v11 }
0x53e8   :  { %v10617_v16 = vadd.f32 1e-05, %v10615_v15 }
0x53ea   :  { %13279 = vrsqrt.f32 %v10617_v16 }
0x53f3   :  { %v13278_v20 = vpop.eup %13277 }
0x53f4   :  { %v10622_v9 = vmul.f32 %v13278_v20, %v10606_v49  ;;  %v5503_v49 = vsel %vm284_vm2, %v15432_v19, 0.0 }
0x53f6   :  { %v10628_v24 = vmul.f32 %v11578_v21, %v10622_v9 }
0x53f7   :  { %v13280_v29 = vpop.eup %13279 }
0x53f8   :  { %v10621_v3 = vmul.f32 %v13280_v29, %v10605_v53  ;;  %v10634_v51 = vadd.f32 %v11579_v23, %v10628_v24  ;;  %v11584_v53 = vld [vmem:[%s15579_s4 + $0x3e8] ss:$0 sm:$0xff] }
0x53fa   :  { %v10627_v2 = vmul.f32 %v11578_v21, %v10621_v3  ;;  %12876 = vmatmul.mubr.msk.f32.vlgmr.msra.gmra.mxu1 %vm394_vm3, %v10634_v51  ;;  %v10798_v3 = vld [vmem:[%s15579_s4 + $0x390] sm:$0x1] }
0x53fb   :  { %12897 = vmatprep.mubr.msk.f32.mxu1 %vm13341_vm6, %v13335_v1  ;;  %12890 = vmatpush3.msra.mxu1 %v10818_v18 }
0x53fc   :  { %v10633_v27 = vadd.f32 %v11579_v23, %v10627_v2  ;;  %12891 = vmatprep.subr.mxu1 %v13335_v1  ;;  %v10799_v2 = vld [vmem:[%s15579_s4 + $0x398] sm:$0x1] }
0x53fd   :  { %12892 = vmatpush3.msra.mxu1 %v10817_v44  ;;  %v5533_v44 = vld [vmem:[%s15579_s4 + $0x418] sm:$0xff] }
0x53fe   :  { %12893 = vmatprep.subr.mxu1 %v13335_v1 }
0x53ff   :  { %12894 = vmatpush3.msra.mxu1 %v10816_v4  ;;  %v5534_v4 = vld [vmem:[%s15579_s4 + $0x420] sm:$0xff] }
0x5400   :  { %12895 = vmatprep.subr.mxu1 %v13335_v1 }
0x5401   :  { %12896 = vmatpush3.msra.mxu1 %v10815_v63 }
0x5402   :  { %12911 = vmatprep.subr.mxu1 %v13335_v1 }
0x54ba   :  { %v10709_v28 = vpop.f32.mrf.mxu1 }
0x54bb   :  { %v10710_v34 = vadd.f32 %v10709_v28, %v10639_v32  ;;  %v5245_v28 = vld [vmem:[%s15579_s4 + $0x3c0] sm:$0x1] }
0x54bc   :  { %v12877_v26 = vpop.f32.mrf.mxu1 }
0x54bd   :  { %v11581_v60 = vmul.f32 -1.442695, %v10710_v34 }
0x54bf   :  { %13281 = vpow2.f32 %v11581_v60 }
0x54cc   :  { %v13282_v14 = vpop.eup %13281 }
0x54cd   :  { %v10716_v25 = vadd.f32 1.0, %v13282_v14 }
0x54cf   :  { %13283 = vrcp.f32 %v10716_v25 }
0x54dc   :  { %v13284_v35 = vpop.eup %13283 }
0x54dd   :  { %v10719_v36 = vmul.f32 %v13284_v35, %v10710_v34  ;;  %v5316_v34 = vadd.f32 %v14573_v13, %v5245_v28 }
0x54df   :  { %12887 = vmatmul.mubr.msk.f32.vlgmr.msra.gmra.mxu0 %vm394_vm3, %v10719_v36  ;;  %v5320_v26 = vsel %vm5319_vm11, %v5316_v34, -inf }
0x54e0   :  { %12901 = vmatpush3.msra.mxu0 %v10909_v30  ;;  %12908 = vmatprep.mubr.msk.f32.mxu0 %vm13341_vm6, %v13335_v1 }
0x54e1   :  { %12902 = vmatprep.subr.mxu0 %v13335_v1 }
0x54e2   :  { %12903 = vmatpush3.msra.mxu0 %v10908_v10 }
0x54e3   :  { %12904 = vmatprep.subr.mxu0 %v13335_v1 }
0x54e4   :  { %12905 = vmatpush3.msra.mxu0 %v10907_v39 }
0x54e5   :  { %12906 = vmatprep.subr.mxu0 %v13335_v1 }
0x54e6   :  { %12907 = vmatpush3.msra.mxu0 %v10906_v37 }
0x54e7   :  { %12909 = vmatmul.mubr.msk.f32.vlgmr.msra.gmra.mxu0 %vm394_vm3, %v10633_v27 }
0x559f   :  { %v10794_v40 = vpop.f32.mrf.mxu0 }
0x55a0   :  { %v10795_v33 = vadd.f32 %v10794_v40, %v10724_v42 }
0x55a1   :  { %v12888_v17 = vpop.f32.mrf.mxu0 }
0x55a2   :  { %v10800_v43 = vsel %vm3263_vm10, %v10795_v33, 0.0 }
0x55a3   :  { %10801 = vadd.xlane.f32.xlu1 %v10800_v43 }
0x55a7   :  { %v10984_v62 = vpop.f32.mrf.mxu0 }
0x55a8   :  { %v10985_v55 = vadd.f32 %v11584_v53, %v10984_v62 }
0x55a9   :  { %v12910_v61 = vpop.f32.mrf.mxu0 }
0x55aa   :  { %v11586_v41 = vmul.f32 -1.442695, %v10985_v55 }
0x55ac   :  { %13285 = vpow2.f32 %v11586_v41 }
0x55b4   :  { %5536 = vrot.lane.b32.xlu1 %v15432_v19, %s13339_s8 }
0x55b9   :  { %v13286_v8 = vpop.eup %13285 }
0x55ba   :  { %v10991_v15 = vadd.f32 1.0, %v13286_v8 }
0x562c   :  { %v10802_v46 = vpop.xlane.xlu1 %10801 }
0x562d   :  { %v10803_v45 = vmul.f32 0.03125, %v10802_v46 }
0x562f   :  { %v10804_v47 = vsub.f32 %v10795_v33, %v10803_v45 }
0x5630   :  { %v5537_v38 = vpop.permute.xlu1 %5536 }
0x5631   :  { %v5539_v54 = vsel %vm284_vm2, %v5537_v38, 0.0  ;;  %v10805_v48 = vmul.f32 %v10804_v47, %v10804_v47 }
0x5632   :  { %5540 = vadd.xlane.f32.xlu1 %v5539_v54 }
0x5633   :  { %v10806_v52 = vsel %vm3263_vm10, %v10805_v48, 0.0 }
0x5634   :  { %10807 = vadd.xlane.f32.xlu0 %v10806_v52 }
0x5636   :  { %5504 = vadd.xlane.f32.xlu1 %v5503_v49 }
0x56bb   :  { %v5541_v58 = vpop.xlane.xlu1 %5540 }
0x56bc   :  { %v5542_v59 = vmul.f32 0.125, %v5541_v58 }
0x56bd   :  { %v10808_v50 = vpop.xlane.xlu0 %10807 }
0x56be   :  { %v5543_v7 = vrot.slane %v5542_v59, 4  ;;  %v10809_v22 = vmul.f32 0.03125, %v10808_v50 }
0x56bf   :  { %v5505_v45 = vpop.xlane.xlu1 %5504 }
0x56c0   :  { %v5544_v0 = vadd.f32 %v5543_v7, %v5542_v59  ;;  %v10810_v5 = vadd.f32 1e-05, %v10809_v22  ;;  %v5507_v63 = vmul.f32 0.125, %v5505_v45 }
0x56c2   :  { %v5545_v11 = vrot.slane %v5544_v0, 2  ;;  %13287 = vrsqrt.f32 %v10810_v5  ;;  %v5508_v53 = vrot.slane %v5507_v63, 4 }
0x56c3   :  { %13289 = vrcp.f32 %v10991_v15 }
0x56c4   :  { %v5546_v16 = vadd.f32 %v5545_v11, %v5544_v0  ;;  %v5509_v41 = vadd.f32 %v5508_v53, %v5507_v63 }
0x56c6   :  { %v5547_v20 = vrot.slane %v5546_v16, 1  ;;  %v5510_v59 = vrot.slane %v5509_v41, 2 }
0x56c8   :  { %v5548_v21 = vadd.f32 %v5547_v20, %v5546_v16  ;;  %v5511_v7 = vadd.f32 %v5510_v59, %v5509_v41 }
0x56ca   :  { %v5549_v9 = vmul.f32 0.125, %v5548_v21  ;;  %v5512_v0 = vrot.slane %v5511_v7, 1 }
0x56cc   :  { %v15460_v23 = vsub.f32 %v15432_v19, %v5549_v9  ;;  %v5513_v8 = vadd.f32 %v5512_v0, %v5511_v7 }
0x56ce   :  { %v5551_v24 = vmul.f32 %v15460_v23, %v15460_v23  ;;  %v5514_v15 = vmul.f32 0.125, %v5513_v8  ;;  %v5501_v8 = vld [vmem:[%s15579_s4 + $0x408] sm:$0xff] }
0x56cf   :  { %v13288_v29 = vpop.eup %13287 }
0x56d0   :  { %v10812_v51 = vmul.f32 %v13288_v29, %v10804_v47  ;;  %5553 = vrot.lane.b32.xlu1 %v5551_v24, %s13339_s8  ;;  %v13290_v31 = vpop.eup %13289  ;;  %v15512_v21 = vsub.f32 %v15432_v19, %v5514_v15 }
0x56d1   :  { %v10994_v32 = vmul.f32 %v13290_v31, %v10985_v55 }
0x56d2   :  { %v10813_v27 = vmul.f32 %v10812_v51, %v10798_v3  ;;  %v5516_v3 = vmul.f32 %v15512_v21, %v15512_v21  ;;  %v10819_v51 = vld [vmem:[%s15579_s4 + $0x3c0] sm:$0x1] }
0x56d4   :  { %v10814_v57 = vadd.f32 %v10813_v27, %v10799_v2  ;;  %v5517_v27 = vsel %vm284_vm2, %v5516_v3, 0.0  ;;  %v11398_v3 = vld [vmem:[%s15578_s3 + $0x8] sm:$0xff] }
0x56d6   :  { %12898 = vmatmul.mubr.msk.f32.vlgmr.msra.gmra.mxu1 %vm394_vm3, %v10814_v57 }
0x56d7   :  { %12912 = vmatpush3.msra.mxu1 %v10996_v6  ;;  %12915 = vmatprep.mubr.msk.f32.mxu1 %vm13341_vm6, %v13335_v1 }
0x56d8   :  { %12913 = vmatprep.subr.mxu1 %v13335_v1  ;;  %v11587_v1 = vld [vmem:[%s15579_s4 + $0x400] ss:$0 sm:$0xff] }
0x56d9   :  { %12914 = vmatpush3.msra.mxu1 %v10995_v12  ;;  %v33_v12 = vld [vmem:[%s15578_s3] sm:$0xff] }
0x56da   :  { %12916 = vmatmul.mubr.msk.f32.vlgmr.msra.gmra.mxu1 %vm172_vm1, %v10994_v32 }
0x56f4   :  { %5321 = vmax.xlane.f32.xlu1 %v5320_v26 }
0x5742   :  { %v5554_v47 = vpop.permute.xlu1 %5553 }
0x5743   :  { %v5556_v52 = vsel %vm284_vm2, %v5554_v47, 0.0 }
0x577d   :  { %v5322_v38 = vpop.xlane.xlu1 %5321 }
0x577e   :  { %v5323_v54 = vsub.f32 %v5316_v34, %v5322_v38 }
0x5780   :  { %v5324_v48 = vmul.f32 1.442695, %v5323_v54 }
0x5782   :  { %13291 = vpow2.f32 %v5324_v48 }
0x578f   :  { %v13292_v49 = vpop.eup %13291 }
0x5790   :  { %v5326_v18 = vsel %vm5319_vm11, %v13292_v49, 0.0 }
0x5796   :  { %v15487_v60 = vpop.f32.mrf.mxu1 }
0x5797   :  { %v15521_v2 = vadd.f32 %v15487_v60, %v10819_v51 }
0x5798   :  { %v12899_v14 = vpop.f32.mrf.mxu1 }
0x5799   :  { %v10893_v19 = vsel %vm5319_vm11, %v15521_v2, -inf }
0x579a   :  { %v11071_v25 = vpop.f32.mrf.mxu1 }
0x579b   :  { %v11072_v35 = vadd.f32 %v11587_v1, %v11071_v25 }
0x579c   :  { %v12917_v36 = vpop.f32.mrf.mxu1 }
0x579d   :  { %11109 = vrot.lane.b32.xlu0 %v11072_v35, %s13339_s8  ;;  %v11077_v13 = vsel %vm284_vm2, %v11072_v35, 0.0 }
0x580f   :  { %v11110_v30 = vpop.permute.xlu0 %11109 }
0x5810   :  { %v11112_v10 = vsel %vm284_vm2, %v11110_v30, 0.0 }
0x5811   :  { %11113 = vadd.xlane.f32.xlu0 %v11112_v10 }
0x5815   :  { %11078 = vadd.xlane.f32.xlu0 %v11077_v13 }
0x589a   :  { %v11114_v39 = vpop.xlane.xlu0 %11113 }
0x589b   :  { %v11115_v37 = vmul.f32 0.125, %v11114_v39 }
0x589d   :  { %v11116_v42 = vrot.slane %v11115_v37, 4 }
0x589e   :  { %v11079_v55 = vpop.xlane.xlu0 %11078 }
0x589f   :  { %v11117_v40 = vadd.f32 %v11116_v42, %v11115_v37  ;;  %v11080_v58 = vmul.f32 0.125, %v11079_v55 }
0x58a1   :  { %v11118_v33 = vrot.slane %v11117_v40, 2  ;;  %v11081_v50 = vrot.slane %v11080_v58, 4 }
0x58a3   :  { %v11119_v17 = vadd.f32 %v11118_v33, %v11117_v40  ;;  %v11082_v22 = vadd.f32 %v11081_v50, %v11080_v58 }
0x58a5   :  { %v11120_v43 = vrot.slane %v11119_v17, 1  ;;  %v11083_v5 = vrot.slane %v11082_v22, 2 }
0x58a7   :  { %v11121_v62 = vadd.f32 %v11120_v43, %v11119_v17  ;;  %v11084_v11 = vadd.f32 %v11083_v5, %v11082_v22 }
0x58a9   :  { %v11122_v61 = vmul.f32 0.125, %v11121_v62  ;;  %v11085_v16 = vrot.slane %v11084_v11, 1 }
0x58ab   :  { %v15495_v56 = vsub.f32 %v11072_v35, %v11122_v61  ;;  %v11086_v20 = vadd.f32 %v11085_v16, %v11084_v11 }
0x58ad   :  { %v11124_v46 = vmul.f32 %v15495_v56, %v15495_v56  ;;  %v11087_v24 = vmul.f32 0.125, %v11086_v20  ;;  %v5502_v20 = vld [vmem:[%s15579_s4 + $0x410] sm:$0xff] }
0x58af   :  { %11126 = vrot.lane.b32.xlu0 %v11124_v46, %s13339_s8  ;;  %v15524_v57 = vsub.f32 %v11072_v35, %v11087_v24 }
0x58b1   :  { %v11089_v6 = vmul.f32 %v15524_v57, %v15524_v57 }
0x58b3   :  { %v11090_v31 = vsel %vm284_vm2, %v11089_v6, 0.0 }
0x58ce   :  { %5557 = vadd.xlane.f32.xlu0 %v5556_v52 }
0x58d2   :  { %5327 = vadd.xlane.f32.xlu0 %v5326_v18 }
0x58e8   :  { %5571 = vrot.lane.b32.xlu0 %v5533_v44, %s13348_s24 }
0x58ec   :  { %11144 = vrot.lane.b32.xlu0 %v5533_v44, %s13348_s24 }
0x58f0   :  { %11149 = vrot.lane.b32.xlu0 %v5534_v4, %s13348_s24 }
0x5921   :  { %v11127_v9 = vpop.permute.xlu0 %11126 }
0x5922   :  { %v11129_v29 = vsel %vm284_vm2, %v11127_v9, 0.0 }
0x5923   :  { %11130 = vadd.xlane.f32.xlu1 %v11129_v29 }
0x5927   :  { %5518 = vadd.xlane.f32.xlu1 %v5517_v27 }
0x592b   :  { %10894 = vmax.xlane.f32.xlu1 %v10893_v19 }
0x592f   :  { %11091 = vadd.xlane.f32.xlu1 %v11090_v31 }
0x5940   :  { %5576 = vrot.lane.b32.xlu1 %v5534_v4, %s13348_s24 }
0x5944   :  { %5584 = vrot.lane.b32.xlu1 %v33_v12, %s13348_s24 }
0x5957   :  { %v5558_v32 = vpop.xlane.xlu0 %5557 }
0x5958   :  { %v5559_v60 = vmul.f32 0.125, %v5558_v32 }
0x595a   :  { %v5560_v14 = vrot.slane %v5559_v60, 4 }
0x595b   :  { %v5328_v28 = vpop.xlane.xlu0 %5327 }
0x595c   :  { %13293 = vrcp.f32 %v5328_v28  ;;  %v5561_v1 = vadd.f32 %v5560_v14, %v5559_v60 }
0x595e   :  { %v5562_v25 = vrot.slane %v5561_v1, 2 }
0x595f   :  { %v5572_v46 = vpop.permute.xlu0 %5571 }
0x5960   :  { %v5563_v35 = vadd.f32 %v5562_v25, %v5561_v1 }
0x5962   :  { %v5564_v36 = vrot.slane %v5563_v35, 1 }
0x5964   :  { %v5565_v30 = vadd.f32 %v5564_v36, %v5563_v35  ;;  %v11145_v36 = vpop.permute.xlu0 %11144 }
0x5966   :  { %v5566_v10 = vmul.f32 0.125, %v5565_v30 }
0x5968   :  { %v5567_v13 = vadd.f32 1e-05, %v5566_v10  ;;  %v11150_v10 = vpop.permute.xlu0 %11149 }
0x5969   :  { %v13294_v34 = vpop.eup %13293 }
0x596a   :  { %v5330_v26 = vmul.f32 %v13294_v34, %v13292_v49  ;;  %13295 = vrsqrt.f32 %v5567_v13 }
0x596c   :  { %5331 = vst.msk [vmem:[#allocation2] sm:$0x1] %vm5319_vm11, %v5330_v26 }
0x5977   :  { %v13296_v33 = vpop.eup %13295 }
0x5978   :  { %v5569_v62 = vmul.f32 %v13296_v33, %v15460_v23 }
0x597a   :  { %v5574_v54 = vmul.f32 %v5572_v46, %v5569_v62 }
0x59ac   :  { %v11131_v39 = vpop.xlane.xlu1 %11130 }
0x59ad   :  { %v11132_v12 = vmul.f32 0.125, %v11131_v39 }
0x59af   :  { %v11133_v28 = vrot.slane %v11132_v12, 4 }
0x59b0   :  { %v5519_v37 = vpop.xlane.xlu1 %5518 }
0x59b1   :  { %v5520_v42 = vmul.f32 0.125, %v5519_v37  ;;  %v11134_v34 = vadd.f32 %v11133_v28, %v11132_v12 }
0x59b3   :  { %v5521_v40 = vrot.slane %v5520_v42, 4  ;;  %v11135_v26 = vrot.slane %v11134_v34, 2 }
0x59b4   :  { %v10895_v17 = vpop.xlane.xlu1 %10894 }
0x59b5   :  { %v5522_v43 = vadd.f32 %v5521_v40, %v5520_v42  ;;  %v10896_v19 = vsub.f32 %v15521_v2, %v10895_v17  ;;  %v11136_v60 = vadd.f32 %v11135_v26, %v11134_v34 }
0x59b7   :  { %v5523_v61 = vrot.slane %v5522_v43, 2  ;;  %v10897_v6 = vmul.f32 1.442695, %v10896_v19 }
0x59b8   :  { %v11092_v45 = vpop.xlane.xlu1 %11091 }
0x59b9   :  { %v5524_v47 = vadd.f32 %v5523_v61, %v5522_v43  ;;  %v11093_v38 = vmul.f32 0.125, %v11092_v45 }
0x59bb   :  { %v5525_v48 = vrot.slane %v5524_v47, 1  ;;  %v11094_v52 = vrot.slane %v11093_v38, 4 }
0x59bc   :  { %v5577_v49 = vpop.permute.xlu1 %5576 }
0x59bd   :  { %v5526_v18 = vadd.f32 %v5525_v48, %v5524_v47  ;;  %v11095_v44 = vadd.f32 %v11094_v52, %v11093_v38  ;;  %v5579_v4 = vadd.f32 %v5577_v49, %v5574_v54 }
0x59bf   :  { %v5527_v63 = vmul.f32 0.125, %v5526_v18  ;;  %v11096_v53 = vrot.slane %v11095_v44, 2  ;;  %v5580_v55 = vmul.f32 0.5, %v5579_v4 }
0x59c0   :  { %v5585_v0 = vpop.permute.xlu1 %5584 }
0x59c1   :  { %v5528_v41 = vadd.f32 1e-05, %v5527_v63  ;;  %v11097_v58 = vadd.f32 %v11096_v53, %v11095_v44  ;;  %v5581_v59 = vmul.f32 1.442695, %v5580_v55 }
0x59c3   :  { %13297 = vrsqrt.f32 %v5528_v41  ;;  %v11098_v23 = vrot.slane %v11097_v58, 1 }
0x59c4   :  { %13299 = vpow2.f32 %v5581_v59 }
0x59c5   :  { %v11099_v50 = vadd.f32 %v11098_v23, %v11097_v58 }
0x59c7   :  { %v11100_v7 = vmul.f32 0.125, %v11099_v50 }
0x59c9   :  { %v11101_v22 = vadd.f32 1e-05, %v11100_v7 }
0x59cb   :  { %13301 = vrsqrt.f32 %v11101_v22 }
0x59cc   :  { %13303 = vpow2.f32 %v10897_v6 }
0x59d0   :  { %v13298_v5 = vpop.eup %13297 }
0x59d1   :  { %v13300_v11 = vpop.eup %13299  ;;  %v5530_v15 = vmul.f32 %v13298_v5, %v15512_v21 }
0x59d2   :  { %v5587_v16 = vmul.f32 %v13300_v11, %v5585_v0 }
0x59d3   :  { %v5531_v9 = vmul.f32 %v5530_v15, %v5501_v8 }
0x59d4   :  { %5589 = vrot.lane.b32.xlu0 %v5587_v16, %s13339_s8 }
0x59d5   :  { %v5532_v24 = vadd.f32 %v5531_v9, %v5502_v20 }
0x59d7   :  { %5594 = vrot.lane.b32.xlu1 %v5532_v24, %s13348_s24 }
0x59d8   :  { %v13302_v29 = vpop.eup %13301  ;;  %5598 = vrot.lane.b32.xlu0 %v5579_v4, %s13348_s24 }
0x59d9   :  { %v11103_v21 = vmul.f32 %v13302_v29, %v15524_v57  ;;  %v13304_v31 = vpop.eup %13303  ;;  %v11137_v57 = vrot.slane %v11136_v60, 1 }
0x59da   :  { %v10899_v32 = vsel %vm5319_vm11, %v13304_v31, 0.0 }
0x59db   :  { %v11104_v51 = vmul.f32 %v11103_v21, %v5501_v8  ;;  %v11138_v14 = vadd.f32 %v11137_v57, %v11136_v60 }
0x59dc   :  { %11157 = vrot.lane.b32.xlu0 %v11398_v3, %s13348_s24 }
0x59dd   :  { %v11105_v27 = vadd.f32 %v11104_v51, %v5502_v20  ;;  %v11139_v1 = vmul.f32 0.125, %v11138_v14 }
0x59df   :  { %v11140_v25 = vadd.f32 1e-05, %v11139_v1 }
0x59e0   :  { %11167 = vrot.lane.b32.xlu0 %v11105_v27, %s13348_s24 }
0x59e1   :  { %13305 = vrsqrt.f32 %v11140_v25 }
0x59ee   :  { %v13306_v35 = vpop.eup %13305 }
0x59ef   :  { %v11142_v2 = vmul.f32 %v13306_v35, %v15495_v56 }
0x59f1   :  { %v11147_v30 = vmul.f32 %v11145_v36, %v11142_v2 }
0x59f3   :  { %v11152_v13 = vadd.f32 %v11150_v10, %v11147_v30 }
0x59f5   :  { %v11153_v39 = vmul.f32 0.5, %v11152_v13 }
0x59f7   :  { %v11154_v37 = vmul.f32 1.442695, %v11153_v39 }
0x59f9   :  { %13307 = vpow2.f32 %v11154_v37 }
0x59fb   :  { %10900 = vadd.xlane.f32.xlu1 %v10899_v32 }
0x5a06   :  { %v13308_v56 = vpop.eup %13307 }
0x5a46   :  { %v5590_v42 = vpop.permute.xlu0 %5589 }
0x5a47   :  { %v5592_v40 = vadd.f32 %v5590_v42, %v5532_v24 }
0x5a49   :  { %v5595_v33 = vpop.permute.xlu1 %5594 }
0x5a4a   :  { %v5599_v17 = vpop.permute.xlu0 %5598  ;;  %v5601_v43 = vsel %vm284_vm2, %v5592_v40, %v5595_v33 }
0x5a4b   :  { %v5602_v62 = vsel %vm172_vm1, %v5601_v43, %v5599_v17 }
0x5a4c   :  { %5604 = vst.msk [vmem:[%s15580_s5] sm:$0xff] %vm5603_vm12, %v5602_v62 }
0x5a4e   :  { %v11158_v61 = vpop.permute.xlu0 %11157 }
0x5a4f   :  { %v11160_v46 = vmul.f32 %v13308_v56, %v11158_v61 }
0x5a51   :  { %11162 = vrot.lane.b32.xlu0 %v11160_v46, %s13339_s8 }
0x5a55   :  { %11171 = vrot.lane.b32.xlu0 %v11152_v13, %s13348_s24 }
0x5a84   :  { %v10901_v45 = vpop.xlane.xlu1 %10900 }
0x5a85   :  { %13309 = vrcp.f32 %v10901_v45 }
0x5a92   :  { %v13310_v47 = vpop.eup %13309 }
0x5a93   :  { %v10903_v38 = vmul.f32 %v13310_v47, %v13304_v31 }
0x5a95   :  { %10905 = vst.msk [vmem:[#allocation2 + $0x1] sm:$0x1] %vm5319_vm11, %v10903_v38 }
0x5a96   :  { %13324 = shalt.err (!%p13321_p4)
}
0x5a97   :  { %s13350_s2 = smov 16   ;;  %s13351_s8 = smov 1   ;;  %v11168_v54 = vpop.permute.xlu0 %11167 }
0x5a98   :  { %11191 = dma.vmem_to_hbm [thread:$0]  %s11186_s26, 32, %s15581_s6, [#allocation3], %s13350_s2, %s13350_s2, %s13351_s8  }
0x5ac3   :  { %v11163_v48 = vpop.permute.xlu0 %11162 }
0x5ac4   :  { %v11165_v52 = vadd.f32 %v11163_v48, %v11105_v27 }
0x5ac6   :  { %v11174_v49 = vsel %vm284_vm2, %v11165_v52, %v11168_v54 }
0x5ac7   :  { %v11172_v18 = vpop.permute.xlu0 %11171 }
0x5ac8   :  { %v11175_v44 = vsel %vm172_vm1, %v11174_v49, %v11172_v18 }
0x5ac9   :  { %11589 = vst.msk [vmem:[%s15580_s5 + $0x8] sm:$0xff] %vm5603_vm12, %v11175_v44 }
0x5aca   :  { %13333 = dma.done.wait [#allocation3], 32  }
0x5acb   :  { %13334 = vsyncadd [#allocation3], 4294967264 }
0x5acc   :  { %11197 = vsyncpa [#allocation3], 1 }

</bundles_post_ra>
